<compile_context>
chip_gen: v6e
topology: v6e:2x2x1
jax: 0.10.0
libtpu: 0.0.40
codegen_flags: <defaults>
</compile_context>

<pallas_src>
import functools

import jax
import jax.numpy as jnp
from jax.experimental import pallas as pl
from jax.experimental.pallas import tpu as pltpu


# ---------------------------------------------------------------------------
# Fused conv (im2col matmul) + maxpool(2x2) + bias + ReLU kernel.
# The 4 patch inputs correspond to the 4 positions of each 2x2 pooling window,
# so pool == elementwise max of the 4 matmul results (bias/ReLU commute with
# max, so they are applied once, after the max).
# ---------------------------------------------------------------------------
def _conv_pool_kernel(p00_ref, p01_ref, p10_ref, p11_ref, w_ref, b_ref, o_ref):
    # p*_ref: (tm, F) f32    w_ref: (F, O) bf16    b_ref: (1, O) f32
    w = w_ref[...]

    def mm(p_ref):
        return jnp.dot(p_ref[...].astype(jnp.bfloat16), w,
                       preferred_element_type=jnp.float32)

    y = jnp.maximum(jnp.maximum(mm(p00_ref), mm(p01_ref)),
                    jnp.maximum(mm(p10_ref), mm(p11_ref)))
    o_ref[...] = jnp.maximum(y + b_ref[...], 0.0).astype(o_ref.dtype)


def conv2d_pool_relu(x_nhwc, w_mat, b2, *, K=3):
    """VALID KxK conv + bias + ReLU + 2x2 maxpool, fused in one Pallas call.

    `w_mat` is the pre-reshaped (K*K*Cin, Cout) bf16 weight, rows ordered
    (kh, kw, cin). The im2col glue is pure strided slicing (XLA); the output
    rows are ordered (n, hp, wp) so the result reshapes directly to NHWC.
    """
    N, H, W, C = x_nhwc.shape
    F, O = w_mat.shape
    Ho, Wo = H - K + 1, W - K + 1
    Hp, Wp = Ho // 2, Wo // 2
    M = N * Hp * Wp

    def patches_for(dh, dw):
        cols = []
        for kh in range(K):
            for kw in range(K):
                h0, w0 = dh + kh, dw + kw
                cols.append(
                    x_nhwc[:, h0:h0 + 2 * (Hp - 1) + 1:2,
                           w0:w0 + 2 * (Wp - 1) + 1:2, :])
        return jnp.concatenate(cols, axis=-1).reshape(M, F)

    p00 = patches_for(0, 0)
    p01 = patches_for(0, 1)
    p10 = patches_for(1, 0)
    p11 = patches_for(1, 1)

    # Row-tiled grid when the batch grows (keeps VMEM bounded on v7x's 64 MiB);
    # grid of 1 (fully resident) at small M.
    tm = 1024 if (M % 1024 == 0) else M
    grid = (M // tm,)

    out = pl.pallas_call(
        _conv_pool_kernel,
        out_shape=jax.ShapeDtypeStruct((M, O), jnp.float32),
        grid_spec=pltpu.PrefetchScalarGridSpec(
            num_scalar_prefetch=0,
            grid=grid,
            in_specs=[pl.BlockSpec((tm, F), lambda i: (i, 0)),
                      pl.BlockSpec((tm, F), lambda i: (i, 0)),
                      pl.BlockSpec((tm, F), lambda i: (i, 0)),
                      pl.BlockSpec((tm, F), lambda i: (i, 0)),
                      pl.BlockSpec((F, O), lambda i: (0, 0)),
                      pl.BlockSpec((1, O), lambda i: (0, 0))],
            out_specs=pl.BlockSpec((tm, O), lambda i: (i, 0)),
        ),
        compiler_params=pltpu.CompilerParams(
            dimension_semantics=("parallel",)),
    )(p00, p01, p10, p11, w_mat, b2)
    return out.reshape(N, Hp, Wp, O)


# ---------------------------------------------------------------------------
# fc1: y = relu(x @ Wt + b), Wt pre-transposed to (K, O) bf16.
# Grid = (output tiles [parallel], K tiles [arbitrary/reduction]); the output
# tile's block index ignores k, so it stays resident and acts as the f32
# accumulator (no scratch buffer needed).
# ---------------------------------------------------------------------------
def _fc_tiled_kernel(x_ref, w_ref, b_ref, o_ref, *, relu):
    k = pl.program_id(1)

    @pl.when(k == 0)
    def _():
        o_ref[...] = jnp.zeros_like(o_ref)

    o_ref[...] += jnp.dot(x_ref[...].astype(jnp.bfloat16), w_ref[...],
                          preferred_element_type=jnp.float32)

    @pl.when(k == pl.num_programs(1) - 1)
    def _():
        y = o_ref[...] + b_ref[...]
        if relu:
            y = jnp.maximum(y, 0.0)
        o_ref[...] = y.astype(o_ref.dtype)


def linear_tiled(x, w_t, b2, *, relu, tk=2304, tn=512):
    """nn.Linear with pre-transposed bf16 weight w_t of shape (K, O)."""
    N, K = x.shape
    O = w_t.shape[1]
    if K % tk != 0:
        tk = K
    if O % tn != 0:
        tn = O
    grid = (O // tn, K // tk)   # reduction axis last

    return pl.pallas_call(
        functools.partial(_fc_tiled_kernel, relu=relu),
        out_shape=jax.ShapeDtypeStruct((N, O), jnp.float32),
        grid_spec=pltpu.PrefetchScalarGridSpec(
            num_scalar_prefetch=0,
            grid=grid,
            in_specs=[
                pl.BlockSpec((N, tk), lambda j, k: (0, k)),
                pl.BlockSpec((tk, tn), lambda j, k: (k, j)),
                pl.BlockSpec((1, tn), lambda j, k: (0, j)),
            ],
            out_specs=pl.BlockSpec((N, tn), lambda j, k: (0, j)),
        ),
        compiler_params=pltpu.CompilerParams(
            dimension_semantics=("parallel", "arbitrary")),
    )(x, w_t, b2)


# ---------------------------------------------------------------------------
# Fused head: fc2 -> ReLU -> fc3 -> ReLU -> fc4; all (bf16) weights and the
# intermediates stay VMEM-resident in a single grid-less Pallas call.
# (Dropout layers are identity at inference.)
# ---------------------------------------------------------------------------
def _mlp_head_kernel(x_ref, w2_ref, b2_ref, w3_ref, b3_ref, w4_ref, b4_ref,
                     o_ref):
    h = jnp.dot(x_ref[...].astype(jnp.bfloat16), w2_ref[...],
                preferred_element_type=jnp.float32)
    h = jnp.maximum(h + b2_ref[...], 0.0)
    h = jnp.dot(h.astype(jnp.bfloat16), w3_ref[...],
                preferred_element_type=jnp.float32)
    h = jnp.maximum(h + b3_ref[...], 0.0)
    h = jnp.dot(h.astype(jnp.bfloat16), w4_ref[...],
                preferred_element_type=jnp.float32)
    o_ref[...] = (h + b4_ref[...]).astype(o_ref.dtype)


def mlp_head(x, w2t, b2, w3t, b3, w4t, b4):
    N = x.shape[0]
    O = w4t.shape[1]
    return pl.pallas_call(
        _mlp_head_kernel,
        out_shape=jax.ShapeDtypeStruct((N, O), jnp.float32),
    )(x, w2t, b2, w3t, b3, w4t, b4)


# ---------------------------------------------------------------------------
# Parameters: raw (PyTorch layout) + one-time outside-jit layout/dtype prep
# ---------------------------------------------------------------------------
def init_params(key):
    ks = jax.random.split(key, 12)

    def nrm(k, shape, scale):
        return jax.random.normal(k, shape, dtype=jnp.float32) * scale

    return {
        "conv1_w": nrm(ks[0], (32, 3, 3, 3), 0.10),        # (O, I, KH, KW)
        "conv1_b": nrm(ks[1], (32,), 0.10),
        "conv2_w": nrm(ks[2], (128, 32, 3, 3), 0.05),
        "conv2_b": nrm(ks[3], (128,), 0.05),
        "fc1_w":   nrm(ks[4], (1024, 128 * 6 * 6), 0.02),  # (out, in), CHW cols
        "fc1_b":   nrm(ks[5], (1024,), 0.02),
        "fc2_w":   nrm(ks[6], (256, 1024), 0.02),
        "fc2_b":   nrm(ks[7], (256,), 0.02),
        "fc3_w":   nrm(ks[8], (64, 256), 0.05),
        "fc3_b":   nrm(ks[9], (64,), 0.05),
        "fc4_w":   nrm(ks[10], (2, 64), 0.10),
        "fc4_b":   nrm(ks[11], (2,), 0.10),
    }


def prepare_params(p):
    """One-time layout/dtype prep OUTSIDE jit.

    Matmul weights -> bf16 (halves the dominant HBM weight stream; MXU-native
    on v5e/v6e/v7x), biases stay f32 as (1, O). fc weights pre-transposed to
    (K, O); fc1 columns permuted CHW -> HWC so the NHWC conv output flattens
    directly while keeping torch.flatten(x, 1) semantics.
    """
    bf16 = jnp.bfloat16

    def conv_mat(w):  # (O, I, KH, KW) -> (KH*KW*I, O), rows in (kh, kw, cin) order
        return jnp.transpose(w, (2, 3, 1, 0)).reshape(-1, w.shape[0]).astype(bf16)

    fc1_w = p["fc1_w"].reshape(1024, 128, 6, 6)
    fc1_w = jnp.transpose(fc1_w, (0, 2, 3, 1)).reshape(1024, 128 * 6 * 6)  # HWC cols

    prepared = {
        "conv1_wm": conv_mat(p["conv1_w"]),                    # (27, 32)   bf16
        "conv1_b2": p["conv1_b"].reshape(1, -1),
        "conv2_wm": conv_mat(p["conv2_w"]),                    # (288, 128) bf16
        "conv2_b2": p["conv2_b"].reshape(1, -1),
        "fc1_wt":   jnp.transpose(fc1_w).astype(bf16),         # (4608, 1024)
        "fc1_b2":   p["fc1_b"].reshape(1, -1),
        "fc2_wt":   jnp.transpose(p["fc2_w"]).astype(bf16),    # (1024, 256)
        "fc2_b2":   p["fc2_b"].reshape(1, -1),
        "fc3_wt":   jnp.transpose(p["fc3_w"]).astype(bf16),    # (256, 64)
        "fc3_b2":   p["fc3_b"].reshape(1, -1),
        "fc4_wt":   jnp.transpose(p["fc4_w"]).astype(bf16),    # (64, 2)
        "fc4_b2":   p["fc4_b"].reshape(1, -1),
    }
    # Materialize once so the transposes/casts don't re-run per forward call.
    return jax.tree_util.tree_map(jnp.asarray, prepared)


# ---------------------------------------------------------------------------
# Forward pass (matches Net.forward; dropout = identity at inference)
# ---------------------------------------------------------------------------
@jax.jit
def net_forward(params, x_nchw):
    # x_nchw: (N, 3, 30, 30) float32 (PyTorch conv input layout)
    x = jnp.transpose(x_nchw, (0, 2, 3, 1))                          # NHWC
    x = conv2d_pool_relu(x, params["conv1_wm"], params["conv1_b2"])  # (N,14,14,32)
    x = conv2d_pool_relu(x, params["conv2_wm"], params["conv2_b2"])  # (N, 6, 6,128)
    # Direct HWC flatten; fc1 weight columns were pre-permuted to match
    # torch.flatten(x, 1) (CHW) semantics exactly.
    x = x.reshape(x.shape[0], -1)                                    # (N, 4608)
    x = linear_tiled(x, params["fc1_wt"], params["fc1_b2"],
                     relu=True, tk=2304, tn=512)                     # (N, 1024)
    # drop (p=0.5): identity in eval mode
    x = mlp_head(x,
                 params["fc2_wt"], params["fc2_b2"],
                 params["fc3_wt"], params["fc3_b2"],
                 params["fc4_wt"], params["fc4_b2"])                 # (N, 2)
    # drop2 (p=0.25) sits before fc4 and is identity in eval mode
    return x


if __name__ == "__main__":
    key = jax.random.PRNGKey(0)
    pkey, xkey = jax.random.split(key)
    raw_params = init_params(pkey)
    params = prepare_params(raw_params)
    # Spatial size 30 -> conv(3)->28 -> pool->14 -> conv(3)->12 -> pool->6,
    # matching fc1's expected 128 * 6 * 6 input features.
    x = jax.random.normal(xkey, (2, 3, 30, 30), dtype=jnp.float32)
    out = net_forward(params, x)
    out = jax.block_until_ready(out)
    assert out.shape == (2, 2), out.shape
    assert out.dtype == jnp.float32
    assert bool(jnp.all(jnp.isfinite(out)))
    print("KERNEL_OK")
</pallas_src>

<mosaic_0001>
module attributes {stable_mosaic.version = 11 : i64} {
  func.func @_conv_pool_kernel(%arg0: i32, %arg1: memref<392x27xf32, #tpu.memory_space<vmem>>, %arg2: memref<392x27xf32, #tpu.memory_space<vmem>>, %arg3: memref<392x27xf32, #tpu.memory_space<vmem>>, %arg4: memref<392x27xf32, #tpu.memory_space<vmem>>, %arg5: memref<27x32xbf16, #tpu.memory_space<vmem>>, %arg6: memref<1x32xf32, #tpu.memory_space<vmem>>, %arg7: memref<392x32xf32, #tpu.memory_space<vmem>>) attributes {dimension_semantics = [#tpu.dimension_semantics<parallel>], iteration_bounds = array<i64: 1>, scalar_prefetch = 0 : i64, scratch_operands = 0 : i64, tpu.core_type = #tpu.core_type<tc>, window_params = [{transform_indices = @transform_0, window_bounds = array<i64: 392, 27>}, {transform_indices = @transform_1, window_bounds = array<i64: 392, 27>}, {transform_indices = @transform_2, window_bounds = array<i64: 392, 27>}, {transform_indices = @transform_3, window_bounds = array<i64: 392, 27>}, {pipeline_mode = #tpu.pipeline_mode<synchronous>, transform_indices = @transform_4, window_bounds = array<i64: 27, 32>}, {pipeline_mode = #tpu.pipeline_mode<synchronous>, transform_indices = @transform_5, window_bounds = array<i64: 1, 32>}, {transform_indices = @transform_6, window_bounds = array<i64: 392, 32>}]} {
    %c0 = arith.constant 0 : index
    %c0_0 = arith.constant 0 : index
    %0 = vector.load %arg5[%c0, %c0_0] : memref<27x32xbf16, #tpu.memory_space<vmem>>, vector<27x32xbf16>
    %c0_1 = arith.constant 0 : index
    %c0_2 = arith.constant 0 : index
    %1 = vector.load %arg1[%c0_1, %c0_2] : memref<392x27xf32, #tpu.memory_space<vmem>>, vector<392x27xf32>
    %2 = arith.truncf %1 : vector<392x27xf32> to vector<392x27xbf16>
    %cst = arith.constant dense<0.000000e+00> : vector<392x32xf32>
    %3 = tpu.matmul %2, %0, %cst {dimension_numbers = #tpu.dot_dimension_numbers<[1], [0], [0], [1], [0, 0, 1, 1], [], []>} : vector<392x27xbf16>, vector<27x32xbf16>, vector<392x32xf32> -> vector<392x32xf32>
    %c0_3 = arith.constant 0 : index
    %c0_4 = arith.constant 0 : index
    %4 = vector.load %arg2[%c0_3, %c0_4] : memref<392x27xf32, #tpu.memory_space<vmem>>, vector<392x27xf32>
    %5 = arith.truncf %4 : vector<392x27xf32> to vector<392x27xbf16>
    %cst_5 = arith.constant dense<0.000000e+00> : vector<392x32xf32>
    %6 = tpu.matmul %5, %0, %cst_5 {dimension_numbers = #tpu.dot_dimension_numbers<[1], [0], [0], [1], [0, 0, 1, 1], [], []>} : vector<392x27xbf16>, vector<27x32xbf16>, vector<392x32xf32> -> vector<392x32xf32>
    %7 = arith.maximumf %3, %6 : vector<392x32xf32>
    %c0_6 = arith.constant 0 : index
    %c0_7 = arith.constant 0 : index
    %8 = vector.load %arg3[%c0_6, %c0_7] : memref<392x27xf32, #tpu.memory_space<vmem>>, vector<392x27xf32>
    %9 = arith.truncf %8 : vector<392x27xf32> to vector<392x27xbf16>
    %cst_8 = arith.constant dense<0.000000e+00> : vector<392x32xf32>
    %10 = tpu.matmul %9, %0, %cst_8 {dimension_numbers = #tpu.dot_dimension_numbers<[1], [0], [0], [1], [0, 0, 1, 1], [], []>} : vector<392x27xbf16>, vector<27x32xbf16>, vector<392x32xf32> -> vector<392x32xf32>
    %c0_9 = arith.constant 0 : index
    %c0_10 = arith.constant 0 : index
    %11 = vector.load %arg4[%c0_9, %c0_10] : memref<392x27xf32, #tpu.memory_space<vmem>>, vector<392x27xf32>
    %12 = arith.truncf %11 : vector<392x27xf32> to vector<392x27xbf16>
    %cst_11 = arith.constant dense<0.000000e+00> : vector<392x32xf32>
    %13 = tpu.matmul %12, %0, %cst_11 {dimension_numbers = #tpu.dot_dimension_numbers<[1], [0], [0], [1], [0, 0, 1, 1], [], []>} : vector<392x27xbf16>, vector<27x32xbf16>, vector<392x32xf32> -> vector<392x32xf32>
    %14 = arith.maximumf %10, %13 : vector<392x32xf32>
    %15 = arith.maximumf %7, %14 : vector<392x32xf32>
    %c0_12 = arith.constant 0 : index
    %c0_13 = arith.constant 0 : index
    %16 = vector.load %arg6[%c0_12, %c0_13] : memref<1x32xf32, #tpu.memory_space<vmem>>, vector<1x32xf32>
    %17 = vector.broadcast %16 : vector<1x32xf32> to vector<392x32xf32>
    %18 = arith.addf %15, %17 : vector<392x32xf32>
    %cst_14 = arith.constant 0.000000e+00 : f32
    %19 = vector.broadcast %cst_14 : f32 to vector<392x32xf32>
    %20 = arith.maximumf %18, %19 : vector<392x32xf32>
    %c0_15 = arith.constant 0 : index
    %c0_16 = arith.constant 0 : index
    %21 = vector.load %arg7[%c0_15, %c0_16] : memref<392x32xf32, #tpu.memory_space<vmem>>, vector<392x32xf32>
    tpu.vector_store %arg7[%c0_15, %c0_16], %20 {strides = array<i32>} : memref<392x32xf32, #tpu.memory_space<vmem>>, vector<392x32xf32>,
    return
  }
  func.func @transform_0(%arg0: i32) -> (i32, i32) {
    %c0_i32 = arith.constant 0 : i32
    %c0_i32_0 = arith.constant 0 : i32
    return %arg0, %c0_i32 : i32, i32
  }
  func.func @transform_1(%arg0: i32) -> (i32, i32) {
    %c0_i32 = arith.constant 0 : i32
    %c0_i32_0 = arith.constant 0 : i32
    return %arg0, %c0_i32 : i32, i32
  }
  func.func @transform_2(%arg0: i32) -> (i32, i32) {
    %c0_i32 = arith.constant 0 : i32
    %c0_i32_0 = arith.constant 0 : i32
    return %arg0, %c0_i32 : i32, i32
  }
  func.func @transform_3(%arg0: i32) -> (i32, i32) {
    %c0_i32 = arith.constant 0 : i32
    %c0_i32_0 = arith.constant 0 : i32
    return %arg0, %c0_i32 : i32, i32
  }
  func.func @transform_4(%arg0: i32) -> (i32, i32) {
    %c0_i32 = arith.constant 0 : i32
    %c0_i32_0 = arith.constant 0 : i32
    %c0_i32_1 = arith.constant 0 : i32
    return %c0_i32, %c0_i32_0 : i32, i32
  }
  func.func @transform_5(%arg0: i32) -> (i32, i32) {
    %c0_i32 = arith.constant 0 : i32
    %c0_i32_0 = arith.constant 0 : i32
    %c0_i32_1 = arith.constant 0 : i32
    return %c0_i32, %c0_i32_0 : i32, i32
  }
  func.func @transform_6(%arg0: i32) -> (i32, i32) {
    %c0_i32 = arith.constant 0 : i32
    %c0_i32_0 = arith.constant 0 : i32
    return %arg0, %c0_i32 : i32, i32
  }
}

module attributes {stable_mosaic.version = 11 : i64} {
  func.func @_fc_tiled_kernel(%arg0: i32, %arg1: i32, %arg2: memref<2x2304xf32, #tpu.memory_space<vmem>>, %arg3: memref<2304x512xbf16, #tpu.memory_space<vmem>>, %arg4: memref<1x512xf32, #tpu.memory_space<vmem>>, %arg5: memref<2x512xf32, #tpu.memory_space<vmem>>) attributes {dimension_semantics = [#tpu.dimension_semantics<parallel>, #tpu.dimension_semantics<arbitrary>], iteration_bounds = array<i64: 2, 2>, scalar_prefetch = 0 : i64, scratch_operands = 0 : i64, tpu.core_type = #tpu.core_type<tc>, window_params = [{transform_indices = @transform_0, window_bounds = array<i64: 2, 2304>}, {transform_indices = @transform_1, window_bounds = array<i64: 2304, 512>}, {transform_indices = @transform_2, window_bounds = array<i64: 1, 512>}, {transform_indices = @transform_3, window_bounds = array<i64: 2, 512>}]} {
    %c0_i32 = arith.constant 0 : i32
    %0 = arith.cmpi eq, %arg1, %c0_i32 : i32
    %1 = arith.extui %0 : i1 to i32
    %c0_i32_0 = arith.constant 0 : i32
    %2 = arith.cmpi ne, %1, %c0_i32_0 : i32
    scf.if %2 {
      %cst_9 = arith.constant 0.000000e+00 : f32
      %13 = vector.broadcast %cst_9 : f32 to vector<2x512xf32>
      %c0_10 = arith.constant 0 : index
      %c0_11 = arith.constant 0 : index
      %14 = vector.load %arg5[%c0_10, %c0_11] : memref<2x512xf32, #tpu.memory_space<vmem>>, vector<2x512xf32>
      tpu.vector_store %arg5[%c0_10, %c0_11], %13 {strides = array<i32>} : memref<2x512xf32, #tpu.memory_space<vmem>>, vector<2x512xf32>,
    } else {
    }
    %c0 = arith.constant 0 : index
    %c0_1 = arith.constant 0 : index
    %3 = vector.load %arg5[%c0, %c0_1] : memref<2x512xf32, #tpu.memory_space<vmem>>, vector<2x512xf32>
    %c0_2 = arith.constant 0 : index
    %c0_3 = arith.constant 0 : index
    %4 = vector.load %arg2[%c0_2, %c0_3] : memref<2x2304xf32, #tpu.memory_space<vmem>>, vector<2x2304xf32>
    %5 = arith.truncf %4 : vector<2x2304xf32> to vector<2x2304xbf16>
    %c0_4 = arith.constant 0 : index
    %c0_5 = arith.constant 0 : index
    %6 = vector.load %arg3[%c0_4, %c0_5] : memref<2304x512xbf16, #tpu.memory_space<vmem>>, vector<2304x512xbf16>
    %cst = arith.constant dense<0.000000e+00> : vector<2x512xf32>
    %7 = tpu.matmul %5, %6, %cst {dimension_numbers = #tpu.dot_dimension_numbers<[1], [0], [0], [1], [0, 0, 1, 1], [], []>} : vector<2x2304xbf16>, vector<2304x512xbf16>, vector<2x512xf32> -> vector<2x512xf32>
    %8 = arith.addf %3, %7 : vector<2x512xf32>
    %c0_6 = arith.constant 0 : index
    %c0_7 = arith.constant 0 : index
    %9 = vector.load %arg5[%c0_6, %c0_7] : memref<2x512xf32, #tpu.memory_space<vmem>>, vector<2x512xf32>
    tpu.vector_store %arg5[%c0_6, %c0_7], %8 {strides = array<i32>} : memref<2x512xf32, #tpu.memory_space<vmem>>, vector<2x512xf32>,
    %c1_i32 = arith.constant 1 : i32
    %10 = arith.cmpi eq, %arg1, %c1_i32 : i32
    %11 = arith.extui %10 : i1 to i32
    %c0_i32_8 = arith.constant 0 : i32
    %12 = arith.cmpi ne, %11, %c0_i32_8 : i32
    scf.if %12 {
      %c0_9 = arith.constant 0 : index
      %c0_10 = arith.constant 0 : index
      %13 = vector.load %arg5[%c0_9, %c0_10] : memref<2x512xf32, #tpu.memory_space<vmem>>, vector<2x512xf32>
      %c0_11 = arith.constant 0 : index
      %c0_12 = arith.constant 0 : index
      %14 = vector.load %arg4[%c0_11, %c0_12] : memref<1x512xf32, #tpu.memory_space<vmem>>, vector<1x512xf32>
      %15 = vector.broadcast %14 : vector<1x512xf32> to vector<2x512xf32>
      %16 = arith.addf %13, %15 : vector<2x512xf32>
      %cst_13 = arith.constant 0.000000e+00 : f32
      %17 = vector.broadcast %cst_13 : f32 to vector<2x512xf32>
      %18 = arith.maximumf %16, %17 : vector<2x512xf32>
      %c0_14 = arith.constant 0 : index
      %c0_15 = arith.constant 0 : index
      %19 = vector.load %arg5[%c0_14, %c0_15] : memref<2x512xf32, #tpu.memory_space<vmem>>, vector<2x512xf32>
      tpu.vector_store %arg5[%c0_14, %c0_15], %18 {strides = array<i32>} : memref<2x512xf32, #tpu.memory_space<vmem>>, vector<2x512xf32>,
    } else {
    }
    return
  }
  func.func @transform_0(%arg0: i32, %arg1: i32) -> (i32, i32) {
    %c0_i32 = arith.constant 0 : i32
    %c0_i32_0 = arith.constant 0 : i32
    return %c0_i32, %arg1 : i32, i32
  }
  func.func @transform_1(%arg0: i32, %arg1: i32) -> (i32, i32) {
    %c0_i32 = arith.constant 0 : i32
    return %arg1, %arg0 : i32, i32
  }
  func.func @transform_2(%arg0: i32, %arg1: i32) -> (i32, i32) {
    %c0_i32 = arith.constant 0 : i32
    %c0_i32_0 = arith.constant 0 : i32
    return %c0_i32, %arg0 : i32, i32
  }
  func.func @transform_3(%arg0: i32, %arg1: i32) -> (i32, i32) {
    %c0_i32 = arith.constant 0 : i32
    %c0_i32_0 = arith.constant 0 : i32
    return %c0_i32, %arg0 : i32, i32
  }
}

module attributes {stable_mosaic.version = 11 : i64} {
  func.func @_conv_pool_kernel(%arg0: i32, %arg1: memref<72x288xf32, #tpu.memory_space<vmem>>, %arg2: memref<72x288xf32, #tpu.memory_space<vmem>>, %arg3: memref<72x288xf32, #tpu.memory_space<vmem>>, %arg4: memref<72x288xf32, #tpu.memory_space<vmem>>, %arg5: memref<288x128xbf16, #tpu.memory_space<vmem>>, %arg6: memref<1x128xf32, #tpu.memory_space<vmem>>, %arg7: memref<72x128xf32, #tpu.memory_space<vmem>>) attributes {dimension_semantics = [#tpu.dimension_semantics<parallel>], iteration_bounds = array<i64: 1>, scalar_prefetch = 0 : i64, scratch_operands = 0 : i64, tpu.core_type = #tpu.core_type<tc>, window_params = [{transform_indices = @transform_0, window_bounds = array<i64: 72, 288>}, {transform_indices = @transform_1, window_bounds = array<i64: 72, 288>}, {transform_indices = @transform_2, window_bounds = array<i64: 72, 288>}, {transform_indices = @transform_3, window_bounds = array<i64: 72, 288>}, {pipeline_mode = #tpu.pipeline_mode<synchronous>, transform_indices = @transform_4, window_bounds = array<i64: 288, 128>}, {pipeline_mode = #tpu.pipeline_mode<synchronous>, transform_indices = @transform_5, window_bounds = array<i64: 1, 128>}, {transform_indices = @transform_6, window_bounds = array<i64: 72, 128>}]} {
    %c0 = arith.constant 0 : index
    %c0_0 = arith.constant 0 : index
    %0 = vector.load %arg5[%c0, %c0_0] : memref<288x128xbf16, #tpu.memory_space<vmem>>, vector<288x128xbf16>
    %c0_1 = arith.constant 0 : index
    %c0_2 = arith.constant 0 : index
    %1 = vector.load %arg1[%c0_1, %c0_2] : memref<72x288xf32, #tpu.memory_space<vmem>>, vector<72x288xf32>
    %2 = arith.truncf %1 : vector<72x288xf32> to vector<72x288xbf16>
    %cst = arith.constant dense<0.000000e+00> : vector<72x128xf32>
    %3 = tpu.matmul %2, %0, %cst {dimension_numbers = #tpu.dot_dimension_numbers<[1], [0], [0], [1], [0, 0, 1, 1], [], []>} : vector<72x288xbf16>, vector<288x128xbf16>, vector<72x128xf32> -> vector<72x128xf32>
    %c0_3 = arith.constant 0 : index
    %c0_4 = arith.constant 0 : index
    %4 = vector.load %arg2[%c0_3, %c0_4] : memref<72x288xf32, #tpu.memory_space<vmem>>, vector<72x288xf32>
    %5 = arith.truncf %4 : vector<72x288xf32> to vector<72x288xbf16>
    %cst_5 = arith.constant dense<0.000000e+00> : vector<72x128xf32>
    %6 = tpu.matmul %5, %0, %cst_5 {dimension_numbers = #tpu.dot_dimension_numbers<[1], [0], [0], [1], [0, 0, 1, 1], [], []>} : vector<72x288xbf16>, vector<288x128xbf16>, vector<72x128xf32> -> vector<72x128xf32>
    %7 = arith.maximumf %3, %6 : vector<72x128xf32>
    %c0_6 = arith.constant 0 : index
    %c0_7 = arith.constant 0 : index
    %8 = vector.load %arg3[%c0_6, %c0_7] : memref<72x288xf32, #tpu.memory_space<vmem>>, vector<72x288xf32>
    %9 = arith.truncf %8 : vector<72x288xf32> to vector<72x288xbf16>
    %cst_8 = arith.constant dense<0.000000e+00> : vector<72x128xf32>
    %10 = tpu.matmul %9, %0, %cst_8 {dimension_numbers = #tpu.dot_dimension_numbers<[1], [0], [0], [1], [0, 0, 1, 1], [], []>} : vector<72x288xbf16>, vector<288x128xbf16>, vector<72x128xf32> -> vector<72x128xf32>
    %c0_9 = arith.constant 0 : index
    %c0_10 = arith.constant 0 : index
    %11 = vector.load %arg4[%c0_9, %c0_10] : memref<72x288xf32, #tpu.memory_space<vmem>>, vector<72x288xf32>
    %12 = arith.truncf %11 : vector<72x288xf32> to vector<72x288xbf16>
    %cst_11 = arith.constant dense<0.000000e+00> : vector<72x128xf32>
    %13 = tpu.matmul %12, %0, %cst_11 {dimension_numbers = #tpu.dot_dimension_numbers<[1], [0], [0], [1], [0, 0, 1, 1], [], []>} : vector<72x288xbf16>, vector<288x128xbf16>, vector<72x128xf32> -> vector<72x128xf32>
    %14 = arith.maximumf %10, %13 : vector<72x128xf32>
    %15 = arith.maximumf %7, %14 : vector<72x128xf32>
    %c0_12 = arith.constant 0 : index
    %c0_13 = arith.constant 0 : index
    %16 = vector.load %arg6[%c0_12, %c0_13] : memref<1x128xf32, #tpu.memory_space<vmem>>, vector<1x128xf32>
    %17 = vector.broadcast %16 : vector<1x128xf32> to vector<72x128xf32>
    %18 = arith.addf %15, %17 : vector<72x128xf32>
    %cst_14 = arith.constant 0.000000e+00 : f32
    %19 = vector.broadcast %cst_14 : f32 to vector<72x128xf32>
    %20 = arith.maximumf %18, %19 : vector<72x128xf32>
    %c0_15 = arith.constant 0 : index
    %c0_16 = arith.constant 0 : index
    %21 = vector.load %arg7[%c0_15, %c0_16] : memref<72x128xf32, #tpu.memory_space<vmem>>, vector<72x128xf32>
    tpu.vector_store %arg7[%c0_15, %c0_16], %20 {strides = array<i32>} : memref<72x128xf32, #tpu.memory_space<vmem>>, vector<72x128xf32>,
    return
  }
  func.func @transform_0(%arg0: i32) -> (i32, i32) {
    %c0_i32 = arith.constant 0 : i32
    %c0_i32_0 = arith.constant 0 : i32
    return %arg0, %c0_i32 : i32, i32
  }
  func.func @transform_1(%arg0: i32) -> (i32, i32) {
    %c0_i32 = arith.constant 0 : i32
    %c0_i32_0 = arith.constant 0 : i32
    return %arg0, %c0_i32 : i32, i32
  }
  func.func @transform_2(%arg0: i32) -> (i32, i32) {
    %c0_i32 = arith.constant 0 : i32
    %c0_i32_0 = arith.constant 0 : i32
    return %arg0, %c0_i32 : i32, i32
  }
  func.func @transform_3(%arg0: i32) -> (i32, i32) {
    %c0_i32 = arith.constant 0 : i32
    %c0_i32_0 = arith.constant 0 : i32
    return %arg0, %c0_i32 : i32, i32
  }
  func.func @transform_4(%arg0: i32) -> (i32, i32) {
    %c0_i32 = arith.constant 0 : i32
    %c0_i32_0 = arith.constant 0 : i32
    %c0_i32_1 = arith.constant 0 : i32
    return %c0_i32, %c0_i32_0 : i32, i32
  }
  func.func @transform_5(%arg0: i32) -> (i32, i32) {
    %c0_i32 = arith.constant 0 : i32
    %c0_i32_0 = arith.constant 0 : i32
    %c0_i32_1 = arith.constant 0 : i32
    return %c0_i32, %c0_i32_0 : i32, i32
  }
  func.func @transform_6(%arg0: i32) -> (i32, i32) {
    %c0_i32 = arith.constant 0 : i32
    %c0_i32_0 = arith.constant 0 : i32
    return %arg0, %c0_i32 : i32, i32
  }
}

module attributes {stable_mosaic.version = 11 : i64} {
  func.func @_mlp_head_kernel(%arg0: memref<2x1024xf32, #tpu.memory_space<vmem>>, %arg1: memref<1024x256xbf16, #tpu.memory_space<vmem>>, %arg2: memref<1x256xf32, #tpu.memory_space<vmem>>, %arg3: memref<256x64xbf16, #tpu.memory_space<vmem>>, %arg4: memref<1x64xf32, #tpu.memory_space<vmem>>, %arg5: memref<64x2xbf16, #tpu.memory_space<vmem>>, %arg6: memref<1x2xf32, #tpu.memory_space<vmem>>, %arg7: memref<2x2xf32, #tpu.memory_space<vmem>>) attributes {dimension_semantics = [], scalar_prefetch = 0 : i64, scratch_operands = 0 : i64, tpu.core_type = #tpu.core_type<tc>} {
    %c0 = arith.constant 0 : index
    %c0_0 = arith.constant 0 : index
    %0 = vector.load %arg0[%c0, %c0_0] : memref<2x1024xf32, #tpu.memory_space<vmem>>, vector<2x1024xf32>
    %1 = arith.truncf %0 : vector<2x1024xf32> to vector<2x1024xbf16>
    %c0_1 = arith.constant 0 : index
    %c0_2 = arith.constant 0 : index
    %2 = vector.load %arg1[%c0_1, %c0_2] : memref<1024x256xbf16, #tpu.memory_space<vmem>>, vector<1024x256xbf16>
    %cst = arith.constant dense<0.000000e+00> : vector<2x256xf32>
    %3 = tpu.matmul %1, %2, %cst {dimension_numbers = #tpu.dot_dimension_numbers<[1], [0], [0], [1], [0, 0, 1, 1], [], []>} : vector<2x1024xbf16>, vector<1024x256xbf16>, vector<2x256xf32> -> vector<2x256xf32>
    %c0_3 = arith.constant 0 : index
    %c0_4 = arith.constant 0 : index
    %4 = vector.load %arg2[%c0_3, %c0_4] : memref<1x256xf32, #tpu.memory_space<vmem>>, vector<1x256xf32>
    %5 = vector.broadcast %4 : vector<1x256xf32> to vector<2x256xf32>
    %6 = arith.addf %3, %5 : vector<2x256xf32>
    %cst_5 = arith.constant 0.000000e+00 : f32
    %7 = vector.broadcast %cst_5 : f32 to vector<2x256xf32>
    %8 = arith.maximumf %6, %7 : vector<2x256xf32>
    %9 = arith.truncf %8 : vector<2x256xf32> to vector<2x256xbf16>
    %c0_6 = arith.constant 0 : index
    %c0_7 = arith.constant 0 : index
    %10 = vector.load %arg3[%c0_6, %c0_7] : memref<256x64xbf16, #tpu.memory_space<vmem>>, vector<256x64xbf16>
    %cst_8 = arith.constant dense<0.000000e+00> : vector<2x64xf32>
    %11 = tpu.matmul %9, %10, %cst_8 {dimension_numbers = #tpu.dot_dimension_numbers<[1], [0], [0], [1], [0, 0, 1, 1], [], []>} : vector<2x256xbf16>, vector<256x64xbf16>, vector<2x64xf32> -> vector<2x64xf32>
    %c0_9 = arith.constant 0 : index
    %c0_10 = arith.constant 0 : index
    %12 = vector.load %arg4[%c0_9, %c0_10] : memref<1x64xf32, #tpu.memory_space<vmem>>, vector<1x64xf32>
    %13 = vector.broadcast %12 : vector<1x64xf32> to vector<2x64xf32>
    %14 = arith.addf %11, %13 : vector<2x64xf32>
    %cst_11 = arith.constant 0.000000e+00 : f32
    %15 = vector.broadcast %cst_11 : f32 to vector<2x64xf32>
    %16 = arith.maximumf %14, %15 : vector<2x64xf32>
    %17 = arith.truncf %16 : vector<2x64xf32> to vector<2x64xbf16>
    %c0_12 = arith.constant 0 : index
    %c0_13 = arith.constant 0 : index
    %18 = vector.load %arg5[%c0_12, %c0_13] : memref<64x2xbf16, #tpu.memory_space<vmem>>, vector<64x2xbf16>
    %cst_14 = arith.constant dense<0.000000e+00> : vector<2x2xf32>
    %19 = tpu.matmul %17, %18, %cst_14 {dimension_numbers = #tpu.dot_dimension_numbers<[1], [0], [0], [1], [0, 0, 1, 1], [], []>} : vector<2x64xbf16>, vector<64x2xbf16>, vector<2x2xf32> -> vector<2x2xf32>
    %c0_15 = arith.constant 0 : index
    %c0_16 = arith.constant 0 : index
    %20 = vector.load %arg6[%c0_15, %c0_16] : memref<1x2xf32, #tpu.memory_space<vmem>>, vector<1x2xf32>
    %21 = vector.broadcast %20 : vector<1x2xf32> to vector<2x2xf32>
    %22 = arith.addf %19, %21 : vector<2x2xf32>
    %c0_17 = arith.constant 0 : index
    %c0_18 = arith.constant 0 : index
    %23 = vector.load %arg7[%c0_17, %c0_18] : memref<2x2xf32, #tpu.memory_space<vmem>>, vector<2x2xf32>
    tpu.vector_store %arg7[%c0_17, %c0_18], %22 {strides = array<i32>} : memref<2x2xf32, #tpu.memory_space<vmem>>, vector<2x2xf32>,
    return
  }
}

</mosaic_0001>

<bundles_post_ra>
// kernel: net_forward.5
= control target key start
LH: loop header
LB: loop body
LE: loop exit
PB: predicated region body
PF: predicated region fallthrough
CT: control target
= control target key end

     0   :  { %v1409_v0 = vmov 0.0   ;;  %vm1410_vm0 = vmmov 0   ;;  %vm210_vm1 = vcmask 261120   ;;  %s2213_s4 = inlined_call_operand.vmem [shape: bf16[288,128], index: 4, kind: input, shape index: {}]   ;;  %s2214_s0 = inlined_call_operand.vmem [shape: f32[72,288], index: 0, kind: input, shape index: {}]   ;;  %s2215_s1 = inlined_call_operand.vmem [shape: f32[72,288], index: 1, kind: input, shape index: {}]   ;;  %s2216_s2 = inlined_call_operand.vmem [shape: f32[72,288], index: 2, kind: input, shape index: {}]   ;;  %s2217_s3 = inlined_call_operand.vmem [shape: f32[72,288], index: 3, kind: input, shape index: {}]   ;;  %s2218_s5 = inlined_call_operand.vmem [shape: f32[1,128], index: 5, kind: input, shape index: {}]   ;;  %s2219_s6 = inlined_call_operand.vmem [shape: f32[72,128], index: 6, kind: output, shape index: {}]  }
   0x1   :  { %1289 = vmatprep.subr.bf16.mxu1 %v1409_v0  ;;  %v1450_v1 = vld [vmem:[%s2213_s4 + $0x78] sm:$0xff]   ;;  %1293 = vmatprep.mubr.msk.bf16.mxu1 %vm1410_vm0, %v1409_v0  ;;  %v1457_v2 = vld [vmem:[%s2213_s4 + $0x88] sm:$0xff]   ;;  %v1469_v4 = vld [vmem:[%s2213_s4 + $0x70] sm:$0xff]  }
   0x2   :  { %1077 = vmatprep.subr.bf16.mxu0 %v1450_v1  ;;  %v1463_v3 = vld [vmem:[%s2213_s4 + $0x38] sm:$0xff]   ;;  %1290 = vmatpush3.bf16.msra.mxu1 %v1457_v2  ;;  %v1476_v5 = vld [vmem:[%s2213_s4 + $0x80] sm:$0xff]   ;;  %v1482_v6 = vld [vmem:[%s2213_s4 + $0x30] sm:$0xff]  }
   0x3   :  { %1078 = vmatpush3.bf16.msra.mxu0 %v1463_v3  ;;  %1291 = vmatprep.subr.bf16.mxu1 %v1409_v0  ;;  %v62_v7 = vld [vmem:[%s2214_s0 + $0x10] sm:$0xff]  ;;  %v65_v8 = vld [vmem:[%s2214_s0 + $0x28] sm:$0xff]  ;;  %v1507_v12 = vld [vmem:[%s2213_s4 + $0x60] sm:$0xff]  }
   0x4   :  { %1079 = vmatprep.subr.bf16.mxu0 %v1469_v4  ;;  %v89_v9 = vpack.c.bf16 %v65_v8, %v62_v7  ;;  %v1494_v10 = vld [vmem:[%s2213_s4 + $0x68] sm:$0xff]   ;;  %v68_v13 = vld [vmem:[%s2214_s0 + $0x40] sm:$0xff]  ;;  %v71_v14 = vld [vmem:[%s2214_s0 + $0x58] sm:$0xff] }
   0x5   :  { %v1500_v11 = vld [vmem:[%s2213_s4 + $0x28] sm:$0xff]   ;;  %v1523_v15 = vld [vmem:[%s2213_s4 + $0x20] sm:$0xff]   ;;  %v1530_v16 = vld [vmem:[%s2213_s4 + $0x58] sm:$0xff]   ;;  %v92_v17 = vpack.c.bf16 %v71_v14, %v68_v13 }
   0x6   :  { %1292 = vmatpush3.bf16.msra.mxu1 %v1476_v5  ;;  %v1537_v18 = vld [vmem:[%s2213_s4 + $0x18] sm:$0xff]   ;;  %v1544_v19 = vld [vmem:[%s2213_s4 + $0x50] sm:$0xff]   ;;  %v77_v21 = vld [vmem:[%s2214_s0 + $0x88] sm:$0xff] }
   0x7   :  { %1080 = vmatpush3.bf16.msra.mxu0 %v1482_v6  ;;  %1130 = vmatprep.subr.bf16.mxu1 %v1450_v1  ;;  %v74_v20 = vld [vmem:[%s2214_s0 + $0x70] sm:$0xff]  ;;  %v61_v23 = vld [vmem:[%s2214_s0 + $0x8] sm:$0xff]  ;;  %v64_v24 = vld [vmem:[%s2214_s0 + $0x20] sm:$0xff] }
   0x8   :  { %1081 = vmatprep.subr.bf16.mxu0 %v1494_v10  ;;  %v1560_v22 = vld [vmem:[%s2213_s4 + $0x10] sm:$0xff]   ;;  %v1573_v25 = vld [vmem:[%s2213_s4 + $0x48] sm:$0xff]   ;;  %v88_v26 = vpack.c.bf16 %v64_v24, %v61_v23  ;;  %v95_v27 = vpack.c.bf16 %v77_v21, %v74_v20  ;;  %v1587_v29 = vld [vmem:[%s2213_s4 + $0x40] sm:$0xff]  }
   0x9   :  { %1294 = vmatmul.mubr.msk.bf16.vlgmr.msra.gmra.mxu1 %vm210_vm1, %v89_v9  ;;  %v1580_v28 = vld [vmem:[%s2213_s4 + $0x8] sm:$0xff]   ;;  %v80_v30 = vld [vmem:[%s2214_s0 + $0xa0] sm:$0xff]  ;;  %v83_v31 = vld [vmem:[%s2214_s0 + $0xb8] sm:$0xff] }
   0xa   :  { %1297 = vmatprep.mubr.msk.bf16.mxu1 %vm1410_vm0, %v1409_v0  ;;  %1131 = vmatpush3.bf16.msra.mxu1 %v1463_v3  ;;  %v1603_v32 = vld [vmem:[%s2213_s4] sm:$0xff]   ;;  %v63_v34 = vld [vmem:[%s2214_s0 + $0x18] sm:$0xff]  ;;  %v70_v36 = vld [vmem:[%s2214_s0 + $0x50] sm:$0xff]  ;;  %v98_v37 = vpack.c.bf16 %v83_v31, %v80_v30 }
   0xb   :  { %1082 = vmatpush3.bf16.msra.mxu0 %v1500_v11  ;;  %1132 = vmatprep.subr.bf16.mxu1 %v1469_v4  ;;  %v60_v33 = vld [vmem:[%s2214_s0] sm:$0xff]  ;;  %v67_v35 = vld [vmem:[%s2214_s0 + $0x38] sm:$0xff]  ;;  %v86_v40 = vld [vmem:[%s2214_s0 + $0xd0] sm:$0xff] }
   0xc   :  { %1083 = vmatprep.subr.bf16.mxu0 %v1507_v12  ;;  %258 = vmatprep.mubr.bf16.mxu0 %v88_v26  ;;  %v87_v38 = vpack.c.bf16 %v63_v34, %v60_v33  ;;  %v91_v39 = vpack.c.bf16 %v70_v36, %v67_v35  ;;  %v66_v41 = vld [vmem:[%s2214_s0 + $0x30] sm:$0xff]  ;;  %v69_v42 = vld [vmem:[%s2214_s0 + $0x48] sm:$0xff]  ;;  %v374_v44 = vld [vmem:[%s2215_s1 + $0x20] sm:$0xff]  ;;  %v101_v47 = vpack.c.bf16 %v86_v40, %v86_v40 }
   0xd   :  { %v371_v43 = vld [vmem:[%s2215_s1 + $0x8] sm:$0xff]  ;;  %v76_v46 = vld [vmem:[%s2214_s0 + $0x80] sm:$0xff]  ;;  %v90_v48 = vpack.c.bf16 %v69_v42, %v66_v41  ;;  %v373_v52 = vld [vmem:[%s2215_s1 + $0x18] sm:$0xff] }
   0xe   :  { %1133 = vmatpush3.bf16.msra.mxu1 %v1482_v6  ;;  %v73_v45 = vld [vmem:[%s2214_s0 + $0x68] sm:$0xff]  ;;  %v398_v49 = vpack.c.bf16 %v374_v44, %v371_v43  ;;  %v370_v51 = vld [vmem:[%s2215_s1] sm:$0xff]  ;;  %v75_v54 = vld [vmem:[%s2214_s0 + $0x78] sm:$0xff] }
   0xf   :  { %1084 = vmatpush3.bf16.msra.mxu0 %v1523_v15  ;;  %1134 = vmatprep.subr.bf16.mxu1 %v1494_v10  ;;  %v94_v50 = vpack.c.bf16 %v76_v46, %v73_v45  ;;  %v72_v53 = vld [vmem:[%s2214_s0 + $0x60] sm:$0xff]  ;;  %v377_v55 = vld [vmem:[%s2215_s1 + $0x38] sm:$0xff]  ;;  %v380_v56 = vld [vmem:[%s2215_s1 + $0x50] sm:$0xff]  ;;  %v397_v59 = vpack.c.bf16 %v373_v52, %v370_v51 }
  0x10   :  { %1085 = vmatprep.subr.bf16.mxu0 %v1530_v16  ;;  %v79_v57 = vld [vmem:[%s2214_s0 + $0x98] sm:$0xff]  ;;  %v82_v58 = vld [vmem:[%s2214_s0 + $0xb0] sm:$0xff]  ;;  %v93_v60 = vpack.c.bf16 %v75_v54, %v72_v53  ;;  %v401_v61 = vpack.c.bf16 %v380_v56, %v377_v55  ;;  %v379_v7 = vld [vmem:[%s2215_s1 + $0x48] sm:$0xff] }
  0x11   :  { %1298 = vmatmul.mubr.msk.bf16.gmra.mxu1 %vm210_vm1, %v92_v17  ;;  %v97_v62 = vpack.c.bf16 %v82_v58, %v79_v57  ;;  %v376_v63 = vld [vmem:[%s2215_s1 + $0x30] sm:$0xff]  ;;  %v81_v9 = vld [vmem:[%s2214_s0 + $0xa8] sm:$0xff]  ;;  %v386_v14 = vld [vmem:[%s2215_s1 + $0x80] sm:$0xff] }
  0x12   :  { %1301 = vmatprep.mubr.msk.bf16.mxu1 %vm1410_vm0, %v1409_v0  ;;  %1135 = vmatpush3.bf16.msra.mxu1 %v1500_v11  ;;  %v78_v8 = vld [vmem:[%s2214_s0 + $0x90] sm:$0xff]  ;;  %v383_v13 = vld [vmem:[%s2215_s1 + $0x68] sm:$0xff]  ;;  %v400_v20 = vpack.c.bf16 %v379_v7, %v376_v63  ;;  %v382_v26 = vld [vmem:[%s2215_s1 + $0x60] sm:$0xff] }
  0x13   :  { %1086 = vmatpush3.bf16.msra.mxu0 %v1537_v18  ;;  %1136 = vmatprep.subr.bf16.mxu1 %v1507_v12  ;;  %v85_v17 = vld [vmem:[%s2214_s0 + $0xc8] sm:$0xff]  ;;  %v96_v21 = vpack.c.bf16 %v81_v9, %v78_v8  ;;  %v404_v23 = vpack.c.bf16 %v386_v14, %v383_v13  ;;  %v84_v30 = vld [vmem:[%s2214_s0 + $0xc0] sm:$0xff]  ;;  %v389_v31 = vld [vmem:[%s2215_s1 + $0x98] sm:$0xff] }
  0x14   :  { %1087 = vmatprep.subr.bf16.mxu0 %v1544_v19  ;;  %v100_v24 = vpack.c.bf16 %v85_v17, %v85_v17  ;;  %v392_v33 = vld [vmem:[%s2215_s1 + $0xb0] sm:$0xff]  ;;  %v99_v35 = vpack.c.bf16 %v84_v30, %v84_v30  ;;  %v375_v40 = vld [vmem:[%s2215_s1 + $0x28] sm:$0xff]  ;;  %v394_v45 = vld [vmem:[%s2215_s1 + $0xc0] sm:$0xff] }
  0x15   :  { %v407_v36 = vpack.c.bf16 %v392_v33, %v389_v31  ;;  %v395_v41 = vld [vmem:[%s2215_s1 + $0xc8] sm:$0xff]  ;;  %v378_v46 = vld [vmem:[%s2215_s1 + $0x40] sm:$0xff]  ;;  %v583_v54 = vld [vmem:[%s2216_s2 + $0x18] sm:$0xff] }
  0x16   :  { %1137 = vmatpush3.bf16.msra.mxu1 %v1523_v15  ;;  %v410_v44 = vpack.c.bf16 %v395_v41, %v395_v41  ;;  %v580_v53 = vld [vmem:[%s2216_s2] sm:$0xff]  ;;  %v384_v55 = vld [vmem:[%s2215_s1 + $0x70] sm:$0xff]  ;;  %v587_v56 = vld [vmem:[%s2216_s2 + $0x38] sm:$0xff] }
  0x17   :  { %1088 = vmatpush3.bf16.msra.mxu0 %v1560_v22  ;;  %1138 = vmatprep.subr.bf16.mxu1 %v1530_v16  ;;  %v590_v57 = vld [vmem:[%s2216_s2 + $0x50] sm:$0xff]  ;;  %v607_v58 = vpack.c.bf16 %v583_v54, %v580_v53  ;;  %v390_v63 = vld [vmem:[%s2215_s1 + $0xa0] sm:$0xff]  ;;  %v393_v7 = vld [vmem:[%s2215_s1 + $0xb8] sm:$0xff] }
  0x18   :  { %1089 = vmatprep.subr.bf16.mxu0 %v1573_v25  ;;  %v593_v8 = vld [vmem:[%s2216_s2 + $0x68] sm:$0xff]  ;;  %v596_v9 = vld [vmem:[%s2216_s2 + $0x80] sm:$0xff]  ;;  %v408_v14 = vpack.c.bf16 %v393_v7, %v390_v63  ;;  %v606_v53 = vld [vmem:[%s2216_s2 + $0xd0] sm:$0xff] }
  0x19   :  { %1302 = vmatmul.mubr.msk.bf16.gmra.mxu1 %vm210_vm1, %v95_v27  ;;  %v385_v27 = vld [vmem:[%s2215_s1 + $0x78] sm:$0xff]  ;;  %v614_v17 = vpack.c.bf16 %v596_v9, %v593_v8  ;;  %v588_v33 = vld [vmem:[%s2216_s2 + $0x40] sm:$0xff]  ;;  %v803_v54 = vld [vmem:[%s2217_s3 + $0xb0] sm:$0xff] }
  0x1a   :  { %1305 = vmatprep.mubr.msk.bf16.mxu1 %vm1410_vm0, %v1409_v0  ;;  %1139 = vmatpush3.bf16.msra.mxu1 %v1537_v18  ;;  %v403_v34 = vpack.c.bf16 %v385_v27, %v382_v26  ;;  %v601_v26 = vld [vmem:[%s2216_s2 + $0xa8] sm:$0xff]  ;;  %v805_v8 = vld [vmem:[%s2217_s3 + $0xc0] sm:$0xff] }
  0x1b   :  { %1090 = vmatpush3.bf16.msra.mxu0 %v1580_v28  ;;  %1140 = vmatprep.subr.bf16.mxu1 %v1544_v19  ;;  %v789_v9 = vld [vmem:[%s2217_s3 + $0x40] sm:$0xff] }
  0x1c   :  { %1091 = vmatprep.subr.bf16.mxu0 %v1587_v29 }
  0x1e   :  { %1141 = vmatpush3.bf16.msra.mxu1 %v1560_v22 }
  0x1f   :  { %1092 = vmatpush3.bf16.msra.mxu0 %v1603_v32  ;;  %1142 = vmatprep.subr.bf16.mxu1 %v1573_v25 }
  0x20   :  { %1313 = vmatprep.subr.bf16.mxu0 %v1409_v0 }
  0x21   :  { %1306 = vmatmul.mubr.msk.bf16.gmra.mxu1 %vm210_vm1, %v98_v37  ;;  %v388_v37 = vld [vmem:[%s2215_s1 + $0x90] sm:$0xff] }
  0x22   :  { %259 = vmatmul.mubr.bf16.vlgmr.msra.gmra.mxu0 %v87_v38  ;;  %1309 = vmatprep.mubr.msk.bf16.mxu1 %vm1410_vm0, %v1409_v0  ;;  %v391_v38 = vld [vmem:[%s2215_s1 + $0xa8] sm:$0xff] }
  0x23   :  { %1314 = vmatpush3.bf16.msra.mxu0 %v1457_v2  ;;  %266 = vmatprep.mubr.bf16.mxu0 %v91_v39  ;;  %v372_v39 = vld [vmem:[%s2215_s1 + $0x10] sm:$0xff]  ;;  %v406_v42 = vpack.c.bf16 %v391_v38, %v388_v37  ;;  %v788_v38 = vld [vmem:[%s2217_s3 + $0x38] sm:$0xff] }
  0x24   :  { %1143 = vmatpush3.bf16.msra.mxu1 %v1580_v28  ;;  %1315 = vmatprep.subr.bf16.mxu0 %v1409_v0  ;;  %v399_v43 = vpack.c.bf16 %v375_v40, %v372_v39  ;;  %v594_v37 = vld [vmem:[%s2216_s2 + $0x70] sm:$0xff] }
  0x25   :  { %1144 = vmatprep.subr.bf16.mxu1 %v1587_v29  ;;  %v791_v39 = vld [vmem:[%s2217_s3 + $0x50] sm:$0xff] }
  0x27   :  { %1316 = vmatpush3.bf16.msra.mxu0 %v1476_v5 }
  0x28   :  { %1145 = vmatpush3.bf16.msra.mxu1 %v1603_v32  ;;  %1337 = vmatprep.subr.bf16.mxu0 %v1409_v0 }
  0x29   :  { %1310 = vmatmul.mubr.msk.bf16.gmra.mxu1 %vm210_vm1, %v101_v47  ;;  %1183 = vmatprep.subr.bf16.mxu1 %v1450_v1  ;;  %v381_v47 = vld [vmem:[%s2215_s1 + $0x58] sm:$0xff] }
  0x2a   :  { %267 = vmatmul.mubr.bf16.gmra.mxu0 %v90_v48  ;;  %459 = vmatprep.mubr.bf16.mxu1 %v398_v49  ;;  %v581_v48 = vld [vmem:[%s2216_s2 + $0x8] sm:$0xff]  ;;  %v584_v49 = vld [vmem:[%s2216_s2 + $0x20] sm:$0xff]  ;;  %v402_v51 = vpack.c.bf16 %v381_v47, %v378_v46  ;;  %v603_v46 = vld [vmem:[%s2216_s2 + $0xb8] sm:$0xff] }
  0x2b   :  { %274 = vmatprep.mubr.bf16.mxu0 %v94_v50  ;;  %v409_v50 = vpack.c.bf16 %v394_v45, %v394_v45  ;;  %v608_v52 = vpack.c.bf16 %v584_v49, %v581_v48  ;;  %v600_v45 = vld [vmem:[%s2216_s2 + $0xa0] sm:$0xff]  ;;  %v794_v47 = vld [vmem:[%s2217_s3 + $0x68] sm:$0xff] }
  0x2c   :  { %v797_v48 = vld [vmem:[%s2217_s3 + $0x80] sm:$0xff] }
  0x31   :  { %460 = vmatmul.mubr.bf16.vlgmr.msra.gmra.mxu1 %v397_v59 }
  0x32   :  { %275 = vmatmul.mubr.bf16.gmra.mxu0 %v93_v60  ;;  %467 = vmatprep.mubr.bf16.mxu1 %v401_v61  ;;  %v611_v60 = vpack.c.bf16 %v590_v57, %v587_v56  ;;  %v586_v61 = vld [vmem:[%s2216_s2 + $0x30] sm:$0xff] }
  0x33   :  { %282 = vmatprep.mubr.bf16.mxu0 %v97_v62  ;;  %1184 = vmatpush3.bf16.msra.mxu1 %v1463_v3  ;;  %v589_v62 = vld [vmem:[%s2216_s2 + $0x48] sm:$0xff]  ;;  %v799_v57 = vld [vmem:[%s2217_s3 + $0x90] sm:$0xff] }
  0x34   :  { %1185 = vmatprep.subr.bf16.mxu1 %v1469_v4  ;;  %v610_v13 = vpack.c.bf16 %v589_v62, %v586_v61  ;;  %v806_v61 = vld [vmem:[%s2217_s3 + $0xc8] sm:$0xff] }
  0x35   :  { %v821_v7 = vpack.c.bf16 %v806_v61, %v806_v61 }
  0x37   :  { %1186 = vmatpush3.bf16.msra.mxu1 %v1482_v6 }
  0x38   :  { %1187 = vmatprep.subr.bf16.mxu1 %v1494_v10 }
  0x39   :  { %468 = vmatmul.mubr.bf16.gmra.mxu1 %v400_v20  ;;  %v595_v20 = vld [vmem:[%s2216_s2 + $0x78] sm:$0xff] }
  0x3a   :  { %283 = vmatmul.mubr.bf16.gmra.mxu0 %v96_v21  ;;  %475 = vmatprep.mubr.bf16.mxu1 %v404_v23 }
  0x3b   :  { %290 = vmatprep.mubr.bf16.mxu0 %v100_v24  ;;  %1188 = vmatpush3.bf16.msra.mxu1 %v1500_v11 }
  0x3c   :  { %1189 = vmatprep.subr.bf16.mxu1 %v1507_v12 }
  0x3f   :  { %1190 = vmatpush3.bf16.msra.mxu1 %v1523_v15 }
  0x40   :  { %1191 = vmatprep.subr.bf16.mxu1 %v1530_v16 }
  0x41   :  { %476 = vmatmul.mubr.bf16.gmra.mxu1 %v403_v34 }
  0x42   :  { %291 = vmatmul.mubr.bf16.gmra.mxu0 %v99_v35  ;;  %483 = vmatprep.mubr.bf16.mxu1 %v407_v36 }
  0x43   :  { %1317 = vmatprep.mubr.msk.bf16.mxu0 %vm1410_vm0, %v1409_v0  ;;  %1192 = vmatpush3.bf16.msra.mxu1 %v1537_v18 }
  0x44   :  { %1193 = vmatprep.subr.bf16.mxu1 %v1544_v19 }
  0x47   :  { %1194 = vmatpush3.bf16.msra.mxu1 %v1560_v22 }
  0x48   :  { %1195 = vmatprep.subr.bf16.mxu1 %v1573_v25 }
  0x49   :  { %484 = vmatmul.mubr.bf16.gmra.mxu1 %v406_v42  ;;  %v812_v42 = vpack.c.bf16 %v791_v39, %v788_v38 }
  0x4a   :  { %1318 = vmatmul.mubr.msk.bf16.vlgmr.msra.gmra.mxu0 %vm210_vm1, %v399_v43  ;;  %491 = vmatprep.mubr.bf16.mxu1 %v410_v44  ;;  %v787_v43 = vld [vmem:[%s2217_s3 + $0x30] sm:$0xff]  ;;  %v790_v44 = vld [vmem:[%s2217_s3 + $0x48] sm:$0xff] }
  0x4b   :  { %1338 = vmatpush3.bf16.msra.mxu0 %v1457_v2  ;;  %1321 = vmatprep.mubr.msk.bf16.mxu0 %vm1410_vm0, %v1409_v0  ;;  %v811_v49 = vpack.c.bf16 %v790_v44, %v787_v43 }
  0x4c   :  { %1196 = vmatpush3.bf16.msra.mxu1 %v1580_v28  ;;  %1339 = vmatprep.subr.bf16.mxu0 %v1409_v0 }
  0x4d   :  { %1197 = vmatprep.subr.bf16.mxu1 %v1587_v29 }
  0x4f   :  { %1340 = vmatpush3.bf16.msra.mxu0 %v1476_v5 }
  0x50   :  { %1198 = vmatpush3.bf16.msra.mxu1 %v1603_v32  ;;  %1361 = vmatprep.subr.bf16.mxu0 %v1409_v0 }
  0x51   :  { %492 = vmatmul.mubr.bf16.gmra.mxu1 %v409_v50  ;;  %1236 = vmatprep.subr.bf16.mxu1 %v1450_v1  ;;  %v387_v1 = vld [vmem:[%s2215_s1 + $0x88] sm:$0xff]  ;;  %v618_v50 = vpack.c.bf16 %v603_v46, %v600_v45 }
  0x52   :  { %1322 = vmatmul.mubr.msk.bf16.gmra.mxu0 %vm210_vm1, %v402_v51  ;;  %669 = vmatprep.mubr.bf16.mxu1 %v608_v52  ;;  %v405_v59 = vpack.c.bf16 %v387_v1, %v384_v55  ;;  %v815_v51 = vpack.c.bf16 %v797_v48, %v794_v47  ;;  %v796_v52 = vld [vmem:[%s2217_s3 + $0x78] sm:$0xff]  ;;  %v621_v1 = vpack.c.bf16 %v606_v53, %v606_v53 }
  0x53   :  { %1325 = vmatprep.mubr.msk.bf16.mxu0 %vm1410_vm0, %v1409_v0 }
  0x59   :  { %670 = vmatmul.mubr.bf16.vlgmr.msra.gmra.mxu1 %v607_v58  ;;  %v802_v58 = vld [vmem:[%s2217_s3 + $0xa8] sm:$0xff] }
  0x5a   :  { %1326 = vmatmul.mubr.msk.bf16.gmra.mxu0 %vm210_vm1, %v405_v59  ;;  %677 = vmatprep.mubr.bf16.mxu1 %v611_v60  ;;  %v783_v59 = vld [vmem:[%s2217_s3 + $0x10] sm:$0xff]  ;;  %v786_v60 = vld [vmem:[%s2217_s3 + $0x28] sm:$0xff]  ;;  %v817_v62 = vpack.c.bf16 %v802_v58, %v799_v57 }
  0x5b   :  { %1329 = vmatprep.mubr.msk.bf16.mxu0 %vm1410_vm0, %v1409_v0  ;;  %1237 = vmatpush3.bf16.msra.mxu1 %v1463_v3  ;;  %v592_v3 = vld [vmem:[%s2216_s2 + $0x60] sm:$0xff]  ;;  %v810_v63 = vpack.c.bf16 %v786_v60, %v783_v59 }
  0x5c   :  { %1238 = vmatprep.subr.bf16.mxu1 %v1469_v4  ;;  %v396_v4 = vld [vmem:[%s2215_s1 + $0xd0] sm:$0xff]  ;;  %v613_v21 = vpack.c.bf16 %v595_v20, %v592_v3 }
  0x5d   :  { %v411_v23 = vpack.c.bf16 %v396_v4, %v396_v4  ;;  %v807_v3 = vld [vmem:[%s2217_s3 + $0xd0] sm:$0xff]  ;;  %v798_v4 = vld [vmem:[%s2217_s3 + $0x88] sm:$0xff] }
  0x5e   :  { %v795_v20 = vld [vmem:[%s2217_s3 + $0x70] sm:$0xff] }
  0x5f   :  { %1239 = vmatpush3.bf16.msra.mxu1 %v1482_v6  ;;  %v599_v6 = vld [vmem:[%s2216_s2 + $0x98] sm:$0xff] }
  0x60   :  { %1240 = vmatprep.subr.bf16.mxu1 %v1494_v10  ;;  %v602_v10 = vld [vmem:[%s2216_s2 + $0xb0] sm:$0xff] }
  0x61   :  { %678 = vmatmul.mubr.bf16.gmra.mxu1 %v610_v13  ;;  %v617_v24 = vpack.c.bf16 %v602_v10, %v599_v6  ;;  %v792_v13 = vld [vmem:[%s2217_s3 + $0x58] sm:$0xff]  ;;  %v822_v6 = vpack.c.bf16 %v807_v3, %v807_v3  ;;  %v816_v10 = vpack.c.bf16 %v798_v4, %v795_v20 }
  0x62   :  { %1330 = vmatmul.mubr.msk.bf16.gmra.mxu0 %vm210_vm1, %v408_v14  ;;  %685 = vmatprep.mubr.bf16.mxu1 %v614_v17  ;;  %v820_v14 = vpack.c.bf16 %v805_v8, %v805_v8  ;;  %v813_v17 = vpack.c.bf16 %v792_v13, %v789_v9 }
  0x63   :  { %1333 = vmatprep.mubr.msk.bf16.mxu0 %vm1410_vm0, %v1409_v0  ;;  %1241 = vmatpush3.bf16.msra.mxu1 %v1500_v11  ;;  %v598_v11 = vld [vmem:[%s2216_s2 + $0x90] sm:$0xff] }
  0x64   :  { %1242 = vmatprep.subr.bf16.mxu1 %v1507_v12  ;;  %v582_v12 = vld [vmem:[%s2216_s2 + $0x10] sm:$0xff]  ;;  %v616_v27 = vpack.c.bf16 %v601_v26, %v598_v11 }
  0x67   :  { %1243 = vmatpush3.bf16.msra.mxu1 %v1523_v15  ;;  %v585_v15 = vld [vmem:[%s2216_s2 + $0x28] sm:$0xff] }
  0x68   :  { %1244 = vmatprep.subr.bf16.mxu1 %v1530_v16  ;;  %v605_v16 = vld [vmem:[%s2216_s2 + $0xc8] sm:$0xff]  ;;  %v609_v30 = vpack.c.bf16 %v585_v15, %v582_v12 }
  0x69   :  { %686 = vmatmul.mubr.bf16.gmra.mxu1 %v613_v21  ;;  %v620_v31 = vpack.c.bf16 %v605_v16, %v605_v16  ;;  %v801_v21 = vld [vmem:[%s2217_s3 + $0xa0] sm:$0xff] }
  0x6a   :  { %1334 = vmatmul.mubr.msk.bf16.gmra.mxu0 %vm210_vm1, %v411_v23  ;;  %693 = vmatprep.mubr.bf16.mxu1 %v617_v24  ;;  %v804_v23 = vld [vmem:[%s2217_s3 + $0xb8] sm:$0xff] }
  0x6b   :  { %1341 = vmatprep.mubr.msk.bf16.mxu0 %vm1410_vm0, %v1409_v0  ;;  %1245 = vmatpush3.bf16.msra.mxu1 %v1537_v18  ;;  %v604_v18 = vld [vmem:[%s2216_s2 + $0xc0] sm:$0xff]  ;;  %v819_v24 = vpack.c.bf16 %v804_v23, %v801_v21 }
  0x6c   :  { %1246 = vmatprep.subr.bf16.mxu1 %v1544_v19  ;;  %v591_v19 = vld [vmem:[%s2216_s2 + $0x58] sm:$0xff]  ;;  %v619_v34 = vpack.c.bf16 %v604_v18, %v604_v18 }
  0x6d   :  { %v612_v35 = vpack.c.bf16 %v591_v19, %v588_v33 }
  0x6f   :  { %1247 = vmatpush3.bf16.msra.mxu1 %v1560_v22  ;;  %v782_v22 = vld [vmem:[%s2217_s3 + $0x8] sm:$0xff] }
  0x70   :  { %1248 = vmatprep.subr.bf16.mxu1 %v1573_v25  ;;  %v785_v25 = vld [vmem:[%s2217_s3 + $0x20] sm:$0xff] }
  0x71   :  { %694 = vmatmul.mubr.bf16.gmra.mxu1 %v616_v27  ;;  %v809_v36 = vpack.c.bf16 %v785_v25, %v782_v22 }
  0x72   :  { %1342 = vmatmul.mubr.msk.bf16.vlgmr.msra.gmra.mxu0 %vm210_vm1, %v609_v30  ;;  %701 = vmatprep.mubr.bf16.mxu1 %v620_v31 }
  0x73   :  { %1362 = vmatpush3.bf16.msra.mxu0 %v1457_v2  ;;  %1345 = vmatprep.mubr.msk.bf16.mxu0 %vm1410_vm0, %v1409_v0 }
  0x74   :  { %1249 = vmatpush3.bf16.msra.mxu1 %v1580_v28  ;;  %1363 = vmatprep.subr.bf16.mxu0 %v1409_v0  ;;  %v781_v28 = vld [vmem:[%s2217_s3] sm:$0xff] }
  0x75   :  { %1250 = vmatprep.subr.bf16.mxu1 %v1587_v29  ;;  %v784_v29 = vld [vmem:[%s2217_s3 + $0x18] sm:$0xff] }
  0x76   :  { %v808_v40 = vpack.c.bf16 %v784_v29, %v781_v28 }
  0x77   :  { %1364 = vmatpush3.bf16.msra.mxu0 %v1476_v5 }
  0x78   :  { %1251 = vmatpush3.bf16.msra.mxu1 %v1603_v32  ;;  %v597_v32 = vld [vmem:[%s2216_s2 + $0x88] sm:$0xff] }
  0x79   :  { %702 = vmatmul.mubr.bf16.gmra.mxu1 %v619_v34  ;;  %1385 = vmatprep.subr.bf16.mxu1 %v1409_v0  ;;  %v615_v41 = vpack.c.bf16 %v597_v32, %v594_v37 }
  0x7a   :  { %1346 = vmatmul.mubr.msk.bf16.gmra.mxu0 %vm210_vm1, %v612_v35  ;;  %870 = vmatprep.mubr.bf16.mxu1 %v809_v36 }
  0x7b   :  { %1349 = vmatprep.mubr.msk.bf16.mxu0 %vm1410_vm0, %v1409_v0 }
  0x81   :  { %871 = vmatmul.mubr.bf16.vlgmr.msra.gmra.mxu1 %v808_v40 }
  0x82   :  { %1350 = vmatmul.mubr.msk.bf16.gmra.mxu0 %vm210_vm1, %v615_v41  ;;  %878 = vmatprep.mubr.bf16.mxu1 %v812_v42 }
  0x83   :  { %1353 = vmatprep.mubr.msk.bf16.mxu0 %vm1410_vm0, %v1409_v0  ;;  %1387 = vmatpush3.bf16.msra.mxu1 %v1457_v2  ;;  %v793_v2 = vld [vmem:[%s2217_s3 + $0x60] sm:$0xff] }
  0x84   :  { %1386 = vmatprep.subr.bf16.mxu1 %v1409_v0  ;;  %v814_v55 = vpack.c.bf16 %v796_v52, %v793_v2 }
  0x87   :  { %1388 = vmatpush3.bf16.msra.mxu1 %v1476_v5  ;;  %v800_v5 = vld [vmem:[%s2217_s3 + $0x98] sm:$0xff] }
  0x88   :  { %v818_v56 = vpack.c.bf16 %v803_v54, %v800_v5 }
  0x89   :  { %879 = vmatmul.mubr.bf16.gmra.mxu1 %v811_v49 }
  0x8a   :  { %1354 = vmatmul.mubr.msk.bf16.gmra.mxu0 %vm210_vm1, %v618_v50  ;;  %886 = vmatprep.mubr.bf16.mxu1 %v815_v51 }
  0x8b   :  { %1357 = vmatprep.mubr.msk.bf16.mxu0 %vm1410_vm0, %v1409_v0 }
  0x91   :  { %887 = vmatmul.mubr.bf16.gmra.mxu1 %v814_v55 }
  0x92   :  { %1358 = vmatmul.mubr.msk.bf16.gmra.mxu0 %vm210_vm1, %v621_v1  ;;  %894 = vmatprep.mubr.bf16.mxu1 %v818_v56 }
  0x93   :  { %1365 = vmatprep.mubr.msk.bf16.mxu0 %vm1410_vm0, %v1409_v0 }
  0x99   :  { %895 = vmatmul.mubr.bf16.gmra.mxu1 %v817_v62 }
  0x9a   :  { %1366 = vmatmul.mubr.msk.bf16.vlgmr.msra.gmra.mxu0 %vm210_vm1, %v810_v63  ;;  %902 = vmatprep.mubr.bf16.mxu1 %v821_v7 }
  0x9b   :  { %1369 = vmatprep.mubr.msk.bf16.mxu0 %vm1410_vm0, %v1409_v0 }
  0xa1   :  { %903 = vmatmul.mubr.bf16.gmra.mxu1 %v820_v14 }
  0xa2   :  { %1370 = vmatmul.mubr.msk.bf16.gmra.mxu0 %vm210_vm1, %v813_v17  ;;  %1381 = vmatprep.mubr.msk.bf16.mxu1 %vm1410_vm0, %v1409_v0 }
  0xa3   :  { %1373 = vmatprep.mubr.msk.bf16.mxu0 %vm1410_vm0, %v1409_v0 }
  0xa9   :  { %1382 = vmatmul.mubr.msk.bf16.vlgmr.msra.gmra.mxu1 %vm210_vm1, %v822_v6 }
  0xaa   :  { %1374 = vmatmul.mubr.msk.bf16.gmra.mxu0 %vm210_vm1, %v816_v10 }
  0xab   :  { %1377 = vmatprep.mubr.msk.bf16.mxu0 %vm1410_vm0, %v1409_v0 }
  0xb2   :  { %1378 = vmatmul.mubr.msk.bf16.gmra.mxu0 %vm210_vm1, %v819_v24 }
  0xc9   :  { %v332_v11 = vpop.f32.mrf.mxu1 }
  0xcb   :  { %v1295_v26 = vpop.f32.mrf.mxu1 }
  0xcd   :  { %v335_v12 = vpop.f32.mrf.mxu1 }
  0xcf   :  { %v1296_v15 = vpop.f32.mrf.mxu1 }
  0xd1   :  { %v340_v16 = vpop.f32.mrf.mxu1 }
  0xd3   :  { %v1299_v27 = vpop.f32.mrf.mxu1 }
  0xd5   :  { %v343_v30 = vpop.f32.mrf.mxu1 }
  0xd7   :  { %v1300_v31 = vpop.f32.mrf.mxu1 }
  0xd9   :  { %v348_v0 = vpop.f32.mrf.mxu1 }
  0xdb   :  { %v1303_v18 = vpop.f32.mrf.mxu1 }
  0xdd   :  { %v351_v33 = vpop.f32.mrf.mxu1 }
  0xdf   :  { %v1304_v19 = vpop.f32.mrf.mxu1 }
  0xe1   :  { %v356_v22 = vpop.f32.mrf.mxu1 }
  0xe2   :  { %v1093_v25 = vpop.f32.mrf.mxu0 }
  0xe3   :  { %v1307_v34 = vpop.f32.mrf.mxu1 }
  0xe4   :  { %v1094_v35 = vpop.f32.mrf.mxu0 }
  0xe5   :  { %v1095_v36 = vadd.f32 %v1094_v35, %v1093_v25  ;;  %v359_v28 = vpop.f32.mrf.mxu1 }
  0xe6   :  { %v1096_v29 = vpop.f32.mrf.mxu0 }
  0xe7   :  { %v2004_v37 = vadd.f32 %v1095_v36, %v332_v11  ;;  %v1308_v32 = vpop.f32.mrf.mxu1 }
  0xe8   :  { %v1097_v38 = vpop.f32.mrf.mxu0 }
  0xe9   :  { %v1098_v39 = vadd.f32 %v1097_v38, %v1096_v29  ;;  %v364_v40 = vpop.f32.mrf.mxu1 }
  0xea   :  { %v1099_v41 = vpop.f32.mrf.mxu0 }
  0xeb   :  { %v2006_v42 = vadd.f32 %v1098_v39, %v335_v12  ;;  %v1311_v43 = vpop.f32.mrf.mxu1 }
  0xec   :  { %v1100_v44 = vpop.f32.mrf.mxu0 }
  0xed   :  { %v1101_v45 = vadd.f32 %v1100_v44, %v1099_v41  ;;  %v367_v46 = vpop.f32.mrf.mxu1 }
  0xee   :  { %v1102_v47 = vpop.f32.mrf.mxu0 }
  0xef   :  { %v2008_v48 = vadd.f32 %v1101_v45, %v340_v16  ;;  %v1312_v49 = vpop.f32.mrf.mxu1 }
  0xf0   :  { %v1103_v50 = vpop.f32.mrf.mxu0 }
  0xf1   :  { %v1104_v51 = vadd.f32 %v1103_v50, %v1102_v47  ;;  %v1146_v2 = vpop.f32.mrf.mxu1 }
  0xf2   :  { %v1105_v52 = vpop.f32.mrf.mxu0 }
  0xf3   :  { %v2010_v53 = vadd.f32 %v1104_v51, %v343_v30  ;;  %v1147_v5 = vpop.f32.mrf.mxu1 }
  0xf4   :  { %v1148_v54 = vadd.f32 %v1147_v5, %v1146_v2  ;;  %v1106_v55 = vpop.f32.mrf.mxu0 }
  0xf5   :  { %v1107_v1 = vadd.f32 %v1106_v55, %v1105_v52  ;;  %v1149_v56 = vpop.f32.mrf.mxu1 }
  0xf6   :  { %v1108_v57 = vpop.f32.mrf.mxu0 }
  0xf7   :  { %v2012_v58 = vadd.f32 %v1107_v1, %v348_v0  ;;  %v1150_v59 = vpop.f32.mrf.mxu1 }
  0xf8   :  { %v1151_v60 = vadd.f32 %v1150_v59, %v1149_v56  ;;  %v1109_v61 = vpop.f32.mrf.mxu0 }
  0xf9   :  { %v1110_v62 = vadd.f32 %v1109_v61, %v1108_v57  ;;  %v1152_v63 = vpop.f32.mrf.mxu1 }
  0xfa   :  { %v1111_v7 = vpop.f32.mrf.mxu0 }
  0xfb   :  { %v2014_v8 = vadd.f32 %v1110_v62, %v351_v33  ;;  %v1153_v9 = vpop.f32.mrf.mxu1 }
  0xfc   :  { %v1154_v13 = vadd.f32 %v1153_v9, %v1152_v63  ;;  %v1112_v14 = vpop.f32.mrf.mxu0 }
  0xfd   :  { %v1113_v17 = vadd.f32 %v1112_v14, %v1111_v7  ;;  %v1155_v3 = vpop.f32.mrf.mxu1 }
  0xfe   :  { %v1114_v20 = vpop.f32.mrf.mxu0 }
  0xff   :  { %v2016_v4 = vadd.f32 %v1113_v17, %v356_v22  ;;  %v1156_v6 = vpop.f32.mrf.mxu1 }
 0x100   :  { %v1157_v10 = vadd.f32 %v1156_v6, %v1155_v3  ;;  %v1115_v21 = vpop.f32.mrf.mxu0 }
 0x101   :  { %2224 = vst [vmem:[#allocation2_spill] sm:$0xff] %v2016_v4  ;;  %v1116_v23 = vadd.f32 %v1115_v21, %v1114_v20  ;;  %v1158_v24 = vpop.f32.mrf.mxu1 }
 0x102   :  { %v1117_v11 = vpop.f32.mrf.mxu0 }
 0x103   :  { %v2018_v26 = vadd.f32 %v1116_v23, %v359_v28  ;;  %v1159_v12 = vpop.f32.mrf.mxu1 }
 0x104   :  { %v1160_v15 = vadd.f32 %v1159_v12, %v1158_v24  ;;  %v1118_v16 = vpop.f32.mrf.mxu0 }
 0x105   :  { %2225 = vst [vmem:[#allocation3_spill] sm:$0xff] %v2018_v26  ;;  %v1119_v27 = vadd.f32 %v1118_v16, %v1117_v11  ;;  %v1161_v30 = vpop.f32.mrf.mxu1 }
 0x106   :  { %v1120_v31 = vpop.f32.mrf.mxu0 }
 0x107   :  { %v2020_v0 = vadd.f32 %v1119_v27, %v364_v40  ;;  %v1162_v18 = vpop.f32.mrf.mxu1 }
 0x108   :  { %v1163_v33 = vadd.f32 %v1162_v18, %v1161_v30  ;;  %v1121_v19 = vpop.f32.mrf.mxu0 }
 0x109   :  { %v1164_v22 = vpop.f32.mrf.mxu1 }
 0x10a   :  { %v533_v25 = vpop.f32.mrf.mxu0 }
 0x10b   :  { %v2022_v34 = vadd.f32 %v1148_v54, %v533_v25  ;;  %v1165_v35 = vpop.f32.mrf.mxu1 }
 0x10c   :  { %v1166_v36 = vadd.f32 %v1165_v35, %v1164_v22  ;;  %v1319_v29 = vpop.f32.mrf.mxu0 }
 0x10d   :  { %v1167_v32 = vpop.f32.mrf.mxu1 }
 0x10e   :  { %v536_v38 = vpop.f32.mrf.mxu0 }
 0x10f   :  { %v2026_v39 = vadd.f32 %v1151_v60, %v536_v38  ;;  %v1168_v41 = vpop.f32.mrf.mxu1 }
 0x110   :  { %v1169_v40 = vadd.f32 %v1168_v41, %v1167_v32  ;;  %v1320_v43 = vpop.f32.mrf.mxu0 }
 0x111   :  { %v1170_v45 = vpop.f32.mrf.mxu1 }
 0x112   :  { %v541_v46 = vpop.f32.mrf.mxu0 }
 0x113   :  { %v2030_v47 = vadd.f32 %v1154_v13, %v541_v46  ;;  %v1171_v49 = vpop.f32.mrf.mxu1 }
 0x114   :  { %v1172_v50 = vadd.f32 %v1171_v49, %v1170_v45  ;;  %v1323_v51 = vpop.f32.mrf.mxu0 }
 0x115   :  { %v1173_v52 = vpop.f32.mrf.mxu1 }
 0x116   :  { %v544_v5 = vpop.f32.mrf.mxu0 }
 0x117   :  { %v2034_v54 = vadd.f32 %v1157_v10, %v544_v5  ;;  %v1174_v55 = vpop.f32.mrf.mxu1 }
 0x118   :  { %v1324_v1 = vpop.f32.mrf.mxu0 }
 0x119   :  { %v2038_v57 = vpop.f32.mrf.mxu1 }
 0x11a   :  { %v549_v59 = vpop.f32.mrf.mxu0 }
 0x11b   :  { %v2040_v60 = vadd.f32 %v1160_v15, %v549_v59  ;;  %v2042_v61 = vpop.f32.mrf.mxu1 }
 0x11c   :  { %v1327_v62 = vpop.f32.mrf.mxu0  ;;  %v1201_v44 = vadd.f32 %v2042_v61, %v2038_v57  ;;  %v2121_v57 = vld [vmem:[%s2218_s5] ss:$0 sm:$0xff] }
 0x11d   :  { %v2046_v7 = vpop.f32.mrf.mxu1 }
 0x11e   :  { %v552_v9 = vpop.f32.mrf.mxu0 }
 0x11f   :  { %v2048_v13 = vadd.f32 %v1163_v33, %v552_v9  ;;  %v2050_v14 = vpop.f32.mrf.mxu1 }
 0x120   :  { %v1328_v17 = vpop.f32.mrf.mxu0 }
 0x121   :  { %v2054_v20 = vpop.f32.mrf.mxu1 }
 0x122   :  { %v557_v6 = vpop.f32.mrf.mxu0 }
 0x123   :  { %v2056_v10 = vadd.f32 %v1166_v36, %v557_v6  ;;  %v2058_v21 = vpop.f32.mrf.mxu1 }
 0x124   :  { %v1331_v23 = vpop.f32.mrf.mxu0 }
 0x125   :  { %2226 = vst [vmem:[#allocation4_spill] sm:$0xff] %v2056_v10  ;;  %v2062_v11 = vpop.f32.mrf.mxu1 }
 0x126   :  { %v560_v12 = vpop.f32.mrf.mxu0 }
 0x127   :  { %v2064_v15 = vadd.f32 %v1169_v40, %v560_v12  ;;  %v2066_v16 = vpop.f32.mrf.mxu1 }
 0x128   :  { %v1332_v27 = vpop.f32.mrf.mxu0 }
 0x129   :  { %2227 = vst [vmem:[#allocation5_spill] sm:$0xff] %v2064_v15  ;;  %v2070_v31 = vpop.f32.mrf.mxu1 }
 0x12a   :  { %v565_v18 = vpop.f32.mrf.mxu0 }
 0x12b   :  { %v2072_v33 = vadd.f32 %v1172_v50, %v565_v18  ;;  %v2074_v19 = vpop.f32.mrf.mxu1 }
 0x12c   :  { %v1335_v22 = vpop.f32.mrf.mxu0 }
 0x12d   :  { %v2078_v35 = vpop.f32.mrf.mxu1 }
 0x12e   :  { %v568_v36 = vpop.f32.mrf.mxu0 }
 0x12f   :  { %v2080_v29 = vpop.f32.mrf.mxu1 }
 0x130   :  { %v1336_v32 = vpop.f32.mrf.mxu0 }
 0x131   :  { %v2082_v38 = vpop.f32.mrf.mxu1 }
 0x132   :  { %v743_v41 = vpop.f32.mrf.mxu0 }
 0x133   :  { %v2084_v40 = vpop.f32.mrf.mxu1  ;;  %v744_v26 = vadd.f32 %v1201_v44, %v743_v41 }
 0x134   :  { %v1343_v43 = vpop.f32.mrf.mxu0 }
 0x135   :  { %v2086_v45 = vpop.f32.mrf.mxu1 }
 0x136   :  { %v746_v46 = vpop.f32.mrf.mxu0 }
 0x137   :  { %v2088_v49 = vpop.f32.mrf.mxu1 }
 0x138   :  { %2228 = vst [vmem:[#allocation6_spill] sm:$0xff] %v2088_v49  ;;  %v1344_v50 = vpop.f32.mrf.mxu0 }
 0x139   :  { %v2090_v51 = vpop.f32.mrf.mxu1 }
 0x13a   :  { %v751_v52 = vpop.f32.mrf.mxu0 }
 0x13b   :  { %v2092_v5 = vpop.f32.mrf.mxu1 }
 0x13c   :  { %v1347_v55 = vpop.f32.mrf.mxu0 }
 0x13d   :  { %v1226_v1 = vpop.f32.mrf.mxu1 }
 0x13e   :  { %v2094_v59 = vpop.f32.mrf.mxu0 }
 0x13f   :  { %v1227_v62 = vpop.f32.mrf.mxu1 }
 0x140   :  { %v1348_v9 = vpop.f32.mrf.mxu0 }
 0x141   :  { %v1252_v17 = vpop.f32.mrf.mxu1 }
 0x142   :  { %v2096_v6 = vpop.f32.mrf.mxu0 }
 0x143   :  { %v1253_v23 = vpop.f32.mrf.mxu1 }
 0x144   :  { %v1351_v12 = vpop.f32.mrf.mxu0  ;;  %v1254_v28 = vadd.f32 %v1253_v23, %v1252_v17 }
 0x145   :  { %v1255_v27 = vpop.f32.mrf.mxu1 }
 0x146   :  { %v2098_v18 = vpop.f32.mrf.mxu0 }
 0x147   :  { %v1256_v22 = vpop.f32.mrf.mxu1 }
 0x148   :  { %v1352_v36 = vpop.f32.mrf.mxu0 }
 0x149   :  { %v1258_v32 = vpop.f32.mrf.mxu1 }
 0x14a   :  { %v2100_v43 = vpop.f32.mrf.mxu0 }
 0x14b   :  { %v1259_v50 = vpop.f32.mrf.mxu1 }
 0x14c   :  { %v1355_v55 = vpop.f32.mrf.mxu0 }
 0x14d   :  { %v1261_v1 = vpop.f32.mrf.mxu1 }
 0x14e   :  { %v2102_v30 = vpop.f32.mrf.mxu0 }
 0x14f   :  { %2229 = vst [vmem:[#allocation7_spill] sm:$0xff] %v2102_v30  ;;  %v1262_v62 = vpop.f32.mrf.mxu1  ;;  %v1257_v30 = vadd.f32 %v1256_v22, %v1255_v27 }
 0x150   :  { %v1356_v9 = vpop.f32.mrf.mxu0 }
 0x151   :  { %v1264_v24 = vpop.f32.mrf.mxu1 }
 0x152   :  { %v775_v3 = vpop.f32.mrf.mxu0 }
 0x153   :  { %v1265_v63 = vpop.f32.mrf.mxu1 }
 0x154   :  { %v1359_v25 = vpop.f32.mrf.mxu0 }
 0x155   :  { %v2104_v12 = vpop.f32.mrf.mxu1  ;;  %v1204_v25 = vadd.f32 %v2050_v14, %v2046_v7  ;;  %v1260_v7 = vadd.f32 %v1259_v50, %v1258_v32 }
 0x156   :  { %v778_v56 = vpop.f32.mrf.mxu0 }
 0x157   :  { %v2106_v2 = vpop.f32.mrf.mxu1  ;;  %v747_v17 = vadd.f32 %v1204_v25, %v746_v46  ;;  %v2231_v46 = vmax.f32 %v2006_v42, %v2026_v39 }
 0x158   :  { %v1360_v36 = vpop.f32.mrf.mxu0 }
 0x159   :  { %v2110_v55 = vpop.f32.mrf.mxu1 }
 0x15a   :  { %v944_v15 = vpop.f32.mrf.mxu0 }
 0x15b   :  { %v945_v10 = vadd.f32 %v1254_v28, %v944_v15  ;;  %v2112_v9 = vpop.f32.mrf.mxu1  ;;  %v2230_v28 = vmax.f32 %v2004_v37, %v2022_v34 }
 0x15c   :  { %v1367_v4 = vpop.f32.mrf.mxu0 }
 0x15d   :  { %v982_v56 = vmax.f32 %v744_v26, %v945_v10  ;;  %v2116_v49 = vpop.f32.mrf.mxu1  ;;  %v1207_v26 = vadd.f32 %v2058_v21, %v2054_v20 }
 0x15e   :  { %v947_v61 = vpop.f32.mrf.mxu0 }
 0x15f   :  { %v991_v44 = vmax.f32 %v2230_v28, %v982_v56  ;;  %v948_v15 = vadd.f32 %v1257_v30, %v947_v61  ;;  %v2126_v4 = vpop.f32.mrf.mxu1  ;;  %v752_v22 = vadd.f32 %v1207_v26, %v751_v52  ;;  %v1210_v56 = vadd.f32 %v2066_v16, %v2062_v11 }
 0x160   :  { %v1368_v41 = vpop.f32.mrf.mxu0  ;;  %v1263_v61 = vadd.f32 %v1262_v62, %v1261_v1  ;;  %v1225_v16 = vadd.f32 %v2092_v5, %v2090_v51  ;;  %v1213_v62 = vadd.f32 %v2074_v19, %v2070_v31  ;;  %v2233_v51 = vmax.f32 %v2010_v53, %v2034_v54 }
 0x161   :  { %v1007_v14 = vadd.f32 %v2121_v57, %v991_v44  ;;  %v983_v10 = vmax.f32 %v747_v17, %v948_v15  ;;  %v1276_v23 = vpop.f32.mrf.mxu1  ;;  %v755_v42 = vadd.f32 %v1210_v56, %v2094_v59  ;;  %v2232_v17 = vmax.f32 %v2008_v48, %v2030_v47 }
 0x162   :  { %v952_v27 = vpop.f32.mrf.mxu0  ;;  %v1266_v15 = vadd.f32 %v1265_v63, %v1264_v24  ;;  %v776_v48 = vadd.f32 %v1225_v16, %v775_v3  ;;  %v2234_v53 = vmax.f32 %v2020_v0, %v2072_v33  ;;  %v1272_v0 = vadd.f32 %v2112_v9, %v2110_v55  ;;  %v2237_v55 = vld [vmem:[#allocation6_spill] sm:$0xff] }
 0x163   :  { %v1016_v36 = vmax.f32 %v1007_v14, 0.0  ;;  %v992_v37 = vmax.f32 %v2231_v46, %v983_v10  ;;  %v953_v34 = vadd.f32 %v1260_v7, %v952_v27  ;;  %v1277_v30 = vpop.f32.mrf.mxu1  ;;  %v760_v14 = vadd.f32 %v1213_v62, %v2096_v6  ;;  %v2243_v62 = vld [vmem:[#allocation5_spill] sm:$0xff] }
 0x164   :  { %v1371_v25 = vpop.f32.mrf.mxu0  ;;  %v1278_v32 = vadd.f32 %v1277_v30, %v1276_v23  ;;  %v1216_v23 = vadd.f32 %v2080_v29, %v2078_v35  ;;  %v1269_v27 = vadd.f32 %v2106_v2, %v2104_v12  ;;  %v2235_v35 = vmax.f32 %v2012_v58, %v2040_v60 }
 0x165   :  { %1025 = vst [vmem:[%s2219_s6] sm:$0xff] %v1016_v36  ;;  %v1008_v20 = vadd.f32 %v2121_v57, %v992_v37  ;;  %v984_v21 = vmax.f32 %v752_v22, %v953_v34  ;;  %v1279_v52 = vpop.f32.mrf.mxu1  ;;  %v1219_v25 = vadd.f32 %v2084_v40, %v2082_v38  ;;  %v1222_v9 = vadd.f32 %v2237_v55, %v2086_v45 }
 0x166   :  { %v955_v50 = vpop.f32.mrf.mxu0  ;;  %v763_v46 = vadd.f32 %v1216_v23, %v2098_v18  ;;  %v1275_v52 = vadd.f32 %v2126_v4, %v2116_v49 }
 0x167   :  { %v1017_v39 = vmax.f32 %v1008_v20, 0.0  ;;  %v993_v28 = vmax.f32 %v2232_v17, %v984_v21  ;;  %v956_v44 = vadd.f32 %v1263_v61, %v955_v50  ;;  %v1280_v11 = vpop.f32.mrf.mxu1  ;;  %v768_v56 = vadd.f32 %v1219_v25, %v2100_v43  ;;  %v2240_v17 = vld [vmem:[#allocation4_spill] sm:$0xff] }
 0x168   :  { %v1372_v1 = vpop.f32.mrf.mxu0  ;;  %v2236_v20 = vmax.f32 %v2014_v8, %v2048_v13 }
 0x169   :  { %1026 = vst [vmem:[%s2219_s6 + $0x8] sm:$0xff] %v1017_v39  ;;  %v1009_v59 = vadd.f32 %v2121_v57, %v993_v28  ;;  %v985_v41 = vmax.f32 %v755_v42, %v956_v44  ;;  %v976_v26 = vpop.f32.mrf.mxu1  ;;  %v2239_v39 = vld [vmem:[#allocation2_spill] sm:$0xff]  ;;  %v2242_v1 = vld [vmem:[#allocation3_spill] sm:$0xff] }
 0x16a   :  { %v977_v47 = vadd.f32 %v1278_v32, %v976_v26  ;;  %v960_v7 = vpop.f32.mrf.mxu0  ;;  %v2238_v32 = vld [vmem:[#allocation7_spill] sm:$0xff]  ;;  %v2241_v28 = vmax.f32 %v2239_v39, %v2240_v17 }
 0x16b   :  { %v1018_v10 = vmax.f32 %v1009_v59, 0.0  ;;  %v994_v5 = vmax.f32 %v2233_v51, %v985_v41  ;;  %v961_v31 = vadd.f32 %v1266_v15, %v960_v7  ;;  %v1383_v63 = vpop.f32.mrf.mxu1  ;;  %v771_v50 = vadd.f32 %v1222_v9, %v2238_v32 }
 0x16c   :  { %v990_v24 = vmax.f32 %v776_v48, %v977_v47  ;;  %v1375_v19 = vpop.f32.mrf.mxu0  ;;  %v2244_v15 = vmax.f32 %v2242_v1, %v2243_v62 }
 0x16d   :  { %1027 = vst [vmem:[%s2219_s6 + $0x10] sm:$0xff] %v1018_v10  ;;  %v1010_v3 = vadd.f32 %v2121_v57, %v994_v5  ;;  %v986_v6 = vmax.f32 %v760_v14, %v961_v31  ;;  %v979_v22 = vpop.f32.mrf.mxu1 }
 0x16e   :  { %v999_v54 = vmax.f32 %v2234_v53, %v990_v24  ;;  %v963_v36 = vpop.f32.mrf.mxu0 }
 0x16f   :  { %v1019_v37 = vmax.f32 %v1010_v3, 0.0  ;;  %v995_v2 = vmax.f32 %v2235_v35, %v986_v6  ;;  %v964_v29 = vadd.f32 %v1269_v27, %v963_v36  ;;  %v1384_v12 = vpop.f32.mrf.mxu1 }
 0x170   :  { %v1015_v34 = vadd.f32 %v2121_v57, %v999_v54  ;;  %v1376_v30 = vpop.f32.mrf.mxu0 }
 0x171   :  { %1028 = vst [vmem:[%s2219_s6 + $0x18] sm:$0xff] %v1019_v37  ;;  %v1011_v33 = vadd.f32 %v2121_v57, %v995_v2  ;;  %v987_v18 = vmax.f32 %v763_v46, %v964_v29 }
 0x172   :  { %v1024_v58 = vmax.f32 %v1015_v34, 0.0  ;;  %v968_v60 = vpop.f32.mrf.mxu0 }
 0x173   :  { %v1020_v61 = vmax.f32 %v1011_v33, 0.0  ;;  %v996_v21 = vmax.f32 %v2236_v20, %v987_v18  ;;  %v969_v38 = vadd.f32 %v1272_v0, %v968_v60 }
 0x174   :  { %1033 = vst [vmem:[%s2219_s6 + $0x40] sm:$0xff] %v1024_v58  ;;  %v1379_v40 = vpop.f32.mrf.mxu0 }
 0x175   :  { %1029 = vst [vmem:[%s2219_s6 + $0x20] sm:$0xff] %v1020_v61  ;;  %v1012_v43 = vadd.f32 %v2121_v57, %v996_v21  ;;  %v988_v8 = vmax.f32 %v768_v56, %v969_v38 }
 0x176   :  { %v971_v13 = vpop.f32.mrf.mxu0 }
 0x177   :  { %v1021_v42 = vmax.f32 %v1012_v43, 0.0  ;;  %v997_v44 = vmax.f32 %v2241_v28, %v988_v8  ;;  %v972_v11 = vadd.f32 %v1275_v52, %v971_v13 }
 0x178   :  { %v1380_v45 = vpop.f32.mrf.mxu0 }
 0x179   :  { %1030 = vst [vmem:[%s2219_s6 + $0x28] sm:$0xff] %v1021_v42  ;;  %v1013_v49 = vadd.f32 %v2121_v57, %v997_v44  ;;  %v989_v4 = vmax.f32 %v771_v50, %v972_v11 }
 0x17b   :  { %v1022_v16 = vmax.f32 %v1013_v49, 0.0  ;;  %v998_v59 = vmax.f32 %v2244_v15, %v989_v4 }
 0x17d   :  { %1031 = vst [vmem:[%s2219_s6 + $0x30] sm:$0xff] %v1022_v16  ;;  %v1014_v41 = vadd.f32 %v2121_v57, %v998_v59 }
 0x17f   :  { %v1023_v26 = vmax.f32 %v1014_v41, 0.0 }
 0x181   :  { %1032 = vst [vmem:[%s2219_s6 + $0x38] sm:$0xff] %v1023_v26 }

// kernel: net_forward.4
= control target key start
LH: loop header
LB: loop body
LE: loop exit
PB: predicated region body
PF: predicated region fallthrough
CT: control target
= control target key end

     0   :  { %11 = vsyncpa [#allocation3], 0  ;;  %s4217_s0 = inlined_call_operand.vmem [shape: f32[392,27], index: 0, kind: input, shape index: {}]   ;;  %s4218_s1 = inlined_call_operand.vmem [shape: f32[392,27], index: 1, kind: input, shape index: {}]   ;;  %s4219_s2 = inlined_call_operand.vmem [shape: f32[392,27], index: 2, kind: input, shape index: {}]   ;;  %s4220_s3 = inlined_call_operand.vmem [shape: f32[392,27], index: 3, kind: input, shape index: {}]   ;;  %s4221_s4 = inlined_call_operand.hbm [shape: bf16[27,32], index: 4, kind: input, shape index: {}]   ;;  %s4222_s5 = inlined_call_operand.hbm [shape: f32[1,32], index: 5, kind: input, shape index: {}]   ;;  %s4223_s6 = inlined_call_operand.vmem [shape: f32[392,32], index: 6, kind: output, shape index: {}]  }
   0x1   :  { %12 = vsyncpa [#allocation5], 0  ;;  %s2585_s21 = smov [#allocation2]  }
   0x2   :  { %s26_s22 = sshll.u32 %s2585_s21, 4  ;;  %s27_s22 = int_to_ptr.vmem [resolvable:$true] %s26_s22 }
   0x3   :  { %s2549_s23 = scalar_lea.vmem %s27_s22, 256  ;;  %p2554_p1 = scmp.lt.s32.totalorder %s27_s22, %s27_s22 }
   0x4   :  { %p2550_p0 = scmp.ne.s32.totalorder %s27_s22, %s2549_s23  ;;  %p2555_p2 = scmp.lt.s32.totalorder %s2549_s23, %s2549_s23 }
   0x6   :  { %p2556_p3 = por %p2555_p2, %p2554_p1 }
   0x8   :  { %p2557_p4 = pnand %p2556_p3, %p2550_p0 }
   0xa   :  { %2560 = shalt.err (!%p2557_p4)
}
   0xb   :  { %s2586_s24 = smov 64   ;;  %s2587_s25 = smov 4  }
   0xc   :  { %32 = dma.hbm_to_vmem [thread:$0]  %s4221_s4, 256, %s27_s22, [#allocation3], %s2586_s24, %s2586_s24, %s2587_s25  }
   0xd   :  { %s2588_s28 = smov [#allocation4]  }
   0xe   :  { %s39_s29 = sshll.u32 %s2588_s28, 4  ;;  %s40_s29 = int_to_ptr.vmem [resolvable:$true] %s39_s29 }
   0xf   :  { %s2569_s30 = scalar_lea.vmem %s40_s29, 16  ;;  %s2573_s7 = scalar_lea.vmem %s40_s29, 32 }
  0x10   :  { %p2570_p5 = scmp.ne.s32.totalorder %s40_s29, %s2569_s30  ;;  %p2574_p6 = scmp.lt.s32.totalorder %s40_s29, %s40_s29 }
  0x11   :  { %p2575_p7 = scmp.lt.s32.totalorder %s2573_s7, %s2569_s30 }
  0x13   :  { %p2576_p8 = por %p2575_p7, %p2574_p6 }
  0x15   :  { %p2577_p9 = pnand %p2576_p8, %p2570_p5 }
  0x17   :  { %2580 = shalt.err (!%p2577_p9)
}
  0x18   :  { %42 = dma.hbm_to_vmem [thread:$0]  %s4222_s5, 16, %s40_s29, [#allocation5]  }
  0x19   :  { %2581 = dma.done.wait [#allocation3], 256  }
  0x1a   :  { %2582 = vsyncadd [#allocation3], 4294967040 }
  0x1b   :  { %2583 = dma.done.wait [#allocation5], 16  }
  0x1c   :  { %2584 = vsyncadd [#allocation5], 4294967280  ;;  %vm215_vm0 = vcmask 1044480   ;;  %v4224_v0 = vmov 0.0   ;;  %vm2590_vm1 = vmmov 0   ;;  %vm216_vm2 = vcmask 1045504  }
  0x1d   :  { %2116 = vmatprep.subr.bf16.mxu0 %v4224_v0  ;;  %2220 = vmatprep.subr.bf16.mxu1 %v4224_v0  ;;  %v2591_v1 = vmov 65535   ;;  %v2539_v4 = vld [vmem:[#allocation2 + $0x8] sm:$0x3f]   ;;  %v2540_v6 = vld [vmem:[#allocation2] sm:$0xff]   ;;  %vm139_vm3 = vcmask 220160   ;;  %v56_v13 = vld [vmem:[%s4217_s0 + $0x10] sm:$0xff] }
  0x1e   :  { %2120 = vmatprep.mubr.msk.bf16.mxu0 %vm2590_vm1, %v4224_v0  ;;  %2224 = vmatprep.mubr.msk.bf16.mxu1 %vm2590_vm1, %v4224_v0  ;;  %v217_v2 = vsel %vm215_vm0, 4294967295, %v2591_v1  ;;  %v54_v7 = vld [vmem:[%s4217_s0] sm:$0xff]  ;;  %v55_v8 = vld [vmem:[%s4217_s0 + $0x8] sm:$0xff]  ;;  %v57_v14 = vld [vmem:[%s4217_s0 + $0x18] sm:$0xff]  ;;  %vm1849_vm4 = vcmask 261120  }
  0x1f   :  { %v218_v3 = vsel %vm216_vm2, %v217_v2, 0  ;;  %v454_v9 = vld [vmem:[%s4218_s1] sm:$0xff]  ;;  %v455_v10 = vld [vmem:[%s4218_s1 + $0x8] sm:$0xff]  ;;  %v103_v11 = vpack.c.bf16 %v55_v8, %v54_v7  ;;  %v456_v15 = vld [vmem:[%s4218_s1 + $0x10] sm:$0xff]  ;;  %v104_v17 = vpack.c.bf16 %v57_v14, %v56_v13 }
  0x20   :  { %v220_v5 = vand.u32 %v2539_v4, %v218_v3  ;;  %v503_v12 = vpack.c.bf16 %v455_v10, %v454_v9  ;;  %v457_v16 = vld [vmem:[%s4218_s1 + $0x18] sm:$0xff]  ;;  %v58_v19 = vld [vmem:[%s4217_s0 + $0x20] sm:$0xff]  ;;  %v59_v20 = vld [vmem:[%s4217_s0 + $0x28] sm:$0xff] }
  0x21   :  { %v504_v18 = vpack.c.bf16 %v457_v16, %v456_v15  ;;  %v458_v21 = vld [vmem:[%s4218_s1 + $0x20] sm:$0xff]  ;;  %v459_v22 = vld [vmem:[%s4218_s1 + $0x28] sm:$0xff]  ;;  %v105_v23 = vpack.c.bf16 %v59_v20, %v58_v19  ;;  %v60_v25 = vld [vmem:[%s4217_s0 + $0x30] sm:$0xff] }
  0x22   :  { %2117 = vmatpush3.bf16.msra.mxu0 %v220_v5  ;;  %2221 = vmatpush3.bf16.msra.mxu1 %v220_v5  ;;  %v505_v24 = vpack.c.bf16 %v459_v22, %v458_v21  ;;  %v61_v26 = vld [vmem:[%s4217_s0 + $0x38] sm:$0xff]  ;;  %v460_v27 = vld [vmem:[%s4218_s1 + $0x30] sm:$0xff]  ;;  %v62_v31 = vld [vmem:[%s4217_s0 + $0x40] sm:$0xff] }
  0x23   :  { %2118 = vmatprep.subr.bf16.mxu0 %v4224_v0  ;;  %2222 = vmatprep.subr.bf16.mxu1 %v4224_v0  ;;  %v461_v28 = vld [vmem:[%s4218_s1 + $0x38] sm:$0xff]  ;;  %v106_v29 = vpack.c.bf16 %v61_v26, %v60_v25  ;;  %v63_v32 = vld [vmem:[%s4217_s0 + $0x48] sm:$0xff]  ;;  %v462_v33 = vld [vmem:[%s4218_s1 + $0x40] sm:$0xff] }
  0x24   :  { %v506_v30 = vpack.c.bf16 %v461_v28, %v460_v27  ;;  %v463_v34 = vld [vmem:[%s4218_s1 + $0x48] sm:$0xff]  ;;  %v107_v35 = vpack.c.bf16 %v63_v32, %v62_v31  ;;  %v64_v37 = vld [vmem:[%s4217_s0 + $0x50] sm:$0xff]  ;;  %v65_v38 = vld [vmem:[%s4217_s0 + $0x58] sm:$0xff] }
  0x25   :  { %v507_v36 = vpack.c.bf16 %v463_v34, %v462_v33  ;;  %v464_v39 = vld [vmem:[%s4218_s1 + $0x50] sm:$0xff]  ;;  %v465_v40 = vld [vmem:[%s4218_s1 + $0x58] sm:$0xff]  ;;  %v108_v41 = vpack.c.bf16 %v65_v38, %v64_v37  ;;  %v66_v43 = vld [vmem:[%s4217_s0 + $0x60] sm:$0xff] }
  0x26   :  { %2119 = vmatpush3.bf16.msra.mxu0 %v2540_v6  ;;  %2223 = vmatpush3.bf16.msra.mxu1 %v2540_v6  ;;  %v508_v42 = vpack.c.bf16 %v465_v40, %v464_v39  ;;  %v67_v44 = vld [vmem:[%s4217_s0 + $0x68] sm:$0xff]  ;;  %v466_v45 = vld [vmem:[%s4218_s1 + $0x60] sm:$0xff]  ;;  %v68_v49 = vld [vmem:[%s4217_s0 + $0x70] sm:$0xff] }
  0x27   :  { %2324 = vmatprep.subr.bf16.mxu0 %v4224_v0  ;;  %2428 = vmatprep.subr.bf16.mxu1 %v4224_v0  ;;  %v467_v46 = vld [vmem:[%s4218_s1 + $0x68] sm:$0xff]  ;;  %v109_v47 = vpack.c.bf16 %v67_v44, %v66_v43  ;;  %v69_v50 = vld [vmem:[%s4217_s0 + $0x78] sm:$0xff]  ;;  %v468_v51 = vld [vmem:[%s4218_s1 + $0x70] sm:$0xff] }
  0x28   :  { %v509_v48 = vpack.c.bf16 %v467_v46, %v466_v45  ;;  %v469_v52 = vld [vmem:[%s4218_s1 + $0x78] sm:$0xff]  ;;  %v110_v53 = vpack.c.bf16 %v69_v50, %v68_v49  ;;  %v70_v55 = vld [vmem:[%s4217_s0 + $0x80] sm:$0xff]  ;;  %v71_v56 = vld [vmem:[%s4217_s0 + $0x88] sm:$0xff] }
  0x29   :  { %2121 = vmatmul.mubr.msk.bf16.vlgmr.msra.gmra.mxu0 %vm139_vm3, %v103_v11  ;;  %2225 = vmatmul.mubr.msk.bf16.vlgmr.msra.gmra.mxu1 %vm139_vm3, %v503_v12  ;;  %v510_v54 = vpack.c.bf16 %v469_v52, %v468_v51  ;;  %v470_v57 = vld [vmem:[%s4218_s1 + $0x80] sm:$0xff]  ;;  %v471_v58 = vld [vmem:[%s4218_s1 + $0x88] sm:$0xff]  ;;  %v111_v59 = vpack.c.bf16 %v71_v56, %v70_v55  ;;  %v72_v61 = vld [vmem:[%s4217_s0 + $0x90] sm:$0xff] }
  0x2a   :  { %2325 = vmatpush3.bf16.msra.mxu0 %v220_v5  ;;  %2429 = vmatpush3.bf16.msra.mxu1 %v220_v5  ;;  %v511_v60 = vpack.c.bf16 %v471_v58, %v470_v57  ;;  %v73_v62 = vld [vmem:[%s4217_s0 + $0x98] sm:$0xff]  ;;  %v472_v63 = vld [vmem:[%s4218_s1 + $0x90] sm:$0xff]  ;;  %v74_v4 = vld [vmem:[%s4217_s0 + $0xa0] sm:$0xff] }
  0x2b   :  { %2124 = vmatprep.mubr.msk.bf16.mxu0 %vm2590_vm1, %v4224_v0  ;;  %2228 = vmatprep.mubr.msk.bf16.mxu1 %vm2590_vm1, %v4224_v0  ;;  %v473_v1 = vld [vmem:[%s4218_s1 + $0x98] sm:$0xff]  ;;  %v112_v2 = vpack.c.bf16 %v73_v62, %v72_v61  ;;  %v75_v5 = vld [vmem:[%s4217_s0 + $0xa8] sm:$0xff]  ;;  %v76_v10 = vld [vmem:[%s4217_s0 + $0xb0] sm:$0xff] }
  0x2c   :  { %2326 = vmatprep.subr.bf16.mxu0 %v4224_v0  ;;  %2430 = vmatprep.subr.bf16.mxu1 %v4224_v0  ;;  %v512_v3 = vpack.c.bf16 %v473_v1, %v472_v63  ;;  %v475_v7 = vld [vmem:[%s4218_s1 + $0xa8] sm:$0xff]  ;;  %v113_v8 = vpack.c.bf16 %v75_v5, %v74_v4  ;;  %v77_v11 = vld [vmem:[%s4217_s0 + $0xb8] sm:$0xff]  ;;  %v476_v12 = vld [vmem:[%s4218_s1 + $0xb0] sm:$0xff] }
  0x2d   :  { %v477_v13 = vld [vmem:[%s4218_s1 + $0xb8] sm:$0xff]  ;;  %v114_v14 = vpack.c.bf16 %v77_v11, %v76_v10  ;;  %v78_v16 = vld [vmem:[%s4217_s0 + $0xc0] sm:$0xff]  ;;  %v479_v19 = vld [vmem:[%s4218_s1 + $0xc8] sm:$0xff] }
  0x2e   :  { %2327 = vmatpush3.bf16.msra.mxu0 %v2540_v6  ;;  %2431 = vmatpush3.bf16.msra.mxu1 %v2540_v6  ;;  %v474_v6 = vld [vmem:[%s4218_s1 + $0xa0] sm:$0xff]  ;;  %v514_v15 = vpack.c.bf16 %v477_v13, %v476_v12  ;;  %v80_v22 = vld [vmem:[%s4217_s0 + $0xd0] sm:$0xff]  ;;  %v481_v25 = vld [vmem:[%s4218_s1 + $0xd8] sm:$0xff] }
  0x2f   :  { %v513_v9 = vpack.c.bf16 %v475_v7, %v474_v6  ;;  %v82_v28 = vld [vmem:[%s4217_s0 + $0xe0] sm:$0xff]  ;;  %v483_v31 = vld [vmem:[%s4218_s1 + $0xe8] sm:$0xff]  ;;  %v84_v34 = vld [vmem:[%s4217_s0 + $0xf0] sm:$0xff] }
  0x30   :  { %v485_v37 = vld [vmem:[%s4218_s1 + $0xf8] sm:$0xff]  ;;  %v86_v40 = vld [vmem:[%s4217_s0 + $0x100] sm:$0xff]  ;;  %v487_v43 = vld [vmem:[%s4218_s1 + $0x108] sm:$0xff] }
  0x31   :  { %2125 = vmatmul.mubr.msk.bf16.gmra.mxu0 %vm139_vm3, %v104_v17  ;;  %2229 = vmatmul.mubr.msk.bf16.gmra.mxu1 %vm139_vm3, %v504_v18  ;;  %v79_v17 = vld [vmem:[%s4217_s0 + $0xc8] sm:$0xff]  ;;  %v478_v18 = vld [vmem:[%s4218_s1 + $0xc0] sm:$0xff]  ;;  %v88_v46 = vld [vmem:[%s4217_s0 + $0x110] sm:$0xff] }
  0x32   :  { %2128 = vmatprep.mubr.msk.bf16.mxu0 %vm2590_vm1, %v4224_v0  ;;  %2232 = vmatprep.mubr.msk.bf16.mxu1 %vm2590_vm1, %v4224_v0  ;;  %v115_v20 = vpack.c.bf16 %v79_v17, %v78_v16  ;;  %v515_v21 = vpack.c.bf16 %v479_v19, %v478_v18  ;;  %v489_v49 = vld [vmem:[%s4218_s1 + $0x118] sm:$0xff]  ;;  %v90_v52 = vld [vmem:[%s4217_s0 + $0x120] sm:$0xff]  ;;  %v491_v55 = vld [vmem:[%s4218_s1 + $0x128] sm:$0xff] }
  0x33   :  { %v92_v58 = vld [vmem:[%s4217_s0 + $0x130] sm:$0xff]  ;;  %v493_v61 = vld [vmem:[%s4218_s1 + $0x138] sm:$0xff]  ;;  %v94_v1 = vld [vmem:[%s4217_s0 + $0x140] sm:$0xff] }
  0x34   :  { %v495_v4 = vld [vmem:[%s4218_s1 + $0x148] sm:$0xff]  ;;  %v96_v7 = vld [vmem:[%s4217_s0 + $0x150] sm:$0xff]  ;;  %v497_v10 = vld [vmem:[%s4218_s1 + $0x158] sm:$0xff] }
  0x35   :  { %v98_v13 = vld [vmem:[%s4217_s0 + $0x160] sm:$0xff]  ;;  %v499_v16 = vld [vmem:[%s4218_s1 + $0x168] sm:$0xff]  ;;  %v100_v19 = vld [vmem:[%s4217_s0 + $0x170] sm:$0xff] }
  0x39   :  { %2129 = vmatmul.mubr.msk.bf16.gmra.mxu0 %vm139_vm3, %v105_v23  ;;  %2233 = vmatmul.mubr.msk.bf16.gmra.mxu1 %vm139_vm3, %v505_v24  ;;  %v81_v23 = vld [vmem:[%s4217_s0 + $0xd8] sm:$0xff]  ;;  %v480_v24 = vld [vmem:[%s4218_s1 + $0xd0] sm:$0xff] }
  0x3a   :  { %2132 = vmatprep.mubr.msk.bf16.mxu0 %vm2590_vm1, %v4224_v0  ;;  %2236 = vmatprep.mubr.msk.bf16.mxu1 %vm2590_vm1, %v4224_v0  ;;  %v116_v26 = vpack.c.bf16 %v81_v23, %v80_v22  ;;  %v516_v27 = vpack.c.bf16 %v481_v25, %v480_v24  ;;  %v501_v22 = vld [vmem:[%s4218_s1 + $0x178] sm:$0xff]  ;;  %v102_v25 = vld [vmem:[%s4217_s0 + $0x180] sm:$0xff] }
  0x41   :  { %2133 = vmatmul.mubr.msk.bf16.gmra.mxu0 %vm139_vm3, %v106_v29  ;;  %2237 = vmatmul.mubr.msk.bf16.gmra.mxu1 %vm139_vm3, %v506_v30  ;;  %v83_v29 = vld [vmem:[%s4217_s0 + $0xe8] sm:$0xff]  ;;  %v482_v30 = vld [vmem:[%s4218_s1 + $0xe0] sm:$0xff] }
  0x42   :  { %2136 = vmatprep.mubr.msk.bf16.mxu0 %vm2590_vm1, %v4224_v0  ;;  %2240 = vmatprep.mubr.msk.bf16.mxu1 %vm2590_vm1, %v4224_v0  ;;  %v117_v32 = vpack.c.bf16 %v83_v29, %v82_v28  ;;  %v517_v33 = vpack.c.bf16 %v483_v31, %v482_v30  ;;  %v884_v31 = vld [vmem:[%s4219_s2] sm:$0xff] }
  0x49   :  { %2137 = vmatmul.mubr.msk.bf16.gmra.mxu0 %vm139_vm3, %v107_v35  ;;  %2241 = vmatmul.mubr.msk.bf16.gmra.mxu1 %vm139_vm3, %v507_v36  ;;  %v85_v35 = vld [vmem:[%s4217_s0 + $0xf8] sm:$0xff]  ;;  %v484_v36 = vld [vmem:[%s4218_s1 + $0xf0] sm:$0xff] }
  0x4a   :  { %2140 = vmatprep.mubr.msk.bf16.mxu0 %vm2590_vm1, %v4224_v0  ;;  %2244 = vmatprep.mubr.msk.bf16.mxu1 %vm2590_vm1, %v4224_v0  ;;  %v118_v38 = vpack.c.bf16 %v85_v35, %v84_v34  ;;  %v518_v39 = vpack.c.bf16 %v485_v37, %v484_v36  ;;  %v1265_v34 = vld [vmem:[%s4220_s3] sm:$0xff]  ;;  %v1266_v35 = vld [vmem:[%s4220_s3 + $0x8] sm:$0xff] }
  0x51   :  { %2141 = vmatmul.mubr.msk.bf16.gmra.mxu0 %vm139_vm3, %v108_v41  ;;  %2245 = vmatmul.mubr.msk.bf16.gmra.mxu1 %vm139_vm3, %v508_v42  ;;  %v87_v41 = vld [vmem:[%s4217_s0 + $0x108] sm:$0xff]  ;;  %v486_v42 = vld [vmem:[%s4218_s1 + $0x100] sm:$0xff] }
  0x52   :  { %2144 = vmatprep.mubr.msk.bf16.mxu0 %vm2590_vm1, %v4224_v0  ;;  %2248 = vmatprep.mubr.msk.bf16.mxu1 %vm2590_vm1, %v4224_v0  ;;  %v119_v44 = vpack.c.bf16 %v87_v41, %v86_v40  ;;  %v519_v45 = vpack.c.bf16 %v487_v43, %v486_v42  ;;  %v1314_v41 = vpack.c.bf16 %v1266_v35, %v1265_v34  ;;  %v892_v35 = vld [vmem:[%s4219_s2 + $0x40] sm:$0xff] }
  0x59   :  { %2145 = vmatmul.mubr.msk.bf16.gmra.mxu0 %vm139_vm3, %v109_v47  ;;  %2249 = vmatmul.mubr.msk.bf16.gmra.mxu1 %vm139_vm3, %v509_v48  ;;  %v89_v47 = vld [vmem:[%s4217_s0 + $0x118] sm:$0xff]  ;;  %v488_v48 = vld [vmem:[%s4218_s1 + $0x110] sm:$0xff] }
  0x5a   :  { %2148 = vmatprep.mubr.msk.bf16.mxu0 %vm2590_vm1, %v4224_v0  ;;  %2252 = vmatprep.mubr.msk.bf16.mxu1 %vm2590_vm1, %v4224_v0  ;;  %v120_v50 = vpack.c.bf16 %v89_v47, %v88_v46  ;;  %v520_v51 = vpack.c.bf16 %v489_v49, %v488_v48  ;;  %v886_v47 = vld [vmem:[%s4219_s2 + $0x10] sm:$0xff]  ;;  %v887_v49 = vld [vmem:[%s4219_s2 + $0x18] sm:$0xff] }
  0x61   :  { %2149 = vmatmul.mubr.msk.bf16.gmra.mxu0 %vm139_vm3, %v110_v53  ;;  %2253 = vmatmul.mubr.msk.bf16.gmra.mxu1 %vm139_vm3, %v510_v54  ;;  %v91_v53 = vld [vmem:[%s4217_s0 + $0x128] sm:$0xff]  ;;  %v490_v54 = vld [vmem:[%s4218_s1 + $0x120] sm:$0xff] }
  0x62   :  { %2152 = vmatprep.mubr.msk.bf16.mxu0 %vm2590_vm1, %v4224_v0  ;;  %2256 = vmatprep.mubr.msk.bf16.mxu1 %vm2590_vm1, %v4224_v0  ;;  %v121_v56 = vpack.c.bf16 %v91_v53, %v90_v52  ;;  %v521_v57 = vpack.c.bf16 %v491_v55, %v490_v54 }
  0x69   :  { %2153 = vmatmul.mubr.msk.bf16.gmra.mxu0 %vm139_vm3, %v111_v59  ;;  %2257 = vmatmul.mubr.msk.bf16.gmra.mxu1 %vm139_vm3, %v511_v60  ;;  %v93_v59 = vld [vmem:[%s4217_s0 + $0x138] sm:$0xff]  ;;  %v492_v60 = vld [vmem:[%s4218_s1 + $0x130] sm:$0xff] }
  0x6a   :  { %2156 = vmatprep.mubr.msk.bf16.mxu0 %vm2590_vm1, %v4224_v0  ;;  %2260 = vmatprep.mubr.msk.bf16.mxu1 %vm2590_vm1, %v4224_v0  ;;  %v122_v62 = vpack.c.bf16 %v93_v59, %v92_v58  ;;  %v522_v63 = vpack.c.bf16 %v493_v61, %v492_v60 }
  0x71   :  { %2157 = vmatmul.mubr.msk.bf16.gmra.mxu0 %vm139_vm3, %v112_v2  ;;  %2261 = vmatmul.mubr.msk.bf16.gmra.mxu1 %vm139_vm3, %v512_v3  ;;  %v95_v2 = vld [vmem:[%s4217_s0 + $0x148] sm:$0xff]  ;;  %v494_v3 = vld [vmem:[%s4218_s1 + $0x140] sm:$0xff] }
  0x72   :  { %2160 = vmatprep.mubr.msk.bf16.mxu0 %vm2590_vm1, %v4224_v0  ;;  %2264 = vmatprep.mubr.msk.bf16.mxu1 %vm2590_vm1, %v4224_v0  ;;  %v123_v5 = vpack.c.bf16 %v95_v2, %v94_v1  ;;  %v523_v6 = vpack.c.bf16 %v495_v4, %v494_v3  ;;  %v889_v2 = vld [vmem:[%s4219_s2 + $0x28] sm:$0xff]  ;;  %v1269_v3 = vld [vmem:[%s4220_s3 + $0x20] sm:$0xff] }
  0x73   :  { %v1270_v4 = vld [vmem:[%s4220_s3 + $0x28] sm:$0xff] }
  0x79   :  { %2161 = vmatmul.mubr.msk.bf16.gmra.mxu0 %vm139_vm3, %v113_v8  ;;  %2265 = vmatmul.mubr.msk.bf16.gmra.mxu1 %vm139_vm3, %v513_v9  ;;  %v97_v8 = vld [vmem:[%s4217_s0 + $0x158] sm:$0xff]  ;;  %v496_v9 = vld [vmem:[%s4218_s1 + $0x150] sm:$0xff] }
  0x7a   :  { %2164 = vmatprep.mubr.msk.bf16.mxu0 %vm2590_vm1, %v4224_v0  ;;  %2268 = vmatprep.mubr.msk.bf16.mxu1 %vm2590_vm1, %v4224_v0  ;;  %v124_v11 = vpack.c.bf16 %v97_v8, %v96_v7  ;;  %v524_v12 = vpack.c.bf16 %v497_v10, %v496_v9  ;;  %v1316_v10 = vpack.c.bf16 %v1270_v4, %v1269_v3  ;;  %v1275_v3 = vld [vmem:[%s4220_s3 + $0x50] sm:$0xff]  ;;  %v1276_v4 = vld [vmem:[%s4220_s3 + $0x58] sm:$0xff] }
  0x81   :  { %2165 = vmatmul.mubr.msk.bf16.gmra.mxu0 %vm139_vm3, %v114_v14  ;;  %2269 = vmatmul.mubr.msk.bf16.gmra.mxu1 %vm139_vm3, %v514_v15  ;;  %v99_v14 = vld [vmem:[%s4217_s0 + $0x168] sm:$0xff]  ;;  %v498_v15 = vld [vmem:[%s4218_s1 + $0x160] sm:$0xff] }
  0x82   :  { %2168 = vmatprep.mubr.msk.bf16.mxu0 %vm2590_vm1, %v4224_v0  ;;  %2272 = vmatprep.mubr.msk.bf16.mxu1 %vm2590_vm1, %v4224_v0  ;;  %v125_v17 = vpack.c.bf16 %v99_v14, %v98_v13  ;;  %v525_v18 = vpack.c.bf16 %v499_v16, %v498_v15  ;;  %v890_v16 = vld [vmem:[%s4219_s2 + $0x30] sm:$0xff] }
  0x89   :  { %2169 = vmatmul.mubr.msk.bf16.gmra.mxu0 %vm139_vm3, %v115_v20  ;;  %2273 = vmatmul.mubr.msk.bf16.gmra.mxu1 %vm139_vm3, %v515_v21  ;;  %v101_v20 = vld [vmem:[%s4217_s0 + $0x178] sm:$0xff]  ;;  %v500_v21 = vld [vmem:[%s4218_s1 + $0x170] sm:$0xff] }
  0x8a   :  { %2172 = vmatprep.mubr.msk.bf16.mxu0 %vm2590_vm1, %v4224_v0  ;;  %2276 = vmatprep.mubr.msk.bf16.mxu1 %vm2590_vm1, %v4224_v0  ;;  %v126_v23 = vpack.c.bf16 %v101_v20, %v100_v19  ;;  %v526_v24 = vpack.c.bf16 %v501_v22, %v500_v21  ;;  %v1271_v19 = vld [vmem:[%s4220_s3 + $0x30] sm:$0xff]  ;;  %v1272_v20 = vld [vmem:[%s4220_s3 + $0x38] sm:$0xff] }
  0x91   :  { %2173 = vmatmul.mubr.msk.bf16.gmra.mxu0 %vm139_vm3, %v116_v26  ;;  %2277 = vmatmul.mubr.msk.bf16.gmra.mxu1 %vm139_vm3, %v516_v27  ;;  %v502_v26 = vld [vmem:[%s4218_s1 + $0x180] sm:$0xff]  ;;  %v127_v27 = vpack.c.bf16 %v102_v25, %v102_v25 }
  0x92   :  { %2176 = vmatprep.mubr.msk.bf16.mxu0 %vm2590_vm1, %v4224_v0  ;;  %2280 = vmatprep.mubr.msk.bf16.mxu1 %vm2590_vm1, %v4224_v0  ;;  %v527_v28 = vpack.c.bf16 %v502_v26, %v502_v26  ;;  %v1317_v26 = vpack.c.bf16 %v1272_v20, %v1271_v19 }
  0x99   :  { %2177 = vmatmul.mubr.msk.bf16.gmra.mxu0 %vm139_vm3, %v117_v32  ;;  %2281 = vmatmul.mubr.msk.bf16.gmra.mxu1 %vm139_vm3, %v517_v33  ;;  %v885_v33 = vld [vmem:[%s4219_s2 + $0x8] sm:$0xff] }
  0x9a   :  { %2180 = vmatprep.mubr.msk.bf16.mxu0 %vm2590_vm1, %v4224_v0  ;;  %2284 = vmatprep.mubr.msk.bf16.mxu1 %vm2590_vm1, %v4224_v0  ;;  %v933_v40 = vpack.c.bf16 %v885_v33, %v884_v31 }
  0xa1   :  { %2181 = vmatmul.mubr.msk.bf16.gmra.mxu0 %vm139_vm3, %v118_v38  ;;  %2285 = vmatmul.mubr.msk.bf16.gmra.mxu1 %vm139_vm3, %v518_v39 }
  0xa2   :  { %2184 = vmatprep.mubr.msk.bf16.mxu0 %vm2590_vm1, %v4224_v0  ;;  %2288 = vmatprep.mubr.msk.bf16.mxu1 %vm2590_vm1, %v4224_v0 }
  0xa9   :  { %2185 = vmatmul.mubr.msk.bf16.gmra.mxu0 %vm139_vm3, %v119_v44  ;;  %2289 = vmatmul.mubr.msk.bf16.gmra.mxu1 %vm139_vm3, %v519_v45 }
  0xaa   :  { %2188 = vmatprep.mubr.msk.bf16.mxu0 %vm2590_vm1, %v4224_v0  ;;  %2292 = vmatprep.mubr.msk.bf16.mxu1 %vm2590_vm1, %v4224_v0 }
  0xb1   :  { %2189 = vmatmul.mubr.msk.bf16.gmra.mxu0 %vm139_vm3, %v120_v50  ;;  %2293 = vmatmul.mubr.msk.bf16.gmra.mxu1 %vm139_vm3, %v520_v51  ;;  %v1267_v50 = vld [vmem:[%s4220_s3 + $0x10] sm:$0xff]  ;;  %v1268_v51 = vld [vmem:[%s4220_s3 + $0x18] sm:$0xff] }
  0xb2   :  { %2192 = vmatprep.mubr.msk.bf16.mxu0 %vm2590_vm1, %v4224_v0  ;;  %2296 = vmatprep.mubr.msk.bf16.mxu1 %vm2590_vm1, %v4224_v0 }
  0xb9   :  { %2193 = vmatmul.mubr.msk.bf16.gmra.mxu0 %vm139_vm3, %v121_v56  ;;  %2297 = vmatmul.mubr.msk.bf16.gmra.mxu1 %vm139_vm3, %v521_v57  ;;  %v934_v56 = vpack.c.bf16 %v887_v49, %v886_v47  ;;  %v1315_v57 = vpack.c.bf16 %v1268_v51, %v1267_v50 }
  0xba   :  { %2196 = vmatprep.mubr.msk.bf16.mxu0 %vm2590_vm1, %v4224_v0  ;;  %2300 = vmatprep.mubr.msk.bf16.mxu1 %vm2590_vm1, %v4224_v0 }
  0xc1   :  { %2197 = vmatmul.mubr.msk.bf16.gmra.mxu0 %vm139_vm3, %v122_v62  ;;  %2301 = vmatmul.mubr.msk.bf16.gmra.mxu1 %vm139_vm3, %v522_v63  ;;  %v888_v63 = vld [vmem:[%s4219_s2 + $0x20] sm:$0xff] }
  0xc2   :  { %2200 = vmatprep.mubr.msk.bf16.mxu0 %vm2590_vm1, %v4224_v0  ;;  %2304 = vmatprep.mubr.msk.bf16.mxu1 %vm2590_vm1, %v4224_v0  ;;  %v935_v9 = vpack.c.bf16 %v889_v2, %v888_v63  ;;  %v895_v2 = vld [vmem:[%s4219_s2 + $0x58] sm:$0xff] }
  0xc9   :  { %2201 = vmatmul.mubr.msk.bf16.gmra.mxu0 %vm139_vm3, %v123_v5  ;;  %2305 = vmatmul.mubr.msk.bf16.gmra.mxu1 %vm139_vm3, %v523_v6 }
  0xca   :  { %2204 = vmatprep.mubr.msk.bf16.mxu0 %vm2590_vm1, %v4224_v0  ;;  %2308 = vmatprep.mubr.msk.bf16.mxu1 %vm2590_vm1, %v4224_v0 }
  0xd1   :  { %2205 = vmatmul.mubr.msk.bf16.gmra.mxu0 %vm139_vm3, %v124_v11  ;;  %2309 = vmatmul.mubr.msk.bf16.gmra.mxu1 %vm139_vm3, %v524_v12 }
  0xd2   :  { %2208 = vmatprep.mubr.msk.bf16.mxu0 %vm2590_vm1, %v4224_v0  ;;  %2312 = vmatprep.mubr.msk.bf16.mxu1 %vm2590_vm1, %v4224_v0 }
  0xd9   :  { %2209 = vmatmul.mubr.msk.bf16.gmra.mxu0 %vm139_vm3, %v125_v17  ;;  %2313 = vmatmul.mubr.msk.bf16.gmra.mxu1 %vm139_vm3, %v525_v18  ;;  %v891_v18 = vld [vmem:[%s4219_s2 + $0x38] sm:$0xff] }
  0xda   :  { %2212 = vmatprep.mubr.msk.bf16.mxu0 %vm2590_vm1, %v4224_v0  ;;  %2316 = vmatprep.mubr.msk.bf16.mxu1 %vm2590_vm1, %v4224_v0  ;;  %v936_v25 = vpack.c.bf16 %v891_v18, %v890_v16 }
  0xe1   :  { %2213 = vmatmul.mubr.msk.bf16.gmra.mxu0 %vm139_vm3, %v126_v23  ;;  %2317 = vmatmul.mubr.msk.bf16.gmra.mxu1 %vm139_vm3, %v526_v24 }
  0xe2   :  { %2216 = vmatprep.mubr.msk.bf16.mxu0 %vm2590_vm1, %v4224_v0  ;;  %2320 = vmatprep.mubr.msk.bf16.mxu1 %vm2590_vm1, %v4224_v0 }
  0xe9   :  { %v3083_v29 = vpop.f32.mrf.mxu0  ;;  %2217 = vmatmul.mubr.msk.bf16.gmra.mxu0 %vm139_vm3, %v127_v27  ;;  %v3086_v30 = vpop.f32.mrf.mxu1  ;;  %2321 = vmatmul.mubr.msk.bf16.gmra.mxu1 %vm139_vm3, %v527_v28 }
  0xea   :  { %2328 = vmatprep.mubr.msk.bf16.mxu0 %vm2590_vm1, %v4224_v0  ;;  %2432 = vmatprep.mubr.msk.bf16.mxu1 %vm2590_vm1, %v4224_v0 }
  0xeb   :  { %v2122_v36 = vpop.f32.mrf.mxu0  ;;  %v2226_v37 = vpop.f32.mrf.mxu1 }
  0xec   :  { %v893_v37 = vld [vmem:[%s4219_s2 + $0x48] sm:$0xff] }
  0xed   :  { %v3107_v38 = vpop.f32.mrf.mxu0  ;;  %v3109_v39 = vpop.f32.mrf.mxu1  ;;  %v937_v50 = vpack.c.bf16 %v893_v37, %v892_v35 }
  0xef   :  { %v2123_v43 = vpop.f32.mrf.mxu0  ;;  %v2227_v44 = vpop.f32.mrf.mxu1 }
  0xf1   :  { %v3113_v45 = vpop.f32.mrf.mxu0  ;;  %v3115_v46 = vpop.f32.mrf.mxu1  ;;  %2329 = vmatmul.mubr.msk.bf16.vlgmr.msra.gmra.mxu0 %vm139_vm3, %v933_v40  ;;  %2433 = vmatmul.mubr.msk.bf16.vlgmr.msra.gmra.mxu1 %vm139_vm3, %v1314_v41  ;;  %v1273_v40 = vld [vmem:[%s4220_s3 + $0x40] sm:$0xff]  ;;  %v1274_v41 = vld [vmem:[%s4220_s3 + $0x48] sm:$0xff] }
  0xf2   :  { %2332 = vmatprep.mubr.msk.bf16.mxu0 %vm2590_vm1, %v4224_v0  ;;  %2436 = vmatprep.mubr.msk.bf16.mxu1 %vm2590_vm1, %v4224_v0  ;;  %v1318_v51 = vpack.c.bf16 %v1274_v41, %v1273_v40 }
  0xf3   :  { %v2126_v52 = vpop.f32.mrf.mxu0  ;;  %v2230_v53 = vpop.f32.mrf.mxu1 }
  0xf5   :  { %v3137_v54 = vpop.f32.mrf.mxu0  ;;  %v3139_v55 = vpop.f32.mrf.mxu1 }
  0xf7   :  { %v2127_v59 = vpop.f32.mrf.mxu0  ;;  %v2231_v60 = vpop.f32.mrf.mxu1 }
  0xf8   :  { %v894_v60 = vld [vmem:[%s4219_s2 + $0x50] sm:$0xff] }
  0xf9   :  { %v3143_v61 = vpop.f32.mrf.mxu0  ;;  %v3145_v62 = vpop.f32.mrf.mxu1  ;;  %2333 = vmatmul.mubr.msk.bf16.gmra.mxu0 %vm139_vm3, %v934_v56  ;;  %2437 = vmatmul.mubr.msk.bf16.gmra.mxu1 %vm139_vm3, %v1315_v57 }
  0xfa   :  { %2336 = vmatprep.mubr.msk.bf16.mxu0 %vm2590_vm1, %v4224_v0  ;;  %2440 = vmatprep.mubr.msk.bf16.mxu1 %vm2590_vm1, %v4224_v0 }
  0xfb   :  { %v2130_v5 = vpop.f32.mrf.mxu0  ;;  %v2234_v6 = vpop.f32.mrf.mxu1 }
  0xfd   :  { %v3167_v7 = vpop.f32.mrf.mxu0  ;;  %v3169_v8 = vpop.f32.mrf.mxu1 }
  0xff   :  { %v2131_v12 = vpop.f32.mrf.mxu0  ;;  %v2235_v13 = vpop.f32.mrf.mxu1 }
 0x100   :  { %v938_v12 = vpack.c.bf16 %v895_v2, %v894_v60  ;;  %v1319_v13 = vpack.c.bf16 %v1276_v4, %v1275_v3  ;;  %v898_v2 = vld [vmem:[%s4219_s2 + $0x70] sm:$0xff]  ;;  %v899_v4 = vld [vmem:[%s4219_s2 + $0x78] sm:$0xff] }
 0x101   :  { %v3173_v14 = vpop.f32.mrf.mxu0  ;;  %v3175_v15 = vpop.f32.mrf.mxu1  ;;  %2337 = vmatmul.mubr.msk.bf16.gmra.mxu0 %vm139_vm3, %v935_v9  ;;  %2441 = vmatmul.mubr.msk.bf16.gmra.mxu1 %vm139_vm3, %v1316_v10 }
 0x102   :  { %2340 = vmatprep.mubr.msk.bf16.mxu0 %vm2590_vm1, %v4224_v0  ;;  %2444 = vmatprep.mubr.msk.bf16.mxu1 %vm2590_vm1, %v4224_v0 }
 0x103   :  { %v2134_v21 = vpop.f32.mrf.mxu0  ;;  %v2238_v22 = vpop.f32.mrf.mxu1 }
 0x104   :  { %v896_v22 = vld [vmem:[%s4219_s2 + $0x60] sm:$0xff] }
 0x105   :  { %v3197_v23 = vpop.f32.mrf.mxu0  ;;  %v3199_v24 = vpop.f32.mrf.mxu1 }
 0x107   :  { %v2135_v28 = vpop.f32.mrf.mxu0  ;;  %v2239_v31 = vpop.f32.mrf.mxu1 }
 0x108   :  { %v1277_v28 = vld [vmem:[%s4220_s3 + $0x60] sm:$0xff]  ;;  %v1278_v31 = vld [vmem:[%s4220_s3 + $0x68] sm:$0xff] }
 0x109   :  { %v3203_v33 = vpop.f32.mrf.mxu0  ;;  %v3205_v34 = vpop.f32.mrf.mxu1  ;;  %2341 = vmatmul.mubr.msk.bf16.gmra.mxu0 %vm139_vm3, %v936_v25  ;;  %2445 = vmatmul.mubr.msk.bf16.gmra.mxu1 %vm139_vm3, %v1317_v26  ;;  %v897_v26 = vld [vmem:[%s4219_s2 + $0x68] sm:$0xff] }
 0x10a   :  { %2344 = vmatprep.mubr.msk.bf16.mxu0 %vm2590_vm1, %v4224_v0  ;;  %2448 = vmatprep.mubr.msk.bf16.mxu1 %vm2590_vm1, %v4224_v0 }
 0x10b   :  { %v2138_v43 = vpop.f32.mrf.mxu0  ;;  %v2242_v44 = vpop.f32.mrf.mxu1 }
 0x10c   :  { %v939_v43 = vpack.c.bf16 %v897_v26, %v896_v22  ;;  %v1320_v44 = vpack.c.bf16 %v1278_v31, %v1277_v28  ;;  %v940_v22 = vpack.c.bf16 %v899_v4, %v898_v2  ;;  %v1281_v2 = vld [vmem:[%s4220_s3 + $0x80] sm:$0xff]  ;;  %v1282_v4 = vld [vmem:[%s4220_s3 + $0x88] sm:$0xff] }
 0x10d   :  { %v3227_v47 = vpop.f32.mrf.mxu0  ;;  %v3229_v49 = vpop.f32.mrf.mxu1 }
 0x10f   :  { %v2139_v53 = vpop.f32.mrf.mxu0  ;;  %v2243_v56 = vpop.f32.mrf.mxu1 }
 0x111   :  { %v3233_v57 = vpop.f32.mrf.mxu0  ;;  %v3235_v59 = vpop.f32.mrf.mxu1  ;;  %2345 = vmatmul.mubr.msk.bf16.gmra.mxu0 %vm139_vm3, %v937_v50  ;;  %2449 = vmatmul.mubr.msk.bf16.gmra.mxu1 %vm139_vm3, %v1318_v51 }
 0x112   :  { %2348 = vmatprep.mubr.msk.bf16.mxu0 %vm2590_vm1, %v4224_v0  ;;  %2452 = vmatprep.mubr.msk.bf16.mxu1 %vm2590_vm1, %v4224_v0 }
 0x113   :  { %v2142_v5 = vpop.f32.mrf.mxu0  ;;  %v2246_v6 = vpop.f32.mrf.mxu1 }
 0x114   :  { %v1279_v5 = vld [vmem:[%s4220_s3 + $0x70] sm:$0xff]  ;;  %v1280_v6 = vld [vmem:[%s4220_s3 + $0x78] sm:$0xff] }
 0x115   :  { %v3257_v9 = vpop.f32.mrf.mxu0  ;;  %v3259_v10 = vpop.f32.mrf.mxu1  ;;  %v1321_v26 = vpack.c.bf16 %v1280_v6, %v1279_v5 }
 0x117   :  { %v2143_v18 = vpop.f32.mrf.mxu0  ;;  %v2247_v19 = vpop.f32.mrf.mxu1 }
 0x119   :  { %v3263_v20 = vpop.f32.mrf.mxu0  ;;  %v3265_v21 = vpop.f32.mrf.mxu1  ;;  %2349 = vmatmul.mubr.msk.bf16.gmra.mxu0 %vm139_vm3, %v938_v12  ;;  %2453 = vmatmul.mubr.msk.bf16.gmra.mxu1 %vm139_vm3, %v1319_v13 }
 0x11a   :  { %2352 = vmatprep.mubr.msk.bf16.mxu0 %vm2590_vm1, %v4224_v0  ;;  %2456 = vmatprep.mubr.msk.bf16.mxu1 %vm2590_vm1, %v4224_v0 }
 0x11b   :  { %v2146_v35 = vpop.f32.mrf.mxu0  ;;  %v2250_v37 = vpop.f32.mrf.mxu1 }
 0x11d   :  { %v3287_v40 = vpop.f32.mrf.mxu0  ;;  %v3289_v41 = vpop.f32.mrf.mxu1 }
 0x11f   :  { %v2147_v51 = vpop.f32.mrf.mxu0  ;;  %v2251_v53 = vpop.f32.mrf.mxu1 }
 0x120   :  { %v901_v53 = vld [vmem:[%s4219_s2 + $0x88] sm:$0xff] }
 0x121   :  { %v3293_v56 = vpop.f32.mrf.mxu0  ;;  %v3295_v60 = vpop.f32.mrf.mxu1  ;;  %2353 = vmatmul.mubr.msk.bf16.gmra.mxu0 %vm139_vm3, %v939_v43  ;;  %2457 = vmatmul.mubr.msk.bf16.gmra.mxu1 %vm139_vm3, %v1320_v44  ;;  %v900_v44 = vld [vmem:[%s4219_s2 + $0x80] sm:$0xff] }
 0x122   :  { %2356 = vmatprep.mubr.msk.bf16.mxu0 %vm2590_vm1, %v4224_v0  ;;  %2460 = vmatprep.mubr.msk.bf16.mxu1 %vm2590_vm1, %v4224_v0 }
 0x123   :  { %v2150_v12 = vpop.f32.mrf.mxu0  ;;  %v2254_v13 = vpop.f32.mrf.mxu1 }
 0x125   :  { %v3317_v18 = vpop.f32.mrf.mxu0  ;;  %v3319_v19 = vpop.f32.mrf.mxu1 }
 0x127   :  { %v2151_v31 = vpop.f32.mrf.mxu0  ;;  %v2255_v35 = vpop.f32.mrf.mxu1 }
 0x129   :  { %v3323_v37 = vpop.f32.mrf.mxu0  ;;  %v3325_v43 = vpop.f32.mrf.mxu1  ;;  %2357 = vmatmul.mubr.msk.bf16.gmra.mxu0 %vm139_vm3, %v940_v22  ;;  %2461 = vmatmul.mubr.msk.bf16.gmra.mxu1 %vm139_vm3, %v1321_v26  ;;  %v941_v22 = vpack.c.bf16 %v901_v53, %v900_v44  ;;  %v1322_v26 = vpack.c.bf16 %v1282_v4, %v1281_v2  ;;  %v1283_v53 = vld [vmem:[%s4220_s3 + $0x90] sm:$0xff]  ;;  %v1284_v2 = vld [vmem:[%s4220_s3 + $0x98] sm:$0xff] }
 0x12a   :  { %2360 = vmatprep.mubr.msk.bf16.mxu0 %vm2590_vm1, %v4224_v0  ;;  %2464 = vmatprep.mubr.msk.bf16.mxu1 %vm2590_vm1, %v4224_v0  ;;  %v1323_v44 = vpack.c.bf16 %v1284_v2, %v1283_v53 }
 0x12b   :  { %v2154_v5 = vpop.f32.mrf.mxu0  ;;  %v2258_v6 = vpop.f32.mrf.mxu1 }
 0x12c   :  { %v902_v5 = vld [vmem:[%s4219_s2 + $0x90] sm:$0xff] }
 0x12d   :  { %v3347_v12 = vpop.f32.mrf.mxu0  ;;  %v3349_v13 = vpop.f32.mrf.mxu1 }
 0x12f   :  { %v2155_v35 = vpop.f32.mrf.mxu0  ;;  %v2259_v51 = vpop.f32.mrf.mxu1 }
 0x130   :  { %v903_v51 = vld [vmem:[%s4219_s2 + $0x98] sm:$0xff] }
 0x131   :  { %v3353_v28 = vpop.f32.mrf.mxu0  ;;  %v3355_v3 = vpop.f32.mrf.mxu1  ;;  %2361 = vmatmul.mubr.msk.bf16.gmra.mxu0 %vm139_vm3, %v941_v22  ;;  %2465 = vmatmul.mubr.msk.bf16.gmra.mxu1 %vm139_vm3, %v1322_v26  ;;  %v942_v35 = vpack.c.bf16 %v903_v51, %v902_v5 }
 0x132   :  { %2364 = vmatprep.mubr.msk.bf16.mxu0 %vm2590_vm1, %v4224_v0  ;;  %2468 = vmatprep.mubr.msk.bf16.mxu1 %vm2590_vm1, %v4224_v0 }
 0x133   :  { %v2158_v4 = vpop.f32.mrf.mxu0  ;;  %v2262_v6 = vpop.f32.mrf.mxu1 }
 0x134   :  { %v904_v4 = vld [vmem:[%s4219_s2 + $0xa0] sm:$0xff] }
 0x135   :  { %v3377_v22 = vpop.f32.mrf.mxu0  ;;  %v3379_v26 = vpop.f32.mrf.mxu1 }
 0x137   :  { %v2159_v50 = vpop.f32.mrf.mxu0  ;;  %v2263_v25 = vpop.f32.mrf.mxu1 }
 0x138   :  { %v905_v25 = vld [vmem:[%s4219_s2 + $0xa8] sm:$0xff]  ;;  %v1285_v50 = vld [vmem:[%s4220_s3 + $0xa0] sm:$0xff] }
 0x139   :  { %v3383_v16 = vpop.f32.mrf.mxu0  ;;  %v3385_v63 = vpop.f32.mrf.mxu1  ;;  %2365 = vmatmul.mubr.msk.bf16.gmra.mxu0 %vm139_vm3, %v942_v35  ;;  %2469 = vmatmul.mubr.msk.bf16.gmra.mxu1 %vm139_vm3, %v1323_v44  ;;  %v1286_v44 = vld [vmem:[%s4220_s3 + $0xa8] sm:$0xff]  ;;  %v943_v35 = vpack.c.bf16 %v905_v25, %v904_v4 }
 0x13a   :  { %2368 = vmatprep.mubr.msk.bf16.mxu0 %vm2590_vm1, %v4224_v0  ;;  %2472 = vmatprep.mubr.msk.bf16.mxu1 %vm2590_vm1, %v4224_v0  ;;  %v1324_v5 = vpack.c.bf16 %v1286_v44, %v1285_v50 }
 0x13b   :  { %v2162_v51 = vpop.f32.mrf.mxu0  ;;  %v2266_v53 = vpop.f32.mrf.mxu1 }
 0x13c   :  { %v906_v51 = vld [vmem:[%s4219_s2 + $0xb0] sm:$0xff] }
 0x13d   :  { %v3407_v2 = vpop.f32.mrf.mxu0  ;;  %v3409_v6 = vpop.f32.mrf.mxu1 }
 0x13f   :  { %v2163_v52 = vpop.f32.mrf.mxu0  ;;  %v2267_v36 = vpop.f32.mrf.mxu1 }
 0x140   :  { %v907_v36 = vld [vmem:[%s4219_s2 + $0xb8] sm:$0xff]  ;;  %v1287_v52 = vld [vmem:[%s4220_s3 + $0xb0] sm:$0xff] }
 0x141   :  { %v3413_v27 = vpop.f32.mrf.mxu0  ;;  %v3415_v17 = vpop.f32.mrf.mxu1  ;;  %2369 = vmatmul.mubr.msk.bf16.gmra.mxu0 %vm139_vm3, %v943_v35  ;;  %2473 = vmatmul.mubr.msk.bf16.gmra.mxu1 %vm139_vm3, %v1324_v5  ;;  %v1288_v5 = vld [vmem:[%s4220_s3 + $0xb8] sm:$0xff]  ;;  %v944_v35 = vpack.c.bf16 %v907_v36, %v906_v51 }
 0x142   :  { %2372 = vmatprep.mubr.msk.bf16.mxu0 %vm2590_vm1, %v4224_v0  ;;  %2476 = vmatprep.mubr.msk.bf16.mxu1 %vm2590_vm1, %v4224_v0  ;;  %v1325_v4 = vpack.c.bf16 %v1288_v5, %v1287_v52 }
 0x143   :  { %v2166_v25 = vpop.f32.mrf.mxu0  ;;  %v2270_v50 = vpop.f32.mrf.mxu1 }
 0x144   :  { %v908_v25 = vld [vmem:[%s4219_s2 + $0xc0] sm:$0xff] }
 0x145   :  { %v3437_v44 = vpop.f32.mrf.mxu0  ;;  %v3439_v53 = vpop.f32.mrf.mxu1 }
 0x147   :  { %v2167_v11 = vpop.f32.mrf.mxu0  ;;  %v2271_v1 = vpop.f32.mrf.mxu1 }
 0x148   :  { %v909_v1 = vld [vmem:[%s4219_s2 + $0xc8] sm:$0xff]  ;;  %v1289_v11 = vld [vmem:[%s4220_s3 + $0xc0] sm:$0xff] }
 0x149   :  { %v3443_v58 = vpop.f32.mrf.mxu0  ;;  %v3445_v48 = vpop.f32.mrf.mxu1  ;;  %2373 = vmatmul.mubr.msk.bf16.gmra.mxu0 %vm139_vm3, %v944_v35  ;;  %2477 = vmatmul.mubr.msk.bf16.gmra.mxu1 %vm139_vm3, %v1325_v4  ;;  %v1290_v4 = vld [vmem:[%s4220_s3 + $0xc8] sm:$0xff]  ;;  %v945_v35 = vpack.c.bf16 %v909_v1, %v908_v25  ;;  %v4282_v1 = vmov 0.0  }
 0x14a   :  { %4276 = vst [vmem:[#allocation8_spill] sm:$0xff] %v3443_v58  ;;  %4277 = vst [vmem:[#allocation9_spill] sm:$0xff] %v3445_v48  ;;  %2376 = vmatprep.mubr.msk.bf16.mxu0 %vm2590_vm1, %v4224_v0  ;;  %2480 = vmatprep.mubr.msk.bf16.mxu1 %vm2590_vm1, %v4224_v0  ;;  %v1326_v51 = vpack.c.bf16 %v1290_v4, %v1289_v11 }
 0x14b   :  { %v2170_v36 = vpop.f32.mrf.mxu0  ;;  %v2274_v52 = vpop.f32.mrf.mxu1 }
 0x14c   :  { %v910_v36 = vld [vmem:[%s4219_s2 + $0xd0] sm:$0xff] }
 0x14d   :  { %v3467_v5 = vpop.f32.mrf.mxu0  ;;  %v3469_v50 = vpop.f32.mrf.mxu1 }
 0x14e   :  { %4278 = vst [vmem:[#allocation10_spill] sm:$0xff] %v3467_v5  ;;  %4279 = vst [vmem:[#allocation11_spill] sm:$0xff] %v3469_v50 }
 0x14f   :  { %v2171_v42 = vpop.f32.mrf.mxu0  ;;  %v2275_v32 = vpop.f32.mrf.mxu1 }
 0x150   :  { %v911_v32 = vld [vmem:[%s4219_s2 + $0xd8] sm:$0xff]  ;;  %v1291_v42 = vld [vmem:[%s4220_s3 + $0xd0] sm:$0xff] }
 0x151   :  { %v3473_v0 = vpop.f32.mrf.mxu0  ;;  %v3475_v48 = vpop.f32.mrf.mxu1  ;;  %2377 = vmatmul.mubr.msk.bf16.gmra.mxu0 %vm139_vm3, %v945_v35  ;;  %2481 = vmatmul.mubr.msk.bf16.gmra.mxu1 %vm139_vm3, %v1326_v51  ;;  %v1292_v51 = vld [vmem:[%s4220_s3 + $0xd8] sm:$0xff]  ;;  %v946_v25 = vpack.c.bf16 %v911_v32, %v910_v36 }
 0x152   :  { %4280 = vst [vmem:[#allocation12_spill] sm:$0xff] %v3473_v0  ;;  %4281 = vst [vmem:[#allocation13_spill] sm:$0xff] %v3475_v48  ;;  %2380 = vmatprep.mubr.msk.bf16.mxu0 %vm2590_vm1, %v4282_v1  ;;  %2484 = vmatprep.mubr.msk.bf16.mxu1 %vm2590_vm1, %v4282_v1  ;;  %v1327_v31 = vpack.c.bf16 %v1292_v51, %v1291_v42 }
 0x153   :  { %v2174_v11 = vpop.f32.mrf.mxu0  ;;  %v2278_v4 = vpop.f32.mrf.mxu1 }
 0x154   :  { %v912_v11 = vld [vmem:[%s4219_s2 + $0xe0] sm:$0xff] }
 0x155   :  { %v3497_v52 = vpop.f32.mrf.mxu0  ;;  %v3499_v35 = vpop.f32.mrf.mxu1 }
 0x156   :  { %4283 = vst [vmem:[#allocation14_spill] sm:$0xff] %v3497_v52  ;;  %4284 = vst [vmem:[#allocation15_spill] sm:$0xff] %v3499_v35 }
 0x157   :  { %v2175_v0 = vpop.f32.mrf.mxu0  ;;  %v2279_v50 = vpop.f32.mrf.mxu1 }
 0x158   :  { %v913_v0 = vld [vmem:[%s4219_s2 + $0xe8] sm:$0xff] }
 0x159   :  { %v3503_v5 = vpop.f32.mrf.mxu0  ;;  %v3505_v58 = vpop.f32.mrf.mxu1  ;;  %2381 = vmatmul.mubr.msk.bf16.gmra.mxu0 %vm139_vm3, %v946_v25  ;;  %2485 = vmatmul.mubr.msk.bf16.gmra.mxu1 %vm139_vm3, %v1327_v31  ;;  %v1293_v31 = vld [vmem:[%s4220_s3 + $0xe0] sm:$0xff]  ;;  %v1294_v50 = vld [vmem:[%s4220_s3 + $0xe8] sm:$0xff]  ;;  %v947_v4 = vpack.c.bf16 %v913_v0, %v912_v11 }
 0x15a   :  { %4285 = vst [vmem:[#allocation16_spill] sm:$0xff] %v3503_v5  ;;  %4286 = vst [vmem:[#allocation17_spill] sm:$0xff] %v3505_v58  ;;  %2384 = vmatprep.mubr.msk.bf16.mxu0 %vm2590_vm1, %v4282_v1  ;;  %2488 = vmatprep.mubr.msk.bf16.mxu1 %vm2590_vm1, %v4282_v1  ;;  %v1328_v36 = vpack.c.bf16 %v1294_v50, %v1293_v31 }
 0x15b   :  { %v2178_v25 = vpop.f32.mrf.mxu0  ;;  %v2282_v32 = vpop.f32.mrf.mxu1 }
 0x15c   :  { %v914_v25 = vld [vmem:[%s4219_s2 + $0xf0] sm:$0xff] }
 0x15d   :  { %v3527_v42 = vpop.f32.mrf.mxu0  ;;  %v3529_v51 = vpop.f32.mrf.mxu1 }
 0x15e   :  { %4287 = vst [vmem:[#allocation18_spill] sm:$0xff] %v3527_v42  ;;  %4288 = vst [vmem:[#allocation19_spill] sm:$0xff] %v3529_v51 }
 0x15f   :  { %v2179_v58 = vpop.f32.mrf.mxu0  ;;  %v2283_v5 = vpop.f32.mrf.mxu1 }
 0x160   :  { %v915_v58 = vld [vmem:[%s4219_s2 + $0xf8] sm:$0xff]  ;;  %v1295_v5 = vld [vmem:[%s4220_s3 + $0xf0] sm:$0xff] }
 0x161   :  { %v3533_v35 = vpop.f32.mrf.mxu0  ;;  %v3535_v52 = vpop.f32.mrf.mxu1  ;;  %2385 = vmatmul.mubr.msk.bf16.gmra.mxu0 %vm139_vm3, %v947_v4  ;;  %2489 = vmatmul.mubr.msk.bf16.gmra.mxu1 %vm139_vm3, %v1328_v36  ;;  %v1296_v36 = vld [vmem:[%s4220_s3 + $0xf8] sm:$0xff]  ;;  %v948_v4 = vpack.c.bf16 %v915_v58, %v914_v25 }
 0x162   :  { %4289 = vst [vmem:[#allocation20_spill] sm:$0xff] %v3533_v35  ;;  %4290 = vst [vmem:[#allocation21_spill] sm:$0xff] %v3535_v52  ;;  %2388 = vmatprep.mubr.msk.bf16.mxu0 %vm2590_vm1, %v4282_v1  ;;  %2492 = vmatprep.mubr.msk.bf16.mxu1 %vm2590_vm1, %v4282_v1  ;;  %v1329_v11 = vpack.c.bf16 %v1296_v36, %v1295_v5 }
 0x163   :  { %v2182_v0 = vpop.f32.mrf.mxu0  ;;  %v2286_v31 = vpop.f32.mrf.mxu1 }
 0x164   :  { %v916_v0 = vld [vmem:[%s4219_s2 + $0x100] sm:$0xff] }
 0x165   :  { %v3557_v50 = vpop.f32.mrf.mxu0  ;;  %v3559_v32 = vpop.f32.mrf.mxu1 }
 0x166   :  { %4291 = vst [vmem:[#allocation22_spill] sm:$0xff] %v3557_v50  ;;  %4292 = vst [vmem:[#allocation23_spill] sm:$0xff] %v3559_v32 }
 0x167   :  { %v2183_v52 = vpop.f32.mrf.mxu0  ;;  %v2287_v35 = vpop.f32.mrf.mxu1 }
 0x168   :  { %v917_v52 = vld [vmem:[%s4219_s2 + $0x108] sm:$0xff]  ;;  %v1297_v35 = vld [vmem:[%s4220_s3 + $0x100] sm:$0xff] }
 0x169   :  { %v3563_v51 = vpop.f32.mrf.mxu0  ;;  %v3565_v42 = vpop.f32.mrf.mxu1  ;;  %2389 = vmatmul.mubr.msk.bf16.gmra.mxu0 %vm139_vm3, %v948_v4  ;;  %2493 = vmatmul.mubr.msk.bf16.gmra.mxu1 %vm139_vm3, %v1329_v11  ;;  %v1298_v11 = vld [vmem:[%s4220_s3 + $0x108] sm:$0xff]  ;;  %v949_v4 = vpack.c.bf16 %v917_v52, %v916_v0 }
 0x16a   :  { %4293 = vst [vmem:[#allocation24_spill] sm:$0xff] %v3563_v51  ;;  %4294 = vst [vmem:[#allocation25_spill] sm:$0xff] %v3565_v42  ;;  %2392 = vmatprep.mubr.msk.bf16.mxu0 %vm2590_vm1, %v4282_v1  ;;  %2496 = vmatprep.mubr.msk.bf16.mxu1 %vm2590_vm1, %v4282_v1  ;;  %v1330_v25 = vpack.c.bf16 %v1298_v11, %v1297_v35 }
 0x16b   :  { %v2186_v58 = vpop.f32.mrf.mxu0  ;;  %v2290_v5 = vpop.f32.mrf.mxu1 }
 0x16c   :  { %v918_v58 = vld [vmem:[%s4219_s2 + $0x110] sm:$0xff] }
 0x16d   :  { %v3587_v36 = vpop.f32.mrf.mxu0  ;;  %v3589_v31 = vpop.f32.mrf.mxu1 }
 0x16e   :  { %4295 = vst [vmem:[#allocation26_spill] sm:$0xff] %v3587_v36  ;;  %4296 = vst [vmem:[#allocation27_spill] sm:$0xff] %v3589_v31 }
 0x16f   :  { %v2187_v42 = vpop.f32.mrf.mxu0  ;;  %v2291_v51 = vpop.f32.mrf.mxu1 }
 0x170   :  { %v919_v42 = vld [vmem:[%s4219_s2 + $0x118] sm:$0xff]  ;;  %v1299_v51 = vld [vmem:[%s4220_s3 + $0x110] sm:$0xff] }
 0x171   :  { %v3593_v32 = vpop.f32.mrf.mxu0  ;;  %v3595_v50 = vpop.f32.mrf.mxu1  ;;  %2393 = vmatmul.mubr.msk.bf16.gmra.mxu0 %vm139_vm3, %v949_v4  ;;  %2497 = vmatmul.mubr.msk.bf16.gmra.mxu1 %vm139_vm3, %v1330_v25  ;;  %v1300_v25 = vld [vmem:[%s4220_s3 + $0x118] sm:$0xff]  ;;  %v950_v4 = vpack.c.bf16 %v919_v42, %v918_v58 }
 0x172   :  { %4297 = vst [vmem:[#allocation28_spill] sm:$0xff] %v3593_v32  ;;  %4298 = vst [vmem:[#allocation29_spill] sm:$0xff] %v3595_v50  ;;  %2396 = vmatprep.mubr.msk.bf16.mxu0 %vm2590_vm1, %v4282_v1  ;;  %2500 = vmatprep.mubr.msk.bf16.mxu1 %vm2590_vm1, %v4282_v1  ;;  %v1331_v0 = vpack.c.bf16 %v1300_v25, %v1299_v51 }
 0x173   :  { %v2190_v52 = vpop.f32.mrf.mxu0  ;;  %v2294_v35 = vpop.f32.mrf.mxu1 }
 0x174   :  { %v920_v52 = vld [vmem:[%s4219_s2 + $0x120] sm:$0xff] }
 0x175   :  { %v3617_v11 = vpop.f32.mrf.mxu0  ;;  %v3619_v5 = vpop.f32.mrf.mxu1 }
 0x176   :  { %4299 = vst [vmem:[#allocation30_spill] sm:$0xff] %v3617_v11  ;;  %4300 = vst [vmem:[#allocation31_spill] sm:$0xff] %v3619_v5 }
 0x177   :  { %v2191_v50 = vpop.f32.mrf.mxu0  ;;  %v2295_v32 = vpop.f32.mrf.mxu1 }
 0x178   :  { %v921_v50 = vld [vmem:[%s4219_s2 + $0x128] sm:$0xff]  ;;  %v1301_v32 = vld [vmem:[%s4220_s3 + $0x120] sm:$0xff] }
 0x179   :  { %v3623_v31 = vpop.f32.mrf.mxu0  ;;  %v3625_v36 = vpop.f32.mrf.mxu1  ;;  %2397 = vmatmul.mubr.msk.bf16.gmra.mxu0 %vm139_vm3, %v950_v4  ;;  %2501 = vmatmul.mubr.msk.bf16.gmra.mxu1 %vm139_vm3, %v1331_v0  ;;  %v1302_v0 = vld [vmem:[%s4220_s3 + $0x128] sm:$0xff]  ;;  %v951_v4 = vpack.c.bf16 %v921_v50, %v920_v52 }
 0x17a   :  { %4301 = vst [vmem:[#allocation32_spill] sm:$0xff] %v3623_v31  ;;  %4302 = vst [vmem:[#allocation33_spill] sm:$0xff] %v3625_v36  ;;  %2400 = vmatprep.mubr.msk.bf16.mxu0 %vm2590_vm1, %v4282_v1  ;;  %2504 = vmatprep.mubr.msk.bf16.mxu1 %vm2590_vm1, %v4282_v1  ;;  %v1332_v58 = vpack.c.bf16 %v1302_v0, %v1301_v32 }
 0x17b   :  { %v2194_v42 = vpop.f32.mrf.mxu0  ;;  %v2298_v51 = vpop.f32.mrf.mxu1 }
 0x17c   :  { %v922_v42 = vld [vmem:[%s4219_s2 + $0x130] sm:$0xff] }
 0x17d   :  { %v3647_v25 = vpop.f32.mrf.mxu0  ;;  %v3649_v35 = vpop.f32.mrf.mxu1 }
 0x17e   :  { %4303 = vst [vmem:[#allocation34_spill] sm:$0xff] %v3647_v25  ;;  %4304 = vst [vmem:[#allocation35_spill] sm:$0xff] %v3649_v35 }
 0x17f   :  { %v2195_v36 = vpop.f32.mrf.mxu0  ;;  %v2299_v31 = vpop.f32.mrf.mxu1 }
 0x180   :  { %v923_v36 = vld [vmem:[%s4219_s2 + $0x138] sm:$0xff]  ;;  %v1303_v31 = vld [vmem:[%s4220_s3 + $0x130] sm:$0xff] }
 0x181   :  { %v3653_v5 = vpop.f32.mrf.mxu0  ;;  %v3655_v11 = vpop.f32.mrf.mxu1  ;;  %2401 = vmatmul.mubr.msk.bf16.gmra.mxu0 %vm139_vm3, %v951_v4  ;;  %2505 = vmatmul.mubr.msk.bf16.gmra.mxu1 %vm139_vm3, %v1332_v58  ;;  %v1304_v58 = vld [vmem:[%s4220_s3 + $0x138] sm:$0xff]  ;;  %v952_v4 = vpack.c.bf16 %v923_v36, %v922_v42 }
 0x182   :  { %4305 = vst [vmem:[#allocation36_spill] sm:$0xff] %v3653_v5  ;;  %4306 = vst [vmem:[#allocation37_spill] sm:$0xff] %v3655_v11  ;;  %2404 = vmatprep.mubr.msk.bf16.mxu0 %vm2590_vm1, %v4282_v1  ;;  %2508 = vmatprep.mubr.msk.bf16.mxu1 %vm2590_vm1, %v4282_v1  ;;  %v1333_v52 = vpack.c.bf16 %v1304_v58, %v1303_v31 }
 0x183   :  { %v2198_v50 = vpop.f32.mrf.mxu0  ;;  %v2302_v32 = vpop.f32.mrf.mxu1 }
 0x184   :  { %v924_v50 = vld [vmem:[%s4219_s2 + $0x140] sm:$0xff] }
 0x185   :  { %v3677_v0 = vpop.f32.mrf.mxu0  ;;  %v3679_v51 = vpop.f32.mrf.mxu1 }
 0x186   :  { %4307 = vst [vmem:[#allocation38_spill] sm:$0xff] %v3677_v0  ;;  %4308 = vst [vmem:[#allocation39_spill] sm:$0xff] %v3679_v51 }
 0x187   :  { %v2199_v11 = vpop.f32.mrf.mxu0  ;;  %v2303_v5 = vpop.f32.mrf.mxu1 }
 0x188   :  { %v925_v11 = vld [vmem:[%s4219_s2 + $0x148] sm:$0xff]  ;;  %v1305_v5 = vld [vmem:[%s4220_s3 + $0x140] sm:$0xff] }
 0x189   :  { %v3683_v35 = vpop.f32.mrf.mxu0  ;;  %v3685_v25 = vpop.f32.mrf.mxu1  ;;  %2405 = vmatmul.mubr.msk.bf16.gmra.mxu0 %vm139_vm3, %v952_v4  ;;  %2509 = vmatmul.mubr.msk.bf16.gmra.mxu1 %vm139_vm3, %v1333_v52  ;;  %v1306_v52 = vld [vmem:[%s4220_s3 + $0x148] sm:$0xff]  ;;  %v953_v4 = vpack.c.bf16 %v925_v11, %v924_v50 }
 0x18a   :  { %4309 = vst [vmem:[#allocation40_spill] sm:$0xff] %v3683_v35  ;;  %4310 = vst [vmem:[#allocation41_spill] sm:$0xff] %v3685_v25  ;;  %2408 = vmatprep.mubr.msk.bf16.mxu0 %vm2590_vm1, %v4282_v1  ;;  %2512 = vmatprep.mubr.msk.bf16.mxu1 %vm2590_vm1, %v4282_v1  ;;  %v1334_v42 = vpack.c.bf16 %v1306_v52, %v1305_v5 }
 0x18b   :  { %v2202_v36 = vpop.f32.mrf.mxu0  ;;  %v2306_v31 = vpop.f32.mrf.mxu1 }
 0x18c   :  { %v926_v36 = vld [vmem:[%s4219_s2 + $0x150] sm:$0xff] }
 0x18d   :  { %v3707_v58 = vpop.f32.mrf.mxu0  ;;  %v3709_v32 = vpop.f32.mrf.mxu1 }
 0x18e   :  { %4311 = vst [vmem:[#allocation42_spill] sm:$0xff] %v3707_v58  ;;  %4312 = vst [vmem:[#allocation43_spill] sm:$0xff] %v3709_v32 }
 0x18f   :  { %v2203_v25 = vpop.f32.mrf.mxu0  ;;  %v2307_v35 = vpop.f32.mrf.mxu1 }
 0x190   :  { %v927_v25 = vld [vmem:[%s4219_s2 + $0x158] sm:$0xff]  ;;  %v1307_v35 = vld [vmem:[%s4220_s3 + $0x150] sm:$0xff] }
 0x191   :  { %v3713_v51 = vpop.f32.mrf.mxu0  ;;  %v3715_v0 = vpop.f32.mrf.mxu1  ;;  %2409 = vmatmul.mubr.msk.bf16.gmra.mxu0 %vm139_vm3, %v953_v4  ;;  %2513 = vmatmul.mubr.msk.bf16.gmra.mxu1 %vm139_vm3, %v1334_v42  ;;  %v1308_v42 = vld [vmem:[%s4220_s3 + $0x158] sm:$0xff]  ;;  %v954_v4 = vpack.c.bf16 %v927_v25, %v926_v36 }
 0x192   :  { %4313 = vst [vmem:[#allocation44_spill] sm:$0xff] %v3713_v51  ;;  %4314 = vst [vmem:[#allocation45_spill] sm:$0xff] %v3715_v0  ;;  %2412 = vmatprep.mubr.msk.bf16.mxu0 %vm2590_vm1, %v4282_v1  ;;  %2516 = vmatprep.mubr.msk.bf16.mxu1 %vm2590_vm1, %v4282_v1  ;;  %v1335_v50 = vpack.c.bf16 %v1308_v42, %v1307_v35 }
 0x193   :  { %v2206_v11 = vpop.f32.mrf.mxu0  ;;  %v2310_v5 = vpop.f32.mrf.mxu1 }
 0x194   :  { %v928_v11 = vld [vmem:[%s4219_s2 + $0x160] sm:$0xff] }
 0x195   :  { %v3737_v52 = vpop.f32.mrf.mxu0  ;;  %v3739_v31 = vpop.f32.mrf.mxu1 }
 0x196   :  { %4315 = vst [vmem:[#allocation46_spill] sm:$0xff] %v3737_v52  ;;  %4316 = vst [vmem:[#allocation47_spill] sm:$0xff] %v3739_v31 }
 0x197   :  { %v2207_v0 = vpop.f32.mrf.mxu0  ;;  %v2311_v51 = vpop.f32.mrf.mxu1 }
 0x198   :  { %v929_v0 = vld [vmem:[%s4219_s2 + $0x168] sm:$0xff]  ;;  %v1309_v51 = vld [vmem:[%s4220_s3 + $0x160] sm:$0xff] }
 0x199   :  { %v3743_v32 = vpop.f32.mrf.mxu0  ;;  %v3745_v58 = vpop.f32.mrf.mxu1  ;;  %2413 = vmatmul.mubr.msk.bf16.gmra.mxu0 %vm139_vm3, %v954_v4  ;;  %2517 = vmatmul.mubr.msk.bf16.gmra.mxu1 %vm139_vm3, %v1335_v50  ;;  %v1310_v50 = vld [vmem:[%s4220_s3 + $0x168] sm:$0xff]  ;;  %v955_v4 = vpack.c.bf16 %v929_v0, %v928_v11 }
 0x19a   :  { %4317 = vst [vmem:[#allocation48_spill] sm:$0xff] %v3743_v32  ;;  %4318 = vst [vmem:[#allocation49_spill] sm:$0xff] %v3745_v58  ;;  %2416 = vmatprep.mubr.msk.bf16.mxu0 %vm2590_vm1, %v4282_v1  ;;  %2520 = vmatprep.mubr.msk.bf16.mxu1 %vm2590_vm1, %v4282_v1  ;;  %v1336_v36 = vpack.c.bf16 %v1310_v50, %v1309_v51 }
 0x19b   :  { %v2210_v25 = vpop.f32.mrf.mxu0  ;;  %v2314_v35 = vpop.f32.mrf.mxu1 }
 0x19c   :  { %v930_v25 = vld [vmem:[%s4219_s2 + $0x170] sm:$0xff] }
 0x19d   :  { %v3767_v42 = vpop.f32.mrf.mxu0  ;;  %v3769_v5 = vpop.f32.mrf.mxu1 }
 0x19e   :  { %4319 = vst [vmem:[#allocation50_spill] sm:$0xff] %v3767_v42  ;;  %4320 = vst [vmem:[#allocation51_spill] sm:$0xff] %v3769_v5 }
 0x19f   :  { %v2211_v58 = vpop.f32.mrf.mxu0  ;;  %v2315_v32 = vpop.f32.mrf.mxu1 }
 0x1a0   :  { %v931_v58 = vld [vmem:[%s4219_s2 + $0x178] sm:$0xff]  ;;  %v1311_v32 = vld [vmem:[%s4220_s3 + $0x170] sm:$0xff] }
 0x1a1   :  { %v3773_v31 = vpop.f32.mrf.mxu0  ;;  %v3775_v52 = vpop.f32.mrf.mxu1  ;;  %2417 = vmatmul.mubr.msk.bf16.gmra.mxu0 %vm139_vm3, %v955_v4  ;;  %2521 = vmatmul.mubr.msk.bf16.gmra.mxu1 %vm139_vm3, %v1336_v36  ;;  %v1312_v36 = vld [vmem:[%s4220_s3 + $0x178] sm:$0xff]  ;;  %v956_v4 = vpack.c.bf16 %v931_v58, %v930_v25 }
 0x1a2   :  { %4321 = vst [vmem:[#allocation52_spill] sm:$0xff] %v3773_v31  ;;  %4322 = vst [vmem:[#allocation53_spill] sm:$0xff] %v3775_v52  ;;  %2420 = vmatprep.mubr.msk.bf16.mxu0 %vm2590_vm1, %v4282_v1  ;;  %2524 = vmatprep.mubr.msk.bf16.mxu1 %vm2590_vm1, %v4282_v1  ;;  %v1337_v11 = vpack.c.bf16 %v1312_v36, %v1311_v32 }
 0x1a3   :  { %v2214_v0 = vpop.f32.mrf.mxu0  ;;  %v2318_v51 = vpop.f32.mrf.mxu1 }
 0x1a5   :  { %v3797_v50 = vpop.f32.mrf.mxu0  ;;  %v3799_v35 = vpop.f32.mrf.mxu1 }
 0x1a6   :  { %4323 = vst [vmem:[#allocation54_spill] sm:$0xff] %v3797_v50  ;;  %4324 = vst [vmem:[#allocation55_spill] sm:$0xff] %v3799_v35 }
 0x1a7   :  { %v2215_v52 = vpop.f32.mrf.mxu0  ;;  %v2319_v31 = vpop.f32.mrf.mxu1 }
 0x1a8   :  { %v932_v52 = vld [vmem:[%s4219_s2 + $0x180] sm:$0xff] }
 0x1a9   :  { %v3803_v5 = vpop.f32.mrf.mxu0  ;;  %v3805_v42 = vpop.f32.mrf.mxu1  ;;  %2421 = vmatmul.mubr.msk.bf16.gmra.mxu0 %vm139_vm3, %v956_v4  ;;  %2525 = vmatmul.mubr.msk.bf16.gmra.mxu1 %vm139_vm3, %v1337_v11  ;;  %v1313_v31 = vld [vmem:[%s4220_s3 + $0x180] sm:$0xff]  ;;  %v957_v36 = vpack.c.bf16 %v932_v52, %v932_v52 }
 0x1aa   :  { %4325 = vst [vmem:[#allocation56_spill] sm:$0xff] %v3803_v5  ;;  %4326 = vst [vmem:[#allocation57_spill] sm:$0xff] %v3805_v42  ;;  %2424 = vmatprep.mubr.msk.bf16.mxu0 %vm2590_vm1, %v4282_v1  ;;  %2528 = vmatprep.mubr.msk.bf16.mxu1 %vm2590_vm1, %v4282_v1  ;;  %v1338_v51 = vpack.c.bf16 %v1313_v31, %v1313_v31  ;;  %v3823_v5 = vld [vmem:[#allocation4] ss:$0 sm:$0xff] }
 0x1ab   :  { %v2218_v25 = vpop.f32.mrf.mxu0  ;;  %v2322_v58 = vpop.f32.mrf.mxu1 }
 0x1ac   :  { %v4327_v25 = vmax.f32 %v3083_v29, %v3086_v30 }
 0x1ad   :  { %v451_v11 = vpop.f32.mrf.mxu0  ;;  %v832_v32 = vpop.f32.mrf.mxu1 }
 0x1af   :  { %v2219_v4 = vpop.f32.mrf.mxu0  ;;  %v2323_v0 = vpop.f32.mrf.mxu1 }
 0x1b1   :  { %v1067_v48 = vpop.f32.mrf.mxu0  ;;  %2425 = vmatmul.mubr.msk.bf16.gmra.mxu0 %vm139_vm3, %v957_v36  ;;  %v1448_v1 = vpop.f32.mrf.mxu1  ;;  %2529 = vmatmul.mubr.msk.bf16.gmra.mxu1 %vm139_vm3, %v1338_v51 }
 0x1b2   :  { %v1646_v42 = vmax.f32 %v1067_v48, %v1448_v1  ;;  %v4328_v48 = vmax.f32 %v3107_v38, %v3109_v39 }
 0x1b3   :  { %v2330_v35 = vpop.f32.mrf.mxu0  ;;  %v2434_v50 = vpop.f32.mrf.mxu1 }
 0x1b4   :  { %v1695_v58 = vmax.f32 %v4327_v25, %v1646_v42 }
 0x1b5   :  { %v1070_v11 = vpop.f32.mrf.mxu0  ;;  %v1451_v52 = vpop.f32.mrf.mxu1 }
 0x1b6   :  { %v1751_v31 = vadd.f32 %v3823_v5, %v1695_v58  ;;  %v1647_v0 = vmax.f32 %v1070_v11, %v1451_v52  ;;  %v4329_v58 = vmax.f32 %v3113_v45, %v3115_v46 }
 0x1b7   :  { %v2331_v32 = vpop.f32.mrf.mxu0  ;;  %v2435_v36 = vpop.f32.mrf.mxu1 }
 0x1b8   :  { %v1800_v4 = vmax.f32 %v1751_v31, 0.0  ;;  %v1696_v51 = vmax.f32 %v4328_v48, %v1647_v0 }
 0x1b9   :  { %v1075_v1 = vpop.f32.mrf.mxu0  ;;  %v1456_v35 = vpop.f32.mrf.mxu1 }
 0x1ba   :  { %1850 = vst.msk [vmem:[%s4223_s6] sm:$0xff] %vm1849_vm4, %v1800_v4  ;;  %v1752_v29 = vadd.f32 %v3823_v5, %v1696_v51  ;;  %v1648_v30 = vmax.f32 %v1075_v1, %v1456_v35  ;;  %v4330_v4 = vmax.f32 %v3137_v54, %v3139_v55 }
 0x1bb   :  { %v2334_v42 = vpop.f32.mrf.mxu0  ;;  %v2438_v50 = vpop.f32.mrf.mxu1 }
 0x1bc   :  { %v1801_v25 = vmax.f32 %v1752_v29, 0.0  ;;  %v1697_v11 = vmax.f32 %v4329_v58, %v1648_v30  ;;  %v4331_v42 = vmax.f32 %v3143_v61, %v3145_v62 }
 0x1bd   :  { %v1078_v52 = vpop.f32.mrf.mxu0  ;;  %v1459_v38 = vpop.f32.mrf.mxu1 }
 0x1be   :  { %1851 = vst.msk [vmem:[%s4223_s6 + $0x8] sm:$0xff] %vm1849_vm4, %v1801_v25  ;;  %v1753_v39 = vadd.f32 %v3823_v5, %v1697_v11  ;;  %v1649_v31 = vmax.f32 %v1078_v52, %v1459_v38 }
 0x1bf   :  { %v2335_v0 = vpop.f32.mrf.mxu0  ;;  %v2439_v32 = vpop.f32.mrf.mxu1 }
 0x1c0   :  { %v1802_v36 = vmax.f32 %v1753_v39, 0.0  ;;  %v1698_v48 = vmax.f32 %v4330_v4, %v1649_v31  ;;  %v4332_v39 = vmax.f32 %v3167_v7, %v3169_v8 }
 0x1c1   :  { %v1083_v51 = vpop.f32.mrf.mxu0  ;;  %v1464_v45 = vpop.f32.mrf.mxu1 }
 0x1c2   :  { %1852 = vst.msk [vmem:[%s4223_s6 + $0x10] sm:$0xff] %vm1849_vm4, %v1802_v36  ;;  %v1754_v46 = vadd.f32 %v3823_v5, %v1698_v48  ;;  %v1650_v1 = vmax.f32 %v1083_v51, %v1464_v45  ;;  %v4333_v51 = vmax.f32 %v3173_v14, %v3175_v15 }
 0x1c3   :  { %v2338_v35 = vpop.f32.mrf.mxu0  ;;  %v2442_v29 = vpop.f32.mrf.mxu1 }
 0x1c4   :  { %v1803_v30 = vmax.f32 %v1754_v46, 0.0  ;;  %v1699_v50 = vmax.f32 %v4331_v42, %v1650_v1  ;;  %v4334_v42 = vmax.f32 %v3197_v23, %v3199_v24 }
 0x1c5   :  { %v1086_v25 = vpop.f32.mrf.mxu0  ;;  %v1467_v54 = vpop.f32.mrf.mxu1 }
 0x1c6   :  { %1853 = vst.msk [vmem:[%s4223_s6 + $0x18] sm:$0xff] %vm1849_vm4, %v1803_v30  ;;  %v1755_v55 = vadd.f32 %v3823_v5, %v1699_v50  ;;  %v1651_v58 = vmax.f32 %v1086_v25, %v1467_v54 }
 0x1c7   :  { %v2339_v11 = vpop.f32.mrf.mxu0  ;;  %v2443_v52 = vpop.f32.mrf.mxu1 }
 0x1c8   :  { %v1804_v38 = vmax.f32 %v1755_v55, 0.0  ;;  %v1700_v31 = vmax.f32 %v4332_v39, %v1651_v58  ;;  %v4335_v52 = vmax.f32 %v3203_v33, %v3205_v34 }
 0x1c9   :  { %v1091_v0 = vpop.f32.mrf.mxu0  ;;  %v1472_v61 = vpop.f32.mrf.mxu1 }
 0x1ca   :  { %1854 = vst.msk [vmem:[%s4223_s6 + $0x20] sm:$0xff] %vm1849_vm4, %v1804_v38  ;;  %v1756_v62 = vadd.f32 %v3823_v5, %v1700_v31  ;;  %v1652_v32 = vmax.f32 %v1091_v0, %v1472_v61 }
 0x1cb   :  { %v2342_v36 = vpop.f32.mrf.mxu0  ;;  %v2446_v4 = vpop.f32.mrf.mxu1 }
 0x1cc   :  { %v1805_v48 = vmax.f32 %v1756_v62, 0.0  ;;  %v1701_v45 = vmax.f32 %v4333_v51, %v1652_v32  ;;  %v4336_v32 = vmax.f32 %v3227_v47, %v3229_v49 }
 0x1cd   :  { %v1094_v46 = vpop.f32.mrf.mxu0  ;;  %v1475_v7 = vpop.f32.mrf.mxu1 }
 0x1ce   :  { %1855 = vst.msk [vmem:[%s4223_s6 + $0x28] sm:$0xff] %vm1849_vm4, %v1805_v48  ;;  %v1757_v8 = vadd.f32 %v3823_v5, %v1701_v45  ;;  %v1653_v1 = vmax.f32 %v1094_v46, %v1475_v7  ;;  %v4337_v7 = vmax.f32 %v3233_v57, %v3235_v59 }
 0x1cf   :  { %v2343_v35 = vpop.f32.mrf.mxu0  ;;  %v2447_v29 = vpop.f32.mrf.mxu1 }
 0x1d0   :  { %v1806_v30 = vmax.f32 %v1757_v8, 0.0  ;;  %v1702_v50 = vmax.f32 %v4334_v42, %v1653_v1 }
 0x1d1   :  { %v1099_v25 = vpop.f32.mrf.mxu0  ;;  %v1480_v14 = vpop.f32.mrf.mxu1 }
 0x1d2   :  { %1856 = vst.msk [vmem:[%s4223_s6 + $0x30] sm:$0xff] %vm1849_vm4, %v1806_v30  ;;  %v1758_v15 = vadd.f32 %v3823_v5, %v1702_v50  ;;  %v1654_v54 = vmax.f32 %v1099_v25, %v1480_v14  ;;  %v4338_v50 = vmax.f32 %v3257_v9, %v3259_v10 }
 0x1d3   :  { %v2346_v55 = vpop.f32.mrf.mxu0  ;;  %v2450_v58 = vpop.f32.mrf.mxu1 }
 0x1d4   :  { %v1807_v11 = vmax.f32 %v1758_v15, 0.0  ;;  %v1703_v38 = vmax.f32 %v4335_v52, %v1654_v54 }
 0x1d5   :  { %v1102_v39 = vpop.f32.mrf.mxu0  ;;  %v1483_v23 = vpop.f32.mrf.mxu1 }
 0x1d6   :  { %1857 = vst.msk [vmem:[%s4223_s6 + $0x38] sm:$0xff] %vm1849_vm4, %v1807_v11  ;;  %v1759_v24 = vadd.f32 %v3823_v5, %v1703_v38  ;;  %v1655_v31 = vmax.f32 %v1102_v39, %v1483_v23  ;;  %v4339_v11 = vmax.f32 %v3263_v20, %v3265_v21 }
 0x1d7   :  { %v2347_v0 = vpop.f32.mrf.mxu0  ;;  %v2451_v61 = vpop.f32.mrf.mxu1 }
 0x1d8   :  { %v1808_v62 = vmax.f32 %v1759_v24, 0.0  ;;  %v1704_v36 = vmax.f32 %v4336_v32, %v1655_v31  ;;  %v4340_v0 = vmax.f32 %v3287_v40, %v3289_v41 }
 0x1d9   :  { %v1107_v4 = vpop.f32.mrf.mxu0  ;;  %v1488_v33 = vpop.f32.mrf.mxu1 }
 0x1da   :  { %1858 = vst.msk [vmem:[%s4223_s6 + $0x40] sm:$0xff] %vm1849_vm4, %v1808_v62  ;;  %v1760_v34 = vadd.f32 %v3823_v5, %v1704_v36  ;;  %v1656_v48 = vmax.f32 %v1107_v4, %v1488_v33 }
 0x1db   :  { %v2350_v51 = vpop.f32.mrf.mxu0  ;;  %v2454_v45 = vpop.f32.mrf.mxu1 }
 0x1dc   :  { %v1809_v46 = vmax.f32 %v1760_v34, 0.0  ;;  %v1705_v8 = vmax.f32 %v4337_v7, %v1656_v48  ;;  %v4341_v34 = vmax.f32 %v3293_v56, %v3295_v60 }
 0x1dd   :  { %v1110_v1 = vpop.f32.mrf.mxu0  ;;  %v1491_v47 = vpop.f32.mrf.mxu1 }
 0x1de   :  { %1859 = vst.msk [vmem:[%s4223_s6 + $0x48] sm:$0xff] %vm1849_vm4, %v1809_v46  ;;  %v1761_v49 = vadd.f32 %v3823_v5, %v1705_v8  ;;  %v1657_v35 = vmax.f32 %v1110_v1, %v1491_v47  ;;  %v4342_v1 = vmax.f32 %v3317_v18, %v3319_v19 }
 0x1df   :  { %v2351_v29 = vpop.f32.mrf.mxu0  ;;  %v2455_v30 = vpop.f32.mrf.mxu1 }
 0x1e0   :  { %v1810_v42 = vmax.f32 %v1761_v49, 0.0  ;;  %v1706_v25 = vmax.f32 %v4338_v50, %v1657_v35  ;;  %v4343_v50 = vmax.f32 %v3323_v37, %v3325_v43 }
 0x1e1   :  { %v1115_v14 = vpop.f32.mrf.mxu0  ;;  %v1496_v57 = vpop.f32.mrf.mxu1 }
 0x1e2   :  { %1860 = vst.msk [vmem:[%s4223_s6 + $0x50] sm:$0xff] %vm1849_vm4, %v1810_v42  ;;  %v1762_v59 = vadd.f32 %v3823_v5, %v1706_v25  ;;  %v1658_v15 = vmax.f32 %v1115_v14, %v1496_v57 }
 0x1e3   :  { %v2354_v54 = vpop.f32.mrf.mxu0  ;;  %v2458_v55 = vpop.f32.mrf.mxu1 }
 0x1e4   :  { %v1811_v58 = vmax.f32 %v1762_v59, 0.0  ;;  %v1707_v52 = vmax.f32 %v4339_v11, %v1658_v15  ;;  %v4344_v55 = vmax.f32 %v3347_v12, %v3349_v13 }
 0x1e5   :  { %v1118_v38 = vpop.f32.mrf.mxu0  ;;  %v1499_v9 = vpop.f32.mrf.mxu1 }
 0x1e6   :  { %1861 = vst.msk [vmem:[%s4223_s6 + $0x58] sm:$0xff] %vm1849_vm4, %v1811_v58  ;;  %v1763_v10 = vadd.f32 %v3823_v5, %v1707_v52  ;;  %v1659_v39 = vmax.f32 %v1118_v38, %v1499_v9 }
 0x1e7   :  { %v2355_v23 = vpop.f32.mrf.mxu0  ;;  %v2459_v24 = vpop.f32.mrf.mxu1 }
 0x1e8   :  { %v1812_v31 = vmax.f32 %v1763_v10, 0.0  ;;  %v1708_v61 = vmax.f32 %v4340_v0, %v1659_v39  ;;  %v4345_v39 = vmax.f32 %v3353_v28, %v3355_v3 }
 0x1e9   :  { %v1123_v62 = vpop.f32.mrf.mxu0  ;;  %v1504_v20 = vpop.f32.mrf.mxu1 }
 0x1ea   :  { %1862 = vst.msk [vmem:[%s4223_s6 + $0x60] sm:$0xff] %vm1849_vm4, %v1812_v31  ;;  %v1764_v21 = vadd.f32 %v3823_v5, %v1708_v61  ;;  %v1660_v32 = vmax.f32 %v1123_v62, %v1504_v20  ;;  %v4346_v20 = vmax.f32 %v3377_v22, %v3379_v26 }
 0x1eb   :  { %v2358_v36 = vpop.f32.mrf.mxu0  ;;  %v2462_v4 = vpop.f32.mrf.mxu1 }
 0x1ec   :  { %v1813_v33 = vmax.f32 %v1764_v21, 0.0  ;;  %v1709_v48 = vmax.f32 %v4341_v34, %v1660_v32 }
 0x1ed   :  { %v1126_v51 = vpop.f32.mrf.mxu0  ;;  %v1507_v40 = vpop.f32.mrf.mxu1 }
 0x1ee   :  { %1863 = vst.msk [vmem:[%s4223_s6 + $0x68] sm:$0xff] %vm1849_vm4, %v1813_v33  ;;  %v1765_v41 = vadd.f32 %v3823_v5, %v1709_v48  ;;  %v1661_v45 = vmax.f32 %v1126_v51, %v1507_v40  ;;  %v4347_v48 = vmax.f32 %v3383_v16, %v3385_v63 }
 0x1ef   :  { %v2359_v46 = vpop.f32.mrf.mxu0  ;;  %v2463_v7 = vpop.f32.mrf.mxu1 }
 0x1f0   :  { %v1814_v8 = vmax.f32 %v1765_v41, 0.0  ;;  %v1710_v47 = vmax.f32 %v4342_v1, %v1661_v45 }
 0x1f1   :  { %v1131_v49 = vpop.f32.mrf.mxu0  ;;  %v1512_v56 = vpop.f32.mrf.mxu1 }
 0x1f2   :  { %1864 = vst.msk [vmem:[%s4223_s6 + $0x70] sm:$0xff] %vm1849_vm4, %v1814_v8  ;;  %v1766_v60 = vadd.f32 %v3823_v5, %v1710_v47  ;;  %v1662_v35 = vmax.f32 %v1131_v49, %v1512_v56  ;;  %v4348_v8 = vmax.f32 %v3407_v2, %v3409_v6 }
 0x1f3   :  { %v2362_v29 = vpop.f32.mrf.mxu0  ;;  %v2466_v30 = vpop.f32.mrf.mxu1 }
 0x1f4   :  { %v1815_v42 = vmax.f32 %v1766_v60, 0.0  ;;  %v1711_v25 = vmax.f32 %v4343_v50, %v1662_v35  ;;  %v4349_v29 = vmax.f32 %v3413_v27, %v3415_v17 }
 0x1f5   :  { %v1134_v14 = vpop.f32.mrf.mxu0  ;;  %v1515_v18 = vpop.f32.mrf.mxu1 }
 0x1f6   :  { %1865 = vst.msk [vmem:[%s4223_s6 + $0x78] sm:$0xff] %vm1849_vm4, %v1815_v42  ;;  %v1767_v19 = vadd.f32 %v3823_v5, %v1711_v25  ;;  %v1663_v57 = vmax.f32 %v1134_v14, %v1515_v18 }
 0x1f7   :  { %v2363_v59 = vpop.f32.mrf.mxu0  ;;  %v2467_v15 = vpop.f32.mrf.mxu1 }
 0x1f8   :  { %v1816_v54 = vmax.f32 %v1767_v19, 0.0  ;;  %v1712_v58 = vmax.f32 %v4344_v55, %v1663_v57  ;;  %v4350_v19 = vmax.f32 %v3437_v44, %v3439_v53 }
 0x1f9   :  { %v1139_v11 = vpop.f32.mrf.mxu0  ;;  %v1520_v37 = vpop.f32.mrf.mxu1 }
 0x1fa   :  { %1866 = vst.msk [vmem:[%s4223_s6 + $0x80] sm:$0xff] %vm1849_vm4, %v1816_v54  ;;  %v1768_v43 = vadd.f32 %v3823_v5, %v1712_v58  ;;  %v1664_v52 = vmax.f32 %v1139_v11, %v1520_v37  ;;  %v4351_v11 = vld [vmem:[#allocation8_spill] sm:$0xff]  ;;  %v4352_v37 = vld [vmem:[#allocation9_spill] sm:$0xff] }
 0x1fb   :  { %v2366_v38 = vpop.f32.mrf.mxu0  ;;  %v2470_v9 = vpop.f32.mrf.mxu1 }
 0x1fc   :  { %v1817_v10 = vmax.f32 %v1768_v43, 0.0  ;;  %v1713_v23 = vmax.f32 %v4345_v39, %v1664_v52  ;;  %v4353_v43 = vmax.f32 %v4351_v11, %v4352_v37 }
 0x1fd   :  { %v1142_v24 = vpop.f32.mrf.mxu0  ;;  %v1523_v12 = vpop.f32.mrf.mxu1 }
 0x1fe   :  { %1867 = vst.msk [vmem:[%s4223_s6 + $0x88] sm:$0xff] %vm1849_vm4, %v1817_v10  ;;  %v1769_v13 = vadd.f32 %v3823_v5, %v1713_v23  ;;  %v1665_v31 = vmax.f32 %v1142_v24, %v1523_v12  ;;  %v4354_v24 = vld [vmem:[#allocation10_spill] sm:$0xff]  ;;  %v4355_v12 = vld [vmem:[#allocation11_spill] sm:$0xff] }
 0x1ff   :  { %v2367_v0 = vpop.f32.mrf.mxu0  ;;  %v2471_v61 = vpop.f32.mrf.mxu1 }
 0x200   :  { %v1818_v62 = vmax.f32 %v1769_v13, 0.0  ;;  %v1714_v21 = vmax.f32 %v4346_v20, %v1665_v31  ;;  %v4356_v13 = vmax.f32 %v4354_v24, %v4355_v12 }
 0x201   :  { %v1147_v32 = vpop.f32.mrf.mxu0  ;;  %v1528_v3 = vpop.f32.mrf.mxu1 }
 0x202   :  { %1868 = vst.msk [vmem:[%s4223_s6 + $0x90] sm:$0xff] %vm1849_vm4, %v1818_v62  ;;  %v1770_v28 = vadd.f32 %v3823_v5, %v1714_v21  ;;  %v1666_v36 = vmax.f32 %v1147_v32, %v1528_v3 }
 0x203   :  { %v2370_v4 = vpop.f32.mrf.mxu0  ;;  %v2474_v33 = vpop.f32.mrf.mxu1 }
 0x204   :  { %v1819_v34 = vmax.f32 %v1770_v28, 0.0  ;;  %v1715_v51 = vmax.f32 %v4347_v48, %v1666_v36  ;;  %v4357_v28 = vld [vmem:[#allocation12_spill] sm:$0xff]  ;;  %v4358_v36 = vld [vmem:[#allocation13_spill] sm:$0xff] }
 0x205   :  { %v1150_v40 = vpop.f32.mrf.mxu0  ;;  %v1531_v22 = vpop.f32.mrf.mxu1  ;;  %v4359_v4 = vmax.f32 %v4357_v28, %v4358_v36 }
 0x206   :  { %1869 = vst.msk [vmem:[%s4223_s6 + $0x98] sm:$0xff] %vm1849_vm4, %v1819_v34  ;;  %v1771_v26 = vadd.f32 %v3823_v5, %v1715_v51  ;;  %v1667_v41 = vmax.f32 %v1150_v40, %v1531_v22 }
 0x207   :  { %v2371_v45 = vpop.f32.mrf.mxu0  ;;  %v2475_v46 = vpop.f32.mrf.mxu1 }
 0x208   :  { %v1820_v7 = vmax.f32 %v1771_v26, 0.0  ;;  %v1716_v1 = vmax.f32 %v4348_v8, %v1667_v41  ;;  %v4360_v45 = vld [vmem:[#allocation14_spill] sm:$0xff]  ;;  %v4361_v46 = vld [vmem:[#allocation15_spill] sm:$0xff] }
 0x209   :  { %v1155_v47 = vpop.f32.mrf.mxu0  ;;  %v1536_v63 = vpop.f32.mrf.mxu1 }
 0x20a   :  { %1870 = vst.msk [vmem:[%s4223_s6 + $0xa0] sm:$0xff] %vm1849_vm4, %v1820_v7  ;;  %v1772_v16 = vadd.f32 %v3823_v5, %v1716_v1  ;;  %v1668_v49 = vmax.f32 %v1155_v47, %v1536_v63  ;;  %v4362_v7 = vmax.f32 %v4360_v45, %v4361_v46 }
 0x20b   :  { %v2374_v56 = vpop.f32.mrf.mxu0  ;;  %v2478_v60 = vpop.f32.mrf.mxu1 }
 0x20c   :  { %v1821_v35 = vmax.f32 %v1772_v16, 0.0  ;;  %v1717_v30 = vmax.f32 %v4349_v29, %v1668_v49  ;;  %v4364_v29 = vld [vmem:[#allocation17_spill] sm:$0xff] }
 0x20d   :  { %v1158_v42 = vpop.f32.mrf.mxu0  ;;  %v1539_v2 = vpop.f32.mrf.mxu1 }
 0x20e   :  { %1871 = vst.msk [vmem:[%s4223_s6 + $0xa8] sm:$0xff] %vm1849_vm4, %v1821_v35  ;;  %v1773_v6 = vadd.f32 %v3823_v5, %v1717_v30  ;;  %v1669_v50 = vmax.f32 %v1158_v42, %v1539_v2  ;;  %v4363_v35 = vld [vmem:[#allocation16_spill] sm:$0xff] }
 0x20f   :  { %v2375_v25 = vpop.f32.mrf.mxu0  ;;  %v2479_v14 = vpop.f32.mrf.mxu1  ;;  %v4365_v30 = vmax.f32 %v4363_v35, %v4364_v29 }
 0x210   :  { %v1822_v18 = vmax.f32 %v1773_v6, 0.0  ;;  %v1718_v57 = vmax.f32 %v4350_v19, %v1669_v50 }
 0x211   :  { %v1163_v59 = vpop.f32.mrf.mxu0  ;;  %v1544_v17 = vpop.f32.mrf.mxu1 }
 0x212   :  { %1872 = vst.msk [vmem:[%s4223_s6 + $0xb0] sm:$0xff] %vm1849_vm4, %v1822_v18  ;;  %v1774_v27 = vadd.f32 %v3823_v5, %v1718_v57  ;;  %v1670_v15 = vmax.f32 %v1163_v59, %v1544_v17  ;;  %v4366_v57 = vld [vmem:[#allocation18_spill] sm:$0xff]  ;;  %v4367_v59 = vld [vmem:[#allocation19_spill] sm:$0xff] }
 0x213   :  { %v2378_v54 = vpop.f32.mrf.mxu0  ;;  %v2482_v55 = vpop.f32.mrf.mxu1  ;;  %v4368_v17 = vmax.f32 %v4366_v57, %v4367_v59 }
 0x214   :  { %v1823_v58 = vmax.f32 %v1774_v27, 0.0  ;;  %v1719_v52 = vmax.f32 %v4353_v43, %v1670_v15 }
 0x215   :  { %v1166_v38 = vpop.f32.mrf.mxu0  ;;  %v1547_v44 = vpop.f32.mrf.mxu1 }
 0x216   :  { %1873 = vst.msk [vmem:[%s4223_s6 + $0xb8] sm:$0xff] %vm1849_vm4, %v1823_v58  ;;  %v1775_v53 = vadd.f32 %v3823_v5, %v1719_v52  ;;  %v1671_v9 = vmax.f32 %v1166_v38, %v1547_v44  ;;  %v4369_v52 = vld [vmem:[#allocation20_spill] sm:$0xff]  ;;  %v4370_v38 = vld [vmem:[#allocation21_spill] sm:$0xff] }
 0x217   :  { %v2379_v10 = vpop.f32.mrf.mxu0  ;;  %v2483_v39 = vpop.f32.mrf.mxu1  ;;  %v4371_v44 = vmax.f32 %v4369_v52, %v4370_v38 }
 0x218   :  { %v1824_v23 = vmax.f32 %v1775_v53, 0.0  ;;  %v1720_v31 = vmax.f32 %v4356_v13, %v1671_v9 }
 0x219   :  { %v1171_v0 = vpop.f32.mrf.mxu0  ;;  %v1552_v61 = vpop.f32.mrf.mxu1 }
 0x21a   :  { %1874 = vst.msk [vmem:[%s4223_s6 + $0xc0] sm:$0xff] %vm1849_vm4, %v1824_v23  ;;  %v1776_v62 = vadd.f32 %v3823_v5, %v1720_v31  ;;  %v1672_v20 = vmax.f32 %v1171_v0, %v1552_v61  ;;  %v4372_v31 = vld [vmem:[#allocation22_spill] sm:$0xff]  ;;  %v4373_v0 = vld [vmem:[#allocation23_spill] sm:$0xff] }
 0x21b   :  { %v2382_v21 = vpop.f32.mrf.mxu0  ;;  %v2486_v32 = vpop.f32.mrf.mxu1  ;;  %v4374_v61 = vmax.f32 %v4372_v31, %v4373_v0 }
 0x21c   :  { %v1825_v3 = vmax.f32 %v1776_v62, 0.0  ;;  %v1721_v33 = vmax.f32 %v4359_v4, %v1672_v20 }
 0x21d   :  { %v1174_v34 = vpop.f32.mrf.mxu0  ;;  %v1555_v48 = vpop.f32.mrf.mxu1 }
 0x21e   :  { %1875 = vst.msk [vmem:[%s4223_s6 + $0xc8] sm:$0xff] %vm1849_vm4, %v1825_v3  ;;  %v1777_v51 = vadd.f32 %v3823_v5, %v1721_v33  ;;  %v1673_v40 = vmax.f32 %v1174_v34, %v1555_v48  ;;  %v4375_v33 = vld [vmem:[#allocation24_spill] sm:$0xff]  ;;  %v4376_v34 = vld [vmem:[#allocation25_spill] sm:$0xff] }
 0x21f   :  { %v2383_v22 = vpop.f32.mrf.mxu0  ;;  %v2487_v26 = vpop.f32.mrf.mxu1  ;;  %v4377_v48 = vmax.f32 %v4375_v33, %v4376_v34 }
 0x220   :  { %v1826_v41 = vmax.f32 %v1777_v51, 0.0  ;;  %v1722_v8 = vmax.f32 %v4362_v7, %v1673_v40 }
 0x221   :  { %v1179_v1 = vpop.f32.mrf.mxu0  ;;  %v1560_v47 = vpop.f32.mrf.mxu1 }
 0x222   :  { %1876 = vst.msk [vmem:[%s4223_s6 + $0xd0] sm:$0xff] %vm1849_vm4, %v1826_v41  ;;  %v1778_v63 = vadd.f32 %v3823_v5, %v1722_v8  ;;  %v1674_v16 = vmax.f32 %v1179_v1, %v1560_v47  ;;  %v4378_v8 = vld [vmem:[#allocation26_spill] sm:$0xff]  ;;  %v4379_v1 = vld [vmem:[#allocation27_spill] sm:$0xff] }
 0x223   :  { %v2386_v49 = vpop.f32.mrf.mxu0  ;;  %v2490_v56 = vpop.f32.mrf.mxu1  ;;  %v4380_v47 = vmax.f32 %v4378_v8, %v4379_v1 }
 0x224   :  { %v1827_v60 = vmax.f32 %v1778_v63, 0.0  ;;  %v1723_v42 = vmax.f32 %v4365_v30, %v1674_v16 }
 0x225   :  { %v1182_v2 = vpop.f32.mrf.mxu0  ;;  %v1563_v6 = vpop.f32.mrf.mxu1 }
 0x226   :  { %1877 = vst.msk [vmem:[%s4223_s6 + $0xd8] sm:$0xff] %vm1849_vm4, %v1827_v60  ;;  %v1779_v50 = vadd.f32 %v3823_v5, %v1723_v42  ;;  %v1675_v25 = vmax.f32 %v1182_v2, %v1563_v6  ;;  %v4381_v42 = vld [vmem:[#allocation28_spill] sm:$0xff]  ;;  %v4382_v2 = vld [vmem:[#allocation29_spill] sm:$0xff] }
 0x227   :  { %v2387_v14 = vpop.f32.mrf.mxu0  ;;  %v2491_v18 = vpop.f32.mrf.mxu1  ;;  %v4383_v6 = vmax.f32 %v4381_v42, %v4382_v2 }
 0x228   :  { %v1828_v19 = vmax.f32 %v1779_v50, 0.0  ;;  %v1724_v27 = vmax.f32 %v4368_v17, %v1675_v25 }
 0x229   :  { %v1187_v15 = vpop.f32.mrf.mxu0  ;;  %v1568_v54 = vpop.f32.mrf.mxu1 }
 0x22a   :  { %1878 = vst.msk [vmem:[%s4223_s6 + $0xe0] sm:$0xff] %vm1849_vm4, %v1828_v19  ;;  %v1780_v55 = vadd.f32 %v3823_v5, %v1724_v27  ;;  %v1676_v58 = vmax.f32 %v1187_v15, %v1568_v54  ;;  %v4384_v27 = vld [vmem:[#allocation30_spill] sm:$0xff]  ;;  %v4385_v15 = vld [vmem:[#allocation31_spill] sm:$0xff] }
 0x22b   :  { %v2390_v11 = vpop.f32.mrf.mxu0  ;;  %v2494_v37 = vpop.f32.mrf.mxu1  ;;  %v4386_v54 = vmax.f32 %v4384_v27, %v4385_v15 }
 0x22c   :  { %v1829_v43 = vmax.f32 %v1780_v55, 0.0  ;;  %v1725_v53 = vmax.f32 %v4371_v44, %v1676_v58 }
 0x22d   :  { %v1190_v9 = vpop.f32.mrf.mxu0  ;;  %v1571_v10 = vpop.f32.mrf.mxu1 }
 0x22e   :  { %1879 = vst.msk [vmem:[%s4223_s6 + $0xe8] sm:$0xff] %vm1849_vm4, %v1829_v43  ;;  %v1781_v39 = vadd.f32 %v3823_v5, %v1725_v53  ;;  %v1677_v23 = vmax.f32 %v1190_v9, %v1571_v10  ;;  %v4387_v53 = vld [vmem:[#allocation32_spill] sm:$0xff]  ;;  %v4388_v9 = vld [vmem:[#allocation33_spill] sm:$0xff] }
 0x22f   :  { %v2391_v24 = vpop.f32.mrf.mxu0  ;;  %v2495_v12 = vpop.f32.mrf.mxu1  ;;  %v4389_v10 = vmax.f32 %v4387_v53, %v4388_v9 }
 0x230   :  { %v1830_v13 = vmax.f32 %v1781_v39, 0.0  ;;  %v1726_v62 = vmax.f32 %v4374_v61, %v1677_v23 }
 0x231   :  { %v1195_v20 = vpop.f32.mrf.mxu0  ;;  %v1576_v21 = vpop.f32.mrf.mxu1 }
 0x232   :  { %1880 = vst.msk [vmem:[%s4223_s6 + $0xf0] sm:$0xff] %vm1849_vm4, %v1830_v13  ;;  %v1782_v32 = vadd.f32 %v3823_v5, %v1726_v62  ;;  %v1678_v3 = vmax.f32 %v1195_v20, %v1576_v21  ;;  %v4390_v62 = vld [vmem:[#allocation34_spill] sm:$0xff]  ;;  %v4391_v20 = vld [vmem:[#allocation35_spill] sm:$0xff] }
 0x233   :  { %v2394_v28 = vpop.f32.mrf.mxu0  ;;  %v2498_v36 = vpop.f32.mrf.mxu1  ;;  %v4392_v21 = vmax.f32 %v4390_v62, %v4391_v20 }
 0x234   :  { %v1831_v4 = vmax.f32 %v1782_v32, 0.0  ;;  %v1727_v51 = vmax.f32 %v4377_v48, %v1678_v3 }
 0x235   :  { %v1198_v40 = vpop.f32.mrf.mxu0  ;;  %v1579_v22 = vpop.f32.mrf.mxu1 }
 0x236   :  { %1881 = vst.msk [vmem:[%s4223_s6 + $0xf8] sm:$0xff] %vm1849_vm4, %v1831_v4  ;;  %v1783_v26 = vadd.f32 %v3823_v5, %v1727_v51  ;;  %v1679_v41 = vmax.f32 %v1198_v40, %v1579_v22  ;;  %v4393_v51 = vld [vmem:[#allocation36_spill] sm:$0xff]  ;;  %v4394_v40 = vld [vmem:[#allocation37_spill] sm:$0xff] }
 0x237   :  { %v2395_v45 = vpop.f32.mrf.mxu0  ;;  %v2499_v46 = vpop.f32.mrf.mxu1  ;;  %v4395_v22 = vmax.f32 %v4393_v51, %v4394_v40 }
 0x238   :  { %v1832_v7 = vmax.f32 %v1783_v26, 0.0  ;;  %v1728_v63 = vmax.f32 %v4380_v47, %v1679_v41 }
 0x239   :  { %v1203_v16 = vpop.f32.mrf.mxu0  ;;  %v1584_v49 = vpop.f32.mrf.mxu1 }
 0x23a   :  { %1882 = vst.msk [vmem:[%s4223_s6 + $0x100] sm:$0xff] %vm1849_vm4, %v1832_v7  ;;  %v1784_v56 = vadd.f32 %v3823_v5, %v1728_v63  ;;  %v1680_v60 = vmax.f32 %v1203_v16, %v1584_v49  ;;  %v4396_v63 = vld [vmem:[#allocation38_spill] sm:$0xff]  ;;  %v4397_v16 = vld [vmem:[#allocation39_spill] sm:$0xff] }
 0x23b   :  { %v2398_v35 = vpop.f32.mrf.mxu0  ;;  %v2502_v29 = vpop.f32.mrf.mxu1  ;;  %v4398_v49 = vmax.f32 %v4396_v63, %v4397_v16 }
 0x23c   :  { %v1833_v30 = vmax.f32 %v1784_v56, 0.0  ;;  %v1729_v50 = vmax.f32 %v4383_v6, %v1680_v60 }
 0x23d   :  { %v1206_v25 = vpop.f32.mrf.mxu0  ;;  %v1587_v14 = vpop.f32.mrf.mxu1 }
 0x23e   :  { %1883 = vst.msk [vmem:[%s4223_s6 + $0x108] sm:$0xff] %vm1849_vm4, %v1833_v30  ;;  %v1785_v18 = vadd.f32 %v3823_v5, %v1729_v50  ;;  %v1681_v19 = vmax.f32 %v1206_v25, %v1587_v14  ;;  %v4399_v50 = vld [vmem:[#allocation40_spill] sm:$0xff]  ;;  %v4400_v25 = vld [vmem:[#allocation41_spill] sm:$0xff] }
 0x23f   :  { %v2399_v57 = vpop.f32.mrf.mxu0  ;;  %v2503_v59 = vpop.f32.mrf.mxu1  ;;  %v4401_v14 = vmax.f32 %v4399_v50, %v4400_v25 }
 0x240   :  { %v1834_v17 = vmax.f32 %v1785_v18, 0.0  ;;  %v1730_v55 = vmax.f32 %v4386_v54, %v1681_v19 }
 0x241   :  { %v1211_v58 = vpop.f32.mrf.mxu0  ;;  %v1592_v11 = vpop.f32.mrf.mxu1 }
 0x242   :  { %1884 = vst.msk [vmem:[%s4223_s6 + $0x110] sm:$0xff] %vm1849_vm4, %v1834_v17  ;;  %v1786_v37 = vadd.f32 %v3823_v5, %v1730_v55  ;;  %v1682_v43 = vmax.f32 %v1211_v58, %v1592_v11  ;;  %v4402_v55 = vld [vmem:[#allocation42_spill] sm:$0xff]  ;;  %v4403_v58 = vld [vmem:[#allocation43_spill] sm:$0xff] }
 0x243   :  { %v2402_v52 = vpop.f32.mrf.mxu0  ;;  %v2506_v38 = vpop.f32.mrf.mxu1  ;;  %v4404_v11 = vmax.f32 %v4402_v55, %v4403_v58 }
 0x244   :  { %v1835_v44 = vmax.f32 %v1786_v37, 0.0  ;;  %v1731_v39 = vmax.f32 %v4389_v10, %v1682_v43 }
 0x245   :  { %v1214_v23 = vpop.f32.mrf.mxu0  ;;  %v1595_v24 = vpop.f32.mrf.mxu1 }
 0x246   :  { %1885 = vst.msk [vmem:[%s4223_s6 + $0x118] sm:$0xff] %vm1849_vm4, %v1835_v44  ;;  %v1787_v12 = vadd.f32 %v3823_v5, %v1731_v39  ;;  %v1683_v13 = vmax.f32 %v1214_v23, %v1595_v24  ;;  %v4405_v39 = vld [vmem:[#allocation44_spill] sm:$0xff]  ;;  %v4406_v23 = vld [vmem:[#allocation45_spill] sm:$0xff] }
 0x247   :  { %v2403_v31 = vpop.f32.mrf.mxu0  ;;  %v2507_v0 = vpop.f32.mrf.mxu1  ;;  %v4407_v24 = vmax.f32 %v4405_v39, %v4406_v23 }
 0x248   :  { %v1836_v61 = vmax.f32 %v1787_v12, 0.0  ;;  %v1732_v32 = vmax.f32 %v4392_v21, %v1683_v13 }
 0x249   :  { %v1219_v3 = vpop.f32.mrf.mxu0  ;;  %v1600_v28 = vpop.f32.mrf.mxu1 }
 0x24a   :  { %1886 = vst.msk [vmem:[%s4223_s6 + $0x120] sm:$0xff] %vm1849_vm4, %v1836_v61  ;;  %v1788_v36 = vadd.f32 %v3823_v5, %v1732_v32  ;;  %v1684_v4 = vmax.f32 %v1219_v3, %v1600_v28  ;;  %v4408_v32 = vld [vmem:[#allocation46_spill] sm:$0xff]  ;;  %v4409_v3 = vld [vmem:[#allocation47_spill] sm:$0xff] }
 0x24b   :  { %v2406_v33 = vpop.f32.mrf.mxu0  ;;  %v2510_v34 = vpop.f32.mrf.mxu1  ;;  %v4410_v28 = vmax.f32 %v4408_v32, %v4409_v3 }
 0x24c   :  { %v1837_v48 = vmax.f32 %v1788_v36, 0.0  ;;  %v1733_v26 = vmax.f32 %v4395_v22, %v1684_v4 }
 0x24d   :  { %v1222_v41 = vpop.f32.mrf.mxu0  ;;  %v1603_v45 = vpop.f32.mrf.mxu1 }
 0x24e   :  { %1887 = vst.msk [vmem:[%s4223_s6 + $0x128] sm:$0xff] %vm1849_vm4, %v1837_v48  ;;  %v1789_v46 = vadd.f32 %v3823_v5, %v1733_v26  ;;  %v1685_v7 = vmax.f32 %v1222_v41, %v1603_v45  ;;  %v4411_v26 = vld [vmem:[#allocation48_spill] sm:$0xff]  ;;  %v4412_v41 = vld [vmem:[#allocation49_spill] sm:$0xff] }
 0x24f   :  { %v2407_v8 = vpop.f32.mrf.mxu0  ;;  %v2511_v1 = vpop.f32.mrf.mxu1  ;;  %v4413_v45 = vmax.f32 %v4411_v26, %v4412_v41 }
 0x250   :  { %v1838_v47 = vmax.f32 %v1789_v46, 0.0  ;;  %v1734_v56 = vmax.f32 %v4398_v49, %v1685_v7 }
 0x251   :  { %v1227_v60 = vpop.f32.mrf.mxu0  ;;  %v1608_v35 = vpop.f32.mrf.mxu1 }
 0x252   :  { %1888 = vst.msk [vmem:[%s4223_s6 + $0x130] sm:$0xff] %vm1849_vm4, %v1838_v47  ;;  %v1790_v29 = vadd.f32 %v3823_v5, %v1734_v56  ;;  %v1686_v30 = vmax.f32 %v1227_v60, %v1608_v35  ;;  %v4414_v56 = vld [vmem:[#allocation50_spill] sm:$0xff]  ;;  %v4415_v60 = vld [vmem:[#allocation51_spill] sm:$0xff] }
 0x253   :  { %v2410_v42 = vpop.f32.mrf.mxu0  ;;  %v2514_v2 = vpop.f32.mrf.mxu1  ;;  %v4416_v35 = vmax.f32 %v4414_v56, %v4415_v60 }
 0x254   :  { %v1839_v6 = vmax.f32 %v1790_v29, 0.0  ;;  %v1735_v18 = vmax.f32 %v4401_v14, %v1686_v30 }
 0x255   :  { %v1230_v19 = vpop.f32.mrf.mxu0  ;;  %v1611_v57 = vpop.f32.mrf.mxu1 }
 0x256   :  { %1889 = vst.msk [vmem:[%s4223_s6 + $0x138] sm:$0xff] %vm1849_vm4, %v1839_v6  ;;  %v1791_v59 = vadd.f32 %v3823_v5, %v1735_v18  ;;  %v1687_v17 = vmax.f32 %v1230_v19, %v1611_v57  ;;  %v4417_v18 = vld [vmem:[#allocation52_spill] sm:$0xff]  ;;  %v4418_v19 = vld [vmem:[#allocation53_spill] sm:$0xff] }
 0x257   :  { %v2411_v27 = vpop.f32.mrf.mxu0  ;;  %v2515_v15 = vpop.f32.mrf.mxu1  ;;  %v4419_v57 = vmax.f32 %v4417_v18, %v4418_v19 }
 0x258   :  { %v1840_v54 = vmax.f32 %v1791_v59, 0.0  ;;  %v1736_v37 = vmax.f32 %v4404_v11, %v1687_v17 }
 0x259   :  { %v1235_v43 = vpop.f32.mrf.mxu0  ;;  %v1616_v52 = vpop.f32.mrf.mxu1 }
 0x25a   :  { %1890 = vst.msk [vmem:[%s4223_s6 + $0x140] sm:$0xff] %vm1849_vm4, %v1840_v54  ;;  %v1792_v38 = vadd.f32 %v3823_v5, %v1736_v37  ;;  %v1688_v44 = vmax.f32 %v1235_v43, %v1616_v52  ;;  %v4420_v37 = vld [vmem:[#allocation54_spill] sm:$0xff]  ;;  %v4421_v43 = vld [vmem:[#allocation55_spill] sm:$0xff] }
 0x25b   :  { %v2414_v53 = vpop.f32.mrf.mxu0  ;;  %v2518_v9 = vpop.f32.mrf.mxu1  ;;  %v4422_v52 = vmax.f32 %v4420_v37, %v4421_v43 }
 0x25c   :  { %v1841_v10 = vmax.f32 %v1792_v38, 0.0  ;;  %v1737_v12 = vmax.f32 %v4407_v24, %v1688_v44 }
 0x25d   :  { %v1238_v13 = vpop.f32.mrf.mxu0  ;;  %v1619_v31 = vpop.f32.mrf.mxu1 }
 0x25e   :  { %1891 = vst.msk [vmem:[%s4223_s6 + $0x148] sm:$0xff] %vm1849_vm4, %v1841_v10  ;;  %v1793_v0 = vadd.f32 %v3823_v5, %v1737_v12  ;;  %v1689_v61 = vmax.f32 %v1238_v13, %v1619_v31  ;;  %v4423_v12 = vld [vmem:[#allocation56_spill] sm:$0xff]  ;;  %v4424_v13 = vld [vmem:[#allocation57_spill] sm:$0xff] }
 0x25f   :  { %v2415_v62 = vpop.f32.mrf.mxu0  ;;  %v2519_v20 = vpop.f32.mrf.mxu1  ;;  %v4425_v31 = vmax.f32 %v4423_v12, %v4424_v13 }
 0x260   :  { %v1842_v21 = vmax.f32 %v1793_v0, 0.0  ;;  %v1738_v36 = vmax.f32 %v4410_v28, %v1689_v61 }
 0x261   :  { %v1243_v4 = vpop.f32.mrf.mxu0  ;;  %v1624_v33 = vpop.f32.mrf.mxu1 }
 0x262   :  { %1892 = vst.msk [vmem:[%s4223_s6 + $0x150] sm:$0xff] %vm1849_vm4, %v1842_v21  ;;  %v1794_v34 = vadd.f32 %v3823_v5, %v1738_v36  ;;  %v1690_v48 = vmax.f32 %v1243_v4, %v1624_v33 }
 0x263   :  { %v2418_v51 = vpop.f32.mrf.mxu0  ;;  %v2522_v40 = vpop.f32.mrf.mxu1 }
 0x264   :  { %v1843_v22 = vmax.f32 %v1794_v34, 0.0  ;;  %v1739_v46 = vmax.f32 %v4413_v45, %v1690_v48 }
 0x265   :  { %v1246_v7 = vpop.f32.mrf.mxu0  ;;  %v1627_v8 = vpop.f32.mrf.mxu1 }
 0x266   :  { %1893 = vst.msk [vmem:[%s4223_s6 + $0x158] sm:$0xff] %vm1849_vm4, %v1843_v22  ;;  %v1795_v1 = vadd.f32 %v3823_v5, %v1739_v46  ;;  %v1691_v47 = vmax.f32 %v1246_v7, %v1627_v8 }
 0x267   :  { %v2419_v63 = vpop.f32.mrf.mxu0  ;;  %v2523_v16 = vpop.f32.mrf.mxu1 }
 0x268   :  { %v1844_v49 = vmax.f32 %v1795_v1, 0.0  ;;  %v1740_v29 = vmax.f32 %v4416_v35, %v1691_v47 }
 0x269   :  { %v1251_v30 = vpop.f32.mrf.mxu0  ;;  %v1632_v42 = vpop.f32.mrf.mxu1 }
 0x26a   :  { %1894 = vst.msk [vmem:[%s4223_s6 + $0x160] sm:$0xff] %vm1849_vm4, %v1844_v49  ;;  %v1796_v2 = vadd.f32 %v3823_v5, %v1740_v29  ;;  %v1692_v6 = vmax.f32 %v1251_v30, %v1632_v42 }
 0x26b   :  { %v2422_v50 = vpop.f32.mrf.mxu0  ;;  %v2526_v25 = vpop.f32.mrf.mxu1 }
 0x26c   :  { %v1845_v14 = vmax.f32 %v1796_v2, 0.0  ;;  %v1741_v59 = vmax.f32 %v4419_v57, %v1692_v6 }
 0x26d   :  { %v1254_v17 = vpop.f32.mrf.mxu0  ;;  %v1635_v27 = vpop.f32.mrf.mxu1 }
 0x26e   :  { %1895 = vst.msk [vmem:[%s4223_s6 + $0x168] sm:$0xff] %vm1849_vm4, %v1845_v14  ;;  %v1797_v15 = vadd.f32 %v3823_v5, %v1741_v59  ;;  %v1693_v54 = vmax.f32 %v1254_v17, %v1635_v27 }
 0x26f   :  { %v2423_v55 = vpop.f32.mrf.mxu0  ;;  %v2527_v58 = vpop.f32.mrf.mxu1 }
 0x270   :  { %v1846_v11 = vmax.f32 %v1797_v15, 0.0  ;;  %v1742_v38 = vmax.f32 %v4422_v52, %v1693_v54 }
 0x271   :  { %v1259_v44 = vpop.f32.mrf.mxu0  ;;  %v1640_v53 = vpop.f32.mrf.mxu1 }
 0x272   :  { %1896 = vst.msk [vmem:[%s4223_s6 + $0x170] sm:$0xff] %vm1849_vm4, %v1846_v11  ;;  %v1798_v9 = vadd.f32 %v3823_v5, %v1742_v38  ;;  %v1694_v10 = vmax.f32 %v1259_v44, %v1640_v53 }
 0x273   :  { %v2426_v39 = vpop.f32.mrf.mxu0  ;;  %v2530_v23 = vpop.f32.mrf.mxu1 }
 0x274   :  { %v1847_v24 = vmax.f32 %v1798_v9, 0.0  ;;  %v1743_v0 = vmax.f32 %v4425_v31, %v1694_v10 }
 0x275   :  { %v1262_v61 = vpop.f32.mrf.mxu0  ;;  %v1643_v62 = vpop.f32.mrf.mxu1 }
 0x276   :  { %1897 = vst.msk [vmem:[%s4223_s6 + $0x178] sm:$0xff] %vm1849_vm4, %v1847_v24  ;;  %v1799_v20 = vadd.f32 %v3823_v5, %v1743_v0 }
 0x277   :  { %v2427_v21 = vpop.f32.mrf.mxu0  ;;  %v2531_v32 = vpop.f32.mrf.mxu1 }
 0x278   :  { %v1848_v3 = vmax.f32 %v1799_v20, 0.0 }
 0x27a   :  { %1898 = vst.msk [vmem:[%s4223_s6 + $0x180] sm:$0xff] %vm1849_vm4, %v1848_v3 }
 0x27b   :  { %1903 = vsyncpa [#allocation3], 1 }
 0x27c   :  { %1904 = vsyncpa [#allocation5], 1 }

// kernel: net_forward.7
= control target key start
LH: loop header
LB: loop body
LE: loop exit
PB: predicated region body
PF: predicated region fallthrough
CT: control target
= control target key end

     0   :  { %v1736_v36 = vmov 1983009808   ;;  %v36_v38 = vlaneseq  ;;  %s2265_s0 = inlined_call_operand.vmem [shape: f32[2,1024], index: 0, kind: input, shape index: {}]   ;;  %s2266_s1 = inlined_call_operand.vmem [shape: bf16[1024,256], index: 1, kind: input, shape index: {}]   ;;  %s2267_s2 = inlined_call_operand.vmem [shape: f32[1,256], index: 2, kind: input, shape index: {}]   ;;  %s2268_s3 = inlined_call_operand.vmem [shape: bf16[256,64], index: 3, kind: input, shape index: {}]   ;;  %s2269_s4 = inlined_call_operand.vmem [shape: f32[1,64], index: 4, kind: input, shape index: {}]   ;;  %s2270_s5 = inlined_call_operand.vmem [shape: bf16[64,2], index: 5, kind: input, shape index: {}]   ;;  %s2271_s6 = inlined_call_operand.vmem [shape: f32[1,2], index: 6, kind: input, shape index: {}]   ;;  %s2272_s7 = inlined_call_operand.hbm [shape: f32[2,2], index: 7, kind: output, shape index: {}]  }
   0x1   :  { %v1500_v0 = vld [vmem:[%s2266_s1 + $0x74] ss:$8 sps:$4 sm:$0xff]   ;;  %v1504_v2 = vld [vmem:[%s2266_s1 + $0x70] ss:$8 sps:$4 sm:$0xff]   ;;  %v1506_v4 = vld [vmem:[%s2266_s1 + $0x64] ss:$8 sps:$4 sm:$0xff]   ;;  %v34_v37 = vunpack.c.l.s4 %v1736_v36 }
   0x2   :  { %v1502_v1 = vld [vmem:[%s2266_s1 + $0x174] ss:$8 sps:$4 sm:$0xff]   ;;  %862 = vmatprep.subr.bf16.mxu0 %v1500_v0  ;;  %v1505_v3 = vld [vmem:[%s2266_s1 + $0x170] ss:$8 sps:$4 sm:$0xff]   ;;  %v1508_v5 = vld [vmem:[%s2266_s1 + $0x164] ss:$8 sps:$4 sm:$0xff]  }
   0x3   :  { %903 = vmatprep.subr.bf16.mxu1 %v1502_v1  ;;  %863 = vmatpush1.bf16.msra.mxu0 %v1504_v2  ;;  %v1510_v6 = vld [vmem:[%s2266_s1 + $0x60] ss:$8 sps:$4 sm:$0xff]   ;;  %v1512_v8 = vld [vmem:[%s2266_s1 + $0x54] ss:$8 sps:$4 sm:$0xff]   ;;  %v1516_v10 = vld [vmem:[%s2266_s1 + $0x50] ss:$8 sps:$4 sm:$0xff]   ;;  %v35_v42 = vunpack.c.0.s8 %v34_v37 }
   0x4   :  { %904 = vmatpush1.bf16.msra.mxu1 %v1505_v3  ;;  %864 = vmatprep.subr.bf16.mxu0 %v1506_v4  ;;  %v1511_v7 = vld [vmem:[%s2266_s1 + $0x160] ss:$8 sps:$4 sm:$0xff]   ;;  %v1514_v9 = vld [vmem:[%s2266_s1 + $0x154] ss:$8 sps:$4 sm:$0xff]   ;;  %v1517_v11 = vld [vmem:[%s2266_s1 + $0x150] ss:$8 sps:$4 sm:$0xff]  }
   0x5   :  { %905 = vmatprep.subr.bf16.mxu1 %v1508_v5  ;;  %v1518_v12 = vld [vmem:[%s2266_s1 + $0x44] ss:$8 sps:$4 sm:$0xff]   ;;  %v1522_v14 = vld [vmem:[%s2266_s1 + $0x40] ss:$8 sps:$4 sm:$0xff]   ;;  %v1524_v16 = vld [vmem:[%s2266_s1 + $0x34] ss:$8 sps:$4 sm:$0xff]  }
   0x6   :  { %v1520_v13 = vld [vmem:[%s2266_s1 + $0x144] ss:$8 sps:$4 sm:$0xff]   ;;  %v1523_v15 = vld [vmem:[%s2266_s1 + $0x140] ss:$8 sps:$4 sm:$0xff]   ;;  %v1526_v17 = vld [vmem:[%s2266_s1 + $0x134] ss:$8 sps:$4 sm:$0xff]  }
   0x7   :  { %865 = vmatpush1.bf16.msra.mxu0 %v1510_v6  ;;  %v1528_v18 = vld [vmem:[%s2266_s1 + $0x30] ss:$8 sps:$4 sm:$0xff]   ;;  %v1530_v20 = vld [vmem:[%s2266_s1 + $0x24] ss:$8 sps:$4 sm:$0xff]   ;;  %v1534_v22 = vld [vmem:[%s2266_s1 + $0x20] ss:$8 sps:$4 sm:$0xff]  }
   0x8   :  { %906 = vmatpush1.bf16.msra.mxu1 %v1511_v7  ;;  %866 = vmatprep.subr.bf16.mxu0 %v1512_v8  ;;  %v1529_v19 = vld [vmem:[%s2266_s1 + $0x130] ss:$8 sps:$4 sm:$0xff]   ;;  %v1532_v21 = vld [vmem:[%s2266_s1 + $0x124] ss:$8 sps:$4 sm:$0xff]   ;;  %v1535_v23 = vld [vmem:[%s2266_s1 + $0x120] ss:$8 sps:$4 sm:$0xff]  }
   0x9   :  { %907 = vmatprep.subr.bf16.mxu1 %v1514_v9  ;;  %v1536_v24 = vld [vmem:[%s2266_s1 + $0x14] ss:$8 sps:$4 sm:$0xff]   ;;  %v1540_v26 = vld [vmem:[%s2266_s1 + $0x10] ss:$8 sps:$4 sm:$0xff]   ;;  %v1542_v28 = vld [vmem:[%s2266_s1 + $0x4] ss:$8 sps:$4 sm:$0xff]  }
   0xa   :  { %v1538_v25 = vld [vmem:[%s2266_s1 + $0x114] ss:$8 sps:$4 sm:$0xff]   ;;  %v1541_v27 = vld [vmem:[%s2266_s1 + $0x110] ss:$8 sps:$4 sm:$0xff]   ;;  %v1544_v29 = vld [vmem:[%s2266_s1 + $0x104] ss:$8 sps:$4 sm:$0xff]  }
   0xb   :  { %867 = vmatpush1.bf16.msra.mxu0 %v1516_v10  ;;  %v1546_v30 = vld [vmem:[%s2266_s1] ss:$8 sps:$4 sm:$0xff]   ;;  %v1548_v32 = vld [vmem:[%s2266_s1 + $0xf4] ss:$8 sps:$4 sm:$0xff]   ;;  %v1552_v34 = vld [vmem:[%s2266_s1 + $0xf0] ss:$8 sps:$4 sm:$0xff]  }
   0xc   :  { %908 = vmatpush1.bf16.msra.mxu1 %v1517_v11  ;;  %868 = vmatprep.subr.bf16.mxu0 %v1518_v12  ;;  %v1547_v31 = vld [vmem:[%s2266_s1 + $0x100] ss:$8 sps:$4 sm:$0xff]   ;;  %v1550_v33 = vld [vmem:[%s2266_s1 + $0x1f4] ss:$8 sps:$4 sm:$0xff]   ;;  %v1553_v35 = vld [vmem:[%s2266_s1 + $0x1f0] ss:$8 sps:$4 sm:$0xff]  }
   0xd   :  { %909 = vmatprep.subr.bf16.mxu1 %v1520_v13  ;;  %v1554_v39 = vld [vmem:[%s2266_s1 + $0xe4] ss:$8 sps:$4 sm:$0xff]   ;;  %v1558_v41 = vld [vmem:[%s2266_s1 + $0xe0] ss:$8 sps:$4 sm:$0xff]   ;;  %v1897_v43 = vshrl.u32 %v36_v38, 7 }
   0xe   :  { %v1556_v40 = vld [vmem:[%s2266_s1 + $0x1e4] ss:$8 sps:$4 sm:$0xff]   ;;  %v1559_v44 = vld [vmem:[%s2266_s1 + $0x1e0] ss:$8 sps:$4 sm:$0xff]   ;;  %v1560_v45 = vld [vmem:[%s2266_s1 + $0xd4] ss:$8 sps:$4 sm:$0xff]  }
   0xf   :  { %869 = vmatpush1.bf16.msra.mxu0 %v1522_v14  ;;  %v1562_v46 = vld [vmem:[%s2266_s1 + $0x1d4] ss:$8 sps:$4 sm:$0xff]   ;;  %v1564_v47 = vld [vmem:[%s2266_s1 + $0xd0] ss:$8 sps:$4 sm:$0xff]   ;;  %v1915_v49 = vsub.s32 %v35_v42, %v1897_v43  ;;  %v1566_v50 = vld [vmem:[%s2266_s1 + $0xc4] ss:$8 sps:$4 sm:$0xff]  }
  0x10   :  { %910 = vmatpush1.bf16.msra.mxu1 %v1523_v15  ;;  %870 = vmatprep.subr.bf16.mxu0 %v1524_v16  ;;  %v1565_v48 = vld [vmem:[%s2266_s1 + $0x1d0] ss:$8 sps:$4 sm:$0xff]   ;;  %v1568_v51 = vld [vmem:[%s2266_s1 + $0x1c4] ss:$8 sps:$4 sm:$0xff]   ;;  %v1570_v53 = vld [vmem:[%s2266_s1 + $0xc0] ss:$8 sps:$4 sm:$0xff]  }
  0x11   :  { %911 = vmatprep.subr.bf16.mxu1 %v1526_v17  ;;  %v28_v52 = vld [vmem:[%s2265_s0] sm:$0xff]  ;;  %v1572_v57 = vld [vmem:[%s2266_s1 + $0xb4] ss:$8 sps:$4 sm:$0xff]   ;;  %v1576_v61 = vld [vmem:[%s2266_s1 + $0xb0] ss:$8 sps:$4 sm:$0xff]  }
  0x12   :  { %v39_v54 = vrot.slane %v28_v52, %v1915_v49  ;;  %v32_v55 = vcombine.high %v28_v52, %v28_v52  ;;  %v1571_v56 = vld [vmem:[%s2266_s1 + $0x1c0] ss:$8 sps:$4 sm:$0xff]   ;;  %v1574_v58 = vld [vmem:[%s2266_s1 + $0x1b4] ss:$8 sps:$4 sm:$0xff]   ;;  %v1577_v0 = vld [vmem:[%s2266_s1 + $0x1b0] ss:$8 sps:$4 sm:$0xff]  }
  0x13   :  { %871 = vmatpush1.bf16.msra.mxu0 %v1528_v18  ;;  %v1578_v1 = vld [vmem:[%s2266_s1 + $0xa4] ss:$8 sps:$4 sm:$0xff]   ;;  %v1582_v4 = vld [vmem:[%s2266_s1 + $0xa0] ss:$8 sps:$4 sm:$0xff]   ;;  %v1584_v6 = vld [vmem:[%s2266_s1 + $0x94] ss:$8 sps:$4 sm:$0xff]  }
  0x14   :  { %912 = vmatpush1.bf16.msra.mxu1 %v1529_v19  ;;  %872 = vmatprep.subr.bf16.mxu0 %v1530_v20  ;;  %v47_v59 = vcombine.high %v39_v54, %v39_v54  ;;  %v46_v60 = vrot.slane %v32_v55, %v1915_v49  ;;  %v1580_v2 = vld [vmem:[%s2266_s1 + $0x1a4] ss:$8 sps:$4 sm:$0xff]   ;;  %v1583_v5 = vld [vmem:[%s2266_s1 + $0x1a0] ss:$8 sps:$4 sm:$0xff]   ;;  %v1586_v7 = vld [vmem:[%s2266_s1 + $0x194] ss:$8 sps:$4 sm:$0xff]   ;;  %v74_v16 = vpack.c.bf16 %v39_v54, %v39_v54 }
  0x15   :  { %913 = vmatprep.subr.bf16.mxu1 %v1532_v21  ;;  %v1588_v8 = vld [vmem:[%s2266_s1 + $0x90] ss:$8 sps:$4 sm:$0xff]   ;;  %v1590_v10 = vld [vmem:[%s2266_s1 + $0x84] ss:$8 sps:$4 sm:$0xff]   ;;  %v1594_v12 = vld [vmem:[%s2266_s1 + $0x80] ss:$8 sps:$4 sm:$0xff]  }
  0x16   :  { %v75_v62 = vpack.c.bf16 %v47_v59, %v47_v59  ;;  %v48_v63 = vcombine.high %v46_v60, %v46_v60  ;;  %v1589_v9 = vld [vmem:[%s2266_s1 + $0x190] ss:$8 sps:$4 sm:$0xff]   ;;  %v1592_v11 = vld [vmem:[%s2266_s1 + $0x184] ss:$8 sps:$4 sm:$0xff]   ;;  %v1595_v13 = vld [vmem:[%s2266_s1 + $0x180] ss:$8 sps:$4 sm:$0xff]   ;;  %v76_v17 = vpack.c.bf16 %v46_v60, %v46_v60 }
  0x17   :  { %873 = vmatpush1.bf16.msra.mxu0 %v1534_v22  ;;  %v1599_v14 = vld [vmem:[%s2266_s1 + $0x274] ss:$8 sps:$4 sm:$0xff]   ;;  %v1597_v18 = vld [vmem:[%s2266_s1 + $0x270] ss:$8 sps:$4 sm:$0xff]   ;;  %v1605_v20 = vld [vmem:[%s2266_s1 + $0x264] ss:$8 sps:$4 sm:$0xff]  }
  0x18   :  { %914 = vmatpush1.bf16.msra.mxu1 %v1535_v23  ;;  %874 = vmatprep.subr.bf16.mxu0 %v1536_v24  ;;  %v77_v3 = vpack.c.bf16 %v48_v63, %v48_v63  ;;  %v1602_v15 = vld [vmem:[%s2266_s1 + $0x374] ss:$8 sps:$4 sm:$0xff]   ;;  %v1600_v19 = vld [vmem:[%s2266_s1 + $0x370] ss:$8 sps:$4 sm:$0xff]   ;;  %v1608_v21 = vld [vmem:[%s2266_s1 + $0x364] ss:$8 sps:$4 sm:$0xff]  }
  0x19   :  { %915 = vmatprep.subr.bf16.mxu1 %v1538_v25  ;;  %894 = vmatprep.mubr.bf16.mxu0 %v75_v62  ;;  %v1603_v22 = vld [vmem:[%s2266_s1 + $0x260] ss:$8 sps:$4 sm:$0xff]   ;;  %v1611_v24 = vld [vmem:[%s2266_s1 + $0x254] ss:$8 sps:$4 sm:$0xff]   ;;  %v1629_v36 = vld [vmem:[%s2266_s1 + $0x224] ss:$8 sps:$4 sm:$0xff]  }
  0x1a   :  { %935 = vmatprep.mubr.bf16.mxu1 %v77_v3  ;;  %v1606_v23 = vld [vmem:[%s2266_s1 + $0x360] ss:$8 sps:$4 sm:$0xff]   ;;  %v1614_v25 = vld [vmem:[%s2266_s1 + $0x354] ss:$8 sps:$4 sm:$0xff]   ;;  %v1632_v37 = vld [vmem:[%s2266_s1 + $0x324] ss:$8 sps:$4 sm:$0xff]  }
  0x1b   :  { %875 = vmatpush1.bf16.msra.mxu0 %v1540_v26  ;;  %v1609_v26 = vld [vmem:[%s2266_s1 + $0x250] ss:$8 sps:$4 sm:$0xff]   ;;  %v1627_v38 = vld [vmem:[%s2266_s1 + $0x220] ss:$8 sps:$4 sm:$0xff]   ;;  %v1656_v62 = vld [vmem:[%s2266_s1 + $0x3e4] ss:$8 sps:$4 sm:$0xff]  }
  0x1c   :  { %916 = vmatpush1.bf16.msra.mxu1 %v1541_v27  ;;  %876 = vmatprep.subr.bf16.mxu0 %v1542_v28  ;;  %v1612_v27 = vld [vmem:[%s2266_s1 + $0x350] ss:$8 sps:$4 sm:$0xff]   ;;  %v1617_v28 = vld [vmem:[%s2266_s1 + $0x244] ss:$8 sps:$4 sm:$0xff]   ;;  %v1642_v54 = vld [vmem:[%s2266_s1 + $0x300] ss:$8 sps:$4 sm:$0xff]  }
  0x1d   :  { %917 = vmatprep.subr.bf16.mxu1 %v1544_v29  ;;  %v1620_v29 = vld [vmem:[%s2266_s1 + $0x344] ss:$8 sps:$4 sm:$0xff]   ;;  %v1645_v59 = vld [vmem:[%s2266_s1 + $0x2f0] ss:$8 sps:$4 sm:$0xff]  }
  0x1e   :  { %v29_v42 = vld [vmem:[%s2265_s0 + $0x8] sm:$0xff]  ;;  %v1648_v60 = vld [vmem:[%s2266_s1 + $0x3f0] ss:$8 sps:$4 sm:$0xff]  }
  0x1f   :  { %877 = vmatpush1.bf16.msra.mxu0 %v1546_v30  ;;  %v1615_v30 = vld [vmem:[%s2266_s1 + $0x240] ss:$8 sps:$4 sm:$0xff]  }
  0x20   :  { %918 = vmatpush1.bf16.msra.mxu1 %v1547_v31  ;;  %878 = vmatprep.subr.bf16.mxu0 %v1548_v32  ;;  %v1618_v31 = vld [vmem:[%s2266_s1 + $0x340] ss:$8 sps:$4 sm:$0xff]   ;;  %v1623_v32 = vld [vmem:[%s2266_s1 + $0x234] ss:$8 sps:$4 sm:$0xff]  }
  0x21   :  { %919 = vmatprep.subr.bf16.mxu1 %v1550_v33  ;;  %v1626_v33 = vld [vmem:[%s2266_s1 + $0x334] ss:$8 sps:$4 sm:$0xff]  }
  0x23   :  { %879 = vmatpush2.bf16.msra.mxu0 %v1552_v34  ;;  %v1621_v34 = vld [vmem:[%s2266_s1 + $0x230] ss:$8 sps:$4 sm:$0xff]  }
  0x24   :  { %920 = vmatpush2.bf16.msra.mxu1 %v1553_v35  ;;  %880 = vmatprep.subr.bf16.mxu0 %v1554_v39  ;;  %v1624_v35 = vld [vmem:[%s2266_s1 + $0x330] ss:$8 sps:$4 sm:$0xff]   ;;  %v1630_v39 = vld [vmem:[%s2266_s1 + $0x320] ss:$8 sps:$4 sm:$0xff]  }
  0x25   :  { %921 = vmatprep.subr.bf16.mxu1 %v1556_v40  ;;  %v1635_v40 = vld [vmem:[%s2266_s1 + $0x214] ss:$8 sps:$4 sm:$0xff]  }
  0x27   :  { %881 = vmatpush2.bf16.msra.mxu0 %v1558_v41  ;;  %v1638_v41 = vld [vmem:[%s2266_s1 + $0x314] ss:$8 sps:$4 sm:$0xff]  }
  0x28   :  { %922 = vmatpush2.bf16.msra.mxu1 %v1559_v44  ;;  %882 = vmatprep.subr.bf16.mxu0 %v1560_v45  ;;  %v1633_v44 = vld [vmem:[%s2266_s1 + $0x210] ss:$8 sps:$4 sm:$0xff]  }
  0x29   :  { %923 = vmatprep.subr.bf16.mxu1 %v1562_v46  ;;  %v1636_v45 = vld [vmem:[%s2266_s1 + $0x310] ss:$8 sps:$4 sm:$0xff]   ;;  %v2070_v46 = vrot.slane %v29_v42, %v1915_v49 }
  0x2b   :  { %883 = vmatpush2.bf16.msra.mxu0 %v1564_v47  ;;  %v49_v47 = vcombine.high %v29_v42, %v29_v42 }
  0x2c   :  { %924 = vmatpush2.bf16.msra.mxu1 %v1565_v48  ;;  %884 = vmatprep.subr.bf16.mxu0 %v1566_v50  ;;  %v1641_v48 = vld [vmem:[%s2266_s1 + $0x204] ss:$8 sps:$4 sm:$0xff]  }
  0x2d   :  { %925 = vmatprep.subr.bf16.mxu1 %v1568_v51  ;;  %v1644_v50 = vld [vmem:[%s2266_s1 + $0x304] ss:$8 sps:$4 sm:$0xff]   ;;  %v64_v51 = vcombine.high %v2070_v46, %v2070_v46  ;;  %v2081_v52 = vrot.slane %v49_v47, %v1915_v49  ;;  %v1650_v49 = vld [vmem:[%s2266_s1 + $0x3f4] ss:$8 sps:$4 sm:$0xff]  }
  0x2f   :  { %885 = vmatpush2.bf16.msra.mxu0 %v1570_v53  ;;  %v1639_v53 = vld [vmem:[%s2266_s1 + $0x200] ss:$8 sps:$4 sm:$0xff]   ;;  %v79_v55 = vpack.c.bf16 %v64_v51, %v64_v51 }
  0x30   :  { %926 = vmatpush2.bf16.msra.mxu1 %v1571_v56  ;;  %886 = vmatprep.subr.bf16.mxu0 %v1572_v57  ;;  %v65_v56 = vcombine.high %v2081_v52, %v2081_v52  ;;  %v1647_v57 = vld [vmem:[%s2266_s1 + $0x2f4] ss:$8 sps:$4 sm:$0xff]  }
  0x31   :  { %927 = vmatprep.subr.bf16.mxu1 %v1574_v58 }
  0x32   :  { %v81_v58 = vpack.c.bf16 %v65_v56, %v65_v56 }
  0x33   :  { %887 = vmatpush2.bf16.msra.mxu0 %v1576_v61  ;;  %v1653_v61 = vld [vmem:[%s2266_s1 + $0x2e4] ss:$8 sps:$4 sm:$0xff]  }
  0x34   :  { %928 = vmatpush2.bf16.msra.mxu1 %v1577_v0  ;;  %888 = vmatprep.subr.bf16.mxu0 %v1578_v1 }
  0x35   :  { %929 = vmatprep.subr.bf16.mxu1 %v1580_v2 }
  0x37   :  { %889 = vmatpush2.bf16.msra.mxu0 %v1582_v4 }
  0x38   :  { %930 = vmatpush2.bf16.msra.mxu1 %v1583_v5  ;;  %890 = vmatprep.subr.bf16.mxu0 %v1584_v6 }
  0x39   :  { %931 = vmatprep.subr.bf16.mxu1 %v1586_v7 }
  0x3b   :  { %891 = vmatpush2.bf16.msra.mxu0 %v1588_v8 }
  0x3c   :  { %932 = vmatpush2.bf16.msra.mxu1 %v1589_v9  ;;  %892 = vmatprep.subr.bf16.mxu0 %v1590_v10 }
  0x3d   :  { %933 = vmatprep.subr.bf16.mxu1 %v1592_v11 }
  0x3f   :  { %893 = vmatpush2.bf16.msra.mxu0 %v1594_v12 }
  0x40   :  { %934 = vmatpush2.bf16.msra.mxu1 %v1595_v13  ;;  %944 = vmatprep.subr.bf16.mxu0 %v1599_v14 }
  0x41   :  { %985 = vmatprep.subr.bf16.mxu1 %v1602_v15 }
  0x42   :  { %895 = vmatmul.mubr.bf16.vlgmr.msra.gmra.mxu0 %v74_v16 }
  0x43   :  { %936 = vmatmul.mubr.bf16.vlgmr.msra.gmra.mxu1 %v76_v17  ;;  %945 = vmatpush1.bf16.msra.mxu0 %v1597_v18 }
  0x44   :  { %986 = vmatpush1.bf16.msra.mxu1 %v1600_v19  ;;  %946 = vmatprep.subr.bf16.mxu0 %v1605_v20 }
  0x45   :  { %987 = vmatprep.subr.bf16.mxu1 %v1608_v21  ;;  %976 = vmatprep.mubr.bf16.mxu0 %v79_v55 }
  0x46   :  { %1017 = vmatprep.mubr.bf16.mxu1 %v81_v58 }
  0x47   :  { %947 = vmatpush1.bf16.msra.mxu0 %v1603_v22 }
  0x48   :  { %988 = vmatpush1.bf16.msra.mxu1 %v1606_v23  ;;  %948 = vmatprep.subr.bf16.mxu0 %v1611_v24 }
  0x49   :  { %989 = vmatprep.subr.bf16.mxu1 %v1614_v25 }
  0x4b   :  { %949 = vmatpush1.bf16.msra.mxu0 %v1609_v26 }
  0x4c   :  { %990 = vmatpush1.bf16.msra.mxu1 %v1612_v27  ;;  %950 = vmatprep.subr.bf16.mxu0 %v1617_v28 }
  0x4d   :  { %991 = vmatprep.subr.bf16.mxu1 %v1620_v29 }
  0x4f   :  { %951 = vmatpush1.bf16.msra.mxu0 %v1615_v30 }
  0x50   :  { %992 = vmatpush1.bf16.msra.mxu1 %v1618_v31  ;;  %952 = vmatprep.subr.bf16.mxu0 %v1623_v32 }
  0x51   :  { %993 = vmatprep.subr.bf16.mxu1 %v1626_v33 }
  0x53   :  { %953 = vmatpush1.bf16.msra.mxu0 %v1621_v34 }
  0x54   :  { %994 = vmatpush1.bf16.msra.mxu1 %v1624_v35  ;;  %954 = vmatprep.subr.bf16.mxu0 %v1629_v36 }
  0x55   :  { %995 = vmatprep.subr.bf16.mxu1 %v1632_v37 }
  0x57   :  { %955 = vmatpush1.bf16.msra.mxu0 %v1627_v38 }
  0x58   :  { %996 = vmatpush1.bf16.msra.mxu1 %v1630_v39  ;;  %956 = vmatprep.subr.bf16.mxu0 %v1635_v40 }
  0x59   :  { %997 = vmatprep.subr.bf16.mxu1 %v1638_v41 }
  0x5b   :  { %957 = vmatpush1.bf16.msra.mxu0 %v1633_v44 }
  0x5c   :  { %998 = vmatpush1.bf16.msra.mxu1 %v1636_v45  ;;  %958 = vmatprep.subr.bf16.mxu0 %v1641_v48 }
  0x5d   :  { %999 = vmatprep.subr.bf16.mxu1 %v1644_v50 }
  0x5f   :  { %959 = vmatpush1.bf16.msra.mxu0 %v1639_v53 }
  0x60   :  { %1000 = vmatpush1.bf16.msra.mxu1 %v1642_v54  ;;  %960 = vmatprep.subr.bf16.mxu0 %v1647_v57 }
  0x61   :  { %1001 = vmatprep.subr.bf16.mxu1 %v1650_v49 }
  0x62   :  { %12 = vsyncpa [#allocation3], 0  ;;  %v1651_v63 = vld [vmem:[%s2266_s1 + $0x2e0] ss:$8 sps:$4 sm:$0xff]   ;;  %v1659_v1 = vld [vmem:[%s2266_s1 + $0x2d4] ss:$8 sps:$4 sm:$0xff]   ;;  %v78_v25 = vpack.c.bf16 %v2070_v46, %v2070_v46  ;;  %v80_v26 = vpack.c.bf16 %v2081_v52, %v2081_v52 }
  0x63   :  { %961 = vmatpush2.bf16.msra.mxu0 %v1645_v59  ;;  %v1654_v0 = vld [vmem:[%s2266_s1 + $0x3e0] ss:$8 sps:$4 sm:$0xff]   ;;  %v1662_v2 = vld [vmem:[%s2266_s1 + $0x3d4] ss:$8 sps:$4 sm:$0xff]   ;;  %v1657_v3 = vld [vmem:[%s2266_s1 + $0x2d0] ss:$8 sps:$4 sm:$0xff]  }
  0x64   :  { %1002 = vmatpush2.bf16.msra.mxu1 %v1648_v60  ;;  %962 = vmatprep.subr.bf16.mxu0 %v1653_v61  ;;  %v1660_v4 = vld [vmem:[%s2266_s1 + $0x3d0] ss:$8 sps:$4 sm:$0xff]   ;;  %v1665_v5 = vld [vmem:[%s2266_s1 + $0x2c4] ss:$8 sps:$4 sm:$0xff]   ;;  %v1663_v7 = vld [vmem:[%s2266_s1 + $0x2c0] ss:$8 sps:$4 sm:$0xff]  }
  0x65   :  { %1003 = vmatprep.subr.bf16.mxu1 %v1656_v62  ;;  %v1668_v6 = vld [vmem:[%s2266_s1 + $0x3c4] ss:$8 sps:$4 sm:$0xff]   ;;  %v1666_v8 = vld [vmem:[%s2266_s1 + $0x3c0] ss:$8 sps:$4 sm:$0xff]   ;;  %v1671_v9 = vld [vmem:[%s2266_s1 + $0x2b4] ss:$8 sps:$4 sm:$0xff]  }
  0x66   :  { %v1674_v10 = vld [vmem:[%s2266_s1 + $0x3b4] ss:$8 sps:$4 sm:$0xff]   ;;  %v1669_v11 = vld [vmem:[%s2266_s1 + $0x2b0] ss:$8 sps:$4 sm:$0xff]   ;;  %v1677_v13 = vld [vmem:[%s2266_s1 + $0x2a4] ss:$8 sps:$4 sm:$0xff]  }
  0x67   :  { %963 = vmatpush2.bf16.msra.mxu0 %v1651_v63  ;;  %v1672_v12 = vld [vmem:[%s2266_s1 + $0x3b0] ss:$8 sps:$4 sm:$0xff]   ;;  %v1680_v14 = vld [vmem:[%s2266_s1 + $0x3a4] ss:$8 sps:$4 sm:$0xff]   ;;  %v1675_v15 = vld [vmem:[%s2266_s1 + $0x2a0] ss:$8 sps:$4 sm:$0xff]  }
  0x68   :  { %1004 = vmatpush2.bf16.msra.mxu1 %v1654_v0  ;;  %964 = vmatprep.subr.bf16.mxu0 %v1659_v1  ;;  %v1678_v16 = vld [vmem:[%s2266_s1 + $0x3a0] ss:$8 sps:$4 sm:$0xff]   ;;  %v1683_v17 = vld [vmem:[%s2266_s1 + $0x294] ss:$8 sps:$4 sm:$0xff]   ;;  %v1681_v19 = vld [vmem:[%s2266_s1 + $0x290] ss:$8 sps:$4 sm:$0xff]  }
  0x69   :  { %1005 = vmatprep.subr.bf16.mxu1 %v1662_v2  ;;  %v1686_v18 = vld [vmem:[%s2266_s1 + $0x394] ss:$8 sps:$4 sm:$0xff]   ;;  %v1684_v20 = vld [vmem:[%s2266_s1 + $0x390] ss:$8 sps:$4 sm:$0xff]   ;;  %v1689_v21 = vld [vmem:[%s2266_s1 + $0x284] ss:$8 sps:$4 sm:$0xff]  }
  0x6a   :  { %v1692_v22 = vld [vmem:[%s2266_s1 + $0x384] ss:$8 sps:$4 sm:$0xff]   ;;  %v1687_v23 = vld [vmem:[%s2266_s1 + $0x280] ss:$8 sps:$4 sm:$0xff]   ;;  %v1694_v27 = vld [vmem:[%s2268_s3 + $0x78] sm:$0xff]   ;;  %v1737_v45 = vmov 0.0  }
  0x6b   :  { %965 = vmatpush2.bf16.msra.mxu0 %v1657_v3  ;;  %v1690_v24 = vld [vmem:[%s2266_s1 + $0x380] ss:$8 sps:$4 sm:$0xff]   ;;  %v1695_v28 = vld [vmem:[%s2268_s3 + $0x38] sm:$0xff]   ;;  %v1696_v29 = vld [vmem:[%s2268_s3 + $0x70] sm:$0xff]   ;;  %v214_v55 = vsub.s32 0, %v1897_v43  ;;  %v218_v57 = vsub.s32 1, %v1897_v43 }
  0x6c   :  { %1006 = vmatpush2.bf16.msra.mxu1 %v1660_v4  ;;  %966 = vmatprep.subr.bf16.mxu0 %v1665_v5  ;;  %v1697_v30 = vld [vmem:[%s2268_s3 + $0x30] sm:$0xff]   ;;  %v1698_v31 = vld [vmem:[%s2268_s3 + $0x68] sm:$0xff]   ;;  %v1700_v33 = vld [vmem:[%s2268_s3 + $0x60] sm:$0xff]   ;;  %vm1738_vm0 = vmmov 0   ;;  %vm1246_vm1 = vcmask 523264   ;;  %vm1290_vm2 = vcmask 9216  }
  0x6d   :  { %1007 = vmatprep.subr.bf16.mxu1 %v1668_v6  ;;  %v1699_v32 = vld [vmem:[%s2268_s3 + $0x28] sm:$0xff]   ;;  %v1701_v34 = vld [vmem:[%s2268_s3 + $0x20] sm:$0xff]   ;;  %v1702_v35 = vld [vmem:[%s2268_s3 + $0x58] sm:$0xff]  }
  0x6e   :  { %v1703_v36 = vld [vmem:[%s2268_s3 + $0x18] sm:$0xff]   ;;  %v1704_v37 = vld [vmem:[%s2268_s3 + $0x50] sm:$0xff]   ;;  %v1706_v39 = vld [vmem:[%s2268_s3 + $0x48] sm:$0xff]  }
  0x6f   :  { %967 = vmatpush2.bf16.msra.mxu0 %v1663_v7  ;;  %v1705_v38 = vld [vmem:[%s2268_s3 + $0x10] sm:$0xff]   ;;  %v1707_v40 = vld [vmem:[%s2268_s3 + $0x8] sm:$0xff]   ;;  %v1708_v41 = vld [vmem:[%s2268_s3 + $0x40] sm:$0xff]  }
  0x70   :  { %1008 = vmatpush2.bf16.msra.mxu1 %v1666_v8  ;;  %968 = vmatprep.subr.bf16.mxu0 %v1671_v9  ;;  %v1709_v42 = vld [vmem:[%s2268_s3] sm:$0xff]   ;;  %v1710_v44 = vld [vmem:[%s2270_s5 + $0x18] sm:$0xff]  }
  0x71   :  { %1009 = vmatprep.subr.bf16.mxu1 %v1674_v10  ;;  %v210_v56 = vld [vmem:[%s2267_s2] sm:$0x3] }
  0x72   :  { %v215_v49 = vrot.slane %v210_v56, %v214_v55  ;;  %v219_v58 = vrot.slane %v210_v56, %v218_v57 }
  0x73   :  { %969 = vmatpush2.bf16.msra.mxu0 %v1669_v11 }
  0x74   :  { %1010 = vmatpush2.bf16.msra.mxu1 %v1672_v12  ;;  %970 = vmatprep.subr.bf16.mxu0 %v1677_v13 }
  0x75   :  { %1011 = vmatprep.subr.bf16.mxu1 %v1680_v14  ;;  %v1711_v14 = vld [vmem:[%s2270_s5 + $0x10] sm:$0xff]  }
  0x77   :  { %971 = vmatpush2.bf16.msra.mxu0 %v1675_v15  ;;  %v1712_v15 = vld [vmem:[%s2270_s5 + $0x8] sm:$0xff]  }
  0x78   :  { %1012 = vmatpush2.bf16.msra.mxu1 %v1678_v16  ;;  %972 = vmatprep.subr.bf16.mxu0 %v1683_v17  ;;  %v1713_v16 = vld [vmem:[%s2270_s5] sm:$0xff]   ;;  %s1739_s5 = smov [#allocation2]  }
  0x79   :  { %1013 = vmatprep.subr.bf16.mxu1 %v1686_v18  ;;  %v1434_v18 = vld [vmem:[%s2269_s4] ss:$0 sm:$0xff]  ;;  %s1298_s22 = sshll.u32 %s1739_s5, 4  ;;  %s1299_s22 = int_to_ptr.vmem [resolvable:$true] %s1298_s22 }
  0x7a   :  { %s1714_s4 = scalar_lea.vmem %s1299_s22, 32  ;;  %p1719_p1 = scmp.lt.s32.totalorder %s1299_s22, %s1299_s22 }
  0x7b   :  { %973 = vmatpush2.bf16.msra.mxu0 %v1681_v19  ;;  %p1715_p0 = scmp.ne.s32.totalorder %s1299_s22, %s1714_s4  ;;  %p1720_p2 = scmp.lt.s32.totalorder %s1714_s4, %s1714_s4 }
  0x7c   :  { %1014 = vmatpush2.bf16.msra.mxu1 %v1684_v20  ;;  %974 = vmatprep.subr.bf16.mxu0 %v1689_v21 }
  0x7d   :  { %1015 = vmatprep.subr.bf16.mxu1 %v1692_v22  ;;  %p1721_p3 = por %p1720_p2, %p1719_p1 }
  0x7f   :  { %975 = vmatpush2.bf16.msra.mxu0 %v1687_v23  ;;  %p1722_p4 = pnand %p1721_p3, %p1715_p0 }
  0x80   :  { %1016 = vmatpush2.bf16.msra.mxu1 %v1690_v24  ;;  %1457 = vmatprep.subr.bf16.mxu0 %v1694_v27 }
  0x81   :  { %1484 = vmatprep.subr.bf16.mxu1 %v1737_v45 }
  0x82   :  { %977 = vmatmul.mubr.bf16.vlgmr.msra.gmra.mxu0 %v78_v25 }
  0x83   :  { %1018 = vmatmul.mubr.bf16.vlgmr.msra.gmra.mxu1 %v80_v26  ;;  %1458 = vmatpush3.bf16.msra.mxu0 %v1695_v28  ;;  %v1451_v26 = vld [vmem:[%s2271_s6] ss:$0 sm:$0xff] }
  0x84   :  { %1459 = vmatprep.subr.bf16.mxu0 %v1696_v29  ;;  %1485 = vmatpush3.bf16.msra.mxu1 %v1710_v44 }
  0x85   :  { %1486 = vmatprep.subr.bf16.mxu1 %v1737_v45  ;;  %1492 = vmatprep.mubr.msk.bf16.mxu1 %vm1738_vm0, %v1737_v45 }
  0x87   :  { %1460 = vmatpush3.bf16.msra.mxu0 %v1697_v30 }
  0x88   :  { %1461 = vmatprep.subr.bf16.mxu0 %v1698_v31  ;;  %1487 = vmatpush3.bf16.msra.mxu1 %v1711_v14 }
  0x89   :  { %1488 = vmatprep.subr.bf16.mxu1 %v1737_v45 }
  0x8b   :  { %1462 = vmatpush3.bf16.msra.mxu0 %v1699_v32 }
  0x8c   :  { %1463 = vmatprep.subr.bf16.mxu0 %v1700_v33  ;;  %1489 = vmatpush3.bf16.msra.mxu1 %v1712_v15 }
  0x8d   :  { %1490 = vmatprep.subr.bf16.mxu1 %v1737_v45 }
  0x8f   :  { %1464 = vmatpush3.bf16.msra.mxu0 %v1701_v34 }
  0x90   :  { %1465 = vmatprep.subr.bf16.mxu0 %v1702_v35  ;;  %1491 = vmatpush3.bf16.msra.mxu1 %v1713_v16 }
  0x93   :  { %1466 = vmatpush3.bf16.msra.mxu0 %v1703_v36 }
  0x94   :  { %1467 = vmatprep.subr.bf16.mxu0 %v1704_v37 }
  0x97   :  { %1468 = vmatpush3.bf16.msra.mxu0 %v1705_v38 }
  0x98   :  { %1469 = vmatprep.subr.bf16.mxu0 %v1706_v39 }
  0x9b   :  { %1470 = vmatpush3.bf16.msra.mxu0 %v1707_v40 }
  0x9c   :  { %1471 = vmatprep.subr.bf16.mxu0 %v1708_v41 }
  0x9f   :  { %1472 = vmatpush3.bf16.msra.mxu0 %v1709_v42 }
 0x102   :  { %v896_v46 = vpop.f32.mrf.mxu0 }
 0x103   :  { %v937_v47 = vpop.f32.mrf.mxu1  ;;  %v897_v59 = vadd.f32 %v896_v46, %v215_v49 }
 0x104   :  { %v898_v48 = vpop.f32.mrf.mxu0 }
 0x105   :  { %v939_v50 = vpop.f32.mrf.mxu1  ;;  %v899_v60 = vadd.f32 %v898_v48, %v219_v58  ;;  %v938_v61 = vadd.f32 %v937_v47, %v897_v59 }
 0x106   :  { %v900_v51 = vpop.f32.mrf.mxu0 }
 0x107   :  { %v941_v52 = vpop.f32.mrf.mxu1  ;;  %v940_v0 = vadd.f32 %v939_v50, %v899_v60 }
 0x108   :  { %v901_v53 = vpop.f32.mrf.mxu0 }
 0x109   :  { %v942_v54 = vpop.f32.mrf.mxu1 }
 0x142   :  { %v978_v62 = vpop.f32.mrf.mxu0 }
 0x143   :  { %v1019_v63 = vpop.f32.mrf.mxu1  ;;  %v979_v1 = vadd.f32 %v978_v62, %v938_v61 }
 0x144   :  { %v980_v2 = vpop.f32.mrf.mxu0 }
 0x145   :  { %v1021_v3 = vpop.f32.mrf.mxu1  ;;  %v1020_v4 = vadd.f32 %v1019_v63, %v979_v1  ;;  %v981_v5 = vadd.f32 %v980_v2, %v940_v0 }
 0x146   :  { %v982_v6 = vpop.f32.mrf.mxu0 }
 0x147   :  { %v1023_v7 = vpop.f32.mrf.mxu1  ;;  %v1022_v8 = vadd.f32 %v1021_v3, %v981_v5  ;;  %v1026_v9 = vmax.f32 %v1020_v4, 0.0 }
 0x148   :  { %v983_v10 = vpop.f32.mrf.mxu0 }
 0x149   :  { %v1024_v11 = vpop.f32.mrf.mxu1  ;;  %v1027_v43 = vmax.f32 %v1022_v8, 0.0  ;;  %v1028_v13 = vpack.c.bf16 %v1026_v9, %v1026_v9 }
 0x14b   :  { %v1029_v12 = vpack.c.bf16 %v1027_v43, %v1027_v43 }
 0x14d   :  { %1197 = vmatprep.mubr.bf16.mxu0 %v1029_v12 }
 0x14e   :  { %1198 = vmatmul.mubr.bf16.vlgmr.msra.gmra.mxu0 %v1028_v13 }
 0x20e   :  { %v1473_v17 = vpop.f32.mrf.mxu0 }
 0x210   :  { %v1474_v19 = vpop.f32.mrf.mxu0 }
 0x211   :  { %v1475_v20 = vadd.f32 %v1474_v19, %v1473_v17 }
 0x212   :  { %v1476_v21 = vpop.f32.mrf.mxu0 }
 0x213   :  { %v1200_v22 = vadd.f32 %v1475_v20, %v1434_v18 }
 0x214   :  { %v1477_v23 = vpop.f32.mrf.mxu0 }
 0x215   :  { %v1205_v24 = vmax.f32 %v1200_v22, 0.0 }
 0x217   :  { %v1206_v25 = vpack.c.bf16 %v1205_v24, %v1205_v24 }
 0x219   :  { %1493 = vmatmul.mubr.msk.bf16.vlgmr.msra.gmra.mxu1 %vm1246_vm1, %v1206_v25 }
 0x2d9   :  { %v1284_v27 = vpop.f32.mrf.mxu1 }
 0x2da   :  { %v1285_v28 = vadd.f32 %v1451_v26, %v1284_v27 }
 0x2db   :  { %v1494_v29 = vpop.f32.mrf.mxu1 }
 0x2dc   :  { %1291 = vst.msk [vmem:[#allocation2] sm:$0x3] %vm1290_vm2, %v1285_v28 }
 0x2dd   :  { %v1287_v30 = vpop.f32.mrf.mxu1 }
 0x2de   :  { %1725 = shalt.err (!%p1722_p4)
}
 0x2df   :  { %1301 = dma.vmem_to_hbm [thread:$0]  %s1299_s22, 32, %s2272_s7, [#allocation3]   ;;  %v1495_v31 = vpop.f32.mrf.mxu1 }
 0x2e0   :  { %1734 = dma.done.wait [#allocation3], 32  }
 0x2e1   :  { %1735 = vsyncadd [#allocation3], 4294967264 }
 0x2e2   :  { %1305 = vsyncpa [#allocation3], 1 }

// kernel: net_forward.6
= control target key start
LH: loop header
LB: loop body
LE: loop exit
PB: predicated region body
PF: predicated region fallthrough
CT: control target
= control target key end

     0   :  { %s7490_s12 = smov 0   ;;  %s7492_s13 = smov 0   ;;  %s9518_s0 = inlined_call_operand.vmem [shape: f32[2,4608], index: 0, kind: input, shape index: {}]   ;;  %s9519_s1 = inlined_call_operand.vmem [shape: bf16[4608,1024], index: 1, kind: input, shape index: {}]   ;;  %s9520_s2 = inlined_call_operand.vmem [shape: f32[1,1024], index: 2, kind: input, shape index: {}]   ;;  %s9521_s3 = inlined_call_operand.vmem [shape: f32[2,1024], index: 3, kind: output, shape index: {}]  }
   0x1   :  { %s7494_s14 = smov 0   ;;  %s7496_s15 = smov 0  }
   0x2   :  { %s7498_s16 = smov 0   ;;  %s7500_s17 = smov 0  }
   0x3   :  { %s7502_s18 = smov 0  }
   0x4 LB: > { %s22_s19 = sadd.s32 1, %s7458_s16  ;;  %s25_s20 = sadd.s32 1, %s7462_s17  ;;  %s7466_s18 = sphi %s7502_s18, %s13_s18   ;;  %s7462_s17 = sphi %s7500_s17, %s9527_s17   ;;  %s7458_s16 = sphi %s7498_s16, %s9526_s16   ;;  %s7454_s15 = sphi %s7496_s15, %s9525_s15   ;;  %s7450_s14 = sphi %s7494_s14, %s9524_s14   ;;  %s7446_s13 = sphi %s7492_s13, %s9523_s13   ;;  %s7442_s12 = sphi %s7490_s12, %s9522_s12  }
   0x5   : > { %p23_p0 = scmp.ge.s32.totalorder %s22_s19, 2  ;;  %p67_p1 = scmp.ne.s32.totalorder %s7446_s13, %s7442_s12 }
   0x6   : > { %p68_p2 = scmp.eq.s32.totalorder %s7466_s18, 0  ;;  %s60_s24 = sadd.s32 1, %s7446_s13 }
   0x7   : > { %s9529_s19 = smov (%p23_p0, %s22_s19), 0  ;;  %s9531_s20 = smov (!%p23_p0, %s25_s20), %s7462_s17 }
   0x8   : > { %p69_p3 = por %p68_p2, %p67_p1  ;;  %p27_p4 = scmp.ge.s32.totalorder %s9531_s20, 2 }
   0x9   : > { %s55_s21 = ssub.s32 %s7458_s16, %s9529_s19  ;;  %p5893_p6 = scmp.ge.s32.totalorder %s7466_s18, 4 }
   0xa   : > { %s9533_s20 = smov (%p27_p4, %s9531_s20), 0 }
   0xb   : > { %s56_s22 = ssub.s32 %s7462_s17, %s9533_s20  ;;  %145 = sbr.rel (%p5893_p6) target bundleno = 312 (0x138), region = 16 }
   0xc   : > { %s57_s23 = sor.u32 %s56_s22, %s55_s21 }
   0xd   : > { %p58_p5 = scmp.eq.s32.totalorder %s57_s23, 0 }
   0xf   : > { %s7541_s25 = scalar_select %p58_p5, %s7446_s13, %s60_s24  }
  0x10   : > { %157 = sbr.rel (!%p69_p3) target bundleno = 312 (0x138), region = 24  ;;  %s159_s26 = sand.u32 (%p69_p3), 1, %s7446_s13  }
  0x11   : > { %s6484_s27 = smul.u32 (%p69_p3), 4608, %s159_s26  ;;  %s5894_s28 = sshll.u32 (%p69_p3), %s7462_s17, 2 }
  0x12   : > { %s6483_s29 = smul.u32 (%p69_p3), 2304, %s7458_s16 }
  0x13   : > { %s7555_s8 = scalar_lea.vmem (%p69_p3), [#allocation2], %s6484_s27 }
  0x14   : > { %s165_s30 = sadd.s32 (%p69_p3), %s6483_s29, %s5894_s28 }
  0x15   : > { %s5896_s4 = sshll.u32 %s165_s30, 2 }
  0x16   : > { %s7550_s7 = scalar_lea.vmem %s9519_s1, %s5896_s4 }
  0x17   : > { %v180_v0 = vld [vmem:[%s7550_s7] sm:$0xff]  ;;  %v182_v1 = vld [vmem:[%s7550_s7 + $0x8] sm:$0xff] }
  0x18   : > { %v184_v2 = vld [vmem:[%s7550_s7 + $0x20] sm:$0xff]  ;;  %181 = vst [vmem:[%s7555_s8] sm:$0xff] %v180_v0  ;;  %183 = vst [vmem:[%s7555_s8 + $0x8] sm:$0xff] %v182_v1  ;;  %v186_v3 = vld [vmem:[%s7550_s7 + $0x28] sm:$0xff] }
  0x19   : > { %185 = vst [vmem:[%s7555_s8 + $0x10] sm:$0xff] %v184_v2  ;;  %v188_v4 = vld [vmem:[%s7550_s7 + $0x40] sm:$0xff]  ;;  %v190_v5 = vld [vmem:[%s7550_s7 + $0x48] sm:$0xff]  ;;  %187 = vst [vmem:[%s7555_s8 + $0x18] sm:$0xff] %v186_v3 }
  0x1a   : > { %189 = vst [vmem:[%s7555_s8 + $0x20] sm:$0xff] %v188_v4  ;;  %191 = vst [vmem:[%s7555_s8 + $0x28] sm:$0xff] %v190_v5  ;;  %v192_v6 = vld [vmem:[%s7550_s7 + $0x60] sm:$0xff]  ;;  %v194_v7 = vld [vmem:[%s7550_s7 + $0x68] sm:$0xff] }
  0x1b   : > { %v196_v8 = vld [vmem:[%s7550_s7 + $0x80] sm:$0xff]  ;;  %193 = vst [vmem:[%s7555_s8 + $0x30] sm:$0xff] %v192_v6  ;;  %195 = vst [vmem:[%s7555_s8 + $0x38] sm:$0xff] %v194_v7  ;;  %v198_v9 = vld [vmem:[%s7550_s7 + $0x88] sm:$0xff] }
  0x1c   : > { %197 = vst [vmem:[%s7555_s8 + $0x40] sm:$0xff] %v196_v8  ;;  %v200_v10 = vld [vmem:[%s7550_s7 + $0xa0] sm:$0xff]  ;;  %v202_v11 = vld [vmem:[%s7550_s7 + $0xa8] sm:$0xff]  ;;  %199 = vst [vmem:[%s7555_s8 + $0x48] sm:$0xff] %v198_v9 }
  0x1d   : > { %201 = vst [vmem:[%s7555_s8 + $0x50] sm:$0xff] %v200_v10  ;;  %203 = vst [vmem:[%s7555_s8 + $0x58] sm:$0xff] %v202_v11  ;;  %v204_v12 = vld [vmem:[%s7550_s7 + $0xc0] sm:$0xff]  ;;  %v206_v13 = vld [vmem:[%s7550_s7 + $0xc8] sm:$0xff] }
  0x1e   : > { %v208_v14 = vld [vmem:[%s7550_s7 + $0xe0] sm:$0xff]  ;;  %205 = vst [vmem:[%s7555_s8 + $0x60] sm:$0xff] %v204_v12  ;;  %207 = vst [vmem:[%s7555_s8 + $0x68] sm:$0xff] %v206_v13  ;;  %v210_v15 = vld [vmem:[%s7550_s7 + $0xe8] sm:$0xff] }
  0x1f   : > { %209 = vst [vmem:[%s7555_s8 + $0x70] sm:$0xff] %v208_v14  ;;  %v212_v16 = vld [vmem:[%s7550_s7 + $0x100] sm:$0xff]  ;;  %v214_v17 = vld [vmem:[%s7550_s7 + $0x108] sm:$0xff]  ;;  %211 = vst [vmem:[%s7555_s8 + $0x78] sm:$0xff] %v210_v15 }
  0x20   : > { %213 = vst [vmem:[%s7555_s8 + $0x80] sm:$0xff] %v212_v16  ;;  %215 = vst [vmem:[%s7555_s8 + $0x88] sm:$0xff] %v214_v17  ;;  %v216_v18 = vld [vmem:[%s7550_s7 + $0x120] sm:$0xff]  ;;  %v218_v19 = vld [vmem:[%s7550_s7 + $0x128] sm:$0xff] }
  0x21   : > { %v220_v20 = vld [vmem:[%s7550_s7 + $0x140] sm:$0xff]  ;;  %217 = vst [vmem:[%s7555_s8 + $0x90] sm:$0xff] %v216_v18  ;;  %219 = vst [vmem:[%s7555_s8 + $0x98] sm:$0xff] %v218_v19  ;;  %v222_v21 = vld [vmem:[%s7550_s7 + $0x148] sm:$0xff] }
  0x22   : > { %221 = vst [vmem:[%s7555_s8 + $0xa0] sm:$0xff] %v220_v20  ;;  %v224_v22 = vld [vmem:[%s7550_s7 + $0x160] sm:$0xff]  ;;  %v226_v23 = vld [vmem:[%s7550_s7 + $0x168] sm:$0xff]  ;;  %223 = vst [vmem:[%s7555_s8 + $0xa8] sm:$0xff] %v222_v21 }
  0x23   : > { %225 = vst [vmem:[%s7555_s8 + $0xb0] sm:$0xff] %v224_v22  ;;  %227 = vst [vmem:[%s7555_s8 + $0xb8] sm:$0xff] %v226_v23  ;;  %v228_v24 = vld [vmem:[%s7550_s7 + $0x180] sm:$0xff]  ;;  %v230_v25 = vld [vmem:[%s7550_s7 + $0x188] sm:$0xff] }
  0x24   : > { %v232_v26 = vld [vmem:[%s7550_s7 + $0x1a0] sm:$0xff]  ;;  %229 = vst [vmem:[%s7555_s8 + $0xc0] sm:$0xff] %v228_v24  ;;  %231 = vst [vmem:[%s7555_s8 + $0xc8] sm:$0xff] %v230_v25  ;;  %v234_v27 = vld [vmem:[%s7550_s7 + $0x1a8] sm:$0xff] }
  0x25   : > { %233 = vst [vmem:[%s7555_s8 + $0xd0] sm:$0xff] %v232_v26  ;;  %v236_v28 = vld [vmem:[%s7550_s7 + $0x1c0] sm:$0xff]  ;;  %v238_v29 = vld [vmem:[%s7550_s7 + $0x1c8] sm:$0xff]  ;;  %235 = vst [vmem:[%s7555_s8 + $0xd8] sm:$0xff] %v234_v27 }
  0x26   : > { %237 = vst [vmem:[%s7555_s8 + $0xe0] sm:$0xff] %v236_v28  ;;  %239 = vst [vmem:[%s7555_s8 + $0xe8] sm:$0xff] %v238_v29  ;;  %v240_v30 = vld [vmem:[%s7550_s7 + $0x1e0] sm:$0xff]  ;;  %v242_v31 = vld [vmem:[%s7550_s7 + $0x1e8] sm:$0xff] }
  0x27   : > { %v244_v32 = vld [vmem:[%s7550_s7 + $0x200] sm:$0xff]  ;;  %241 = vst [vmem:[%s7555_s8 + $0xf0] sm:$0xff] %v240_v30  ;;  %243 = vst [vmem:[%s7555_s8 + $0xf8] sm:$0xff] %v242_v31  ;;  %v246_v33 = vld [vmem:[%s7550_s7 + $0x208] sm:$0xff] }
  0x28   : > { %245 = vst [vmem:[%s7555_s8 + $0x100] sm:$0xff] %v244_v32  ;;  %v248_v34 = vld [vmem:[%s7550_s7 + $0x220] sm:$0xff]  ;;  %v250_v35 = vld [vmem:[%s7550_s7 + $0x228] sm:$0xff]  ;;  %247 = vst [vmem:[%s7555_s8 + $0x108] sm:$0xff] %v246_v33 }
  0x29   : > { %249 = vst [vmem:[%s7555_s8 + $0x110] sm:$0xff] %v248_v34  ;;  %251 = vst [vmem:[%s7555_s8 + $0x118] sm:$0xff] %v250_v35  ;;  %v252_v36 = vld [vmem:[%s7550_s7 + $0x240] sm:$0xff]  ;;  %v254_v37 = vld [vmem:[%s7550_s7 + $0x248] sm:$0xff] }
  0x2a   : > { %v256_v38 = vld [vmem:[%s7550_s7 + $0x260] sm:$0xff]  ;;  %253 = vst [vmem:[%s7555_s8 + $0x120] sm:$0xff] %v252_v36  ;;  %255 = vst [vmem:[%s7555_s8 + $0x128] sm:$0xff] %v254_v37  ;;  %v258_v39 = vld [vmem:[%s7550_s7 + $0x268] sm:$0xff] }
  0x2b   : > { %257 = vst [vmem:[%s7555_s8 + $0x130] sm:$0xff] %v256_v38  ;;  %v260_v40 = vld [vmem:[%s7550_s7 + $0x280] sm:$0xff]  ;;  %v262_v41 = vld [vmem:[%s7550_s7 + $0x288] sm:$0xff]  ;;  %259 = vst [vmem:[%s7555_s8 + $0x138] sm:$0xff] %v258_v39 }
  0x2c   : > { %261 = vst [vmem:[%s7555_s8 + $0x140] sm:$0xff] %v260_v40  ;;  %263 = vst [vmem:[%s7555_s8 + $0x148] sm:$0xff] %v262_v41  ;;  %v264_v42 = vld [vmem:[%s7550_s7 + $0x2a0] sm:$0xff]  ;;  %v266_v43 = vld [vmem:[%s7550_s7 + $0x2a8] sm:$0xff] }
  0x2d   : > { %v268_v44 = vld [vmem:[%s7550_s7 + $0x2c0] sm:$0xff]  ;;  %265 = vst [vmem:[%s7555_s8 + $0x150] sm:$0xff] %v264_v42  ;;  %267 = vst [vmem:[%s7555_s8 + $0x158] sm:$0xff] %v266_v43  ;;  %v270_v45 = vld [vmem:[%s7550_s7 + $0x2c8] sm:$0xff] }
  0x2e   : > { %269 = vst [vmem:[%s7555_s8 + $0x160] sm:$0xff] %v268_v44  ;;  %v272_v46 = vld [vmem:[%s7550_s7 + $0x2e0] sm:$0xff]  ;;  %v274_v47 = vld [vmem:[%s7550_s7 + $0x2e8] sm:$0xff]  ;;  %271 = vst [vmem:[%s7555_s8 + $0x168] sm:$0xff] %v270_v45 }
  0x2f   : > { %273 = vst [vmem:[%s7555_s8 + $0x170] sm:$0xff] %v272_v46  ;;  %275 = vst [vmem:[%s7555_s8 + $0x178] sm:$0xff] %v274_v47  ;;  %v276_v48 = vld [vmem:[%s7550_s7 + $0x300] sm:$0xff]  ;;  %v278_v49 = vld [vmem:[%s7550_s7 + $0x308] sm:$0xff] }
  0x30   : > { %v280_v50 = vld [vmem:[%s7550_s7 + $0x320] sm:$0xff]  ;;  %277 = vst [vmem:[%s7555_s8 + $0x180] sm:$0xff] %v276_v48  ;;  %279 = vst [vmem:[%s7555_s8 + $0x188] sm:$0xff] %v278_v49  ;;  %v282_v51 = vld [vmem:[%s7550_s7 + $0x328] sm:$0xff] }
  0x31   : > { %281 = vst [vmem:[%s7555_s8 + $0x190] sm:$0xff] %v280_v50  ;;  %v284_v52 = vld [vmem:[%s7550_s7 + $0x340] sm:$0xff]  ;;  %v286_v53 = vld [vmem:[%s7550_s7 + $0x348] sm:$0xff]  ;;  %283 = vst [vmem:[%s7555_s8 + $0x198] sm:$0xff] %v282_v51 }
  0x32   : > { %285 = vst [vmem:[%s7555_s8 + $0x1a0] sm:$0xff] %v284_v52  ;;  %287 = vst [vmem:[%s7555_s8 + $0x1a8] sm:$0xff] %v286_v53  ;;  %v288_v54 = vld [vmem:[%s7550_s7 + $0x360] sm:$0xff]  ;;  %v290_v55 = vld [vmem:[%s7550_s7 + $0x368] sm:$0xff] }
  0x33   : > { %v292_v56 = vld [vmem:[%s7550_s7 + $0x380] sm:$0xff]  ;;  %289 = vst [vmem:[%s7555_s8 + $0x1b0] sm:$0xff] %v288_v54  ;;  %291 = vst [vmem:[%s7555_s8 + $0x1b8] sm:$0xff] %v290_v55  ;;  %v294_v57 = vld [vmem:[%s7550_s7 + $0x388] sm:$0xff] }
  0x34   : > { %293 = vst [vmem:[%s7555_s8 + $0x1c0] sm:$0xff] %v292_v56  ;;  %v296_v58 = vld [vmem:[%s7550_s7 + $0x3a0] sm:$0xff]  ;;  %v298_v59 = vld [vmem:[%s7550_s7 + $0x3a8] sm:$0xff]  ;;  %295 = vst [vmem:[%s7555_s8 + $0x1c8] sm:$0xff] %v294_v57 }
  0x35   : > { %297 = vst [vmem:[%s7555_s8 + $0x1d0] sm:$0xff] %v296_v58  ;;  %299 = vst [vmem:[%s7555_s8 + $0x1d8] sm:$0xff] %v298_v59  ;;  %v300_v60 = vld [vmem:[%s7550_s7 + $0x3c0] sm:$0xff]  ;;  %v302_v61 = vld [vmem:[%s7550_s7 + $0x3c8] sm:$0xff] }
  0x36   : > { %v304_v62 = vld [vmem:[%s7550_s7 + $0x3e0] sm:$0xff]  ;;  %301 = vst [vmem:[%s7555_s8 + $0x1e0] sm:$0xff] %v300_v60  ;;  %303 = vst [vmem:[%s7555_s8 + $0x1e8] sm:$0xff] %v302_v61  ;;  %v306_v63 = vld [vmem:[%s7550_s7 + $0x3e8] sm:$0xff] }
  0x37   : > { %305 = vst [vmem:[%s7555_s8 + $0x1f0] sm:$0xff] %v304_v62  ;;  %v308_v0 = vld [vmem:[%s7550_s7 + $0x400] sm:$0xff]  ;;  %v310_v1 = vld [vmem:[%s7550_s7 + $0x408] sm:$0xff]  ;;  %307 = vst [vmem:[%s7555_s8 + $0x1f8] sm:$0xff] %v306_v63 }
  0x38   : > { %309 = vst [vmem:[%s7555_s8 + $0x200] sm:$0xff] %v308_v0  ;;  %311 = vst [vmem:[%s7555_s8 + $0x208] sm:$0xff] %v310_v1  ;;  %v312_v2 = vld [vmem:[%s7550_s7 + $0x420] sm:$0xff]  ;;  %v314_v3 = vld [vmem:[%s7550_s7 + $0x428] sm:$0xff] }
  0x39   : > { %v316_v4 = vld [vmem:[%s7550_s7 + $0x440] sm:$0xff]  ;;  %313 = vst [vmem:[%s7555_s8 + $0x210] sm:$0xff] %v312_v2  ;;  %315 = vst [vmem:[%s7555_s8 + $0x218] sm:$0xff] %v314_v3  ;;  %v318_v5 = vld [vmem:[%s7550_s7 + $0x448] sm:$0xff] }
  0x3a   : > { %317 = vst [vmem:[%s7555_s8 + $0x220] sm:$0xff] %v316_v4  ;;  %v320_v6 = vld [vmem:[%s7550_s7 + $0x460] sm:$0xff]  ;;  %v322_v7 = vld [vmem:[%s7550_s7 + $0x468] sm:$0xff]  ;;  %319 = vst [vmem:[%s7555_s8 + $0x228] sm:$0xff] %v318_v5 }
  0x3b   : > { %321 = vst [vmem:[%s7555_s8 + $0x230] sm:$0xff] %v320_v6  ;;  %323 = vst [vmem:[%s7555_s8 + $0x238] sm:$0xff] %v322_v7  ;;  %v324_v8 = vld [vmem:[%s7550_s7 + $0x480] sm:$0xff]  ;;  %v326_v9 = vld [vmem:[%s7550_s7 + $0x488] sm:$0xff] }
  0x3c   : > { %v328_v10 = vld [vmem:[%s7550_s7 + $0x4a0] sm:$0xff]  ;;  %325 = vst [vmem:[%s7555_s8 + $0x240] sm:$0xff] %v324_v8  ;;  %327 = vst [vmem:[%s7555_s8 + $0x248] sm:$0xff] %v326_v9  ;;  %v330_v11 = vld [vmem:[%s7550_s7 + $0x4a8] sm:$0xff] }
  0x3d   : > { %329 = vst [vmem:[%s7555_s8 + $0x250] sm:$0xff] %v328_v10  ;;  %v332_v12 = vld [vmem:[%s7550_s7 + $0x4c0] sm:$0xff]  ;;  %v334_v13 = vld [vmem:[%s7550_s7 + $0x4c8] sm:$0xff]  ;;  %331 = vst [vmem:[%s7555_s8 + $0x258] sm:$0xff] %v330_v11 }
  0x3e   : > { %333 = vst [vmem:[%s7555_s8 + $0x260] sm:$0xff] %v332_v12  ;;  %335 = vst [vmem:[%s7555_s8 + $0x268] sm:$0xff] %v334_v13  ;;  %v336_v14 = vld [vmem:[%s7550_s7 + $0x4e0] sm:$0xff]  ;;  %v338_v15 = vld [vmem:[%s7550_s7 + $0x4e8] sm:$0xff] }
  0x3f   : > { %v340_v16 = vld [vmem:[%s7550_s7 + $0x500] sm:$0xff]  ;;  %337 = vst [vmem:[%s7555_s8 + $0x270] sm:$0xff] %v336_v14  ;;  %339 = vst [vmem:[%s7555_s8 + $0x278] sm:$0xff] %v338_v15  ;;  %v342_v17 = vld [vmem:[%s7550_s7 + $0x508] sm:$0xff] }
  0x40   : > { %341 = vst [vmem:[%s7555_s8 + $0x280] sm:$0xff] %v340_v16  ;;  %v344_v18 = vld [vmem:[%s7550_s7 + $0x520] sm:$0xff]  ;;  %v346_v19 = vld [vmem:[%s7550_s7 + $0x528] sm:$0xff]  ;;  %343 = vst [vmem:[%s7555_s8 + $0x288] sm:$0xff] %v342_v17 }
  0x41   : > { %345 = vst [vmem:[%s7555_s8 + $0x290] sm:$0xff] %v344_v18  ;;  %347 = vst [vmem:[%s7555_s8 + $0x298] sm:$0xff] %v346_v19  ;;  %v348_v20 = vld [vmem:[%s7550_s7 + $0x540] sm:$0xff]  ;;  %v350_v21 = vld [vmem:[%s7550_s7 + $0x548] sm:$0xff] }
  0x42   : > { %v352_v22 = vld [vmem:[%s7550_s7 + $0x560] sm:$0xff]  ;;  %349 = vst [vmem:[%s7555_s8 + $0x2a0] sm:$0xff] %v348_v20  ;;  %351 = vst [vmem:[%s7555_s8 + $0x2a8] sm:$0xff] %v350_v21  ;;  %v354_v23 = vld [vmem:[%s7550_s7 + $0x568] sm:$0xff] }
  0x43   : > { %353 = vst [vmem:[%s7555_s8 + $0x2b0] sm:$0xff] %v352_v22  ;;  %v356_v24 = vld [vmem:[%s7550_s7 + $0x580] sm:$0xff]  ;;  %v358_v25 = vld [vmem:[%s7550_s7 + $0x588] sm:$0xff]  ;;  %355 = vst [vmem:[%s7555_s8 + $0x2b8] sm:$0xff] %v354_v23 }
  0x44   : > { %357 = vst [vmem:[%s7555_s8 + $0x2c0] sm:$0xff] %v356_v24  ;;  %359 = vst [vmem:[%s7555_s8 + $0x2c8] sm:$0xff] %v358_v25  ;;  %v360_v26 = vld [vmem:[%s7550_s7 + $0x5a0] sm:$0xff]  ;;  %v362_v27 = vld [vmem:[%s7550_s7 + $0x5a8] sm:$0xff] }
  0x45   : > { %v364_v28 = vld [vmem:[%s7550_s7 + $0x5c0] sm:$0xff]  ;;  %361 = vst [vmem:[%s7555_s8 + $0x2d0] sm:$0xff] %v360_v26  ;;  %363 = vst [vmem:[%s7555_s8 + $0x2d8] sm:$0xff] %v362_v27  ;;  %v366_v29 = vld [vmem:[%s7550_s7 + $0x5c8] sm:$0xff] }
  0x46   : > { %365 = vst [vmem:[%s7555_s8 + $0x2e0] sm:$0xff] %v364_v28  ;;  %v368_v30 = vld [vmem:[%s7550_s7 + $0x5e0] sm:$0xff]  ;;  %v370_v31 = vld [vmem:[%s7550_s7 + $0x5e8] sm:$0xff]  ;;  %367 = vst [vmem:[%s7555_s8 + $0x2e8] sm:$0xff] %v366_v29 }
  0x47   : > { %369 = vst [vmem:[%s7555_s8 + $0x2f0] sm:$0xff] %v368_v30  ;;  %371 = vst [vmem:[%s7555_s8 + $0x2f8] sm:$0xff] %v370_v31  ;;  %v372_v32 = vld [vmem:[%s7550_s7 + $0x600] sm:$0xff]  ;;  %v374_v33 = vld [vmem:[%s7550_s7 + $0x608] sm:$0xff] }
  0x48   : > { %v376_v34 = vld [vmem:[%s7550_s7 + $0x620] sm:$0xff]  ;;  %373 = vst [vmem:[%s7555_s8 + $0x300] sm:$0xff] %v372_v32  ;;  %375 = vst [vmem:[%s7555_s8 + $0x308] sm:$0xff] %v374_v33  ;;  %v378_v35 = vld [vmem:[%s7550_s7 + $0x628] sm:$0xff] }
  0x49   : > { %377 = vst [vmem:[%s7555_s8 + $0x310] sm:$0xff] %v376_v34  ;;  %v380_v36 = vld [vmem:[%s7550_s7 + $0x640] sm:$0xff]  ;;  %v382_v37 = vld [vmem:[%s7550_s7 + $0x648] sm:$0xff]  ;;  %379 = vst [vmem:[%s7555_s8 + $0x318] sm:$0xff] %v378_v35 }
  0x4a   : > { %381 = vst [vmem:[%s7555_s8 + $0x320] sm:$0xff] %v380_v36  ;;  %383 = vst [vmem:[%s7555_s8 + $0x328] sm:$0xff] %v382_v37  ;;  %v384_v38 = vld [vmem:[%s7550_s7 + $0x660] sm:$0xff]  ;;  %v386_v39 = vld [vmem:[%s7550_s7 + $0x668] sm:$0xff] }
  0x4b   : > { %v388_v40 = vld [vmem:[%s7550_s7 + $0x680] sm:$0xff]  ;;  %385 = vst [vmem:[%s7555_s8 + $0x330] sm:$0xff] %v384_v38  ;;  %387 = vst [vmem:[%s7555_s8 + $0x338] sm:$0xff] %v386_v39  ;;  %v390_v41 = vld [vmem:[%s7550_s7 + $0x688] sm:$0xff] }
  0x4c   : > { %389 = vst [vmem:[%s7555_s8 + $0x340] sm:$0xff] %v388_v40  ;;  %v392_v42 = vld [vmem:[%s7550_s7 + $0x6a0] sm:$0xff]  ;;  %v394_v43 = vld [vmem:[%s7550_s7 + $0x6a8] sm:$0xff]  ;;  %391 = vst [vmem:[%s7555_s8 + $0x348] sm:$0xff] %v390_v41 }
  0x4d   : > { %393 = vst [vmem:[%s7555_s8 + $0x350] sm:$0xff] %v392_v42  ;;  %395 = vst [vmem:[%s7555_s8 + $0x358] sm:$0xff] %v394_v43  ;;  %v396_v44 = vld [vmem:[%s7550_s7 + $0x6c0] sm:$0xff]  ;;  %v398_v45 = vld [vmem:[%s7550_s7 + $0x6c8] sm:$0xff] }
  0x4e   : > { %v400_v46 = vld [vmem:[%s7550_s7 + $0x6e0] sm:$0xff]  ;;  %397 = vst [vmem:[%s7555_s8 + $0x360] sm:$0xff] %v396_v44  ;;  %399 = vst [vmem:[%s7555_s8 + $0x368] sm:$0xff] %v398_v45  ;;  %v402_v47 = vld [vmem:[%s7550_s7 + $0x6e8] sm:$0xff] }
  0x4f   : > { %401 = vst [vmem:[%s7555_s8 + $0x370] sm:$0xff] %v400_v46  ;;  %v404_v48 = vld [vmem:[%s7550_s7 + $0x700] sm:$0xff]  ;;  %v406_v49 = vld [vmem:[%s7550_s7 + $0x708] sm:$0xff]  ;;  %403 = vst [vmem:[%s7555_s8 + $0x378] sm:$0xff] %v402_v47 }
  0x50   : > { %405 = vst [vmem:[%s7555_s8 + $0x380] sm:$0xff] %v404_v48  ;;  %407 = vst [vmem:[%s7555_s8 + $0x388] sm:$0xff] %v406_v49  ;;  %v408_v50 = vld [vmem:[%s7550_s7 + $0x720] sm:$0xff]  ;;  %v410_v51 = vld [vmem:[%s7550_s7 + $0x728] sm:$0xff] }
  0x51   : > { %v412_v52 = vld [vmem:[%s7550_s7 + $0x740] sm:$0xff]  ;;  %409 = vst [vmem:[%s7555_s8 + $0x390] sm:$0xff] %v408_v50  ;;  %411 = vst [vmem:[%s7555_s8 + $0x398] sm:$0xff] %v410_v51  ;;  %v414_v53 = vld [vmem:[%s7550_s7 + $0x748] sm:$0xff] }
  0x52   : > { %413 = vst [vmem:[%s7555_s8 + $0x3a0] sm:$0xff] %v412_v52  ;;  %v416_v54 = vld [vmem:[%s7550_s7 + $0x760] sm:$0xff]  ;;  %v418_v55 = vld [vmem:[%s7550_s7 + $0x768] sm:$0xff]  ;;  %415 = vst [vmem:[%s7555_s8 + $0x3a8] sm:$0xff] %v414_v53 }
  0x53   : > { %417 = vst [vmem:[%s7555_s8 + $0x3b0] sm:$0xff] %v416_v54  ;;  %419 = vst [vmem:[%s7555_s8 + $0x3b8] sm:$0xff] %v418_v55  ;;  %v420_v56 = vld [vmem:[%s7550_s7 + $0x780] sm:$0xff]  ;;  %v422_v57 = vld [vmem:[%s7550_s7 + $0x788] sm:$0xff] }
  0x54   : > { %v424_v58 = vld [vmem:[%s7550_s7 + $0x7a0] sm:$0xff]  ;;  %421 = vst [vmem:[%s7555_s8 + $0x3c0] sm:$0xff] %v420_v56  ;;  %423 = vst [vmem:[%s7555_s8 + $0x3c8] sm:$0xff] %v422_v57  ;;  %v426_v59 = vld [vmem:[%s7550_s7 + $0x7a8] sm:$0xff] }
  0x55   : > { %425 = vst [vmem:[%s7555_s8 + $0x3d0] sm:$0xff] %v424_v58  ;;  %v428_v60 = vld [vmem:[%s7550_s7 + $0x7c0] sm:$0xff]  ;;  %v430_v61 = vld [vmem:[%s7550_s7 + $0x7c8] sm:$0xff]  ;;  %427 = vst [vmem:[%s7555_s8 + $0x3d8] sm:$0xff] %v426_v59 }
  0x56   : > { %429 = vst [vmem:[%s7555_s8 + $0x3e0] sm:$0xff] %v428_v60  ;;  %431 = vst [vmem:[%s7555_s8 + $0x3e8] sm:$0xff] %v430_v61  ;;  %v432_v62 = vld [vmem:[%s7550_s7 + $0x7e0] sm:$0xff]  ;;  %v434_v63 = vld [vmem:[%s7550_s7 + $0x7e8] sm:$0xff] }
  0x57   : > { %v436_v0 = vld [vmem:[%s7550_s7 + $0x800] sm:$0xff]  ;;  %433 = vst [vmem:[%s7555_s8 + $0x3f0] sm:$0xff] %v432_v62  ;;  %435 = vst [vmem:[%s7555_s8 + $0x3f8] sm:$0xff] %v434_v63  ;;  %v438_v1 = vld [vmem:[%s7550_s7 + $0x808] sm:$0xff] }
  0x58   : > { %437 = vst [vmem:[%s7555_s8 + $0x400] sm:$0xff] %v436_v0  ;;  %v440_v2 = vld [vmem:[%s7550_s7 + $0x820] sm:$0xff]  ;;  %v442_v3 = vld [vmem:[%s7550_s7 + $0x828] sm:$0xff]  ;;  %439 = vst [vmem:[%s7555_s8 + $0x408] sm:$0xff] %v438_v1 }
  0x59   : > { %441 = vst [vmem:[%s7555_s8 + $0x410] sm:$0xff] %v440_v2  ;;  %443 = vst [vmem:[%s7555_s8 + $0x418] sm:$0xff] %v442_v3  ;;  %v444_v4 = vld [vmem:[%s7550_s7 + $0x840] sm:$0xff]  ;;  %v446_v5 = vld [vmem:[%s7550_s7 + $0x848] sm:$0xff] }
  0x5a   : > { %v448_v6 = vld [vmem:[%s7550_s7 + $0x860] sm:$0xff]  ;;  %445 = vst [vmem:[%s7555_s8 + $0x420] sm:$0xff] %v444_v4  ;;  %447 = vst [vmem:[%s7555_s8 + $0x428] sm:$0xff] %v446_v5  ;;  %v450_v7 = vld [vmem:[%s7550_s7 + $0x868] sm:$0xff] }
  0x5b   : > { %449 = vst [vmem:[%s7555_s8 + $0x430] sm:$0xff] %v448_v6  ;;  %v452_v8 = vld [vmem:[%s7550_s7 + $0x880] sm:$0xff]  ;;  %v454_v9 = vld [vmem:[%s7550_s7 + $0x888] sm:$0xff]  ;;  %451 = vst [vmem:[%s7555_s8 + $0x438] sm:$0xff] %v450_v7 }
  0x5c   : > { %453 = vst [vmem:[%s7555_s8 + $0x440] sm:$0xff] %v452_v8  ;;  %455 = vst [vmem:[%s7555_s8 + $0x448] sm:$0xff] %v454_v9  ;;  %v456_v10 = vld [vmem:[%s7550_s7 + $0x8a0] sm:$0xff]  ;;  %v458_v11 = vld [vmem:[%s7550_s7 + $0x8a8] sm:$0xff] }
  0x5d   : > { %v460_v12 = vld [vmem:[%s7550_s7 + $0x8c0] sm:$0xff]  ;;  %457 = vst [vmem:[%s7555_s8 + $0x450] sm:$0xff] %v456_v10  ;;  %459 = vst [vmem:[%s7555_s8 + $0x458] sm:$0xff] %v458_v11  ;;  %v462_v13 = vld [vmem:[%s7550_s7 + $0x8c8] sm:$0xff] }
  0x5e   : > { %461 = vst [vmem:[%s7555_s8 + $0x460] sm:$0xff] %v460_v12  ;;  %v464_v14 = vld [vmem:[%s7550_s7 + $0x8e0] sm:$0xff]  ;;  %v466_v15 = vld [vmem:[%s7550_s7 + $0x8e8] sm:$0xff]  ;;  %463 = vst [vmem:[%s7555_s8 + $0x468] sm:$0xff] %v462_v13 }
  0x5f   : > { %465 = vst [vmem:[%s7555_s8 + $0x470] sm:$0xff] %v464_v14  ;;  %467 = vst [vmem:[%s7555_s8 + $0x478] sm:$0xff] %v466_v15  ;;  %v468_v16 = vld [vmem:[%s7550_s7 + $0x900] sm:$0xff]  ;;  %v470_v17 = vld [vmem:[%s7550_s7 + $0x908] sm:$0xff] }
  0x60   : > { %v472_v18 = vld [vmem:[%s7550_s7 + $0x920] sm:$0xff]  ;;  %469 = vst [vmem:[%s7555_s8 + $0x480] sm:$0xff] %v468_v16  ;;  %471 = vst [vmem:[%s7555_s8 + $0x488] sm:$0xff] %v470_v17  ;;  %v474_v19 = vld [vmem:[%s7550_s7 + $0x928] sm:$0xff] }
  0x61   : > { %473 = vst [vmem:[%s7555_s8 + $0x490] sm:$0xff] %v472_v18  ;;  %v476_v20 = vld [vmem:[%s7550_s7 + $0x940] sm:$0xff]  ;;  %v478_v21 = vld [vmem:[%s7550_s7 + $0x948] sm:$0xff]  ;;  %475 = vst [vmem:[%s7555_s8 + $0x498] sm:$0xff] %v474_v19 }
  0x62   : > { %477 = vst [vmem:[%s7555_s8 + $0x4a0] sm:$0xff] %v476_v20  ;;  %479 = vst [vmem:[%s7555_s8 + $0x4a8] sm:$0xff] %v478_v21  ;;  %v480_v22 = vld [vmem:[%s7550_s7 + $0x960] sm:$0xff]  ;;  %v482_v23 = vld [vmem:[%s7550_s7 + $0x968] sm:$0xff] }
  0x63   : > { %v484_v24 = vld [vmem:[%s7550_s7 + $0x980] sm:$0xff]  ;;  %481 = vst [vmem:[%s7555_s8 + $0x4b0] sm:$0xff] %v480_v22  ;;  %483 = vst [vmem:[%s7555_s8 + $0x4b8] sm:$0xff] %v482_v23  ;;  %v486_v25 = vld [vmem:[%s7550_s7 + $0x988] sm:$0xff] }
  0x64   : > { %485 = vst [vmem:[%s7555_s8 + $0x4c0] sm:$0xff] %v484_v24  ;;  %v488_v26 = vld [vmem:[%s7550_s7 + $0x9a0] sm:$0xff]  ;;  %v490_v27 = vld [vmem:[%s7550_s7 + $0x9a8] sm:$0xff]  ;;  %487 = vst [vmem:[%s7555_s8 + $0x4c8] sm:$0xff] %v486_v25 }
  0x65   : > { %489 = vst [vmem:[%s7555_s8 + $0x4d0] sm:$0xff] %v488_v26  ;;  %491 = vst [vmem:[%s7555_s8 + $0x4d8] sm:$0xff] %v490_v27  ;;  %v492_v28 = vld [vmem:[%s7550_s7 + $0x9c0] sm:$0xff]  ;;  %v494_v29 = vld [vmem:[%s7550_s7 + $0x9c8] sm:$0xff] }
  0x66   : > { %v496_v30 = vld [vmem:[%s7550_s7 + $0x9e0] sm:$0xff]  ;;  %493 = vst [vmem:[%s7555_s8 + $0x4e0] sm:$0xff] %v492_v28  ;;  %495 = vst [vmem:[%s7555_s8 + $0x4e8] sm:$0xff] %v494_v29  ;;  %v498_v31 = vld [vmem:[%s7550_s7 + $0x9e8] sm:$0xff] }
  0x67   : > { %497 = vst [vmem:[%s7555_s8 + $0x4f0] sm:$0xff] %v496_v30  ;;  %v500_v32 = vld [vmem:[%s7550_s7 + $0xa00] sm:$0xff]  ;;  %v502_v33 = vld [vmem:[%s7550_s7 + $0xa08] sm:$0xff]  ;;  %499 = vst [vmem:[%s7555_s8 + $0x4f8] sm:$0xff] %v498_v31 }
  0x68   : > { %501 = vst [vmem:[%s7555_s8 + $0x500] sm:$0xff] %v500_v32  ;;  %503 = vst [vmem:[%s7555_s8 + $0x508] sm:$0xff] %v502_v33  ;;  %v504_v34 = vld [vmem:[%s7550_s7 + $0xa20] sm:$0xff]  ;;  %v506_v35 = vld [vmem:[%s7550_s7 + $0xa28] sm:$0xff] }
  0x69   : > { %v508_v36 = vld [vmem:[%s7550_s7 + $0xa40] sm:$0xff]  ;;  %505 = vst [vmem:[%s7555_s8 + $0x510] sm:$0xff] %v504_v34  ;;  %507 = vst [vmem:[%s7555_s8 + $0x518] sm:$0xff] %v506_v35  ;;  %v510_v37 = vld [vmem:[%s7550_s7 + $0xa48] sm:$0xff] }
  0x6a   : > { %509 = vst [vmem:[%s7555_s8 + $0x520] sm:$0xff] %v508_v36  ;;  %v512_v38 = vld [vmem:[%s7550_s7 + $0xa60] sm:$0xff]  ;;  %v514_v39 = vld [vmem:[%s7550_s7 + $0xa68] sm:$0xff]  ;;  %511 = vst [vmem:[%s7555_s8 + $0x528] sm:$0xff] %v510_v37 }
  0x6b   : > { %513 = vst [vmem:[%s7555_s8 + $0x530] sm:$0xff] %v512_v38  ;;  %515 = vst [vmem:[%s7555_s8 + $0x538] sm:$0xff] %v514_v39  ;;  %v516_v40 = vld [vmem:[%s7550_s7 + $0xa80] sm:$0xff]  ;;  %v518_v41 = vld [vmem:[%s7550_s7 + $0xa88] sm:$0xff] }
  0x6c   : > { %v520_v42 = vld [vmem:[%s7550_s7 + $0xaa0] sm:$0xff]  ;;  %517 = vst [vmem:[%s7555_s8 + $0x540] sm:$0xff] %v516_v40  ;;  %519 = vst [vmem:[%s7555_s8 + $0x548] sm:$0xff] %v518_v41  ;;  %v522_v43 = vld [vmem:[%s7550_s7 + $0xaa8] sm:$0xff] }
  0x6d   : > { %521 = vst [vmem:[%s7555_s8 + $0x550] sm:$0xff] %v520_v42  ;;  %v524_v44 = vld [vmem:[%s7550_s7 + $0xac0] sm:$0xff]  ;;  %v526_v45 = vld [vmem:[%s7550_s7 + $0xac8] sm:$0xff]  ;;  %523 = vst [vmem:[%s7555_s8 + $0x558] sm:$0xff] %v522_v43 }
  0x6e   : > { %525 = vst [vmem:[%s7555_s8 + $0x560] sm:$0xff] %v524_v44  ;;  %527 = vst [vmem:[%s7555_s8 + $0x568] sm:$0xff] %v526_v45  ;;  %v528_v46 = vld [vmem:[%s7550_s7 + $0xae0] sm:$0xff]  ;;  %v530_v47 = vld [vmem:[%s7550_s7 + $0xae8] sm:$0xff] }
  0x6f   : > { %v532_v48 = vld [vmem:[%s7550_s7 + $0xb00] sm:$0xff]  ;;  %529 = vst [vmem:[%s7555_s8 + $0x570] sm:$0xff] %v528_v46  ;;  %531 = vst [vmem:[%s7555_s8 + $0x578] sm:$0xff] %v530_v47  ;;  %v534_v49 = vld [vmem:[%s7550_s7 + $0xb08] sm:$0xff] }
  0x70   : > { %533 = vst [vmem:[%s7555_s8 + $0x580] sm:$0xff] %v532_v48  ;;  %v536_v50 = vld [vmem:[%s7550_s7 + $0xb20] sm:$0xff]  ;;  %v538_v51 = vld [vmem:[%s7550_s7 + $0xb28] sm:$0xff]  ;;  %535 = vst [vmem:[%s7555_s8 + $0x588] sm:$0xff] %v534_v49 }
  0x71   : > { %537 = vst [vmem:[%s7555_s8 + $0x590] sm:$0xff] %v536_v50  ;;  %539 = vst [vmem:[%s7555_s8 + $0x598] sm:$0xff] %v538_v51  ;;  %v540_v52 = vld [vmem:[%s7550_s7 + $0xb40] sm:$0xff]  ;;  %v542_v53 = vld [vmem:[%s7550_s7 + $0xb48] sm:$0xff] }
  0x72   : > { %v544_v54 = vld [vmem:[%s7550_s7 + $0xb60] sm:$0xff]  ;;  %541 = vst [vmem:[%s7555_s8 + $0x5a0] sm:$0xff] %v540_v52  ;;  %543 = vst [vmem:[%s7555_s8 + $0x5a8] sm:$0xff] %v542_v53  ;;  %v546_v55 = vld [vmem:[%s7550_s7 + $0xb68] sm:$0xff] }
  0x73   : > { %545 = vst [vmem:[%s7555_s8 + $0x5b0] sm:$0xff] %v544_v54  ;;  %v548_v56 = vld [vmem:[%s7550_s7 + $0xb80] sm:$0xff]  ;;  %v550_v57 = vld [vmem:[%s7550_s7 + $0xb88] sm:$0xff]  ;;  %547 = vst [vmem:[%s7555_s8 + $0x5b8] sm:$0xff] %v546_v55 }
  0x74   : > { %549 = vst [vmem:[%s7555_s8 + $0x5c0] sm:$0xff] %v548_v56  ;;  %551 = vst [vmem:[%s7555_s8 + $0x5c8] sm:$0xff] %v550_v57  ;;  %v552_v58 = vld [vmem:[%s7550_s7 + $0xba0] sm:$0xff]  ;;  %v554_v59 = vld [vmem:[%s7550_s7 + $0xba8] sm:$0xff] }
  0x75   : > { %v556_v60 = vld [vmem:[%s7550_s7 + $0xbc0] sm:$0xff]  ;;  %553 = vst [vmem:[%s7555_s8 + $0x5d0] sm:$0xff] %v552_v58  ;;  %555 = vst [vmem:[%s7555_s8 + $0x5d8] sm:$0xff] %v554_v59  ;;  %v558_v61 = vld [vmem:[%s7550_s7 + $0xbc8] sm:$0xff] }
  0x76   : > { %557 = vst [vmem:[%s7555_s8 + $0x5e0] sm:$0xff] %v556_v60  ;;  %v560_v62 = vld [vmem:[%s7550_s7 + $0xbe0] sm:$0xff]  ;;  %v562_v63 = vld [vmem:[%s7550_s7 + $0xbe8] sm:$0xff]  ;;  %559 = vst [vmem:[%s7555_s8 + $0x5e8] sm:$0xff] %v558_v61 }
  0x77   : > { %561 = vst [vmem:[%s7555_s8 + $0x5f0] sm:$0xff] %v560_v62  ;;  %563 = vst [vmem:[%s7555_s8 + $0x5f8] sm:$0xff] %v562_v63  ;;  %v564_v0 = vld [vmem:[%s7550_s7 + $0xc00] sm:$0xff]  ;;  %v566_v1 = vld [vmem:[%s7550_s7 + $0xc08] sm:$0xff] }
  0x78   : > { %v568_v2 = vld [vmem:[%s7550_s7 + $0xc20] sm:$0xff]  ;;  %565 = vst [vmem:[%s7555_s8 + $0x600] sm:$0xff] %v564_v0  ;;  %567 = vst [vmem:[%s7555_s8 + $0x608] sm:$0xff] %v566_v1  ;;  %v570_v3 = vld [vmem:[%s7550_s7 + $0xc28] sm:$0xff] }
  0x79   : > { %569 = vst [vmem:[%s7555_s8 + $0x610] sm:$0xff] %v568_v2  ;;  %v572_v4 = vld [vmem:[%s7550_s7 + $0xc40] sm:$0xff]  ;;  %v574_v5 = vld [vmem:[%s7550_s7 + $0xc48] sm:$0xff]  ;;  %571 = vst [vmem:[%s7555_s8 + $0x618] sm:$0xff] %v570_v3 }
  0x7a   : > { %573 = vst [vmem:[%s7555_s8 + $0x620] sm:$0xff] %v572_v4  ;;  %575 = vst [vmem:[%s7555_s8 + $0x628] sm:$0xff] %v574_v5  ;;  %v576_v6 = vld [vmem:[%s7550_s7 + $0xc60] sm:$0xff]  ;;  %v578_v7 = vld [vmem:[%s7550_s7 + $0xc68] sm:$0xff] }
  0x7b   : > { %v580_v8 = vld [vmem:[%s7550_s7 + $0xc80] sm:$0xff]  ;;  %577 = vst [vmem:[%s7555_s8 + $0x630] sm:$0xff] %v576_v6  ;;  %579 = vst [vmem:[%s7555_s8 + $0x638] sm:$0xff] %v578_v7  ;;  %v582_v9 = vld [vmem:[%s7550_s7 + $0xc88] sm:$0xff] }
  0x7c   : > { %581 = vst [vmem:[%s7555_s8 + $0x640] sm:$0xff] %v580_v8  ;;  %v584_v10 = vld [vmem:[%s7550_s7 + $0xca0] sm:$0xff]  ;;  %v586_v11 = vld [vmem:[%s7550_s7 + $0xca8] sm:$0xff]  ;;  %583 = vst [vmem:[%s7555_s8 + $0x648] sm:$0xff] %v582_v9 }
  0x7d   : > { %585 = vst [vmem:[%s7555_s8 + $0x650] sm:$0xff] %v584_v10  ;;  %587 = vst [vmem:[%s7555_s8 + $0x658] sm:$0xff] %v586_v11  ;;  %v588_v12 = vld [vmem:[%s7550_s7 + $0xcc0] sm:$0xff]  ;;  %v590_v13 = vld [vmem:[%s7550_s7 + $0xcc8] sm:$0xff] }
  0x7e   : > { %v592_v14 = vld [vmem:[%s7550_s7 + $0xce0] sm:$0xff]  ;;  %589 = vst [vmem:[%s7555_s8 + $0x660] sm:$0xff] %v588_v12  ;;  %591 = vst [vmem:[%s7555_s8 + $0x668] sm:$0xff] %v590_v13  ;;  %v594_v15 = vld [vmem:[%s7550_s7 + $0xce8] sm:$0xff] }
  0x7f   : > { %593 = vst [vmem:[%s7555_s8 + $0x670] sm:$0xff] %v592_v14  ;;  %v596_v16 = vld [vmem:[%s7550_s7 + $0xd00] sm:$0xff]  ;;  %v598_v17 = vld [vmem:[%s7550_s7 + $0xd08] sm:$0xff]  ;;  %595 = vst [vmem:[%s7555_s8 + $0x678] sm:$0xff] %v594_v15 }
  0x80   : > { %597 = vst [vmem:[%s7555_s8 + $0x680] sm:$0xff] %v596_v16  ;;  %599 = vst [vmem:[%s7555_s8 + $0x688] sm:$0xff] %v598_v17  ;;  %v600_v18 = vld [vmem:[%s7550_s7 + $0xd20] sm:$0xff]  ;;  %v602_v19 = vld [vmem:[%s7550_s7 + $0xd28] sm:$0xff] }
  0x81   : > { %v604_v20 = vld [vmem:[%s7550_s7 + $0xd40] sm:$0xff]  ;;  %601 = vst [vmem:[%s7555_s8 + $0x690] sm:$0xff] %v600_v18  ;;  %603 = vst [vmem:[%s7555_s8 + $0x698] sm:$0xff] %v602_v19  ;;  %v606_v21 = vld [vmem:[%s7550_s7 + $0xd48] sm:$0xff] }
  0x82   : > { %605 = vst [vmem:[%s7555_s8 + $0x6a0] sm:$0xff] %v604_v20  ;;  %v608_v22 = vld [vmem:[%s7550_s7 + $0xd60] sm:$0xff]  ;;  %v610_v23 = vld [vmem:[%s7550_s7 + $0xd68] sm:$0xff]  ;;  %607 = vst [vmem:[%s7555_s8 + $0x6a8] sm:$0xff] %v606_v21 }
  0x83   : > { %609 = vst [vmem:[%s7555_s8 + $0x6b0] sm:$0xff] %v608_v22  ;;  %611 = vst [vmem:[%s7555_s8 + $0x6b8] sm:$0xff] %v610_v23  ;;  %v612_v24 = vld [vmem:[%s7550_s7 + $0xd80] sm:$0xff]  ;;  %v614_v25 = vld [vmem:[%s7550_s7 + $0xd88] sm:$0xff] }
  0x84   : > { %v616_v26 = vld [vmem:[%s7550_s7 + $0xda0] sm:$0xff]  ;;  %613 = vst [vmem:[%s7555_s8 + $0x6c0] sm:$0xff] %v612_v24  ;;  %615 = vst [vmem:[%s7555_s8 + $0x6c8] sm:$0xff] %v614_v25  ;;  %v618_v27 = vld [vmem:[%s7550_s7 + $0xda8] sm:$0xff] }
  0x85   : > { %617 = vst [vmem:[%s7555_s8 + $0x6d0] sm:$0xff] %v616_v26  ;;  %v620_v28 = vld [vmem:[%s7550_s7 + $0xdc0] sm:$0xff]  ;;  %v622_v29 = vld [vmem:[%s7550_s7 + $0xdc8] sm:$0xff]  ;;  %619 = vst [vmem:[%s7555_s8 + $0x6d8] sm:$0xff] %v618_v27 }
  0x86   : > { %621 = vst [vmem:[%s7555_s8 + $0x6e0] sm:$0xff] %v620_v28  ;;  %623 = vst [vmem:[%s7555_s8 + $0x6e8] sm:$0xff] %v622_v29  ;;  %v624_v30 = vld [vmem:[%s7550_s7 + $0xde0] sm:$0xff]  ;;  %v626_v31 = vld [vmem:[%s7550_s7 + $0xde8] sm:$0xff] }
  0x87   : > { %v628_v32 = vld [vmem:[%s7550_s7 + $0xe00] sm:$0xff]  ;;  %625 = vst [vmem:[%s7555_s8 + $0x6f0] sm:$0xff] %v624_v30  ;;  %627 = vst [vmem:[%s7555_s8 + $0x6f8] sm:$0xff] %v626_v31  ;;  %v630_v33 = vld [vmem:[%s7550_s7 + $0xe08] sm:$0xff] }
  0x88   : > { %629 = vst [vmem:[%s7555_s8 + $0x700] sm:$0xff] %v628_v32  ;;  %v632_v34 = vld [vmem:[%s7550_s7 + $0xe20] sm:$0xff]  ;;  %v634_v35 = vld [vmem:[%s7550_s7 + $0xe28] sm:$0xff]  ;;  %631 = vst [vmem:[%s7555_s8 + $0x708] sm:$0xff] %v630_v33 }
  0x89   : > { %633 = vst [vmem:[%s7555_s8 + $0x710] sm:$0xff] %v632_v34  ;;  %635 = vst [vmem:[%s7555_s8 + $0x718] sm:$0xff] %v634_v35  ;;  %v636_v36 = vld [vmem:[%s7550_s7 + $0xe40] sm:$0xff]  ;;  %v638_v37 = vld [vmem:[%s7550_s7 + $0xe48] sm:$0xff] }
  0x8a   : > { %v640_v38 = vld [vmem:[%s7550_s7 + $0xe60] sm:$0xff]  ;;  %637 = vst [vmem:[%s7555_s8 + $0x720] sm:$0xff] %v636_v36  ;;  %639 = vst [vmem:[%s7555_s8 + $0x728] sm:$0xff] %v638_v37  ;;  %v642_v39 = vld [vmem:[%s7550_s7 + $0xe68] sm:$0xff] }
  0x8b   : > { %641 = vst [vmem:[%s7555_s8 + $0x730] sm:$0xff] %v640_v38  ;;  %v644_v40 = vld [vmem:[%s7550_s7 + $0xe80] sm:$0xff]  ;;  %v646_v41 = vld [vmem:[%s7550_s7 + $0xe88] sm:$0xff]  ;;  %643 = vst [vmem:[%s7555_s8 + $0x738] sm:$0xff] %v642_v39 }
  0x8c   : > { %645 = vst [vmem:[%s7555_s8 + $0x740] sm:$0xff] %v644_v40  ;;  %647 = vst [vmem:[%s7555_s8 + $0x748] sm:$0xff] %v646_v41  ;;  %v648_v42 = vld [vmem:[%s7550_s7 + $0xea0] sm:$0xff]  ;;  %v650_v43 = vld [vmem:[%s7550_s7 + $0xea8] sm:$0xff] }
  0x8d   : > { %v652_v44 = vld [vmem:[%s7550_s7 + $0xec0] sm:$0xff]  ;;  %649 = vst [vmem:[%s7555_s8 + $0x750] sm:$0xff] %v648_v42  ;;  %651 = vst [vmem:[%s7555_s8 + $0x758] sm:$0xff] %v650_v43  ;;  %v654_v45 = vld [vmem:[%s7550_s7 + $0xec8] sm:$0xff] }
  0x8e   : > { %653 = vst [vmem:[%s7555_s8 + $0x760] sm:$0xff] %v652_v44  ;;  %v656_v46 = vld [vmem:[%s7550_s7 + $0xee0] sm:$0xff]  ;;  %v658_v47 = vld [vmem:[%s7550_s7 + $0xee8] sm:$0xff]  ;;  %655 = vst [vmem:[%s7555_s8 + $0x768] sm:$0xff] %v654_v45 }
  0x8f   : > { %657 = vst [vmem:[%s7555_s8 + $0x770] sm:$0xff] %v656_v46  ;;  %659 = vst [vmem:[%s7555_s8 + $0x778] sm:$0xff] %v658_v47  ;;  %v660_v48 = vld [vmem:[%s7550_s7 + $0xf00] sm:$0xff]  ;;  %v662_v49 = vld [vmem:[%s7550_s7 + $0xf08] sm:$0xff] }
  0x90   : > { %v664_v50 = vld [vmem:[%s7550_s7 + $0xf20] sm:$0xff]  ;;  %661 = vst [vmem:[%s7555_s8 + $0x780] sm:$0xff] %v660_v48  ;;  %663 = vst [vmem:[%s7555_s8 + $0x788] sm:$0xff] %v662_v49  ;;  %v666_v51 = vld [vmem:[%s7550_s7 + $0xf28] sm:$0xff] }
  0x91   : > { %665 = vst [vmem:[%s7555_s8 + $0x790] sm:$0xff] %v664_v50  ;;  %v668_v52 = vld [vmem:[%s7550_s7 + $0xf40] sm:$0xff]  ;;  %v670_v53 = vld [vmem:[%s7550_s7 + $0xf48] sm:$0xff]  ;;  %667 = vst [vmem:[%s7555_s8 + $0x798] sm:$0xff] %v666_v51 }
  0x92   : > { %669 = vst [vmem:[%s7555_s8 + $0x7a0] sm:$0xff] %v668_v52  ;;  %671 = vst [vmem:[%s7555_s8 + $0x7a8] sm:$0xff] %v670_v53  ;;  %v672_v54 = vld [vmem:[%s7550_s7 + $0xf60] sm:$0xff]  ;;  %v674_v55 = vld [vmem:[%s7550_s7 + $0xf68] sm:$0xff] }
  0x93   : > { %v676_v56 = vld [vmem:[%s7550_s7 + $0xf80] sm:$0xff]  ;;  %673 = vst [vmem:[%s7555_s8 + $0x7b0] sm:$0xff] %v672_v54  ;;  %675 = vst [vmem:[%s7555_s8 + $0x7b8] sm:$0xff] %v674_v55  ;;  %v678_v57 = vld [vmem:[%s7550_s7 + $0xf88] sm:$0xff] }
  0x94   : > { %677 = vst [vmem:[%s7555_s8 + $0x7c0] sm:$0xff] %v676_v56  ;;  %v680_v58 = vld [vmem:[%s7550_s7 + $0xfa0] sm:$0xff]  ;;  %v682_v59 = vld [vmem:[%s7550_s7 + $0xfa8] sm:$0xff]  ;;  %679 = vst [vmem:[%s7555_s8 + $0x7c8] sm:$0xff] %v678_v57 }
  0x95   : > { %681 = vst [vmem:[%s7555_s8 + $0x7d0] sm:$0xff] %v680_v58  ;;  %683 = vst [vmem:[%s7555_s8 + $0x7d8] sm:$0xff] %v682_v59  ;;  %v684_v60 = vld [vmem:[%s7550_s7 + $0xfc0] sm:$0xff]  ;;  %v686_v61 = vld [vmem:[%s7550_s7 + $0xfc8] sm:$0xff] }
  0x96   : > { %v688_v62 = vld [vmem:[%s7550_s7 + $0xfe0] sm:$0xff]  ;;  %685 = vst [vmem:[%s7555_s8 + $0x7e0] sm:$0xff] %v684_v60  ;;  %687 = vst [vmem:[%s7555_s8 + $0x7e8] sm:$0xff] %v686_v61  ;;  %v690_v63 = vld [vmem:[%s7550_s7 + $0xfe8] sm:$0xff] }
  0x97   : > { %689 = vst [vmem:[%s7555_s8 + $0x7f0] sm:$0xff] %v688_v62  ;;  %v692_v0 = vld [vmem:[%s7550_s7 + $0x1000] sm:$0xff]  ;;  %v694_v1 = vld [vmem:[%s7550_s7 + $0x1008] sm:$0xff]  ;;  %691 = vst [vmem:[%s7555_s8 + $0x7f8] sm:$0xff] %v690_v63 }
  0x98   : > { %693 = vst [vmem:[%s7555_s8 + $0x800] sm:$0xff] %v692_v0  ;;  %695 = vst [vmem:[%s7555_s8 + $0x808] sm:$0xff] %v694_v1  ;;  %v696_v2 = vld [vmem:[%s7550_s7 + $0x1020] sm:$0xff]  ;;  %v698_v3 = vld [vmem:[%s7550_s7 + $0x1028] sm:$0xff] }
  0x99   : > { %v700_v4 = vld [vmem:[%s7550_s7 + $0x1040] sm:$0xff]  ;;  %697 = vst [vmem:[%s7555_s8 + $0x810] sm:$0xff] %v696_v2  ;;  %699 = vst [vmem:[%s7555_s8 + $0x818] sm:$0xff] %v698_v3  ;;  %v702_v5 = vld [vmem:[%s7550_s7 + $0x1048] sm:$0xff] }
  0x9a   : > { %701 = vst [vmem:[%s7555_s8 + $0x820] sm:$0xff] %v700_v4  ;;  %v704_v6 = vld [vmem:[%s7550_s7 + $0x1060] sm:$0xff]  ;;  %v706_v7 = vld [vmem:[%s7550_s7 + $0x1068] sm:$0xff]  ;;  %703 = vst [vmem:[%s7555_s8 + $0x828] sm:$0xff] %v702_v5 }
  0x9b   : > { %705 = vst [vmem:[%s7555_s8 + $0x830] sm:$0xff] %v704_v6  ;;  %707 = vst [vmem:[%s7555_s8 + $0x838] sm:$0xff] %v706_v7  ;;  %v708_v8 = vld [vmem:[%s7550_s7 + $0x1080] sm:$0xff]  ;;  %v710_v9 = vld [vmem:[%s7550_s7 + $0x1088] sm:$0xff] }
  0x9c   : > { %v712_v10 = vld [vmem:[%s7550_s7 + $0x10a0] sm:$0xff]  ;;  %709 = vst [vmem:[%s7555_s8 + $0x840] sm:$0xff] %v708_v8  ;;  %711 = vst [vmem:[%s7555_s8 + $0x848] sm:$0xff] %v710_v9  ;;  %v714_v11 = vld [vmem:[%s7550_s7 + $0x10a8] sm:$0xff] }
  0x9d   : > { %713 = vst [vmem:[%s7555_s8 + $0x850] sm:$0xff] %v712_v10  ;;  %v716_v12 = vld [vmem:[%s7550_s7 + $0x10c0] sm:$0xff]  ;;  %v718_v13 = vld [vmem:[%s7550_s7 + $0x10c8] sm:$0xff]  ;;  %715 = vst [vmem:[%s7555_s8 + $0x858] sm:$0xff] %v714_v11 }
  0x9e   : > { %717 = vst [vmem:[%s7555_s8 + $0x860] sm:$0xff] %v716_v12  ;;  %719 = vst [vmem:[%s7555_s8 + $0x868] sm:$0xff] %v718_v13  ;;  %v720_v14 = vld [vmem:[%s7550_s7 + $0x10e0] sm:$0xff]  ;;  %v722_v15 = vld [vmem:[%s7550_s7 + $0x10e8] sm:$0xff] }
  0x9f   : > { %v724_v16 = vld [vmem:[%s7550_s7 + $0x1100] sm:$0xff]  ;;  %721 = vst [vmem:[%s7555_s8 + $0x870] sm:$0xff] %v720_v14  ;;  %723 = vst [vmem:[%s7555_s8 + $0x878] sm:$0xff] %v722_v15  ;;  %v726_v17 = vld [vmem:[%s7550_s7 + $0x1108] sm:$0xff] }
  0xa0   : > { %725 = vst [vmem:[%s7555_s8 + $0x880] sm:$0xff] %v724_v16  ;;  %v728_v18 = vld [vmem:[%s7550_s7 + $0x1120] sm:$0xff]  ;;  %v730_v19 = vld [vmem:[%s7550_s7 + $0x1128] sm:$0xff]  ;;  %727 = vst [vmem:[%s7555_s8 + $0x888] sm:$0xff] %v726_v17 }
  0xa1   : > { %729 = vst [vmem:[%s7555_s8 + $0x890] sm:$0xff] %v728_v18  ;;  %731 = vst [vmem:[%s7555_s8 + $0x898] sm:$0xff] %v730_v19  ;;  %v732_v20 = vld [vmem:[%s7550_s7 + $0x1140] sm:$0xff]  ;;  %v734_v21 = vld [vmem:[%s7550_s7 + $0x1148] sm:$0xff] }
  0xa2   : > { %v736_v22 = vld [vmem:[%s7550_s7 + $0x1160] sm:$0xff]  ;;  %733 = vst [vmem:[%s7555_s8 + $0x8a0] sm:$0xff] %v732_v20  ;;  %735 = vst [vmem:[%s7555_s8 + $0x8a8] sm:$0xff] %v734_v21  ;;  %v738_v23 = vld [vmem:[%s7550_s7 + $0x1168] sm:$0xff] }
  0xa3   : > { %737 = vst [vmem:[%s7555_s8 + $0x8b0] sm:$0xff] %v736_v22  ;;  %v740_v24 = vld [vmem:[%s7550_s7 + $0x1180] sm:$0xff]  ;;  %v742_v25 = vld [vmem:[%s7550_s7 + $0x1188] sm:$0xff]  ;;  %739 = vst [vmem:[%s7555_s8 + $0x8b8] sm:$0xff] %v738_v23 }
  0xa4   : > { %741 = vst [vmem:[%s7555_s8 + $0x8c0] sm:$0xff] %v740_v24  ;;  %743 = vst [vmem:[%s7555_s8 + $0x8c8] sm:$0xff] %v742_v25  ;;  %v744_v26 = vld [vmem:[%s7550_s7 + $0x11a0] sm:$0xff]  ;;  %v746_v27 = vld [vmem:[%s7550_s7 + $0x11a8] sm:$0xff] }
  0xa5   : > { %v748_v28 = vld [vmem:[%s7550_s7 + $0x11c0] sm:$0xff]  ;;  %745 = vst [vmem:[%s7555_s8 + $0x8d0] sm:$0xff] %v744_v26  ;;  %747 = vst [vmem:[%s7555_s8 + $0x8d8] sm:$0xff] %v746_v27  ;;  %v750_v29 = vld [vmem:[%s7550_s7 + $0x11c8] sm:$0xff] }
  0xa6   : > { %749 = vst [vmem:[%s7555_s8 + $0x8e0] sm:$0xff] %v748_v28  ;;  %v752_v30 = vld [vmem:[%s7550_s7 + $0x11e0] sm:$0xff]  ;;  %v754_v31 = vld [vmem:[%s7550_s7 + $0x11e8] sm:$0xff]  ;;  %751 = vst [vmem:[%s7555_s8 + $0x8e8] sm:$0xff] %v750_v29 }
  0xa7   : > { %753 = vst [vmem:[%s7555_s8 + $0x8f0] sm:$0xff] %v752_v30  ;;  %755 = vst [vmem:[%s7555_s8 + $0x8f8] sm:$0xff] %v754_v31  ;;  %v756_v32 = vld [vmem:[%s7550_s7 + $0x1200] sm:$0xff]  ;;  %v758_v33 = vld [vmem:[%s7550_s7 + $0x1208] sm:$0xff] }
  0xa8   : > { %v760_v34 = vld [vmem:[%s7550_s7 + $0x1220] sm:$0xff]  ;;  %757 = vst [vmem:[%s7555_s8 + $0x900] sm:$0xff] %v756_v32  ;;  %759 = vst [vmem:[%s7555_s8 + $0x908] sm:$0xff] %v758_v33  ;;  %v762_v35 = vld [vmem:[%s7550_s7 + $0x1228] sm:$0xff] }
  0xa9   : > { %761 = vst [vmem:[%s7555_s8 + $0x910] sm:$0xff] %v760_v34  ;;  %v764_v36 = vld [vmem:[%s7550_s7 + $0x1240] sm:$0xff]  ;;  %v766_v37 = vld [vmem:[%s7550_s7 + $0x1248] sm:$0xff]  ;;  %763 = vst [vmem:[%s7555_s8 + $0x918] sm:$0xff] %v762_v35 }
  0xaa   : > { %765 = vst [vmem:[%s7555_s8 + $0x920] sm:$0xff] %v764_v36  ;;  %767 = vst [vmem:[%s7555_s8 + $0x928] sm:$0xff] %v766_v37  ;;  %v768_v38 = vld [vmem:[%s7550_s7 + $0x1260] sm:$0xff]  ;;  %v770_v39 = vld [vmem:[%s7550_s7 + $0x1268] sm:$0xff] }
  0xab   : > { %v772_v40 = vld [vmem:[%s7550_s7 + $0x1280] sm:$0xff]  ;;  %769 = vst [vmem:[%s7555_s8 + $0x930] sm:$0xff] %v768_v38  ;;  %771 = vst [vmem:[%s7555_s8 + $0x938] sm:$0xff] %v770_v39  ;;  %v774_v41 = vld [vmem:[%s7550_s7 + $0x1288] sm:$0xff] }
  0xac   : > { %773 = vst [vmem:[%s7555_s8 + $0x940] sm:$0xff] %v772_v40  ;;  %v776_v42 = vld [vmem:[%s7550_s7 + $0x12a0] sm:$0xff]  ;;  %v778_v43 = vld [vmem:[%s7550_s7 + $0x12a8] sm:$0xff]  ;;  %775 = vst [vmem:[%s7555_s8 + $0x948] sm:$0xff] %v774_v41 }
  0xad   : > { %777 = vst [vmem:[%s7555_s8 + $0x950] sm:$0xff] %v776_v42  ;;  %779 = vst [vmem:[%s7555_s8 + $0x958] sm:$0xff] %v778_v43  ;;  %v780_v44 = vld [vmem:[%s7550_s7 + $0x12c0] sm:$0xff]  ;;  %v782_v45 = vld [vmem:[%s7550_s7 + $0x12c8] sm:$0xff] }
  0xae   : > { %v784_v46 = vld [vmem:[%s7550_s7 + $0x12e0] sm:$0xff]  ;;  %781 = vst [vmem:[%s7555_s8 + $0x960] sm:$0xff] %v780_v44  ;;  %783 = vst [vmem:[%s7555_s8 + $0x968] sm:$0xff] %v782_v45  ;;  %v786_v47 = vld [vmem:[%s7550_s7 + $0x12e8] sm:$0xff] }
  0xaf   : > { %785 = vst [vmem:[%s7555_s8 + $0x970] sm:$0xff] %v784_v46  ;;  %v788_v48 = vld [vmem:[%s7550_s7 + $0x1300] sm:$0xff]  ;;  %v790_v49 = vld [vmem:[%s7550_s7 + $0x1308] sm:$0xff]  ;;  %787 = vst [vmem:[%s7555_s8 + $0x978] sm:$0xff] %v786_v47 }
  0xb0   : > { %789 = vst [vmem:[%s7555_s8 + $0x980] sm:$0xff] %v788_v48  ;;  %791 = vst [vmem:[%s7555_s8 + $0x988] sm:$0xff] %v790_v49  ;;  %v792_v50 = vld [vmem:[%s7550_s7 + $0x1320] sm:$0xff]  ;;  %v794_v51 = vld [vmem:[%s7550_s7 + $0x1328] sm:$0xff] }
  0xb1   : > { %v796_v52 = vld [vmem:[%s7550_s7 + $0x1340] sm:$0xff]  ;;  %793 = vst [vmem:[%s7555_s8 + $0x990] sm:$0xff] %v792_v50  ;;  %795 = vst [vmem:[%s7555_s8 + $0x998] sm:$0xff] %v794_v51  ;;  %v798_v53 = vld [vmem:[%s7550_s7 + $0x1348] sm:$0xff] }
  0xb2   : > { %797 = vst [vmem:[%s7555_s8 + $0x9a0] sm:$0xff] %v796_v52  ;;  %v800_v54 = vld [vmem:[%s7550_s7 + $0x1360] sm:$0xff]  ;;  %v802_v55 = vld [vmem:[%s7550_s7 + $0x1368] sm:$0xff]  ;;  %799 = vst [vmem:[%s7555_s8 + $0x9a8] sm:$0xff] %v798_v53 }
  0xb3   : > { %801 = vst [vmem:[%s7555_s8 + $0x9b0] sm:$0xff] %v800_v54  ;;  %803 = vst [vmem:[%s7555_s8 + $0x9b8] sm:$0xff] %v802_v55  ;;  %v804_v56 = vld [vmem:[%s7550_s7 + $0x1380] sm:$0xff]  ;;  %v806_v57 = vld [vmem:[%s7550_s7 + $0x1388] sm:$0xff] }
  0xb4   : > { %v808_v58 = vld [vmem:[%s7550_s7 + $0x13a0] sm:$0xff]  ;;  %805 = vst [vmem:[%s7555_s8 + $0x9c0] sm:$0xff] %v804_v56  ;;  %807 = vst [vmem:[%s7555_s8 + $0x9c8] sm:$0xff] %v806_v57  ;;  %v810_v59 = vld [vmem:[%s7550_s7 + $0x13a8] sm:$0xff] }
  0xb5   : > { %809 = vst [vmem:[%s7555_s8 + $0x9d0] sm:$0xff] %v808_v58  ;;  %v812_v60 = vld [vmem:[%s7550_s7 + $0x13c0] sm:$0xff]  ;;  %v814_v61 = vld [vmem:[%s7550_s7 + $0x13c8] sm:$0xff]  ;;  %811 = vst [vmem:[%s7555_s8 + $0x9d8] sm:$0xff] %v810_v59 }
  0xb6   : > { %813 = vst [vmem:[%s7555_s8 + $0x9e0] sm:$0xff] %v812_v60  ;;  %815 = vst [vmem:[%s7555_s8 + $0x9e8] sm:$0xff] %v814_v61  ;;  %v816_v62 = vld [vmem:[%s7550_s7 + $0x13e0] sm:$0xff]  ;;  %v818_v63 = vld [vmem:[%s7550_s7 + $0x13e8] sm:$0xff] }
  0xb7   : > { %v820_v0 = vld [vmem:[%s7550_s7 + $0x1400] sm:$0xff]  ;;  %817 = vst [vmem:[%s7555_s8 + $0x9f0] sm:$0xff] %v816_v62  ;;  %819 = vst [vmem:[%s7555_s8 + $0x9f8] sm:$0xff] %v818_v63  ;;  %v822_v1 = vld [vmem:[%s7550_s7 + $0x1408] sm:$0xff] }
  0xb8   : > { %821 = vst [vmem:[%s7555_s8 + $0xa00] sm:$0xff] %v820_v0  ;;  %v824_v2 = vld [vmem:[%s7550_s7 + $0x1420] sm:$0xff]  ;;  %v826_v3 = vld [vmem:[%s7550_s7 + $0x1428] sm:$0xff]  ;;  %823 = vst [vmem:[%s7555_s8 + $0xa08] sm:$0xff] %v822_v1 }
  0xb9   : > { %825 = vst [vmem:[%s7555_s8 + $0xa10] sm:$0xff] %v824_v2  ;;  %827 = vst [vmem:[%s7555_s8 + $0xa18] sm:$0xff] %v826_v3  ;;  %v828_v4 = vld [vmem:[%s7550_s7 + $0x1440] sm:$0xff]  ;;  %v830_v5 = vld [vmem:[%s7550_s7 + $0x1448] sm:$0xff] }
  0xba   : > { %v832_v6 = vld [vmem:[%s7550_s7 + $0x1460] sm:$0xff]  ;;  %829 = vst [vmem:[%s7555_s8 + $0xa20] sm:$0xff] %v828_v4  ;;  %831 = vst [vmem:[%s7555_s8 + $0xa28] sm:$0xff] %v830_v5  ;;  %v834_v7 = vld [vmem:[%s7550_s7 + $0x1468] sm:$0xff] }
  0xbb   : > { %833 = vst [vmem:[%s7555_s8 + $0xa30] sm:$0xff] %v832_v6  ;;  %v836_v8 = vld [vmem:[%s7550_s7 + $0x1480] sm:$0xff]  ;;  %v838_v9 = vld [vmem:[%s7550_s7 + $0x1488] sm:$0xff]  ;;  %835 = vst [vmem:[%s7555_s8 + $0xa38] sm:$0xff] %v834_v7 }
  0xbc   : > { %837 = vst [vmem:[%s7555_s8 + $0xa40] sm:$0xff] %v836_v8  ;;  %839 = vst [vmem:[%s7555_s8 + $0xa48] sm:$0xff] %v838_v9  ;;  %v840_v10 = vld [vmem:[%s7550_s7 + $0x14a0] sm:$0xff]  ;;  %v842_v11 = vld [vmem:[%s7550_s7 + $0x14a8] sm:$0xff] }
  0xbd   : > { %v844_v12 = vld [vmem:[%s7550_s7 + $0x14c0] sm:$0xff]  ;;  %841 = vst [vmem:[%s7555_s8 + $0xa50] sm:$0xff] %v840_v10  ;;  %843 = vst [vmem:[%s7555_s8 + $0xa58] sm:$0xff] %v842_v11  ;;  %v846_v13 = vld [vmem:[%s7550_s7 + $0x14c8] sm:$0xff] }
  0xbe   : > { %845 = vst [vmem:[%s7555_s8 + $0xa60] sm:$0xff] %v844_v12  ;;  %v848_v14 = vld [vmem:[%s7550_s7 + $0x14e0] sm:$0xff]  ;;  %v850_v15 = vld [vmem:[%s7550_s7 + $0x14e8] sm:$0xff]  ;;  %847 = vst [vmem:[%s7555_s8 + $0xa68] sm:$0xff] %v846_v13 }
  0xbf   : > { %849 = vst [vmem:[%s7555_s8 + $0xa70] sm:$0xff] %v848_v14  ;;  %851 = vst [vmem:[%s7555_s8 + $0xa78] sm:$0xff] %v850_v15  ;;  %v852_v16 = vld [vmem:[%s7550_s7 + $0x1500] sm:$0xff]  ;;  %v854_v17 = vld [vmem:[%s7550_s7 + $0x1508] sm:$0xff] }
  0xc0   : > { %v856_v18 = vld [vmem:[%s7550_s7 + $0x1520] sm:$0xff]  ;;  %853 = vst [vmem:[%s7555_s8 + $0xa80] sm:$0xff] %v852_v16  ;;  %855 = vst [vmem:[%s7555_s8 + $0xa88] sm:$0xff] %v854_v17  ;;  %v858_v19 = vld [vmem:[%s7550_s7 + $0x1528] sm:$0xff] }
  0xc1   : > { %857 = vst [vmem:[%s7555_s8 + $0xa90] sm:$0xff] %v856_v18  ;;  %v860_v20 = vld [vmem:[%s7550_s7 + $0x1540] sm:$0xff]  ;;  %v862_v21 = vld [vmem:[%s7550_s7 + $0x1548] sm:$0xff]  ;;  %859 = vst [vmem:[%s7555_s8 + $0xa98] sm:$0xff] %v858_v19 }
  0xc2   : > { %861 = vst [vmem:[%s7555_s8 + $0xaa0] sm:$0xff] %v860_v20  ;;  %863 = vst [vmem:[%s7555_s8 + $0xaa8] sm:$0xff] %v862_v21  ;;  %v864_v22 = vld [vmem:[%s7550_s7 + $0x1560] sm:$0xff]  ;;  %v866_v23 = vld [vmem:[%s7550_s7 + $0x1568] sm:$0xff] }
  0xc3   : > { %v868_v24 = vld [vmem:[%s7550_s7 + $0x1580] sm:$0xff]  ;;  %865 = vst [vmem:[%s7555_s8 + $0xab0] sm:$0xff] %v864_v22  ;;  %867 = vst [vmem:[%s7555_s8 + $0xab8] sm:$0xff] %v866_v23  ;;  %v870_v25 = vld [vmem:[%s7550_s7 + $0x1588] sm:$0xff] }
  0xc4   : > { %869 = vst [vmem:[%s7555_s8 + $0xac0] sm:$0xff] %v868_v24  ;;  %v872_v26 = vld [vmem:[%s7550_s7 + $0x15a0] sm:$0xff]  ;;  %v874_v27 = vld [vmem:[%s7550_s7 + $0x15a8] sm:$0xff]  ;;  %871 = vst [vmem:[%s7555_s8 + $0xac8] sm:$0xff] %v870_v25 }
  0xc5   : > { %873 = vst [vmem:[%s7555_s8 + $0xad0] sm:$0xff] %v872_v26  ;;  %875 = vst [vmem:[%s7555_s8 + $0xad8] sm:$0xff] %v874_v27  ;;  %v876_v28 = vld [vmem:[%s7550_s7 + $0x15c0] sm:$0xff]  ;;  %v878_v29 = vld [vmem:[%s7550_s7 + $0x15c8] sm:$0xff] }
  0xc6   : > { %v880_v30 = vld [vmem:[%s7550_s7 + $0x15e0] sm:$0xff]  ;;  %877 = vst [vmem:[%s7555_s8 + $0xae0] sm:$0xff] %v876_v28  ;;  %879 = vst [vmem:[%s7555_s8 + $0xae8] sm:$0xff] %v878_v29  ;;  %v882_v31 = vld [vmem:[%s7550_s7 + $0x15e8] sm:$0xff] }
  0xc7   : > { %881 = vst [vmem:[%s7555_s8 + $0xaf0] sm:$0xff] %v880_v30  ;;  %v884_v32 = vld [vmem:[%s7550_s7 + $0x1600] sm:$0xff]  ;;  %v886_v33 = vld [vmem:[%s7550_s7 + $0x1608] sm:$0xff]  ;;  %883 = vst [vmem:[%s7555_s8 + $0xaf8] sm:$0xff] %v882_v31 }
  0xc8   : > { %885 = vst [vmem:[%s7555_s8 + $0xb00] sm:$0xff] %v884_v32  ;;  %887 = vst [vmem:[%s7555_s8 + $0xb08] sm:$0xff] %v886_v33  ;;  %v888_v34 = vld [vmem:[%s7550_s7 + $0x1620] sm:$0xff]  ;;  %v890_v35 = vld [vmem:[%s7550_s7 + $0x1628] sm:$0xff] }
  0xc9   : > { %v892_v36 = vld [vmem:[%s7550_s7 + $0x1640] sm:$0xff]  ;;  %889 = vst [vmem:[%s7555_s8 + $0xb10] sm:$0xff] %v888_v34  ;;  %891 = vst [vmem:[%s7555_s8 + $0xb18] sm:$0xff] %v890_v35  ;;  %v894_v37 = vld [vmem:[%s7550_s7 + $0x1648] sm:$0xff] }
  0xca   : > { %893 = vst [vmem:[%s7555_s8 + $0xb20] sm:$0xff] %v892_v36  ;;  %v896_v38 = vld [vmem:[%s7550_s7 + $0x1660] sm:$0xff]  ;;  %v898_v39 = vld [vmem:[%s7550_s7 + $0x1668] sm:$0xff]  ;;  %895 = vst [vmem:[%s7555_s8 + $0xb28] sm:$0xff] %v894_v37 }
  0xcb   : > { %897 = vst [vmem:[%s7555_s8 + $0xb30] sm:$0xff] %v896_v38  ;;  %899 = vst [vmem:[%s7555_s8 + $0xb38] sm:$0xff] %v898_v39  ;;  %v900_v40 = vld [vmem:[%s7550_s7 + $0x1680] sm:$0xff]  ;;  %v902_v41 = vld [vmem:[%s7550_s7 + $0x1688] sm:$0xff] }
  0xcc   : > { %v904_v42 = vld [vmem:[%s7550_s7 + $0x16a0] sm:$0xff]  ;;  %901 = vst [vmem:[%s7555_s8 + $0xb40] sm:$0xff] %v900_v40  ;;  %903 = vst [vmem:[%s7555_s8 + $0xb48] sm:$0xff] %v902_v41  ;;  %v906_v43 = vld [vmem:[%s7550_s7 + $0x16a8] sm:$0xff] }
  0xcd   : > { %905 = vst [vmem:[%s7555_s8 + $0xb50] sm:$0xff] %v904_v42  ;;  %v908_v44 = vld [vmem:[%s7550_s7 + $0x16c0] sm:$0xff]  ;;  %v910_v45 = vld [vmem:[%s7550_s7 + $0x16c8] sm:$0xff]  ;;  %907 = vst [vmem:[%s7555_s8 + $0xb58] sm:$0xff] %v906_v43 }
  0xce   : > { %909 = vst [vmem:[%s7555_s8 + $0xb60] sm:$0xff] %v908_v44  ;;  %911 = vst [vmem:[%s7555_s8 + $0xb68] sm:$0xff] %v910_v45  ;;  %v912_v46 = vld [vmem:[%s7550_s7 + $0x16e0] sm:$0xff]  ;;  %v914_v47 = vld [vmem:[%s7550_s7 + $0x16e8] sm:$0xff] }
  0xcf   : > { %v916_v48 = vld [vmem:[%s7550_s7 + $0x1700] sm:$0xff]  ;;  %913 = vst [vmem:[%s7555_s8 + $0xb70] sm:$0xff] %v912_v46  ;;  %915 = vst [vmem:[%s7555_s8 + $0xb78] sm:$0xff] %v914_v47  ;;  %v918_v49 = vld [vmem:[%s7550_s7 + $0x1708] sm:$0xff] }
  0xd0   : > { %917 = vst [vmem:[%s7555_s8 + $0xb80] sm:$0xff] %v916_v48  ;;  %v920_v50 = vld [vmem:[%s7550_s7 + $0x1720] sm:$0xff]  ;;  %v922_v51 = vld [vmem:[%s7550_s7 + $0x1728] sm:$0xff]  ;;  %919 = vst [vmem:[%s7555_s8 + $0xb88] sm:$0xff] %v918_v49 }
  0xd1   : > { %921 = vst [vmem:[%s7555_s8 + $0xb90] sm:$0xff] %v920_v50  ;;  %923 = vst [vmem:[%s7555_s8 + $0xb98] sm:$0xff] %v922_v51  ;;  %v924_v52 = vld [vmem:[%s7550_s7 + $0x1740] sm:$0xff]  ;;  %v926_v53 = vld [vmem:[%s7550_s7 + $0x1748] sm:$0xff] }
  0xd2   : > { %v928_v54 = vld [vmem:[%s7550_s7 + $0x1760] sm:$0xff]  ;;  %925 = vst [vmem:[%s7555_s8 + $0xba0] sm:$0xff] %v924_v52  ;;  %927 = vst [vmem:[%s7555_s8 + $0xba8] sm:$0xff] %v926_v53  ;;  %v930_v55 = vld [vmem:[%s7550_s7 + $0x1768] sm:$0xff] }
  0xd3   : > { %929 = vst [vmem:[%s7555_s8 + $0xbb0] sm:$0xff] %v928_v54  ;;  %v932_v56 = vld [vmem:[%s7550_s7 + $0x1780] sm:$0xff]  ;;  %v934_v57 = vld [vmem:[%s7550_s7 + $0x1788] sm:$0xff]  ;;  %931 = vst [vmem:[%s7555_s8 + $0xbb8] sm:$0xff] %v930_v55 }
  0xd4   : > { %933 = vst [vmem:[%s7555_s8 + $0xbc0] sm:$0xff] %v932_v56  ;;  %935 = vst [vmem:[%s7555_s8 + $0xbc8] sm:$0xff] %v934_v57  ;;  %v936_v58 = vld [vmem:[%s7550_s7 + $0x17a0] sm:$0xff]  ;;  %v938_v59 = vld [vmem:[%s7550_s7 + $0x17a8] sm:$0xff] }
  0xd5   : > { %v940_v60 = vld [vmem:[%s7550_s7 + $0x17c0] sm:$0xff]  ;;  %937 = vst [vmem:[%s7555_s8 + $0xbd0] sm:$0xff] %v936_v58  ;;  %939 = vst [vmem:[%s7555_s8 + $0xbd8] sm:$0xff] %v938_v59  ;;  %v942_v61 = vld [vmem:[%s7550_s7 + $0x17c8] sm:$0xff] }
  0xd6   : > { %941 = vst [vmem:[%s7555_s8 + $0xbe0] sm:$0xff] %v940_v60  ;;  %v944_v62 = vld [vmem:[%s7550_s7 + $0x17e0] sm:$0xff]  ;;  %v946_v63 = vld [vmem:[%s7550_s7 + $0x17e8] sm:$0xff]  ;;  %943 = vst [vmem:[%s7555_s8 + $0xbe8] sm:$0xff] %v942_v61 }
  0xd7   : > { %945 = vst [vmem:[%s7555_s8 + $0xbf0] sm:$0xff] %v944_v62  ;;  %947 = vst [vmem:[%s7555_s8 + $0xbf8] sm:$0xff] %v946_v63  ;;  %v948_v0 = vld [vmem:[%s7550_s7 + $0x1800] sm:$0xff]  ;;  %v950_v1 = vld [vmem:[%s7550_s7 + $0x1808] sm:$0xff] }
  0xd8   : > { %v952_v2 = vld [vmem:[%s7550_s7 + $0x1820] sm:$0xff]  ;;  %949 = vst [vmem:[%s7555_s8 + $0xc00] sm:$0xff] %v948_v0  ;;  %951 = vst [vmem:[%s7555_s8 + $0xc08] sm:$0xff] %v950_v1  ;;  %v954_v3 = vld [vmem:[%s7550_s7 + $0x1828] sm:$0xff] }
  0xd9   : > { %953 = vst [vmem:[%s7555_s8 + $0xc10] sm:$0xff] %v952_v2  ;;  %v956_v4 = vld [vmem:[%s7550_s7 + $0x1840] sm:$0xff]  ;;  %v958_v5 = vld [vmem:[%s7550_s7 + $0x1848] sm:$0xff]  ;;  %955 = vst [vmem:[%s7555_s8 + $0xc18] sm:$0xff] %v954_v3 }
  0xda   : > { %957 = vst [vmem:[%s7555_s8 + $0xc20] sm:$0xff] %v956_v4  ;;  %959 = vst [vmem:[%s7555_s8 + $0xc28] sm:$0xff] %v958_v5  ;;  %v960_v6 = vld [vmem:[%s7550_s7 + $0x1860] sm:$0xff]  ;;  %v962_v7 = vld [vmem:[%s7550_s7 + $0x1868] sm:$0xff] }
  0xdb   : > { %v964_v8 = vld [vmem:[%s7550_s7 + $0x1880] sm:$0xff]  ;;  %961 = vst [vmem:[%s7555_s8 + $0xc30] sm:$0xff] %v960_v6  ;;  %963 = vst [vmem:[%s7555_s8 + $0xc38] sm:$0xff] %v962_v7  ;;  %v966_v9 = vld [vmem:[%s7550_s7 + $0x1888] sm:$0xff] }
  0xdc   : > { %965 = vst [vmem:[%s7555_s8 + $0xc40] sm:$0xff] %v964_v8  ;;  %v968_v10 = vld [vmem:[%s7550_s7 + $0x18a0] sm:$0xff]  ;;  %v970_v11 = vld [vmem:[%s7550_s7 + $0x18a8] sm:$0xff]  ;;  %967 = vst [vmem:[%s7555_s8 + $0xc48] sm:$0xff] %v966_v9 }
  0xdd   : > { %969 = vst [vmem:[%s7555_s8 + $0xc50] sm:$0xff] %v968_v10  ;;  %971 = vst [vmem:[%s7555_s8 + $0xc58] sm:$0xff] %v970_v11  ;;  %v972_v12 = vld [vmem:[%s7550_s7 + $0x18c0] sm:$0xff]  ;;  %v974_v13 = vld [vmem:[%s7550_s7 + $0x18c8] sm:$0xff] }
  0xde   : > { %v976_v14 = vld [vmem:[%s7550_s7 + $0x18e0] sm:$0xff]  ;;  %973 = vst [vmem:[%s7555_s8 + $0xc60] sm:$0xff] %v972_v12  ;;  %975 = vst [vmem:[%s7555_s8 + $0xc68] sm:$0xff] %v974_v13  ;;  %v978_v15 = vld [vmem:[%s7550_s7 + $0x18e8] sm:$0xff] }
  0xdf   : > { %977 = vst [vmem:[%s7555_s8 + $0xc70] sm:$0xff] %v976_v14  ;;  %v980_v16 = vld [vmem:[%s7550_s7 + $0x1900] sm:$0xff]  ;;  %v982_v17 = vld [vmem:[%s7550_s7 + $0x1908] sm:$0xff]  ;;  %979 = vst [vmem:[%s7555_s8 + $0xc78] sm:$0xff] %v978_v15 }
  0xe0   : > { %981 = vst [vmem:[%s7555_s8 + $0xc80] sm:$0xff] %v980_v16  ;;  %983 = vst [vmem:[%s7555_s8 + $0xc88] sm:$0xff] %v982_v17  ;;  %v984_v18 = vld [vmem:[%s7550_s7 + $0x1920] sm:$0xff]  ;;  %v986_v19 = vld [vmem:[%s7550_s7 + $0x1928] sm:$0xff] }
  0xe1   : > { %v988_v20 = vld [vmem:[%s7550_s7 + $0x1940] sm:$0xff]  ;;  %985 = vst [vmem:[%s7555_s8 + $0xc90] sm:$0xff] %v984_v18  ;;  %987 = vst [vmem:[%s7555_s8 + $0xc98] sm:$0xff] %v986_v19  ;;  %v990_v21 = vld [vmem:[%s7550_s7 + $0x1948] sm:$0xff] }
  0xe2   : > { %989 = vst [vmem:[%s7555_s8 + $0xca0] sm:$0xff] %v988_v20  ;;  %v992_v22 = vld [vmem:[%s7550_s7 + $0x1960] sm:$0xff]  ;;  %v994_v23 = vld [vmem:[%s7550_s7 + $0x1968] sm:$0xff]  ;;  %991 = vst [vmem:[%s7555_s8 + $0xca8] sm:$0xff] %v990_v21 }
  0xe3   : > { %993 = vst [vmem:[%s7555_s8 + $0xcb0] sm:$0xff] %v992_v22  ;;  %995 = vst [vmem:[%s7555_s8 + $0xcb8] sm:$0xff] %v994_v23  ;;  %v996_v24 = vld [vmem:[%s7550_s7 + $0x1980] sm:$0xff]  ;;  %v998_v25 = vld [vmem:[%s7550_s7 + $0x1988] sm:$0xff] }
  0xe4   : > { %v1000_v26 = vld [vmem:[%s7550_s7 + $0x19a0] sm:$0xff]  ;;  %997 = vst [vmem:[%s7555_s8 + $0xcc0] sm:$0xff] %v996_v24  ;;  %999 = vst [vmem:[%s7555_s8 + $0xcc8] sm:$0xff] %v998_v25  ;;  %v1002_v27 = vld [vmem:[%s7550_s7 + $0x19a8] sm:$0xff] }
  0xe5   : > { %1001 = vst [vmem:[%s7555_s8 + $0xcd0] sm:$0xff] %v1000_v26  ;;  %v1004_v28 = vld [vmem:[%s7550_s7 + $0x19c0] sm:$0xff]  ;;  %v1006_v29 = vld [vmem:[%s7550_s7 + $0x19c8] sm:$0xff]  ;;  %1003 = vst [vmem:[%s7555_s8 + $0xcd8] sm:$0xff] %v1002_v27 }
  0xe6   : > { %1005 = vst [vmem:[%s7555_s8 + $0xce0] sm:$0xff] %v1004_v28  ;;  %1007 = vst [vmem:[%s7555_s8 + $0xce8] sm:$0xff] %v1006_v29  ;;  %v1008_v30 = vld [vmem:[%s7550_s7 + $0x19e0] sm:$0xff]  ;;  %v1010_v31 = vld [vmem:[%s7550_s7 + $0x19e8] sm:$0xff] }
  0xe7   : > { %v1012_v32 = vld [vmem:[%s7550_s7 + $0x1a00] sm:$0xff]  ;;  %1009 = vst [vmem:[%s7555_s8 + $0xcf0] sm:$0xff] %v1008_v30  ;;  %1011 = vst [vmem:[%s7555_s8 + $0xcf8] sm:$0xff] %v1010_v31  ;;  %v1014_v33 = vld [vmem:[%s7550_s7 + $0x1a08] sm:$0xff] }
  0xe8   : > { %1013 = vst [vmem:[%s7555_s8 + $0xd00] sm:$0xff] %v1012_v32  ;;  %v1016_v34 = vld [vmem:[%s7550_s7 + $0x1a20] sm:$0xff]  ;;  %v1018_v35 = vld [vmem:[%s7550_s7 + $0x1a28] sm:$0xff]  ;;  %1015 = vst [vmem:[%s7555_s8 + $0xd08] sm:$0xff] %v1014_v33 }
  0xe9   : > { %1017 = vst [vmem:[%s7555_s8 + $0xd10] sm:$0xff] %v1016_v34  ;;  %1019 = vst [vmem:[%s7555_s8 + $0xd18] sm:$0xff] %v1018_v35  ;;  %v1020_v36 = vld [vmem:[%s7550_s7 + $0x1a40] sm:$0xff]  ;;  %v1022_v37 = vld [vmem:[%s7550_s7 + $0x1a48] sm:$0xff] }
  0xea   : > { %v1024_v38 = vld [vmem:[%s7550_s7 + $0x1a60] sm:$0xff]  ;;  %1021 = vst [vmem:[%s7555_s8 + $0xd20] sm:$0xff] %v1020_v36  ;;  %1023 = vst [vmem:[%s7555_s8 + $0xd28] sm:$0xff] %v1022_v37  ;;  %v1026_v39 = vld [vmem:[%s7550_s7 + $0x1a68] sm:$0xff] }
  0xeb   : > { %1025 = vst [vmem:[%s7555_s8 + $0xd30] sm:$0xff] %v1024_v38  ;;  %v1028_v40 = vld [vmem:[%s7550_s7 + $0x1a80] sm:$0xff]  ;;  %v1030_v41 = vld [vmem:[%s7550_s7 + $0x1a88] sm:$0xff]  ;;  %1027 = vst [vmem:[%s7555_s8 + $0xd38] sm:$0xff] %v1026_v39 }
  0xec   : > { %1029 = vst [vmem:[%s7555_s8 + $0xd40] sm:$0xff] %v1028_v40  ;;  %1031 = vst [vmem:[%s7555_s8 + $0xd48] sm:$0xff] %v1030_v41  ;;  %v1032_v42 = vld [vmem:[%s7550_s7 + $0x1aa0] sm:$0xff]  ;;  %v1034_v43 = vld [vmem:[%s7550_s7 + $0x1aa8] sm:$0xff] }
  0xed   : > { %v1036_v44 = vld [vmem:[%s7550_s7 + $0x1ac0] sm:$0xff]  ;;  %1033 = vst [vmem:[%s7555_s8 + $0xd50] sm:$0xff] %v1032_v42  ;;  %1035 = vst [vmem:[%s7555_s8 + $0xd58] sm:$0xff] %v1034_v43  ;;  %v1038_v45 = vld [vmem:[%s7550_s7 + $0x1ac8] sm:$0xff] }
  0xee   : > { %1037 = vst [vmem:[%s7555_s8 + $0xd60] sm:$0xff] %v1036_v44  ;;  %v1040_v46 = vld [vmem:[%s7550_s7 + $0x1ae0] sm:$0xff]  ;;  %v1042_v47 = vld [vmem:[%s7550_s7 + $0x1ae8] sm:$0xff]  ;;  %1039 = vst [vmem:[%s7555_s8 + $0xd68] sm:$0xff] %v1038_v45 }
  0xef   : > { %1041 = vst [vmem:[%s7555_s8 + $0xd70] sm:$0xff] %v1040_v46  ;;  %1043 = vst [vmem:[%s7555_s8 + $0xd78] sm:$0xff] %v1042_v47  ;;  %v1044_v48 = vld [vmem:[%s7550_s7 + $0x1b00] sm:$0xff]  ;;  %v1046_v49 = vld [vmem:[%s7550_s7 + $0x1b08] sm:$0xff] }
  0xf0   : > { %v1048_v50 = vld [vmem:[%s7550_s7 + $0x1b20] sm:$0xff]  ;;  %1045 = vst [vmem:[%s7555_s8 + $0xd80] sm:$0xff] %v1044_v48  ;;  %1047 = vst [vmem:[%s7555_s8 + $0xd88] sm:$0xff] %v1046_v49  ;;  %v1050_v51 = vld [vmem:[%s7550_s7 + $0x1b28] sm:$0xff] }
  0xf1   : > { %1049 = vst [vmem:[%s7555_s8 + $0xd90] sm:$0xff] %v1048_v50  ;;  %v1052_v52 = vld [vmem:[%s7550_s7 + $0x1b40] sm:$0xff]  ;;  %v1054_v53 = vld [vmem:[%s7550_s7 + $0x1b48] sm:$0xff]  ;;  %1051 = vst [vmem:[%s7555_s8 + $0xd98] sm:$0xff] %v1050_v51 }
  0xf2   : > { %1053 = vst [vmem:[%s7555_s8 + $0xda0] sm:$0xff] %v1052_v52  ;;  %1055 = vst [vmem:[%s7555_s8 + $0xda8] sm:$0xff] %v1054_v53  ;;  %v1056_v54 = vld [vmem:[%s7550_s7 + $0x1b60] sm:$0xff]  ;;  %v1058_v55 = vld [vmem:[%s7550_s7 + $0x1b68] sm:$0xff] }
  0xf3   : > { %v1060_v56 = vld [vmem:[%s7550_s7 + $0x1b80] sm:$0xff]  ;;  %1057 = vst [vmem:[%s7555_s8 + $0xdb0] sm:$0xff] %v1056_v54  ;;  %1059 = vst [vmem:[%s7555_s8 + $0xdb8] sm:$0xff] %v1058_v55  ;;  %v1062_v57 = vld [vmem:[%s7550_s7 + $0x1b88] sm:$0xff] }
  0xf4   : > { %1061 = vst [vmem:[%s7555_s8 + $0xdc0] sm:$0xff] %v1060_v56  ;;  %v1064_v58 = vld [vmem:[%s7550_s7 + $0x1ba0] sm:$0xff]  ;;  %v1066_v59 = vld [vmem:[%s7550_s7 + $0x1ba8] sm:$0xff]  ;;  %1063 = vst [vmem:[%s7555_s8 + $0xdc8] sm:$0xff] %v1062_v57 }
  0xf5   : > { %1065 = vst [vmem:[%s7555_s8 + $0xdd0] sm:$0xff] %v1064_v58  ;;  %1067 = vst [vmem:[%s7555_s8 + $0xdd8] sm:$0xff] %v1066_v59  ;;  %v1068_v60 = vld [vmem:[%s7550_s7 + $0x1bc0] sm:$0xff]  ;;  %v1070_v61 = vld [vmem:[%s7550_s7 + $0x1bc8] sm:$0xff] }
  0xf6   : > { %v1072_v62 = vld [vmem:[%s7550_s7 + $0x1be0] sm:$0xff]  ;;  %1069 = vst [vmem:[%s7555_s8 + $0xde0] sm:$0xff] %v1068_v60  ;;  %1071 = vst [vmem:[%s7555_s8 + $0xde8] sm:$0xff] %v1070_v61  ;;  %v1074_v63 = vld [vmem:[%s7550_s7 + $0x1be8] sm:$0xff] }
  0xf7   : > { %1073 = vst [vmem:[%s7555_s8 + $0xdf0] sm:$0xff] %v1072_v62  ;;  %v1076_v0 = vld [vmem:[%s7550_s7 + $0x1c00] sm:$0xff]  ;;  %v1078_v1 = vld [vmem:[%s7550_s7 + $0x1c08] sm:$0xff]  ;;  %1075 = vst [vmem:[%s7555_s8 + $0xdf8] sm:$0xff] %v1074_v63 }
  0xf8   : > { %1077 = vst [vmem:[%s7555_s8 + $0xe00] sm:$0xff] %v1076_v0  ;;  %1079 = vst [vmem:[%s7555_s8 + $0xe08] sm:$0xff] %v1078_v1  ;;  %v1080_v2 = vld [vmem:[%s7550_s7 + $0x1c20] sm:$0xff]  ;;  %v1082_v3 = vld [vmem:[%s7550_s7 + $0x1c28] sm:$0xff] }
  0xf9   : > { %v1084_v4 = vld [vmem:[%s7550_s7 + $0x1c40] sm:$0xff]  ;;  %1081 = vst [vmem:[%s7555_s8 + $0xe10] sm:$0xff] %v1080_v2  ;;  %1083 = vst [vmem:[%s7555_s8 + $0xe18] sm:$0xff] %v1082_v3  ;;  %v1086_v5 = vld [vmem:[%s7550_s7 + $0x1c48] sm:$0xff] }
  0xfa   : > { %1085 = vst [vmem:[%s7555_s8 + $0xe20] sm:$0xff] %v1084_v4  ;;  %v1088_v6 = vld [vmem:[%s7550_s7 + $0x1c60] sm:$0xff]  ;;  %v1090_v7 = vld [vmem:[%s7550_s7 + $0x1c68] sm:$0xff]  ;;  %1087 = vst [vmem:[%s7555_s8 + $0xe28] sm:$0xff] %v1086_v5 }
  0xfb   : > { %1089 = vst [vmem:[%s7555_s8 + $0xe30] sm:$0xff] %v1088_v6  ;;  %1091 = vst [vmem:[%s7555_s8 + $0xe38] sm:$0xff] %v1090_v7  ;;  %v1092_v8 = vld [vmem:[%s7550_s7 + $0x1c80] sm:$0xff]  ;;  %v1094_v9 = vld [vmem:[%s7550_s7 + $0x1c88] sm:$0xff] }
  0xfc   : > { %v1096_v10 = vld [vmem:[%s7550_s7 + $0x1ca0] sm:$0xff]  ;;  %1093 = vst [vmem:[%s7555_s8 + $0xe40] sm:$0xff] %v1092_v8  ;;  %1095 = vst [vmem:[%s7555_s8 + $0xe48] sm:$0xff] %v1094_v9  ;;  %v1098_v11 = vld [vmem:[%s7550_s7 + $0x1ca8] sm:$0xff] }
  0xfd   : > { %1097 = vst [vmem:[%s7555_s8 + $0xe50] sm:$0xff] %v1096_v10  ;;  %v1100_v12 = vld [vmem:[%s7550_s7 + $0x1cc0] sm:$0xff]  ;;  %v1102_v13 = vld [vmem:[%s7550_s7 + $0x1cc8] sm:$0xff]  ;;  %1099 = vst [vmem:[%s7555_s8 + $0xe58] sm:$0xff] %v1098_v11 }
  0xfe   : > { %1101 = vst [vmem:[%s7555_s8 + $0xe60] sm:$0xff] %v1100_v12  ;;  %1103 = vst [vmem:[%s7555_s8 + $0xe68] sm:$0xff] %v1102_v13  ;;  %v1104_v14 = vld [vmem:[%s7550_s7 + $0x1ce0] sm:$0xff]  ;;  %v1106_v15 = vld [vmem:[%s7550_s7 + $0x1ce8] sm:$0xff] }
  0xff   : > { %v1108_v16 = vld [vmem:[%s7550_s7 + $0x1d00] sm:$0xff]  ;;  %1105 = vst [vmem:[%s7555_s8 + $0xe70] sm:$0xff] %v1104_v14  ;;  %1107 = vst [vmem:[%s7555_s8 + $0xe78] sm:$0xff] %v1106_v15  ;;  %v1110_v17 = vld [vmem:[%s7550_s7 + $0x1d08] sm:$0xff] }
 0x100   : > { %1109 = vst [vmem:[%s7555_s8 + $0xe80] sm:$0xff] %v1108_v16  ;;  %v1112_v18 = vld [vmem:[%s7550_s7 + $0x1d20] sm:$0xff]  ;;  %v1114_v19 = vld [vmem:[%s7550_s7 + $0x1d28] sm:$0xff]  ;;  %1111 = vst [vmem:[%s7555_s8 + $0xe88] sm:$0xff] %v1110_v17 }
 0x101   : > { %1113 = vst [vmem:[%s7555_s8 + $0xe90] sm:$0xff] %v1112_v18  ;;  %1115 = vst [vmem:[%s7555_s8 + $0xe98] sm:$0xff] %v1114_v19  ;;  %v1116_v20 = vld [vmem:[%s7550_s7 + $0x1d40] sm:$0xff]  ;;  %v1118_v21 = vld [vmem:[%s7550_s7 + $0x1d48] sm:$0xff] }
 0x102   : > { %v1120_v22 = vld [vmem:[%s7550_s7 + $0x1d60] sm:$0xff]  ;;  %1117 = vst [vmem:[%s7555_s8 + $0xea0] sm:$0xff] %v1116_v20  ;;  %1119 = vst [vmem:[%s7555_s8 + $0xea8] sm:$0xff] %v1118_v21  ;;  %v1122_v23 = vld [vmem:[%s7550_s7 + $0x1d68] sm:$0xff] }
 0x103   : > { %1121 = vst [vmem:[%s7555_s8 + $0xeb0] sm:$0xff] %v1120_v22  ;;  %v1124_v24 = vld [vmem:[%s7550_s7 + $0x1d80] sm:$0xff]  ;;  %v1126_v25 = vld [vmem:[%s7550_s7 + $0x1d88] sm:$0xff]  ;;  %1123 = vst [vmem:[%s7555_s8 + $0xeb8] sm:$0xff] %v1122_v23 }
 0x104   : > { %1125 = vst [vmem:[%s7555_s8 + $0xec0] sm:$0xff] %v1124_v24  ;;  %1127 = vst [vmem:[%s7555_s8 + $0xec8] sm:$0xff] %v1126_v25  ;;  %v1128_v26 = vld [vmem:[%s7550_s7 + $0x1da0] sm:$0xff]  ;;  %v1130_v27 = vld [vmem:[%s7550_s7 + $0x1da8] sm:$0xff] }
 0x105   : > { %v1132_v28 = vld [vmem:[%s7550_s7 + $0x1dc0] sm:$0xff]  ;;  %1129 = vst [vmem:[%s7555_s8 + $0xed0] sm:$0xff] %v1128_v26  ;;  %1131 = vst [vmem:[%s7555_s8 + $0xed8] sm:$0xff] %v1130_v27  ;;  %v1134_v29 = vld [vmem:[%s7550_s7 + $0x1dc8] sm:$0xff] }
 0x106   : > { %1133 = vst [vmem:[%s7555_s8 + $0xee0] sm:$0xff] %v1132_v28  ;;  %v1136_v30 = vld [vmem:[%s7550_s7 + $0x1de0] sm:$0xff]  ;;  %v1138_v31 = vld [vmem:[%s7550_s7 + $0x1de8] sm:$0xff]  ;;  %1135 = vst [vmem:[%s7555_s8 + $0xee8] sm:$0xff] %v1134_v29 }
 0x107   : > { %1137 = vst [vmem:[%s7555_s8 + $0xef0] sm:$0xff] %v1136_v30  ;;  %1139 = vst [vmem:[%s7555_s8 + $0xef8] sm:$0xff] %v1138_v31  ;;  %v1140_v32 = vld [vmem:[%s7550_s7 + $0x1e00] sm:$0xff]  ;;  %v1142_v33 = vld [vmem:[%s7550_s7 + $0x1e08] sm:$0xff] }
 0x108   : > { %v1144_v34 = vld [vmem:[%s7550_s7 + $0x1e20] sm:$0xff]  ;;  %1141 = vst [vmem:[%s7555_s8 + $0xf00] sm:$0xff] %v1140_v32  ;;  %1143 = vst [vmem:[%s7555_s8 + $0xf08] sm:$0xff] %v1142_v33  ;;  %v1146_v35 = vld [vmem:[%s7550_s7 + $0x1e28] sm:$0xff] }
 0x109   : > { %1145 = vst [vmem:[%s7555_s8 + $0xf10] sm:$0xff] %v1144_v34  ;;  %v1148_v36 = vld [vmem:[%s7550_s7 + $0x1e40] sm:$0xff]  ;;  %v1150_v37 = vld [vmem:[%s7550_s7 + $0x1e48] sm:$0xff]  ;;  %1147 = vst [vmem:[%s7555_s8 + $0xf18] sm:$0xff] %v1146_v35 }
 0x10a   : > { %1149 = vst [vmem:[%s7555_s8 + $0xf20] sm:$0xff] %v1148_v36  ;;  %1151 = vst [vmem:[%s7555_s8 + $0xf28] sm:$0xff] %v1150_v37  ;;  %v1152_v38 = vld [vmem:[%s7550_s7 + $0x1e60] sm:$0xff]  ;;  %v1154_v39 = vld [vmem:[%s7550_s7 + $0x1e68] sm:$0xff] }
 0x10b   : > { %v1156_v40 = vld [vmem:[%s7550_s7 + $0x1e80] sm:$0xff]  ;;  %1153 = vst [vmem:[%s7555_s8 + $0xf30] sm:$0xff] %v1152_v38  ;;  %1155 = vst [vmem:[%s7555_s8 + $0xf38] sm:$0xff] %v1154_v39  ;;  %v1158_v41 = vld [vmem:[%s7550_s7 + $0x1e88] sm:$0xff] }
 0x10c   : > { %1157 = vst [vmem:[%s7555_s8 + $0xf40] sm:$0xff] %v1156_v40  ;;  %v1160_v42 = vld [vmem:[%s7550_s7 + $0x1ea0] sm:$0xff]  ;;  %v1162_v43 = vld [vmem:[%s7550_s7 + $0x1ea8] sm:$0xff]  ;;  %1159 = vst [vmem:[%s7555_s8 + $0xf48] sm:$0xff] %v1158_v41 }
 0x10d   : > { %1161 = vst [vmem:[%s7555_s8 + $0xf50] sm:$0xff] %v1160_v42  ;;  %1163 = vst [vmem:[%s7555_s8 + $0xf58] sm:$0xff] %v1162_v43  ;;  %v1164_v44 = vld [vmem:[%s7550_s7 + $0x1ec0] sm:$0xff]  ;;  %v1166_v45 = vld [vmem:[%s7550_s7 + $0x1ec8] sm:$0xff] }
 0x10e   : > { %v1168_v46 = vld [vmem:[%s7550_s7 + $0x1ee0] sm:$0xff]  ;;  %1165 = vst [vmem:[%s7555_s8 + $0xf60] sm:$0xff] %v1164_v44  ;;  %1167 = vst [vmem:[%s7555_s8 + $0xf68] sm:$0xff] %v1166_v45  ;;  %v1170_v47 = vld [vmem:[%s7550_s7 + $0x1ee8] sm:$0xff] }
 0x10f   : > { %1169 = vst [vmem:[%s7555_s8 + $0xf70] sm:$0xff] %v1168_v46  ;;  %v1172_v48 = vld [vmem:[%s7550_s7 + $0x1f00] sm:$0xff]  ;;  %v1174_v49 = vld [vmem:[%s7550_s7 + $0x1f08] sm:$0xff]  ;;  %1171 = vst [vmem:[%s7555_s8 + $0xf78] sm:$0xff] %v1170_v47 }
 0x110   : > { %1173 = vst [vmem:[%s7555_s8 + $0xf80] sm:$0xff] %v1172_v48  ;;  %1175 = vst [vmem:[%s7555_s8 + $0xf88] sm:$0xff] %v1174_v49  ;;  %v1176_v50 = vld [vmem:[%s7550_s7 + $0x1f20] sm:$0xff]  ;;  %v1178_v51 = vld [vmem:[%s7550_s7 + $0x1f28] sm:$0xff] }
 0x111   : > { %v1180_v52 = vld [vmem:[%s7550_s7 + $0x1f40] sm:$0xff]  ;;  %1177 = vst [vmem:[%s7555_s8 + $0xf90] sm:$0xff] %v1176_v50  ;;  %1179 = vst [vmem:[%s7555_s8 + $0xf98] sm:$0xff] %v1178_v51  ;;  %v1182_v53 = vld [vmem:[%s7550_s7 + $0x1f48] sm:$0xff] }
 0x112   : > { %1181 = vst [vmem:[%s7555_s8 + $0xfa0] sm:$0xff] %v1180_v52  ;;  %v1184_v54 = vld [vmem:[%s7550_s7 + $0x1f60] sm:$0xff]  ;;  %v1186_v55 = vld [vmem:[%s7550_s7 + $0x1f68] sm:$0xff]  ;;  %1183 = vst [vmem:[%s7555_s8 + $0xfa8] sm:$0xff] %v1182_v53 }
 0x113   : > { %1185 = vst [vmem:[%s7555_s8 + $0xfb0] sm:$0xff] %v1184_v54  ;;  %1187 = vst [vmem:[%s7555_s8 + $0xfb8] sm:$0xff] %v1186_v55  ;;  %v1188_v56 = vld [vmem:[%s7550_s7 + $0x1f80] sm:$0xff]  ;;  %v1190_v57 = vld [vmem:[%s7550_s7 + $0x1f88] sm:$0xff] }
 0x114   : > { %v1192_v58 = vld [vmem:[%s7550_s7 + $0x1fa0] sm:$0xff]  ;;  %1189 = vst [vmem:[%s7555_s8 + $0xfc0] sm:$0xff] %v1188_v56  ;;  %1191 = vst [vmem:[%s7555_s8 + $0xfc8] sm:$0xff] %v1190_v57  ;;  %v1194_v59 = vld [vmem:[%s7550_s7 + $0x1fa8] sm:$0xff] }
 0x115   : > { %1193 = vst [vmem:[%s7555_s8 + $0xfd0] sm:$0xff] %v1192_v58  ;;  %v1196_v60 = vld [vmem:[%s7550_s7 + $0x1fc0] sm:$0xff]  ;;  %v1198_v61 = vld [vmem:[%s7550_s7 + $0x1fc8] sm:$0xff]  ;;  %1195 = vst [vmem:[%s7555_s8 + $0xfd8] sm:$0xff] %v1194_v59 }
 0x116   : > { %1197 = vst [vmem:[%s7555_s8 + $0xfe0] sm:$0xff] %v1196_v60  ;;  %1199 = vst [vmem:[%s7555_s8 + $0xfe8] sm:$0xff] %v1198_v61  ;;  %v1200_v62 = vld [vmem:[%s7550_s7 + $0x1fe0] sm:$0xff]  ;;  %v1202_v63 = vld [vmem:[%s7550_s7 + $0x1fe8] sm:$0xff] }
 0x117   : > { %v1204_v0 = vld [vmem:[%s7550_s7 + $0x2000] sm:$0xff]  ;;  %1201 = vst [vmem:[%s7555_s8 + $0xff0] sm:$0xff] %v1200_v62  ;;  %1203 = vst [vmem:[%s7555_s8 + $0xff8] sm:$0xff] %v1202_v63  ;;  %v1206_v1 = vld [vmem:[%s7550_s7 + $0x2008] sm:$0xff] }
 0x118   : > { %1205 = vst [vmem:[%s7555_s8 + $0x1000] sm:$0xff] %v1204_v0  ;;  %v1208_v2 = vld [vmem:[%s7550_s7 + $0x2020] sm:$0xff]  ;;  %v1210_v3 = vld [vmem:[%s7550_s7 + $0x2028] sm:$0xff]  ;;  %1207 = vst [vmem:[%s7555_s8 + $0x1008] sm:$0xff] %v1206_v1 }
 0x119   : > { %1209 = vst [vmem:[%s7555_s8 + $0x1010] sm:$0xff] %v1208_v2  ;;  %1211 = vst [vmem:[%s7555_s8 + $0x1018] sm:$0xff] %v1210_v3  ;;  %v1212_v4 = vld [vmem:[%s7550_s7 + $0x2040] sm:$0xff]  ;;  %v1214_v5 = vld [vmem:[%s7550_s7 + $0x2048] sm:$0xff] }
 0x11a   : > { %v1216_v6 = vld [vmem:[%s7550_s7 + $0x2060] sm:$0xff]  ;;  %1213 = vst [vmem:[%s7555_s8 + $0x1020] sm:$0xff] %v1212_v4  ;;  %1215 = vst [vmem:[%s7555_s8 + $0x1028] sm:$0xff] %v1214_v5  ;;  %v1218_v7 = vld [vmem:[%s7550_s7 + $0x2068] sm:$0xff] }
 0x11b   : > { %1217 = vst [vmem:[%s7555_s8 + $0x1030] sm:$0xff] %v1216_v6  ;;  %v1220_v8 = vld [vmem:[%s7550_s7 + $0x2080] sm:$0xff]  ;;  %v1222_v9 = vld [vmem:[%s7550_s7 + $0x2088] sm:$0xff]  ;;  %1219 = vst [vmem:[%s7555_s8 + $0x1038] sm:$0xff] %v1218_v7 }
 0x11c   : > { %1221 = vst [vmem:[%s7555_s8 + $0x1040] sm:$0xff] %v1220_v8  ;;  %1223 = vst [vmem:[%s7555_s8 + $0x1048] sm:$0xff] %v1222_v9  ;;  %v1224_v10 = vld [vmem:[%s7550_s7 + $0x20a0] sm:$0xff]  ;;  %v1226_v11 = vld [vmem:[%s7550_s7 + $0x20a8] sm:$0xff] }
 0x11d   : > { %v1228_v12 = vld [vmem:[%s7550_s7 + $0x20c0] sm:$0xff]  ;;  %1225 = vst [vmem:[%s7555_s8 + $0x1050] sm:$0xff] %v1224_v10  ;;  %1227 = vst [vmem:[%s7555_s8 + $0x1058] sm:$0xff] %v1226_v11  ;;  %v1230_v13 = vld [vmem:[%s7550_s7 + $0x20c8] sm:$0xff] }
 0x11e   : > { %1229 = vst [vmem:[%s7555_s8 + $0x1060] sm:$0xff] %v1228_v12  ;;  %v1232_v14 = vld [vmem:[%s7550_s7 + $0x20e0] sm:$0xff]  ;;  %v1234_v15 = vld [vmem:[%s7550_s7 + $0x20e8] sm:$0xff]  ;;  %1231 = vst [vmem:[%s7555_s8 + $0x1068] sm:$0xff] %v1230_v13 }
 0x11f   : > { %1233 = vst [vmem:[%s7555_s8 + $0x1070] sm:$0xff] %v1232_v14  ;;  %1235 = vst [vmem:[%s7555_s8 + $0x1078] sm:$0xff] %v1234_v15  ;;  %v1236_v16 = vld [vmem:[%s7550_s7 + $0x2100] sm:$0xff]  ;;  %v1238_v17 = vld [vmem:[%s7550_s7 + $0x2108] sm:$0xff] }
 0x120   : > { %v1240_v18 = vld [vmem:[%s7550_s7 + $0x2120] sm:$0xff]  ;;  %1237 = vst [vmem:[%s7555_s8 + $0x1080] sm:$0xff] %v1236_v16  ;;  %1239 = vst [vmem:[%s7555_s8 + $0x1088] sm:$0xff] %v1238_v17  ;;  %v1242_v19 = vld [vmem:[%s7550_s7 + $0x2128] sm:$0xff] }
 0x121   : > { %1241 = vst [vmem:[%s7555_s8 + $0x1090] sm:$0xff] %v1240_v18  ;;  %v1244_v20 = vld [vmem:[%s7550_s7 + $0x2140] sm:$0xff]  ;;  %v1246_v21 = vld [vmem:[%s7550_s7 + $0x2148] sm:$0xff]  ;;  %1243 = vst [vmem:[%s7555_s8 + $0x1098] sm:$0xff] %v1242_v19 }
 0x122   : > { %1245 = vst [vmem:[%s7555_s8 + $0x10a0] sm:$0xff] %v1244_v20  ;;  %1247 = vst [vmem:[%s7555_s8 + $0x10a8] sm:$0xff] %v1246_v21  ;;  %v1248_v22 = vld [vmem:[%s7550_s7 + $0x2160] sm:$0xff]  ;;  %v1250_v23 = vld [vmem:[%s7550_s7 + $0x2168] sm:$0xff] }
 0x123   : > { %v1252_v24 = vld [vmem:[%s7550_s7 + $0x2180] sm:$0xff]  ;;  %1249 = vst [vmem:[%s7555_s8 + $0x10b0] sm:$0xff] %v1248_v22  ;;  %1251 = vst [vmem:[%s7555_s8 + $0x10b8] sm:$0xff] %v1250_v23  ;;  %v1254_v25 = vld [vmem:[%s7550_s7 + $0x2188] sm:$0xff] }
 0x124   : > { %1253 = vst [vmem:[%s7555_s8 + $0x10c0] sm:$0xff] %v1252_v24  ;;  %v1256_v26 = vld [vmem:[%s7550_s7 + $0x21a0] sm:$0xff]  ;;  %v1258_v27 = vld [vmem:[%s7550_s7 + $0x21a8] sm:$0xff]  ;;  %1255 = vst [vmem:[%s7555_s8 + $0x10c8] sm:$0xff] %v1254_v25 }
 0x125   : > { %1257 = vst [vmem:[%s7555_s8 + $0x10d0] sm:$0xff] %v1256_v26  ;;  %1259 = vst [vmem:[%s7555_s8 + $0x10d8] sm:$0xff] %v1258_v27  ;;  %v1260_v28 = vld [vmem:[%s7550_s7 + $0x21c0] sm:$0xff]  ;;  %v1262_v29 = vld [vmem:[%s7550_s7 + $0x21c8] sm:$0xff] }
 0x126   : > { %v1264_v30 = vld [vmem:[%s7550_s7 + $0x21e0] sm:$0xff]  ;;  %1261 = vst [vmem:[%s7555_s8 + $0x10e0] sm:$0xff] %v1260_v28  ;;  %1263 = vst [vmem:[%s7555_s8 + $0x10e8] sm:$0xff] %v1262_v29  ;;  %v1266_v31 = vld [vmem:[%s7550_s7 + $0x21e8] sm:$0xff] }
 0x127   : > { %1265 = vst [vmem:[%s7555_s8 + $0x10f0] sm:$0xff] %v1264_v30  ;;  %v1268_v32 = vld [vmem:[%s7550_s7 + $0x2200] sm:$0xff]  ;;  %v1270_v33 = vld [vmem:[%s7550_s7 + $0x2208] sm:$0xff]  ;;  %1267 = vst [vmem:[%s7555_s8 + $0x10f8] sm:$0xff] %v1266_v31 }
 0x128   : > { %1269 = vst [vmem:[%s7555_s8 + $0x1100] sm:$0xff] %v1268_v32  ;;  %1271 = vst [vmem:[%s7555_s8 + $0x1108] sm:$0xff] %v1270_v33  ;;  %v1272_v34 = vld [vmem:[%s7550_s7 + $0x2220] sm:$0xff]  ;;  %v1274_v35 = vld [vmem:[%s7550_s7 + $0x2228] sm:$0xff] }
 0x129   : > { %v1276_v36 = vld [vmem:[%s7550_s7 + $0x2240] sm:$0xff]  ;;  %1273 = vst [vmem:[%s7555_s8 + $0x1110] sm:$0xff] %v1272_v34  ;;  %1275 = vst [vmem:[%s7555_s8 + $0x1118] sm:$0xff] %v1274_v35  ;;  %v1278_v37 = vld [vmem:[%s7550_s7 + $0x2248] sm:$0xff] }
 0x12a   : > { %1277 = vst [vmem:[%s7555_s8 + $0x1120] sm:$0xff] %v1276_v36  ;;  %v1280_v38 = vld [vmem:[%s7550_s7 + $0x2260] sm:$0xff]  ;;  %v1282_v39 = vld [vmem:[%s7550_s7 + $0x2268] sm:$0xff]  ;;  %1279 = vst [vmem:[%s7555_s8 + $0x1128] sm:$0xff] %v1278_v37 }
 0x12b   : > { %1281 = vst [vmem:[%s7555_s8 + $0x1130] sm:$0xff] %v1280_v38  ;;  %1283 = vst [vmem:[%s7555_s8 + $0x1138] sm:$0xff] %v1282_v39  ;;  %v1284_v40 = vld [vmem:[%s7550_s7 + $0x2280] sm:$0xff]  ;;  %v1286_v41 = vld [vmem:[%s7550_s7 + $0x2288] sm:$0xff] }
 0x12c   : > { %v1288_v42 = vld [vmem:[%s7550_s7 + $0x22a0] sm:$0xff]  ;;  %1285 = vst [vmem:[%s7555_s8 + $0x1140] sm:$0xff] %v1284_v40  ;;  %1287 = vst [vmem:[%s7555_s8 + $0x1148] sm:$0xff] %v1286_v41  ;;  %v1290_v43 = vld [vmem:[%s7550_s7 + $0x22a8] sm:$0xff] }
 0x12d   : > { %1289 = vst [vmem:[%s7555_s8 + $0x1150] sm:$0xff] %v1288_v42  ;;  %v1292_v44 = vld [vmem:[%s7550_s7 + $0x22c0] sm:$0xff]  ;;  %v1294_v45 = vld [vmem:[%s7550_s7 + $0x22c8] sm:$0xff]  ;;  %1291 = vst [vmem:[%s7555_s8 + $0x1158] sm:$0xff] %v1290_v43 }
 0x12e   : > { %1293 = vst [vmem:[%s7555_s8 + $0x1160] sm:$0xff] %v1292_v44  ;;  %1295 = vst [vmem:[%s7555_s8 + $0x1168] sm:$0xff] %v1294_v45  ;;  %v1296_v46 = vld [vmem:[%s7550_s7 + $0x22e0] sm:$0xff]  ;;  %v1298_v47 = vld [vmem:[%s7550_s7 + $0x22e8] sm:$0xff] }
 0x12f   : > { %v1300_v48 = vld [vmem:[%s7550_s7 + $0x2300] sm:$0xff]  ;;  %1297 = vst [vmem:[%s7555_s8 + $0x1170] sm:$0xff] %v1296_v46  ;;  %1299 = vst [vmem:[%s7555_s8 + $0x1178] sm:$0xff] %v1298_v47  ;;  %v1302_v49 = vld [vmem:[%s7550_s7 + $0x2308] sm:$0xff] }
 0x130   : > { %1301 = vst [vmem:[%s7555_s8 + $0x1180] sm:$0xff] %v1300_v48  ;;  %v1304_v50 = vld [vmem:[%s7550_s7 + $0x2320] sm:$0xff]  ;;  %v1306_v51 = vld [vmem:[%s7550_s7 + $0x2328] sm:$0xff]  ;;  %1303 = vst [vmem:[%s7555_s8 + $0x1188] sm:$0xff] %v1302_v49 }
 0x131   : > { %1305 = vst [vmem:[%s7555_s8 + $0x1190] sm:$0xff] %v1304_v50  ;;  %1307 = vst [vmem:[%s7555_s8 + $0x1198] sm:$0xff] %v1306_v51  ;;  %v1308_v52 = vld [vmem:[%s7550_s7 + $0x2340] sm:$0xff]  ;;  %v1310_v53 = vld [vmem:[%s7550_s7 + $0x2348] sm:$0xff] }
 0x132   : > { %v1312_v54 = vld [vmem:[%s7550_s7 + $0x2360] sm:$0xff]  ;;  %1309 = vst [vmem:[%s7555_s8 + $0x11a0] sm:$0xff] %v1308_v52  ;;  %1311 = vst [vmem:[%s7555_s8 + $0x11a8] sm:$0xff] %v1310_v53  ;;  %v1314_v55 = vld [vmem:[%s7550_s7 + $0x2368] sm:$0xff] }
 0x133   : > { %1313 = vst [vmem:[%s7555_s8 + $0x11b0] sm:$0xff] %v1312_v54  ;;  %v1316_v56 = vld [vmem:[%s7550_s7 + $0x2380] sm:$0xff]  ;;  %v1318_v57 = vld [vmem:[%s7550_s7 + $0x2388] sm:$0xff]  ;;  %1315 = vst [vmem:[%s7555_s8 + $0x11b8] sm:$0xff] %v1314_v55 }
 0x134   : > { %1317 = vst [vmem:[%s7555_s8 + $0x11c0] sm:$0xff] %v1316_v56  ;;  %1319 = vst [vmem:[%s7555_s8 + $0x11c8] sm:$0xff] %v1318_v57  ;;  %v1320_v58 = vld [vmem:[%s7550_s7 + $0x23a0] sm:$0xff]  ;;  %v1322_v59 = vld [vmem:[%s7550_s7 + $0x23a8] sm:$0xff] }
 0x135   : > { %v1324_v60 = vld [vmem:[%s7550_s7 + $0x23c0] sm:$0xff]  ;;  %1321 = vst [vmem:[%s7555_s8 + $0x11d0] sm:$0xff] %v1320_v58  ;;  %1323 = vst [vmem:[%s7555_s8 + $0x11d8] sm:$0xff] %v1322_v59  ;;  %v1326_v61 = vld [vmem:[%s7550_s7 + $0x23c8] sm:$0xff] }
 0x136   : > { %1325 = vst [vmem:[%s7555_s8 + $0x11e0] sm:$0xff] %v1324_v60  ;;  %v1328_v62 = vld [vmem:[%s7550_s7 + $0x23e0] sm:$0xff]  ;;  %v1330_v63 = vld [vmem:[%s7550_s7 + $0x23e8] sm:$0xff]  ;;  %1327 = vst [vmem:[%s7555_s8 + $0x11e8] sm:$0xff] %v1326_v61 }
 0x137   : > { %1329 = vst [vmem:[%s7555_s8 + $0x11f0] sm:$0xff] %v1328_v62  ;;  %1331 = vst [vmem:[%s7555_s8 + $0x11f8] sm:$0xff] %v1330_v63 }
 0x138 PF: > { %p5897_p7 = scmp.ge.s32.totalorder %s7466_s18, 1  ;;  %p1344_p8 = scmp.lt.s32.totalorder %s7466_s18, 5 }
 0x13a   : > { %p1345_p9 = pnand %p5897_p7, %p1344_p8 }
 0x13b   : > { %s1351_s9 = sand.u32 (!%p1345_p9), 1, %s7442_s12   ;;  %s1383_s10 = smul.u32 (!%p1345_p9), 18, %s7450_s14 }
 0x13c   : > { %1348 = sbr.rel (%p1345_p9) target bundleno = 1131 (0x46b), region = 51  ;;  %s5899_s21 = sshll.u32 (!%p1345_p9), %s7454_s15, 2 }
 0x13d   : > { %s6485_s11 = smul.u32 (!%p1345_p9), 4608, %s1351_s9  ;;  %p1384_p10 = scmp.lt.s32.totalorder (!%p1345_p9), %s1383_s10, 35 }
 0x13e   : > { %p1392_p11 = scmp.lt.s32.totalorder (!%p1345_p9), %s5899_s21, 7  ;;  %p5902_p12 = scmp.ne.s32.totalorder (!%p1345_p9), %s7450_s14, 0 }
 0x13f   : > { %s8728_s5 = scalar_lea.vmem (!%p1345_p9), [#allocation2], %s6485_s11 }
 0x141   : > { %s9535_s10 = smov (!%p1384_p10, %s1383_s10), 35  ;;  %s9537_s21 = smov (!%p1392_p11, %s5899_s21), 7 }
 0x142   : > { %s5898_s22 = sshll.u32 %s9535_s10, 1  ;;  %s1394_s12 = scalar_lea.vmem %s9520_s2, %s9537_s21 }
 0x143   : > { %s8716_s26 = scalar_lea.vmem %s9518_s0, %s5898_s22  ;;  %s5901_s29 = sshll.u32 %s9537_s21, 1 }
 0x144   : > { %s8726_s4 = scalar_lea.vmem %s9521_s3, %s5901_s29  ;;  %1405 = sbr.rel (%p5902_p12) target bundleno = 331 (0x14b), region = 59 }
 0x149   : > { %v7468_v0 = vmov 0.0  }
 0x14a   : > { %1406 = vst [vmem:[%s8726_s4] sm:$0xff] %v7468_v0 }
 0x14b PF: > { %v6544_v1 = vld [vmem:[%s8728_s5 + $0xe4] ss:$16 sps:$4 sm:$0xff]   ;;  %v6548_v3 = vld [vmem:[%s8728_s5 + $0xe0] ss:$16 sps:$4 sm:$0xff]   ;;  %v7469_v37 = vmov 1983009808   ;;  %v1422_v39 = vlaneseq }
 0x14c   : > { %v6546_v2 = vld [vmem:[%s8728_s5 + $0x2e4] ss:$16 sps:$4 sm:$0xff]   ;;  %4986 = vmatprep.subr.bf16.mxu0 %v6544_v1  ;;  %v6549_v4 = vld [vmem:[%s8728_s5 + $0x2e0] ss:$16 sps:$4 sm:$0xff]   ;;  %v1420_v38 = vunpack.c.l.s4 %v7469_v37  ;;  %p6480_p13 = scmp.ne.s32.totalorder %s7450_s14, 1 }
 0x14d   : > { %5027 = vmatprep.subr.bf16.mxu1 %v6546_v2  ;;  %v6550_v5 = vld [vmem:[%s8728_s5 + $0xc4] ss:$16 sps:$4 sm:$0xff]   ;;  %4987 = vmatpush1.bf16.msra.mxu0 %v6548_v3  ;;  %v6554_v7 = vld [vmem:[%s8728_s5 + $0xc0] ss:$16 sps:$4 sm:$0xff]   ;;  %v8771_v44 = vshrl.u32 %v1422_v39, 7 }
 0x14e   : > { %5028 = vmatpush1.bf16.msra.mxu1 %v6549_v4  ;;  %v6552_v6 = vld [vmem:[%s8728_s5 + $0x2c4] ss:$16 sps:$4 sm:$0xff]   ;;  %4988 = vmatprep.subr.bf16.mxu0 %v6550_v5  ;;  %v6555_v8 = vld [vmem:[%s8728_s5 + $0x2c0] ss:$16 sps:$4 sm:$0xff]   ;;  %v1421_v43 = vunpack.c.0.s8 %v1420_v38 }
 0x14f   : > { %5029 = vmatprep.subr.bf16.mxu1 %v6552_v6  ;;  %v6556_v9 = vld [vmem:[%s8728_s5 + $0xa4] ss:$16 sps:$4 sm:$0xff]   ;;  %v6560_v11 = vld [vmem:[%s8728_s5 + $0xa0] ss:$16 sps:$4 sm:$0xff]  }
 0x150   : > { %v6558_v10 = vld [vmem:[%s8728_s5 + $0x2a4] ss:$16 sps:$4 sm:$0xff]   ;;  %v6561_v12 = vld [vmem:[%s8728_s5 + $0x2a0] ss:$16 sps:$4 sm:$0xff]   ;;  %v8779_v50 = vsub.s32 %v1421_v43, %v8771_v44  ;;  %v1409_v43 = vld [vmem:[%s8716_s26 + $0x8] sm:$0xff] }
 0x151   : > { %4989 = vmatpush1.bf16.msra.mxu0 %v6554_v7  ;;  %v6562_v13 = vld [vmem:[%s8728_s5 + $0x84] ss:$16 sps:$4 sm:$0xff]   ;;  %v6566_v15 = vld [vmem:[%s8728_s5 + $0x80] ss:$16 sps:$4 sm:$0xff]  }
 0x152   : > { %5030 = vmatpush1.bf16.msra.mxu1 %v6555_v8  ;;  %4990 = vmatprep.subr.bf16.mxu0 %v6556_v9  ;;  %v6564_v14 = vld [vmem:[%s8728_s5 + $0x284] ss:$16 sps:$4 sm:$0xff]   ;;  %v6567_v16 = vld [vmem:[%s8728_s5 + $0x280] ss:$16 sps:$4 sm:$0xff]  }
 0x153   : > { %5031 = vmatprep.subr.bf16.mxu1 %v6558_v10  ;;  %v6568_v17 = vld [vmem:[%s8728_s5 + $0x64] ss:$16 sps:$4 sm:$0xff]   ;;  %v6572_v19 = vld [vmem:[%s8728_s5 + $0x60] ss:$16 sps:$4 sm:$0xff]  }
 0x154   : > { %v6570_v18 = vld [vmem:[%s8728_s5 + $0x264] ss:$16 sps:$4 sm:$0xff]   ;;  %v6573_v20 = vld [vmem:[%s8728_s5 + $0x260] ss:$16 sps:$4 sm:$0xff]  }
 0x155   : > { %4991 = vmatpush1.bf16.msra.mxu0 %v6560_v11  ;;  %v6574_v21 = vld [vmem:[%s8728_s5 + $0x44] ss:$16 sps:$4 sm:$0xff]   ;;  %v6578_v23 = vld [vmem:[%s8728_s5 + $0x40] ss:$16 sps:$4 sm:$0xff]  }
 0x156   : > { %5032 = vmatpush1.bf16.msra.mxu1 %v6561_v12  ;;  %4992 = vmatprep.subr.bf16.mxu0 %v6562_v13  ;;  %v6576_v22 = vld [vmem:[%s8728_s5 + $0x244] ss:$16 sps:$4 sm:$0xff]   ;;  %v6579_v24 = vld [vmem:[%s8728_s5 + $0x240] ss:$16 sps:$4 sm:$0xff]  }
 0x157   : > { %5033 = vmatprep.subr.bf16.mxu1 %v6564_v14  ;;  %v6580_v25 = vld [vmem:[%s8728_s5 + $0x24] ss:$16 sps:$4 sm:$0xff]   ;;  %v6584_v27 = vld [vmem:[%s8728_s5 + $0x20] ss:$16 sps:$4 sm:$0xff]  }
 0x158   : > { %v6582_v26 = vld [vmem:[%s8728_s5 + $0x224] ss:$16 sps:$4 sm:$0xff]   ;;  %v6585_v28 = vld [vmem:[%s8728_s5 + $0x220] ss:$16 sps:$4 sm:$0xff]  }
 0x159   : > { %4993 = vmatpush1.bf16.msra.mxu0 %v6566_v15  ;;  %v6586_v29 = vld [vmem:[%s8728_s5 + $0x4] ss:$16 sps:$4 sm:$0xff]   ;;  %v6590_v31 = vld [vmem:[%s8728_s5] ss:$16 sps:$4 sm:$0xff]  }
 0x15a   : > { %5034 = vmatpush1.bf16.msra.mxu1 %v6567_v16  ;;  %4994 = vmatprep.subr.bf16.mxu0 %v6568_v17  ;;  %v6588_v30 = vld [vmem:[%s8728_s5 + $0x204] ss:$16 sps:$4 sm:$0xff]   ;;  %v6591_v32 = vld [vmem:[%s8728_s5 + $0x200] ss:$16 sps:$4 sm:$0xff]  }
 0x15b   : > { %5035 = vmatprep.subr.bf16.mxu1 %v6570_v18  ;;  %v6592_v33 = vld [vmem:[%s8728_s5 + $0x1e4] ss:$16 sps:$4 sm:$0xff]   ;;  %v6596_v35 = vld [vmem:[%s8728_s5 + $0x1e0] ss:$16 sps:$4 sm:$0xff]  }
 0x15c   : > { %v6594_v34 = vld [vmem:[%s8728_s5 + $0x3e4] ss:$16 sps:$4 sm:$0xff]   ;;  %v6597_v36 = vld [vmem:[%s8728_s5 + $0x3e0] ss:$16 sps:$4 sm:$0xff]  }
 0x15d   : > { %4995 = vmatpush1.bf16.msra.mxu0 %v6572_v19  ;;  %v6598_v40 = vld [vmem:[%s8728_s5 + $0x1c4] ss:$16 sps:$4 sm:$0xff]   ;;  %v6602_v42 = vld [vmem:[%s8728_s5 + $0x1c0] ss:$16 sps:$4 sm:$0xff]  }
 0x15e   : > { %5036 = vmatpush1.bf16.msra.mxu1 %v6573_v20  ;;  %4996 = vmatprep.subr.bf16.mxu0 %v6574_v21  ;;  %v6600_v41 = vld [vmem:[%s8728_s5 + $0x3c4] ss:$16 sps:$4 sm:$0xff]   ;;  %v6603_v45 = vld [vmem:[%s8728_s5 + $0x3c0] ss:$16 sps:$4 sm:$0xff]  }
 0x15f   : > { %5037 = vmatprep.subr.bf16.mxu1 %v6576_v22  ;;  %v6604_v46 = vld [vmem:[%s8728_s5 + $0x1a4] ss:$16 sps:$4 sm:$0xff]   ;;  %v6608_v48 = vld [vmem:[%s8728_s5 + $0x1a0] ss:$16 sps:$4 sm:$0xff]  }
 0x160   : > { %v6606_v47 = vld [vmem:[%s8728_s5 + $0x3a4] ss:$16 sps:$4 sm:$0xff]   ;;  %v6609_v49 = vld [vmem:[%s8728_s5 + $0x3a0] ss:$16 sps:$4 sm:$0xff]  }
 0x161   : > { %4997 = vmatpush1.bf16.msra.mxu0 %v6578_v23  ;;  %v6610_v51 = vld [vmem:[%s8728_s5 + $0x184] ss:$16 sps:$4 sm:$0xff]   ;;  %v6614_v54 = vld [vmem:[%s8728_s5 + $0x180] ss:$16 sps:$4 sm:$0xff]  }
 0x162   : > { %5038 = vmatpush1.bf16.msra.mxu1 %v6579_v24  ;;  %4998 = vmatprep.subr.bf16.mxu0 %v6580_v25  ;;  %v6612_v52 = vld [vmem:[%s8728_s5 + $0x384] ss:$16 sps:$4 sm:$0xff]   ;;  %v6615_v57 = vld [vmem:[%s8728_s5 + $0x380] ss:$16 sps:$4 sm:$0xff]  }
 0x163   : > { %5039 = vmatprep.subr.bf16.mxu1 %v6582_v26  ;;  %v1408_v53 = vld [vmem:[%s8716_s26] sm:$0xff] }
 0x164   : > { %v1425_v55 = vrot.slane %v1408_v53, %v8779_v50  ;;  %v1418_v56 = vcombine.high %v1408_v53, %v1408_v53  ;;  %v6616_v58 = vld [vmem:[%s8728_s5 + $0x164] ss:$16 sps:$4 sm:$0xff]   ;;  %v6620_v62 = vld [vmem:[%s8728_s5 + $0x160] ss:$16 sps:$4 sm:$0xff]  }
 0x165   : > { %4999 = vmatpush1.bf16.msra.mxu0 %v6584_v27  ;;  %v6618_v59 = vld [vmem:[%s8728_s5 + $0x364] ss:$16 sps:$4 sm:$0xff]   ;;  %v6621_v1 = vld [vmem:[%s8728_s5 + $0x360] ss:$16 sps:$4 sm:$0xff]  }
 0x166   : > { %5040 = vmatpush1.bf16.msra.mxu1 %v6585_v28  ;;  %5000 = vmatprep.subr.bf16.mxu0 %v6586_v29  ;;  %v1433_v60 = vcombine.high %v1425_v55, %v1425_v55  ;;  %v1432_v61 = vrot.slane %v1418_v56, %v8779_v50  ;;  %v6622_v2 = vld [vmem:[%s8728_s5 + $0x144] ss:$16 sps:$4 sm:$0xff]   ;;  %v6626_v5 = vld [vmem:[%s8728_s5 + $0x140] ss:$16 sps:$4 sm:$0xff]   ;;  %v8812_v17 = vpack.c.bf16 %v1425_v55, %v1425_v55 }
 0x167   : > { %5041 = vmatprep.subr.bf16.mxu1 %v6588_v30  ;;  %v6624_v3 = vld [vmem:[%s8728_s5 + $0x344] ss:$16 sps:$4 sm:$0xff]   ;;  %v6627_v6 = vld [vmem:[%s8728_s5 + $0x340] ss:$16 sps:$4 sm:$0xff]  }
 0x168   : > { %v8791_v63 = vpack.c.bf16 %v1433_v60, %v1433_v60  ;;  %v1434_v0 = vcombine.high %v1432_v61, %v1432_v61  ;;  %v6628_v7 = vld [vmem:[%s8728_s5 + $0x124] ss:$16 sps:$4 sm:$0xff]   ;;  %v6632_v9 = vld [vmem:[%s8728_s5 + $0x120] ss:$16 sps:$4 sm:$0xff]   ;;  %v8814_v18 = vpack.c.bf16 %v1432_v61, %v1432_v61 }
 0x169   : > { %5001 = vmatpush1.bf16.msra.mxu0 %v6590_v31  ;;  %v6630_v8 = vld [vmem:[%s8728_s5 + $0x324] ss:$16 sps:$4 sm:$0xff]   ;;  %v6633_v10 = vld [vmem:[%s8728_s5 + $0x320] ss:$16 sps:$4 sm:$0xff]  }
 0x16a   : > { %5042 = vmatpush1.bf16.msra.mxu1 %v6591_v32  ;;  %5002 = vmatprep.subr.bf16.mxu0 %v6592_v33  ;;  %v8796_v4 = vpack.c.bf16 %v1434_v0, %v1434_v0  ;;  %v6634_v11 = vld [vmem:[%s8728_s5 + $0x104] ss:$16 sps:$4 sm:$0xff]   ;;  %v6638_v13 = vld [vmem:[%s8728_s5 + $0x100] ss:$16 sps:$4 sm:$0xff]  }
 0x16b   : > { %5043 = vmatprep.subr.bf16.mxu1 %v6594_v34  ;;  %5018 = vmatprep.mubr.bf16.mxu0 %v8791_v63  ;;  %v6636_v12 = vld [vmem:[%s8728_s5 + $0x304] ss:$16 sps:$4 sm:$0xff]   ;;  %v6639_v14 = vld [vmem:[%s8728_s5 + $0x300] ss:$16 sps:$4 sm:$0xff]  }
 0x16c   : > { %5059 = vmatprep.mubr.bf16.mxu1 %v8796_v4  ;;  %v6643_v15 = vld [vmem:[%s8728_s5 + $0x4e4] ss:$16 sps:$4 sm:$0xff]   ;;  %v6641_v19 = vld [vmem:[%s8728_s5 + $0x4e0] ss:$16 sps:$4 sm:$0xff]  }
 0x16d   : > { %5003 = vmatpush2.bf16.msra.mxu0 %v6596_v35  ;;  %v6646_v16 = vld [vmem:[%s8728_s5 + $0x6e4] ss:$16 sps:$4 sm:$0xff]   ;;  %v6644_v20 = vld [vmem:[%s8728_s5 + $0x6e0] ss:$16 sps:$4 sm:$0xff]  }
 0x16e   : > { %5044 = vmatpush2.bf16.msra.mxu1 %v6597_v36  ;;  %5004 = vmatprep.subr.bf16.mxu0 %v6598_v40  ;;  %v6649_v21 = vld [vmem:[%s8728_s5 + $0x4c4] ss:$16 sps:$4 sm:$0xff]   ;;  %v6647_v23 = vld [vmem:[%s8728_s5 + $0x4c0] ss:$16 sps:$4 sm:$0xff]  }
 0x16f   : > { %5045 = vmatprep.subr.bf16.mxu1 %v6600_v41  ;;  %v6652_v22 = vld [vmem:[%s8728_s5 + $0x6c4] ss:$16 sps:$4 sm:$0xff]   ;;  %v6650_v24 = vld [vmem:[%s8728_s5 + $0x6c0] ss:$16 sps:$4 sm:$0xff]  }
 0x170   : > { %v6655_v25 = vld [vmem:[%s8728_s5 + $0x4a4] ss:$16 sps:$4 sm:$0xff]   ;;  %v6653_v27 = vld [vmem:[%s8728_s5 + $0x4a0] ss:$16 sps:$4 sm:$0xff]  }
 0x171   : > { %5005 = vmatpush2.bf16.msra.mxu0 %v6602_v42  ;;  %v6658_v26 = vld [vmem:[%s8728_s5 + $0x6a4] ss:$16 sps:$4 sm:$0xff]   ;;  %v6656_v28 = vld [vmem:[%s8728_s5 + $0x6a0] ss:$16 sps:$4 sm:$0xff]  }
 0x172   : > { %5046 = vmatpush2.bf16.msra.mxu1 %v6603_v45  ;;  %5006 = vmatprep.subr.bf16.mxu0 %v6604_v46  ;;  %v6661_v29 = vld [vmem:[%s8728_s5 + $0x484] ss:$16 sps:$4 sm:$0xff]   ;;  %v6659_v31 = vld [vmem:[%s8728_s5 + $0x480] ss:$16 sps:$4 sm:$0xff]   ;;  %v8844_v45 = vrot.slane %v1409_v43, %v8779_v50  ;;  %v1435_v46 = vcombine.high %v1409_v43, %v1409_v43 }
 0x173   : > { %5047 = vmatprep.subr.bf16.mxu1 %v6606_v47  ;;  %v6664_v30 = vld [vmem:[%s8728_s5 + $0x684] ss:$16 sps:$4 sm:$0xff]   ;;  %v6662_v32 = vld [vmem:[%s8728_s5 + $0x680] ss:$16 sps:$4 sm:$0xff]  }
 0x174   : > { %v6667_v33 = vld [vmem:[%s8728_s5 + $0x464] ss:$16 sps:$4 sm:$0xff]   ;;  %v6665_v35 = vld [vmem:[%s8728_s5 + $0x460] ss:$16 sps:$4 sm:$0xff]  }
 0x175   : > { %5007 = vmatpush2.bf16.msra.mxu0 %v6608_v48  ;;  %v6670_v34 = vld [vmem:[%s8728_s5 + $0x664] ss:$16 sps:$4 sm:$0xff]   ;;  %v6668_v36 = vld [vmem:[%s8728_s5 + $0x660] ss:$16 sps:$4 sm:$0xff]  }
 0x176   : > { %5048 = vmatpush2.bf16.msra.mxu1 %v6609_v49  ;;  %5008 = vmatprep.subr.bf16.mxu0 %v6610_v51  ;;  %v6673_v37 = vld [vmem:[%s8728_s5 + $0x444] ss:$16 sps:$4 sm:$0xff]   ;;  %v6671_v39 = vld [vmem:[%s8728_s5 + $0x440] ss:$16 sps:$4 sm:$0xff]   ;;  %v1450_v49 = vcombine.high %v8844_v45, %v8844_v45  ;;  %v8851_v51 = vrot.slane %v1435_v46, %v8779_v50 }
 0x177   : > { %5049 = vmatprep.subr.bf16.mxu1 %v6612_v52  ;;  %v6676_v38 = vld [vmem:[%s8728_s5 + $0x644] ss:$16 sps:$4 sm:$0xff]   ;;  %v6674_v40 = vld [vmem:[%s8728_s5 + $0x640] ss:$16 sps:$4 sm:$0xff]  }
 0x178   : > { %v6679_v41 = vld [vmem:[%s8728_s5 + $0x424] ss:$16 sps:$4 sm:$0xff]   ;;  %v6677_v47 = vld [vmem:[%s8728_s5 + $0x420] ss:$16 sps:$4 sm:$0xff]   ;;  %v1451_v55 = vcombine.high %v8851_v51, %v8851_v51 }
 0x179   : > { %5009 = vmatpush2.bf16.msra.mxu0 %v6614_v54  ;;  %v6682_v42 = vld [vmem:[%s8728_s5 + $0x624] ss:$16 sps:$4 sm:$0xff]   ;;  %v6680_v48 = vld [vmem:[%s8728_s5 + $0x620] ss:$16 sps:$4 sm:$0xff]   ;;  %v8855_v54 = vpack.c.bf16 %v1450_v49, %v1450_v49 }
 0x17a   : > { %5050 = vmatpush2.bf16.msra.mxu1 %v6615_v57  ;;  %5010 = vmatprep.subr.bf16.mxu0 %v6616_v58  ;;  %v6685_v52 = vld [vmem:[%s8728_s5 + $0x404] ss:$16 sps:$4 sm:$0xff]   ;;  %v6683_v56 = vld [vmem:[%s8728_s5 + $0x400] ss:$16 sps:$4 sm:$0xff]   ;;  %v8861_v58 = vpack.c.bf16 %v1451_v55, %v1451_v55 }
 0x17b   : > { %5051 = vmatprep.subr.bf16.mxu1 %v6618_v59  ;;  %v6688_v53 = vld [vmem:[%s8728_s5 + $0x604] ss:$16 sps:$4 sm:$0xff]   ;;  %v6686_v57 = vld [vmem:[%s8728_s5 + $0x600] ss:$16 sps:$4 sm:$0xff]  }
 0x17c   : > { %v6691_v59 = vld [vmem:[%s8728_s5 + $0x5e4] ss:$16 sps:$4 sm:$0xff]   ;;  %v6689_v61 = vld [vmem:[%s8728_s5 + $0x5e0] ss:$16 sps:$4 sm:$0xff]  }
 0x17d   : > { %5011 = vmatpush2.bf16.msra.mxu0 %v6620_v62  ;;  %v6694_v60 = vld [vmem:[%s8728_s5 + $0x7e4] ss:$16 sps:$4 sm:$0xff]   ;;  %v6692_v62 = vld [vmem:[%s8728_s5 + $0x7e0] ss:$16 sps:$4 sm:$0xff]  }
 0x17e   : > { %5052 = vmatpush2.bf16.msra.mxu1 %v6621_v1  ;;  %5012 = vmatprep.subr.bf16.mxu0 %v6622_v2  ;;  %v6697_v0 = vld [vmem:[%s8728_s5 + $0x5c4] ss:$16 sps:$4 sm:$0xff]   ;;  %v6695_v2 = vld [vmem:[%s8728_s5 + $0x5c0] ss:$16 sps:$4 sm:$0xff]  }
 0x17f   : > { %5053 = vmatprep.subr.bf16.mxu1 %v6624_v3  ;;  %v6700_v1 = vld [vmem:[%s8728_s5 + $0x7c4] ss:$16 sps:$4 sm:$0xff]   ;;  %v6698_v3 = vld [vmem:[%s8728_s5 + $0x7c0] ss:$16 sps:$4 sm:$0xff]  }
 0x180   : > { %v6747_v46 = vld [vmem:[%s8728_s5 + $0xac0] ss:$16 sps:$4 sm:$0xff]  }
 0x181   : > { %5013 = vmatpush2.bf16.msra.mxu0 %v6626_v5  ;;  %v6703_v5 = vld [vmem:[%s8728_s5 + $0x5a4] ss:$16 sps:$4 sm:$0xff]   ;;  %v6753_v55 = vld [vmem:[%s8728_s5 + $0xaa0] ss:$16 sps:$4 sm:$0xff]  }
 0x182   : > { %5054 = vmatpush2.bf16.msra.mxu1 %v6627_v6  ;;  %5014 = vmatprep.subr.bf16.mxu0 %v6628_v7  ;;  %v6706_v6 = vld [vmem:[%s8728_s5 + $0x7a4] ss:$16 sps:$4 sm:$0xff]   ;;  %v6701_v7 = vld [vmem:[%s8728_s5 + $0x5a0] ss:$16 sps:$4 sm:$0xff]  }
 0x183   : > { %5055 = vmatprep.subr.bf16.mxu1 %v6630_v8  ;;  %v6704_v8 = vld [vmem:[%s8728_s5 + $0x7a0] ss:$16 sps:$4 sm:$0xff]  }
 0x185   : > { %5015 = vmatpush2.bf16.msra.mxu0 %v6632_v9  ;;  %v6709_v9 = vld [vmem:[%s8728_s5 + $0x584] ss:$16 sps:$4 sm:$0xff]  }
 0x186   : > { %5056 = vmatpush2.bf16.msra.mxu1 %v6633_v10  ;;  %5016 = vmatprep.subr.bf16.mxu0 %v6634_v11  ;;  %v6712_v10 = vld [vmem:[%s8728_s5 + $0x784] ss:$16 sps:$4 sm:$0xff]   ;;  %v6707_v11 = vld [vmem:[%s8728_s5 + $0x580] ss:$16 sps:$4 sm:$0xff]  }
 0x187   : > { %5057 = vmatprep.subr.bf16.mxu1 %v6636_v12  ;;  %v6710_v12 = vld [vmem:[%s8728_s5 + $0x780] ss:$16 sps:$4 sm:$0xff]  }
 0x189   : > { %5017 = vmatpush2.bf16.msra.mxu0 %v6638_v13  ;;  %v6715_v13 = vld [vmem:[%s8728_s5 + $0x564] ss:$16 sps:$4 sm:$0xff]  }
 0x18a   : > { %5058 = vmatpush2.bf16.msra.mxu1 %v6639_v14  ;;  %5068 = vmatprep.subr.bf16.mxu0 %v6643_v15  ;;  %v6718_v14 = vld [vmem:[%s8728_s5 + $0x764] ss:$16 sps:$4 sm:$0xff]   ;;  %v6713_v15 = vld [vmem:[%s8728_s5 + $0x560] ss:$16 sps:$4 sm:$0xff]  }
 0x18b   : > { %5109 = vmatprep.subr.bf16.mxu1 %v6646_v16  ;;  %v6716_v16 = vld [vmem:[%s8728_s5 + $0x760] ss:$16 sps:$4 sm:$0xff]  }
 0x18c   : > { %5019 = vmatmul.mubr.bf16.vlgmr.msra.gmra.mxu0 %v8812_v17 }
 0x18d   : > { %5060 = vmatmul.mubr.bf16.vlgmr.msra.gmra.mxu1 %v8814_v18  ;;  %5069 = vmatpush1.bf16.msra.mxu0 %v6641_v19  ;;  %v6721_v19 = vld [vmem:[%s8728_s5 + $0x544] ss:$16 sps:$4 sm:$0xff]  }
 0x18e   : > { %5110 = vmatpush1.bf16.msra.mxu1 %v6644_v20  ;;  %5070 = vmatprep.subr.bf16.mxu0 %v6649_v21  ;;  %v6724_v20 = vld [vmem:[%s8728_s5 + $0x744] ss:$16 sps:$4 sm:$0xff]   ;;  %v6719_v21 = vld [vmem:[%s8728_s5 + $0x540] ss:$16 sps:$4 sm:$0xff]  }
 0x18f   : > { %5111 = vmatprep.subr.bf16.mxu1 %v6652_v22  ;;  %5100 = vmatprep.mubr.bf16.mxu0 %v8855_v54  ;;  %v6722_v22 = vld [vmem:[%s8728_s5 + $0x740] ss:$16 sps:$4 sm:$0xff]  }
 0x190   : > { %5141 = vmatprep.mubr.bf16.mxu1 %v8861_v58 }
 0x191   : > { %5071 = vmatpush1.bf16.msra.mxu0 %v6647_v23  ;;  %v6727_v23 = vld [vmem:[%s8728_s5 + $0x524] ss:$16 sps:$4 sm:$0xff]  }
 0x192   : > { %5112 = vmatpush1.bf16.msra.mxu1 %v6650_v24  ;;  %5072 = vmatprep.subr.bf16.mxu0 %v6655_v25  ;;  %v6730_v24 = vld [vmem:[%s8728_s5 + $0x724] ss:$16 sps:$4 sm:$0xff]   ;;  %v6725_v25 = vld [vmem:[%s8728_s5 + $0x520] ss:$16 sps:$4 sm:$0xff]  }
 0x193   : > { %5113 = vmatprep.subr.bf16.mxu1 %v6658_v26  ;;  %v6728_v26 = vld [vmem:[%s8728_s5 + $0x720] ss:$16 sps:$4 sm:$0xff]  }
 0x195   : > { %5073 = vmatpush1.bf16.msra.mxu0 %v6653_v27  ;;  %v6733_v27 = vld [vmem:[%s8728_s5 + $0x504] ss:$16 sps:$4 sm:$0xff]  }
 0x196   : > { %5114 = vmatpush1.bf16.msra.mxu1 %v6656_v28  ;;  %5074 = vmatprep.subr.bf16.mxu0 %v6661_v29  ;;  %v6736_v28 = vld [vmem:[%s8728_s5 + $0x704] ss:$16 sps:$4 sm:$0xff]   ;;  %v6731_v29 = vld [vmem:[%s8728_s5 + $0x500] ss:$16 sps:$4 sm:$0xff]  }
 0x197   : > { %5115 = vmatprep.subr.bf16.mxu1 %v6664_v30  ;;  %v6734_v30 = vld [vmem:[%s8728_s5 + $0x700] ss:$16 sps:$4 sm:$0xff]  }
 0x199   : > { %5075 = vmatpush1.bf16.msra.mxu0 %v6659_v31  ;;  %v6740_v31 = vld [vmem:[%s8728_s5 + $0x8e4] ss:$16 sps:$4 sm:$0xff]  }
 0x19a   : > { %5116 = vmatpush1.bf16.msra.mxu1 %v6662_v32  ;;  %5076 = vmatprep.subr.bf16.mxu0 %v6667_v33  ;;  %v6743_v32 = vld [vmem:[%s8728_s5 + $0xae4] ss:$16 sps:$4 sm:$0xff]   ;;  %v8901_v33 = vpack.c.bf16 %v8844_v45, %v8844_v45 }
 0x19b   : > { %5117 = vmatprep.subr.bf16.mxu1 %v6670_v34  ;;  %v8905_v34 = vpack.c.bf16 %v8851_v51, %v8851_v51 }
 0x19d   : > { %5077 = vmatpush1.bf16.msra.mxu0 %v6665_v35  ;;  %v6738_v35 = vld [vmem:[%s8728_s5 + $0x8e0] ss:$16 sps:$4 sm:$0xff]  }
 0x19e   : > { %5118 = vmatpush1.bf16.msra.mxu1 %v6668_v36  ;;  %5078 = vmatprep.subr.bf16.mxu0 %v6673_v37  ;;  %v6741_v36 = vld [vmem:[%s8728_s5 + $0xae0] ss:$16 sps:$4 sm:$0xff]   ;;  %v6746_v37 = vld [vmem:[%s8728_s5 + $0x8c4] ss:$16 sps:$4 sm:$0xff]  }
 0x19f   : > { %5119 = vmatprep.subr.bf16.mxu1 %v6676_v38  ;;  %v1410_v38 = vld [vmem:[%s8716_s26 + $0x10] sm:$0xff] }
 0x1a1   : > { %5079 = vmatpush1.bf16.msra.mxu0 %v6671_v39  ;;  %v6749_v39 = vld [vmem:[%s8728_s5 + $0xac4] ss:$16 sps:$4 sm:$0xff]  }
 0x1a2   : > { %5120 = vmatpush1.bf16.msra.mxu1 %v6674_v40  ;;  %5080 = vmatprep.subr.bf16.mxu0 %v6679_v41  ;;  %v8913_v40 = vrot.slane %v1410_v38, %v8779_v50  ;;  %v1452_v41 = vcombine.high %v1410_v38, %v1410_v38  ;;  %v6813_v38 = vld [vmem:[%s8728_s5 + $0xb60] ss:$16 sps:$4 sm:$0xff]  }
 0x1a3   : > { %5121 = vmatprep.subr.bf16.mxu1 %v6682_v42  ;;  %v6744_v42 = vld [vmem:[%s8728_s5 + $0x8c0] ss:$16 sps:$4 sm:$0xff]  }
 0x1a4   : > { %v1467_v43 = vcombine.high %v8913_v40, %v8913_v40  ;;  %v8921_v45 = vrot.slane %v1452_v41, %v8779_v50  ;;  %v6821_v41 = vld [vmem:[%s8728_s5 + $0xb44] ss:$16 sps:$4 sm:$0xff]  }
 0x1a5   : > { %5081 = vmatpush1.bf16.msra.mxu0 %v6677_v47  ;;  %v6752_v47 = vld [vmem:[%s8728_s5 + $0x8a4] ss:$16 sps:$4 sm:$0xff]  }
 0x1a6   : > { %5122 = vmatpush1.bf16.msra.mxu1 %v6680_v48  ;;  %5082 = vmatprep.subr.bf16.mxu0 %v6685_v52  ;;  %v6755_v48 = vld [vmem:[%s8728_s5 + $0xaa4] ss:$16 sps:$4 sm:$0xff]   ;;  %v8926_v49 = vpack.c.bf16 %v1467_v43, %v1467_v43  ;;  %v1468_v51 = vcombine.high %v8921_v45, %v8921_v45  ;;  %v6750_v52 = vld [vmem:[%s8728_s5 + $0x8a0] ss:$16 sps:$4 sm:$0xff]  }
 0x1a7   : > { %5123 = vmatprep.subr.bf16.mxu1 %v6688_v53  ;;  %v6819_v43 = vld [vmem:[%s8728_s5 + $0xb40] ss:$16 sps:$4 sm:$0xff]  }
 0x1a8   : > { %v8932_v53 = vpack.c.bf16 %v1468_v51, %v1468_v51 }
 0x1a9   : > { %5083 = vmatpush1.bf16.msra.mxu0 %v6683_v56  ;;  %v6758_v56 = vld [vmem:[%s8728_s5 + $0x884] ss:$16 sps:$4 sm:$0xff]  }
 0x1aa   : > { %5124 = vmatpush1.bf16.msra.mxu1 %v6686_v57  ;;  %5084 = vmatprep.subr.bf16.mxu0 %v6691_v59  ;;  %v6761_v57 = vld [vmem:[%s8728_s5 + $0xa84] ss:$16 sps:$4 sm:$0xff]   ;;  %v6756_v59 = vld [vmem:[%s8728_s5 + $0x880] ss:$16 sps:$4 sm:$0xff]  }
 0x1ab   : > { %5125 = vmatprep.subr.bf16.mxu1 %v6694_v60  ;;  %v6759_v60 = vld [vmem:[%s8728_s5 + $0xa80] ss:$16 sps:$4 sm:$0xff]  }
 0x1ad   : > { %5085 = vmatpush2.bf16.msra.mxu0 %v6689_v61  ;;  %v6764_v61 = vld [vmem:[%s8728_s5 + $0x864] ss:$16 sps:$4 sm:$0xff]  }
 0x1ae   : > { %5126 = vmatpush2.bf16.msra.mxu1 %v6692_v62  ;;  %5086 = vmatprep.subr.bf16.mxu0 %v6697_v0  ;;  %v6767_v62 = vld [vmem:[%s8728_s5 + $0xa64] ss:$16 sps:$4 sm:$0xff]   ;;  %v6762_v0 = vld [vmem:[%s8728_s5 + $0x860] ss:$16 sps:$4 sm:$0xff]  }
 0x1af   : > { %5127 = vmatprep.subr.bf16.mxu1 %v6700_v1  ;;  %v6765_v1 = vld [vmem:[%s8728_s5 + $0xa60] ss:$16 sps:$4 sm:$0xff]  }
 0x1b1   : > { %5087 = vmatpush2.bf16.msra.mxu0 %v6695_v2  ;;  %v6770_v2 = vld [vmem:[%s8728_s5 + $0x844] ss:$16 sps:$4 sm:$0xff]  }
 0x1b2   : > { %5128 = vmatpush2.bf16.msra.mxu1 %v6698_v3  ;;  %5088 = vmatprep.subr.bf16.mxu0 %v6703_v5  ;;  %v6773_v3 = vld [vmem:[%s8728_s5 + $0xa44] ss:$16 sps:$4 sm:$0xff]   ;;  %v6768_v5 = vld [vmem:[%s8728_s5 + $0x840] ss:$16 sps:$4 sm:$0xff]  }
 0x1b3   : > { %5129 = vmatprep.subr.bf16.mxu1 %v6706_v6  ;;  %v6771_v6 = vld [vmem:[%s8728_s5 + $0xa40] ss:$16 sps:$4 sm:$0xff]  }
 0x1b5   : > { %5089 = vmatpush2.bf16.msra.mxu0 %v6701_v7  ;;  %v6776_v7 = vld [vmem:[%s8728_s5 + $0x824] ss:$16 sps:$4 sm:$0xff]  }
 0x1b6   : > { %5130 = vmatpush2.bf16.msra.mxu1 %v6704_v8  ;;  %5090 = vmatprep.subr.bf16.mxu0 %v6709_v9  ;;  %v6779_v8 = vld [vmem:[%s8728_s5 + $0xa24] ss:$16 sps:$4 sm:$0xff]   ;;  %v6774_v9 = vld [vmem:[%s8728_s5 + $0x820] ss:$16 sps:$4 sm:$0xff]  }
 0x1b7   : > { %5131 = vmatprep.subr.bf16.mxu1 %v6712_v10  ;;  %v6777_v10 = vld [vmem:[%s8728_s5 + $0xa20] ss:$16 sps:$4 sm:$0xff]  }
 0x1b9   : > { %5091 = vmatpush2.bf16.msra.mxu0 %v6707_v11  ;;  %v6782_v11 = vld [vmem:[%s8728_s5 + $0x804] ss:$16 sps:$4 sm:$0xff]  }
 0x1ba   : > { %5132 = vmatpush2.bf16.msra.mxu1 %v6710_v12  ;;  %5092 = vmatprep.subr.bf16.mxu0 %v6715_v13  ;;  %v6785_v12 = vld [vmem:[%s8728_s5 + $0xa04] ss:$16 sps:$4 sm:$0xff]   ;;  %v6780_v13 = vld [vmem:[%s8728_s5 + $0x800] ss:$16 sps:$4 sm:$0xff]  }
 0x1bb   : > { %5133 = vmatprep.subr.bf16.mxu1 %v6718_v14  ;;  %v6783_v14 = vld [vmem:[%s8728_s5 + $0xa00] ss:$16 sps:$4 sm:$0xff]  }
 0x1bd   : > { %5093 = vmatpush2.bf16.msra.mxu0 %v6713_v15  ;;  %v6788_v15 = vld [vmem:[%s8728_s5 + $0x9e4] ss:$16 sps:$4 sm:$0xff]  }
 0x1be   : > { %5134 = vmatpush2.bf16.msra.mxu1 %v6716_v16  ;;  %5094 = vmatprep.subr.bf16.mxu0 %v6721_v19  ;;  %v6791_v16 = vld [vmem:[%s8728_s5 + $0xbe4] ss:$16 sps:$4 sm:$0xff]   ;;  %v6786_v19 = vld [vmem:[%s8728_s5 + $0x9e0] ss:$16 sps:$4 sm:$0xff]  }
 0x1bf   : > { %5135 = vmatprep.subr.bf16.mxu1 %v6724_v20  ;;  %v6789_v20 = vld [vmem:[%s8728_s5 + $0xbe0] ss:$16 sps:$4 sm:$0xff]  }
 0x1c1   : > { %5095 = vmatpush2.bf16.msra.mxu0 %v6719_v21  ;;  %v6794_v21 = vld [vmem:[%s8728_s5 + $0x9c4] ss:$16 sps:$4 sm:$0xff]  }
 0x1c2   : > { %5136 = vmatpush2.bf16.msra.mxu1 %v6722_v22  ;;  %5096 = vmatprep.subr.bf16.mxu0 %v6727_v23  ;;  %v6797_v22 = vld [vmem:[%s8728_s5 + $0xbc4] ss:$16 sps:$4 sm:$0xff]   ;;  %v6792_v23 = vld [vmem:[%s8728_s5 + $0x9c0] ss:$16 sps:$4 sm:$0xff]  }
 0x1c3   : > { %5137 = vmatprep.subr.bf16.mxu1 %v6730_v24  ;;  %v6795_v24 = vld [vmem:[%s8728_s5 + $0xbc0] ss:$16 sps:$4 sm:$0xff]  }
 0x1c5   : > { %5097 = vmatpush2.bf16.msra.mxu0 %v6725_v25  ;;  %v6800_v25 = vld [vmem:[%s8728_s5 + $0x9a4] ss:$16 sps:$4 sm:$0xff]  }
 0x1c6   : > { %5138 = vmatpush2.bf16.msra.mxu1 %v6728_v26  ;;  %5098 = vmatprep.subr.bf16.mxu0 %v6733_v27  ;;  %v6803_v26 = vld [vmem:[%s8728_s5 + $0xba4] ss:$16 sps:$4 sm:$0xff]   ;;  %v6798_v27 = vld [vmem:[%s8728_s5 + $0x9a0] ss:$16 sps:$4 sm:$0xff]  }
 0x1c7   : > { %5139 = vmatprep.subr.bf16.mxu1 %v6736_v28  ;;  %v6801_v28 = vld [vmem:[%s8728_s5 + $0xba0] ss:$16 sps:$4 sm:$0xff]  }
 0x1c9   : > { %5099 = vmatpush2.bf16.msra.mxu0 %v6731_v29  ;;  %v6806_v29 = vld [vmem:[%s8728_s5 + $0x984] ss:$16 sps:$4 sm:$0xff]  }
 0x1ca   : > { %5140 = vmatpush2.bf16.msra.mxu1 %v6734_v30  ;;  %5150 = vmatprep.subr.bf16.mxu0 %v6740_v31  ;;  %v6809_v30 = vld [vmem:[%s8728_s5 + $0xb84] ss:$16 sps:$4 sm:$0xff]   ;;  %v6804_v31 = vld [vmem:[%s8728_s5 + $0x980] ss:$16 sps:$4 sm:$0xff]  }
 0x1cb   : > { %5191 = vmatprep.subr.bf16.mxu1 %v6743_v32  ;;  %v6807_v32 = vld [vmem:[%s8728_s5 + $0xb80] ss:$16 sps:$4 sm:$0xff]  }
 0x1cc   : > { %5101 = vmatmul.mubr.bf16.vlgmr.msra.gmra.mxu0 %v8901_v33 }
 0x1cd   : > { %5142 = vmatmul.mubr.bf16.vlgmr.msra.gmra.mxu1 %v8905_v34  ;;  %5151 = vmatpush1.bf16.msra.mxu0 %v6738_v35  ;;  %v6812_v35 = vld [vmem:[%s8728_s5 + $0x964] ss:$16 sps:$4 sm:$0xff]  }
 0x1ce   : > { %5192 = vmatpush1.bf16.msra.mxu1 %v6741_v36  ;;  %5152 = vmatprep.subr.bf16.mxu0 %v6746_v37  ;;  %v6815_v36 = vld [vmem:[%s8728_s5 + $0xb64] ss:$16 sps:$4 sm:$0xff]   ;;  %v6810_v37 = vld [vmem:[%s8728_s5 + $0x960] ss:$16 sps:$4 sm:$0xff]  }
 0x1cf   : > { %5193 = vmatprep.subr.bf16.mxu1 %v6749_v39  ;;  %5182 = vmatprep.mubr.bf16.mxu0 %v8926_v49  ;;  %v6818_v39 = vld [vmem:[%s8728_s5 + $0x944] ss:$16 sps:$4 sm:$0xff]  }
 0x1d0   : > { %5223 = vmatprep.mubr.bf16.mxu1 %v8932_v53 }
 0x1d1   : > { %5153 = vmatpush1.bf16.msra.mxu0 %v6744_v42  ;;  %v6816_v42 = vld [vmem:[%s8728_s5 + $0x940] ss:$16 sps:$4 sm:$0xff]  }
 0x1d2   : > { %5194 = vmatpush1.bf16.msra.mxu1 %v6747_v46  ;;  %5154 = vmatprep.subr.bf16.mxu0 %v6752_v47  ;;  %v1411_v46 = vld [vmem:[%s8716_s26 + $0x18] sm:$0xff]  ;;  %v6824_v47 = vld [vmem:[%s8728_s5 + $0x924] ss:$16 sps:$4 sm:$0xff]  }
 0x1d3   : > { %5195 = vmatprep.subr.bf16.mxu1 %v6755_v48  ;;  %v6827_v48 = vld [vmem:[%s8728_s5 + $0xb24] ss:$16 sps:$4 sm:$0xff]   ;;  %v1469_v51 = vcombine.high %v1411_v46, %v1411_v46 }
 0x1d5   : > { %5155 = vmatpush1.bf16.msra.mxu0 %v6750_v52  ;;  %v6822_v52 = vld [vmem:[%s8728_s5 + $0x920] ss:$16 sps:$4 sm:$0xff]  }
 0x1d6   : > { %5196 = vmatpush1.bf16.msra.mxu1 %v6753_v55  ;;  %5156 = vmatprep.subr.bf16.mxu0 %v6758_v56  ;;  %v6825_v55 = vld [vmem:[%s8728_s5 + $0xb20] ss:$16 sps:$4 sm:$0xff]   ;;  %v6830_v56 = vld [vmem:[%s8728_s5 + $0x904] ss:$16 sps:$4 sm:$0xff]  }
 0x1d7   : > { %5197 = vmatprep.subr.bf16.mxu1 %v6761_v57  ;;  %v6833_v57 = vld [vmem:[%s8728_s5 + $0xb04] ss:$16 sps:$4 sm:$0xff]  }
 0x1d9   : > { %5157 = vmatpush1.bf16.msra.mxu0 %v6756_v59  ;;  %v8988_v59 = vrot.slane %v1411_v46, %v8779_v50  ;;  %v6883_v46 = vld [vmem:[%s8728_s5 + $0xde0] ss:$16 sps:$4 sm:$0xff]  }
 0x1da   : > { %5198 = vmatpush1.bf16.msra.mxu1 %v6759_v60  ;;  %5158 = vmatprep.subr.bf16.mxu0 %v6764_v61  ;;  %v8991_v60 = vrot.slane %v1469_v51, %v8779_v50  ;;  %v6828_v61 = vld [vmem:[%s8728_s5 + $0x900] ss:$16 sps:$4 sm:$0xff]   ;;  %v6894_v51 = vld [vmem:[%s8728_s5 + $0xfc4] ss:$16 sps:$4 sm:$0xff]  }
 0x1db   : > { %5199 = vmatprep.subr.bf16.mxu1 %v6767_v62  ;;  %v6831_v62 = vld [vmem:[%s8728_s5 + $0xb00] ss:$16 sps:$4 sm:$0xff]  }
 0x1dd   : > { %5159 = vmatpush1.bf16.msra.mxu0 %v6762_v0  ;;  %v6837_v0 = vld [vmem:[%s8728_s5 + $0xce4] ss:$16 sps:$4 sm:$0xff]  }
 0x1de   : > { %5200 = vmatpush1.bf16.msra.mxu1 %v6765_v1  ;;  %5160 = vmatprep.subr.bf16.mxu0 %v6770_v2  ;;  %v6840_v1 = vld [vmem:[%s8728_s5 + $0xee4] ss:$16 sps:$4 sm:$0xff]   ;;  %v1484_v2 = vcombine.high %v8988_v59, %v8988_v59 }
 0x1df   : > { %5201 = vmatprep.subr.bf16.mxu1 %v6773_v3  ;;  %v1485_v3 = vcombine.high %v8991_v60, %v8991_v60 }
 0x1e1   : > { %5161 = vmatpush1.bf16.msra.mxu0 %v6768_v5  ;;  %v9003_v5 = vpack.c.bf16 %v8913_v40, %v8913_v40  ;;  %v9015_v40 = vpack.c.bf16 %v1485_v3, %v1485_v3  ;;  %v6904_v3 = vld [vmem:[%s8728_s5 + $0xf80] ss:$16 sps:$4 sm:$0xff]  }
 0x1e2   : > { %5202 = vmatpush1.bf16.msra.mxu1 %v6771_v6  ;;  %5162 = vmatprep.subr.bf16.mxu0 %v6776_v7  ;;  %v9007_v6 = vpack.c.bf16 %v8921_v45, %v8921_v45  ;;  %v6835_v7 = vld [vmem:[%s8728_s5 + $0xce0] ss:$16 sps:$4 sm:$0xff]  }
 0x1e3   : > { %5203 = vmatprep.subr.bf16.mxu1 %v6779_v8  ;;  %v6838_v8 = vld [vmem:[%s8728_s5 + $0xee0] ss:$16 sps:$4 sm:$0xff]  }
 0x1e4   : > { %v6841_v45 = vld [vmem:[%s8728_s5 + $0xcc0] ss:$16 sps:$4 sm:$0xff]  }
 0x1e5   : > { %5163 = vmatpush1.bf16.msra.mxu0 %v6774_v9  ;;  %v6843_v9 = vld [vmem:[%s8728_s5 + $0xcc4] ss:$16 sps:$4 sm:$0xff]  }
 0x1e6   : > { %5204 = vmatpush1.bf16.msra.mxu1 %v6777_v10  ;;  %5164 = vmatprep.subr.bf16.mxu0 %v6782_v11  ;;  %v6846_v10 = vld [vmem:[%s8728_s5 + $0xec4] ss:$16 sps:$4 sm:$0xff]   ;;  %v9013_v11 = vpack.c.bf16 %v1484_v2, %v1484_v2  ;;  %v6901_v2 = vld [vmem:[%s8728_s5 + $0xd80] ss:$16 sps:$4 sm:$0xff]  }
 0x1e7   : > { %5205 = vmatprep.subr.bf16.mxu1 %v6785_v12  ;;  %v6844_v12 = vld [vmem:[%s8728_s5 + $0xec0] ss:$16 sps:$4 sm:$0xff]  }
 0x1e9   : > { %5165 = vmatpush1.bf16.msra.mxu0 %v6780_v13  ;;  %v6849_v13 = vld [vmem:[%s8728_s5 + $0xca4] ss:$16 sps:$4 sm:$0xff]  }
 0x1ea   : > { %5206 = vmatpush1.bf16.msra.mxu1 %v6783_v14  ;;  %5166 = vmatprep.subr.bf16.mxu0 %v6788_v15  ;;  %v6852_v14 = vld [vmem:[%s8728_s5 + $0xea4] ss:$16 sps:$4 sm:$0xff]   ;;  %v6847_v15 = vld [vmem:[%s8728_s5 + $0xca0] ss:$16 sps:$4 sm:$0xff]  }
 0x1eb   : > { %5207 = vmatprep.subr.bf16.mxu1 %v6791_v16  ;;  %v6850_v16 = vld [vmem:[%s8728_s5 + $0xea0] ss:$16 sps:$4 sm:$0xff]  }
 0x1ed   : > { %5167 = vmatpush2.bf16.msra.mxu0 %v6786_v19  ;;  %v6855_v19 = vld [vmem:[%s8728_s5 + $0xc84] ss:$16 sps:$4 sm:$0xff]  }
 0x1ee   : > { %5208 = vmatpush2.bf16.msra.mxu1 %v6789_v20  ;;  %5168 = vmatprep.subr.bf16.mxu0 %v6794_v21  ;;  %v6858_v20 = vld [vmem:[%s8728_s5 + $0xe84] ss:$16 sps:$4 sm:$0xff]   ;;  %v6853_v21 = vld [vmem:[%s8728_s5 + $0xc80] ss:$16 sps:$4 sm:$0xff]  }
 0x1ef   : > { %5209 = vmatprep.subr.bf16.mxu1 %v6797_v22  ;;  %v6856_v22 = vld [vmem:[%s8728_s5 + $0xe80] ss:$16 sps:$4 sm:$0xff]  }
 0x1f1   : > { %5169 = vmatpush2.bf16.msra.mxu0 %v6792_v23  ;;  %v6861_v23 = vld [vmem:[%s8728_s5 + $0xc64] ss:$16 sps:$4 sm:$0xff]  }
 0x1f2   : > { %5210 = vmatpush2.bf16.msra.mxu1 %v6795_v24  ;;  %5170 = vmatprep.subr.bf16.mxu0 %v6800_v25  ;;  %v6864_v24 = vld [vmem:[%s8728_s5 + $0xe64] ss:$16 sps:$4 sm:$0xff]   ;;  %v6859_v25 = vld [vmem:[%s8728_s5 + $0xc60] ss:$16 sps:$4 sm:$0xff]  }
 0x1f3   : > { %5211 = vmatprep.subr.bf16.mxu1 %v6803_v26  ;;  %v6862_v26 = vld [vmem:[%s8728_s5 + $0xe60] ss:$16 sps:$4 sm:$0xff]  }
 0x1f5   : > { %5171 = vmatpush2.bf16.msra.mxu0 %v6798_v27  ;;  %v6867_v27 = vld [vmem:[%s8728_s5 + $0xc44] ss:$16 sps:$4 sm:$0xff]  }
 0x1f6   : > { %5212 = vmatpush2.bf16.msra.mxu1 %v6801_v28  ;;  %5172 = vmatprep.subr.bf16.mxu0 %v6806_v29  ;;  %v6870_v28 = vld [vmem:[%s8728_s5 + $0xe44] ss:$16 sps:$4 sm:$0xff]   ;;  %v6865_v29 = vld [vmem:[%s8728_s5 + $0xc40] ss:$16 sps:$4 sm:$0xff]  }
 0x1f7   : > { %5213 = vmatprep.subr.bf16.mxu1 %v6809_v30  ;;  %v6868_v30 = vld [vmem:[%s8728_s5 + $0xe40] ss:$16 sps:$4 sm:$0xff]  }
 0x1f9   : > { %5173 = vmatpush2.bf16.msra.mxu0 %v6804_v31  ;;  %v6873_v31 = vld [vmem:[%s8728_s5 + $0xc24] ss:$16 sps:$4 sm:$0xff]  }
 0x1fa   : > { %5214 = vmatpush2.bf16.msra.mxu1 %v6807_v32  ;;  %5174 = vmatprep.subr.bf16.mxu0 %v6812_v35  ;;  %v6876_v32 = vld [vmem:[%s8728_s5 + $0xe24] ss:$16 sps:$4 sm:$0xff]   ;;  %v6871_v35 = vld [vmem:[%s8728_s5 + $0xc20] ss:$16 sps:$4 sm:$0xff]  }
 0x1fb   : > { %5215 = vmatprep.subr.bf16.mxu1 %v6815_v36  ;;  %v6874_v36 = vld [vmem:[%s8728_s5 + $0xe20] ss:$16 sps:$4 sm:$0xff]  }
 0x1fd   : > { %5175 = vmatpush2.bf16.msra.mxu0 %v6810_v37  ;;  %v6879_v37 = vld [vmem:[%s8728_s5 + $0xc04] ss:$16 sps:$4 sm:$0xff]  }
 0x1fe   : > { %5216 = vmatpush2.bf16.msra.mxu1 %v6813_v38  ;;  %5176 = vmatprep.subr.bf16.mxu0 %v6818_v39  ;;  %v6882_v38 = vld [vmem:[%s8728_s5 + $0xe04] ss:$16 sps:$4 sm:$0xff]   ;;  %v6877_v39 = vld [vmem:[%s8728_s5 + $0xc00] ss:$16 sps:$4 sm:$0xff]  }
 0x1ff   : > { %5217 = vmatprep.subr.bf16.mxu1 %v6821_v41  ;;  %v6880_v41 = vld [vmem:[%s8728_s5 + $0xe00] ss:$16 sps:$4 sm:$0xff]  }
 0x201   : > { %5177 = vmatpush2.bf16.msra.mxu0 %v6816_v42  ;;  %v6885_v42 = vld [vmem:[%s8728_s5 + $0xde4] ss:$16 sps:$4 sm:$0xff]  }
 0x202   : > { %5218 = vmatpush2.bf16.msra.mxu1 %v6819_v43  ;;  %5178 = vmatprep.subr.bf16.mxu0 %v6824_v47  ;;  %v6888_v43 = vld [vmem:[%s8728_s5 + $0xfe4] ss:$16 sps:$4 sm:$0xff]   ;;  %v6886_v47 = vld [vmem:[%s8728_s5 + $0xfe0] ss:$16 sps:$4 sm:$0xff]  }
 0x203   : > { %5219 = vmatprep.subr.bf16.mxu1 %v6827_v48  ;;  %v6891_v48 = vld [vmem:[%s8728_s5 + $0xdc4] ss:$16 sps:$4 sm:$0xff]  }
 0x205   : > { %5179 = vmatpush2.bf16.msra.mxu0 %v6822_v52  ;;  %v6889_v52 = vld [vmem:[%s8728_s5 + $0xdc0] ss:$16 sps:$4 sm:$0xff]  }
 0x206   : > { %5220 = vmatpush2.bf16.msra.mxu1 %v6825_v55  ;;  %5180 = vmatprep.subr.bf16.mxu0 %v6830_v56  ;;  %v6892_v55 = vld [vmem:[%s8728_s5 + $0xfc0] ss:$16 sps:$4 sm:$0xff]   ;;  %v6897_v56 = vld [vmem:[%s8728_s5 + $0xda4] ss:$16 sps:$4 sm:$0xff]  }
 0x207   : > { %5221 = vmatprep.subr.bf16.mxu1 %v6833_v57  ;;  %v6900_v57 = vld [vmem:[%s8728_s5 + $0xfa4] ss:$16 sps:$4 sm:$0xff]  }
 0x209   : > { %5181 = vmatpush2.bf16.msra.mxu0 %v6828_v61  ;;  %v6895_v61 = vld [vmem:[%s8728_s5 + $0xda0] ss:$16 sps:$4 sm:$0xff]  }
 0x20a   : > { %5222 = vmatpush2.bf16.msra.mxu1 %v6831_v62  ;;  %5232 = vmatprep.subr.bf16.mxu0 %v6837_v0  ;;  %v6898_v62 = vld [vmem:[%s8728_s5 + $0xfa0] ss:$16 sps:$4 sm:$0xff]   ;;  %v6903_v0 = vld [vmem:[%s8728_s5 + $0xd84] ss:$16 sps:$4 sm:$0xff]  }
 0x20b   : > { %5273 = vmatprep.subr.bf16.mxu1 %v6840_v1  ;;  %v6906_v1 = vld [vmem:[%s8728_s5 + $0xf84] ss:$16 sps:$4 sm:$0xff]  }
 0x20c   : > { %5183 = vmatmul.mubr.bf16.vlgmr.msra.gmra.mxu0 %v9003_v5 }
 0x20d   : > { %5224 = vmatmul.mubr.bf16.vlgmr.msra.gmra.mxu1 %v9007_v6  ;;  %5233 = vmatpush1.bf16.msra.mxu0 %v6835_v7  ;;  %v6909_v7 = vld [vmem:[%s8728_s5 + $0xd64] ss:$16 sps:$4 sm:$0xff]  }
 0x20e   : > { %5274 = vmatpush1.bf16.msra.mxu1 %v6838_v8  ;;  %5234 = vmatprep.subr.bf16.mxu0 %v6843_v9  ;;  %v6912_v8 = vld [vmem:[%s8728_s5 + $0xf64] ss:$16 sps:$4 sm:$0xff]   ;;  %v6907_v9 = vld [vmem:[%s8728_s5 + $0xd60] ss:$16 sps:$4 sm:$0xff]  }
 0x20f   : > { %5275 = vmatprep.subr.bf16.mxu1 %v6846_v10  ;;  %5264 = vmatprep.mubr.bf16.mxu0 %v9013_v11  ;;  %v6910_v10 = vld [vmem:[%s8728_s5 + $0xf60] ss:$16 sps:$4 sm:$0xff]  }
 0x210   : > { %5305 = vmatprep.mubr.bf16.mxu1 %v9015_v40 }
 0x211   : > { %5235 = vmatpush1.bf16.msra.mxu0 %v6841_v45  ;;  %v6915_v45 = vld [vmem:[%s8728_s5 + $0xd44] ss:$16 sps:$4 sm:$0xff]  }
 0x212   : > { %5276 = vmatpush1.bf16.msra.mxu1 %v6844_v12  ;;  %5236 = vmatprep.subr.bf16.mxu0 %v6849_v13  ;;  %v6918_v12 = vld [vmem:[%s8728_s5 + $0xf44] ss:$16 sps:$4 sm:$0xff]   ;;  %v6913_v13 = vld [vmem:[%s8728_s5 + $0xd40] ss:$16 sps:$4 sm:$0xff]  }
 0x213   : > { %5277 = vmatprep.subr.bf16.mxu1 %v6852_v14  ;;  %v6916_v14 = vld [vmem:[%s8728_s5 + $0xf40] ss:$16 sps:$4 sm:$0xff]  }
 0x215   : > { %5237 = vmatpush1.bf16.msra.mxu0 %v6847_v15  ;;  %v6921_v15 = vld [vmem:[%s8728_s5 + $0xd24] ss:$16 sps:$4 sm:$0xff]  }
 0x216   : > { %5278 = vmatpush1.bf16.msra.mxu1 %v6850_v16  ;;  %5238 = vmatprep.subr.bf16.mxu0 %v6855_v19  ;;  %v6924_v16 = vld [vmem:[%s8728_s5 + $0xf24] ss:$16 sps:$4 sm:$0xff]   ;;  %v6919_v19 = vld [vmem:[%s8728_s5 + $0xd20] ss:$16 sps:$4 sm:$0xff]  }
 0x217   : > { %5279 = vmatprep.subr.bf16.mxu1 %v6858_v20  ;;  %v6922_v20 = vld [vmem:[%s8728_s5 + $0xf20] ss:$16 sps:$4 sm:$0xff]  }
 0x219   : > { %5239 = vmatpush1.bf16.msra.mxu0 %v6853_v21  ;;  %v6927_v21 = vld [vmem:[%s8728_s5 + $0xd04] ss:$16 sps:$4 sm:$0xff]  }
 0x21a   : > { %5280 = vmatpush1.bf16.msra.mxu1 %v6856_v22  ;;  %5240 = vmatprep.subr.bf16.mxu0 %v6861_v23  ;;  %v6930_v22 = vld [vmem:[%s8728_s5 + $0xf04] ss:$16 sps:$4 sm:$0xff]   ;;  %v6925_v23 = vld [vmem:[%s8728_s5 + $0xd00] ss:$16 sps:$4 sm:$0xff]  }
 0x21b   : > { %5281 = vmatprep.subr.bf16.mxu1 %v6864_v24  ;;  %v9079_v24 = vld.sshfl [vmem:[%s8716_s26 + $0x20] sm:$0x33 pattern:$0x76325410] }
 0x21d   : > { %5241 = vmatpush1.bf16.msra.mxu0 %v6859_v25  ;;  %v6928_v25 = vld [vmem:[%s8728_s5 + $0xf00] ss:$16 sps:$4 sm:$0xff]  }
 0x21e   : > { %5282 = vmatpush1.bf16.msra.mxu1 %v6862_v26  ;;  %5242 = vmatprep.subr.bf16.mxu0 %v6867_v27  ;;  %v6934_v26 = vld [vmem:[%s8728_s5 + $0x10e4] ss:$16 sps:$4 sm:$0xff]   ;;  %v6937_v27 = vld [vmem:[%s8728_s5 + $0xec] ss:$16 sps:$4 sm:$0xff]  }
 0x21f   : > { %5283 = vmatprep.subr.bf16.mxu1 %v6870_v28  ;;  %v1493_v28 = vcombine.high %v9079_v24, %v9079_v24 }
 0x221   : > { %5243 = vmatpush1.bf16.msra.mxu0 %v6865_v29  ;;  %v9088_v29 = vpack.c.bf16 %v8988_v59, %v8988_v59 }
 0x222   : > { %5284 = vmatpush1.bf16.msra.mxu1 %v6868_v30  ;;  %5244 = vmatprep.subr.bf16.mxu0 %v6873_v31  ;;  %v9092_v30 = vpack.c.bf16 %v8991_v60, %v8991_v60  ;;  %v6932_v31 = vld [vmem:[%s8728_s5 + $0x10e0] ss:$16 sps:$4 sm:$0xff]   ;;  %v6941_v60 = vld [vmem:[%s8728_s5 + $0xc8] ss:$16 sps:$4 sm:$0xff]  }
 0x223   : > { %5285 = vmatprep.subr.bf16.mxu1 %v6876_v32  ;;  %v6935_v32 = vld [vmem:[%s8728_s5 + $0xe8] ss:$16 sps:$4 sm:$0xff]  }
 0x225   : > { %5245 = vmatpush1.bf16.msra.mxu0 %v6871_v35  ;;  %v6940_v35 = vld [vmem:[%s8728_s5 + $0x10c4] ss:$16 sps:$4 sm:$0xff]  }
 0x226   : > { %5286 = vmatpush1.bf16.msra.mxu1 %v6874_v36  ;;  %5246 = vmatprep.subr.bf16.mxu0 %v6879_v37  ;;  %v6943_v36 = vld [vmem:[%s8728_s5 + $0xcc] ss:$16 sps:$4 sm:$0xff]   ;;  %v6938_v37 = vld [vmem:[%s8728_s5 + $0x10c0] ss:$16 sps:$4 sm:$0xff]  }
 0x227   : > { %5287 = vmatprep.subr.bf16.mxu1 %v6882_v38  ;;  %v9099_v38 = vpack.c.bf16 %v1493_v28, %v1493_v28  ;;  %v6988_v28 = vld [vmem:[%s8728_s5 + $0x11c4] ss:$16 sps:$4 sm:$0xff]  }
 0x229   : > { %5247 = vmatpush1.bf16.msra.mxu0 %v6877_v39 }
 0x22a   : > { %5288 = vmatpush1.bf16.msra.mxu1 %v6880_v41  ;;  %5248 = vmatprep.subr.bf16.mxu0 %v6885_v42  ;;  %v6946_v42 = vld [vmem:[%s8728_s5 + $0x10a4] ss:$16 sps:$4 sm:$0xff]  }
 0x22b   : > { %5289 = vmatprep.subr.bf16.mxu1 %v6888_v43 }
 0x22d   : > { %5249 = vmatpush2.bf16.msra.mxu0 %v6883_v46 }
 0x22e   : > { %5290 = vmatpush2.bf16.msra.mxu1 %v6886_v47  ;;  %5250 = vmatprep.subr.bf16.mxu0 %v6891_v48  ;;  %v6949_v47 = vld [vmem:[%s8728_s5 + $0xac] ss:$16 sps:$4 sm:$0xff]  }
 0x22f   : > { %5291 = vmatprep.subr.bf16.mxu1 %v6894_v51  ;;  %v6944_v51 = vld [vmem:[%s8728_s5 + $0x10a0] ss:$16 sps:$4 sm:$0xff]  }
 0x231   : > { %5251 = vmatpush2.bf16.msra.mxu0 %v6889_v52  ;;  %v6947_v52 = vld [vmem:[%s8728_s5 + $0xa8] ss:$16 sps:$4 sm:$0xff]  }
 0x232   : > { %5292 = vmatpush2.bf16.msra.mxu1 %v6892_v55  ;;  %5252 = vmatprep.subr.bf16.mxu0 %v6897_v56 }
 0x233   : > { %5293 = vmatprep.subr.bf16.mxu1 %v6900_v57 }
 0x235   : > { %5253 = vmatpush2.bf16.msra.mxu0 %v6895_v61 }
 0x236   : > { %5294 = vmatpush2.bf16.msra.mxu1 %v6898_v62  ;;  %5254 = vmatprep.subr.bf16.mxu0 %v6903_v0  ;;  %v6952_v62 = vld [vmem:[%s8728_s5 + $0x1084] ss:$16 sps:$4 sm:$0xff]   ;;  %v6955_v0 = vld [vmem:[%s8728_s5 + $0x8c] ss:$16 sps:$4 sm:$0xff]  }
 0x237   : > { %5295 = vmatprep.subr.bf16.mxu1 %v6906_v1  ;;  %v6950_v1 = vld [vmem:[%s8728_s5 + $0x1080] ss:$16 sps:$4 sm:$0xff]  }
 0x239   : > { %5255 = vmatpush2.bf16.msra.mxu0 %v6901_v2  ;;  %v6958_v2 = vld [vmem:[%s8728_s5 + $0x1064] ss:$16 sps:$4 sm:$0xff]  }
 0x23a   : > { %5296 = vmatpush2.bf16.msra.mxu1 %v6904_v3  ;;  %5256 = vmatprep.subr.bf16.mxu0 %v6909_v7  ;;  %v6961_v3 = vld [vmem:[%s8728_s5 + $0x6c] ss:$16 sps:$4 sm:$0xff]   ;;  %v6956_v7 = vld [vmem:[%s8728_s5 + $0x1060] ss:$16 sps:$4 sm:$0xff]  }
 0x23b   : > { %5297 = vmatprep.subr.bf16.mxu1 %v6912_v8  ;;  %v6959_v8 = vld [vmem:[%s8728_s5 + $0x68] ss:$16 sps:$4 sm:$0xff]  }
 0x23d   : > { %5257 = vmatpush2.bf16.msra.mxu0 %v6907_v9  ;;  %v6964_v9 = vld [vmem:[%s8728_s5 + $0x1044] ss:$16 sps:$4 sm:$0xff]  }
 0x23e   : > { %5298 = vmatpush2.bf16.msra.mxu1 %v6910_v10  ;;  %5258 = vmatprep.subr.bf16.mxu0 %v6915_v45  ;;  %v6967_v10 = vld [vmem:[%s8728_s5 + $0x4c] ss:$16 sps:$4 sm:$0xff]   ;;  %v6962_v45 = vld [vmem:[%s8728_s5 + $0x1040] ss:$16 sps:$4 sm:$0xff]  }
 0x23f   : > { %5299 = vmatprep.subr.bf16.mxu1 %v6918_v12  ;;  %v6965_v12 = vld [vmem:[%s8728_s5 + $0x48] ss:$16 sps:$4 sm:$0xff]  }
 0x241   : > { %5259 = vmatpush2.bf16.msra.mxu0 %v6913_v13  ;;  %v6970_v13 = vld [vmem:[%s8728_s5 + $0x1024] ss:$16 sps:$4 sm:$0xff]  }
 0x242   : > { %5300 = vmatpush2.bf16.msra.mxu1 %v6916_v14  ;;  %5260 = vmatprep.subr.bf16.mxu0 %v6921_v15  ;;  %v6973_v14 = vld [vmem:[%s8728_s5 + $0x2c] ss:$16 sps:$4 sm:$0xff]   ;;  %v6968_v15 = vld [vmem:[%s8728_s5 + $0x1020] ss:$16 sps:$4 sm:$0xff]  }
 0x243   : > { %5301 = vmatprep.subr.bf16.mxu1 %v6924_v16  ;;  %v6971_v16 = vld [vmem:[%s8728_s5 + $0x28] ss:$16 sps:$4 sm:$0xff]  }
 0x245   : > { %5261 = vmatpush2.bf16.msra.mxu0 %v6919_v19  ;;  %v6976_v19 = vld [vmem:[%s8728_s5 + $0x1004] ss:$16 sps:$4 sm:$0xff]  }
 0x246   : > { %5302 = vmatpush2.bf16.msra.mxu1 %v6922_v20  ;;  %5262 = vmatprep.subr.bf16.mxu0 %v6927_v21  ;;  %v6979_v20 = vld [vmem:[%s8728_s5 + $0xc] ss:$16 sps:$4 sm:$0xff]   ;;  %v6974_v21 = vld [vmem:[%s8728_s5 + $0x1000] ss:$16 sps:$4 sm:$0xff]  }
 0x247   : > { %5303 = vmatprep.subr.bf16.mxu1 %v6930_v22  ;;  %v6977_v22 = vld [vmem:[%s8728_s5 + $0x8] ss:$16 sps:$4 sm:$0xff]  }
 0x249   : > { %5263 = vmatpush2.bf16.msra.mxu0 %v6925_v23  ;;  %v6982_v23 = vld [vmem:[%s8728_s5 + $0x11e4] ss:$16 sps:$4 sm:$0xff]  }
 0x24a   : > { %5304 = vmatpush2.bf16.msra.mxu1 %v6928_v25  ;;  %5314 = vmatprep.subr.bf16.mxu0 %v6934_v26  ;;  %v6985_v25 = vld [vmem:[%s8728_s5 + $0x1ec] ss:$16 sps:$4 sm:$0xff]   ;;  %v6980_v26 = vld [vmem:[%s8728_s5 + $0x11e0] ss:$16 sps:$4 sm:$0xff]  }
 0x24b   : > { %5355 = vmatprep.subr.bf16.mxu1 %v6937_v27  ;;  %v6983_v27 = vld [vmem:[%s8728_s5 + $0x1e8] ss:$16 sps:$4 sm:$0xff]  }
 0x24c   : > { %v5020_v59 = vpop.f32.mrf.mxu0  ;;  %5265 = vmatmul.mubr.bf16.vlgmr.msra.gmra.mxu0 %v9088_v29 }
 0x24d   : > { %v5061_v39 = vpop.f32.mrf.mxu1  ;;  %5306 = vmatmul.mubr.bf16.vlgmr.msra.gmra.mxu1 %v9092_v30  ;;  %5315 = vmatpush1.bf16.msra.mxu0 %v6932_v31  ;;  %v6991_v31 = vld [vmem:[%s8728_s5 + $0x1cc] ss:$16 sps:$4 sm:$0xff]  }
 0x24e   : > { %v9104_v41 = vadd.f32 %v5061_v39, %v5020_v59  ;;  %5356 = vmatpush1.bf16.msra.mxu1 %v6935_v32  ;;  %v5022_v43 = vpop.f32.mrf.mxu0  ;;  %5316 = vmatprep.subr.bf16.mxu0 %v6940_v35  ;;  %v6986_v32 = vld [vmem:[%s8728_s5 + $0x11c0] ss:$16 sps:$4 sm:$0xff]   ;;  %v6989_v35 = vld [vmem:[%s8728_s5 + $0x1c8] ss:$16 sps:$4 sm:$0xff]  }
 0x24f   : > { %v5063_v46 = vpop.f32.mrf.mxu1  ;;  %5357 = vmatprep.subr.bf16.mxu1 %v6943_v36  ;;  %5346 = vmatprep.mubr.bf16.mxu0 %v9099_v38  ;;  %v6994_v36 = vld [vmem:[%s8728_s5 + $0x11a4] ss:$16 sps:$4 sm:$0xff]   ;;  %v6992_v59 = vld [vmem:[%s8728_s5 + $0x11a0] ss:$16 sps:$4 sm:$0xff]   ;;  %v6995_v39 = vld [vmem:[%s8728_s5 + $0x1a8] ss:$16 sps:$4 sm:$0xff]  }
 0x250   : > { %v9108_v48 = vadd.f32 %v5063_v46, %v5022_v43  ;;  %5387 = vmatprep.mubr.bf16.mxu1 %v8791_v63  ;;  %v5024_v55 = vpop.f32.mrf.mxu0  ;;  %v6953_v63 = vld [vmem:[%s8728_s5 + $0x88] ss:$16 sps:$4 sm:$0xff]   ;;  %v6998_v43 = vld [vmem:[%s8728_s5 + $0x1180] ss:$16 sps:$4 sm:$0xff]  }
 0x251   : > { %v5065_v56 = vpop.f32.mrf.mxu1  ;;  %5317 = vmatpush1.bf16.msra.mxu0 %v6938_v37  ;;  %v6997_v37 = vld [vmem:[%s8728_s5 + $0x1ac] ss:$16 sps:$4 sm:$0xff]   ;;  %v7001_v46 = vld [vmem:[%s8728_s5 + $0x188] ss:$16 sps:$4 sm:$0xff]  }
 0x252   : > { %5358 = vmatpush1.bf16.msra.mxu1 %v6941_v60  ;;  %v5025_v57 = vpop.f32.mrf.mxu0  ;;  %5318 = vmatprep.subr.bf16.mxu0 %v6946_v42  ;;  %v7000_v60 = vld [vmem:[%s8728_s5 + $0x1184] ss:$16 sps:$4 sm:$0xff]   ;;  %v7003_v42 = vld [vmem:[%s8728_s5 + $0x18c] ss:$16 sps:$4 sm:$0xff]   ;;  %v7007_v55 = vld [vmem:[%s8728_s5 + $0x168] ss:$16 sps:$4 sm:$0xff]  }
 0x253   : > { %v5066_v61 = vpop.f32.mrf.mxu1  ;;  %5359 = vmatprep.subr.bf16.mxu1 %v6949_v47  ;;  %v7006_v47 = vld [vmem:[%s8728_s5 + $0x1164] ss:$16 sps:$4 sm:$0xff]   ;;  %v7015_v57 = vld [vmem:[%s8728_s5 + $0x14c] ss:$16 sps:$4 sm:$0xff]  }
 0x254   : > { %v7012_v56 = vld [vmem:[%s8728_s5 + $0x1144] ss:$16 sps:$4 sm:$0xff]   ;;  %v7010_v61 = vld [vmem:[%s8728_s5 + $0x1140] ss:$16 sps:$4 sm:$0xff]  }
 0x255   : > { %5319 = vmatpush1.bf16.msra.mxu0 %v6944_v51  ;;  %v7009_v51 = vld [vmem:[%s8728_s5 + $0x16c] ss:$16 sps:$4 sm:$0xff]  }
 0x256   : > { %5360 = vmatpush1.bf16.msra.mxu1 %v6947_v52  ;;  %5320 = vmatprep.subr.bf16.mxu0 %v6952_v62  ;;  %v7004_v52 = vld [vmem:[%s8728_s5 + $0x1160] ss:$16 sps:$4 sm:$0xff]   ;;  %v7013_v62 = vld [vmem:[%s8728_s5 + $0x148] ss:$16 sps:$4 sm:$0xff]  }
 0x257   : > { %5361 = vmatprep.subr.bf16.mxu1 %v6955_v0  ;;  %v7018_v0 = vld [vmem:[%s8728_s5 + $0x1124] ss:$16 sps:$4 sm:$0xff]  }
 0x259   : > { %5321 = vmatpush1.bf16.msra.mxu0 %v6950_v1  ;;  %v7021_v1 = vld [vmem:[%s8728_s5 + $0x12c] ss:$16 sps:$4 sm:$0xff]  }
 0x25a   : > { %5362 = vmatpush1.bf16.msra.mxu1 %v6953_v63  ;;  %5322 = vmatprep.subr.bf16.mxu0 %v6958_v2  ;;  %v7016_v63 = vld [vmem:[%s8728_s5 + $0x1120] ss:$16 sps:$4 sm:$0xff]   ;;  %v7019_v2 = vld [vmem:[%s8728_s5 + $0x128] ss:$16 sps:$4 sm:$0xff]  }
 0x25b   : > { %5363 = vmatprep.subr.bf16.mxu1 %v6961_v3  ;;  %v7024_v3 = vld [vmem:[%s8728_s5 + $0x1104] ss:$16 sps:$4 sm:$0xff]  }
 0x25d   : > { %5323 = vmatpush1.bf16.msra.mxu0 %v6956_v7  ;;  %v7027_v7 = vld [vmem:[%s8728_s5 + $0x10c] ss:$16 sps:$4 sm:$0xff]  }
 0x25e   : > { %5364 = vmatpush1.bf16.msra.mxu1 %v6959_v8  ;;  %5324 = vmatprep.subr.bf16.mxu0 %v6964_v9  ;;  %v7022_v8 = vld [vmem:[%s8728_s5 + $0x1100] ss:$16 sps:$4 sm:$0xff]   ;;  %v7025_v9 = vld [vmem:[%s8728_s5 + $0x108] ss:$16 sps:$4 sm:$0xff]  }
 0x25f   : > { %5365 = vmatprep.subr.bf16.mxu1 %v6967_v10  ;;  %v7030_v10 = vld [vmem:[%s8728_s5 + $0x2ec] ss:$16 sps:$4 sm:$0xff]  }
 0x261   : > { %5325 = vmatpush1.bf16.msra.mxu0 %v6962_v45  ;;  %v7033_v45 = vld [vmem:[%s8728_s5 + $0x4ec] ss:$16 sps:$4 sm:$0xff]  }
 0x262   : > { %5366 = vmatpush1.bf16.msra.mxu1 %v6965_v12  ;;  %5326 = vmatprep.subr.bf16.mxu0 %v6970_v13  ;;  %v7028_v12 = vld [vmem:[%s8728_s5 + $0x2e8] ss:$16 sps:$4 sm:$0xff]  }
 0x263   : > { %5367 = vmatprep.subr.bf16.mxu1 %v6973_v14  ;;  %v7031_v13 = vld [vmem:[%s8728_s5 + $0x4e8] ss:$16 sps:$4 sm:$0xff]   ;;  %v9172_v14 = vpack.c.bf16 %v9079_v24, %v9079_v24 }
 0x265   : > { %5327 = vmatpush1.bf16.msra.mxu0 %v6968_v15  ;;  %v7036_v15 = vld [vmem:[%s8728_s5 + $0x2cc] ss:$16 sps:$4 sm:$0xff]  }
 0x266   : > { %5368 = vmatpush1.bf16.msra.mxu1 %v6971_v16  ;;  %5328 = vmatprep.subr.bf16.mxu0 %v6976_v19  ;;  %v7039_v16 = vld [vmem:[%s8728_s5 + $0x4cc] ss:$16 sps:$4 sm:$0xff]   ;;  %v7034_v19 = vld [vmem:[%s8728_s5 + $0x2c8] ss:$16 sps:$4 sm:$0xff]  }
 0x267   : > { %5369 = vmatprep.subr.bf16.mxu1 %v6979_v20  ;;  %v7037_v20 = vld [vmem:[%s8728_s5 + $0x4c8] ss:$16 sps:$4 sm:$0xff]  }
 0x269   : > { %5329 = vmatpush1.bf16.msra.mxu0 %v6974_v21 }
 0x26a   : > { %5370 = vmatpush1.bf16.msra.mxu1 %v6977_v22  ;;  %5330 = vmatprep.subr.bf16.mxu0 %v6982_v23 }
 0x26b   : > { %5371 = vmatprep.subr.bf16.mxu1 %v6985_v25 }
 0x26d   : > { %5331 = vmatpush2.bf16.msra.mxu0 %v6980_v26  ;;  %v7042_v26 = vld [vmem:[%s8728_s5 + $0x2ac] ss:$16 sps:$4 sm:$0xff]  }
 0x26e   : > { %5372 = vmatpush2.bf16.msra.mxu1 %v6983_v27  ;;  %5332 = vmatprep.subr.bf16.mxu0 %v6988_v28  ;;  %v7045_v27 = vld [vmem:[%s8728_s5 + $0x4ac] ss:$16 sps:$4 sm:$0xff]  }
 0x26f   : > { %5373 = vmatprep.subr.bf16.mxu1 %v6991_v31 }
 0x271   : > { %5333 = vmatpush2.bf16.msra.mxu0 %v6986_v32  ;;  %v7040_v32 = vld [vmem:[%s8728_s5 + $0x2a8] ss:$16 sps:$4 sm:$0xff]  }
 0x272   : > { %5374 = vmatpush2.bf16.msra.mxu1 %v6989_v35  ;;  %5334 = vmatprep.subr.bf16.mxu0 %v6994_v36  ;;  %v7043_v35 = vld [vmem:[%s8728_s5 + $0x4a8] ss:$16 sps:$4 sm:$0xff]  }
 0x273   : > { %5375 = vmatprep.subr.bf16.mxu1 %v6997_v37 }
 0x275   : > { %5335 = vmatpush2.bf16.msra.mxu0 %v6992_v59 }
 0x276   : > { %5376 = vmatpush2.bf16.msra.mxu1 %v6995_v39  ;;  %5336 = vmatprep.subr.bf16.mxu0 %v7000_v60  ;;  %v7049_v39 = vld [vmem:[%s8728_s5 + $0x488] ss:$16 sps:$4 sm:$0xff]   ;;  %v7054_v60 = vld [vmem:[%s8728_s5 + $0x26c] ss:$16 sps:$4 sm:$0xff]  }
 0x277   : > { %5377 = vmatprep.subr.bf16.mxu1 %v7003_v42  ;;  %v7057_v42 = vld [vmem:[%s8728_s5 + $0x46c] ss:$16 sps:$4 sm:$0xff]  }
 0x279   : > { %5337 = vmatpush2.bf16.msra.mxu0 %v6998_v43  ;;  %v7052_v43 = vld [vmem:[%s8728_s5 + $0x268] ss:$16 sps:$4 sm:$0xff]  }
 0x27a   : > { %5378 = vmatpush2.bf16.msra.mxu1 %v7001_v46  ;;  %5338 = vmatprep.subr.bf16.mxu0 %v7006_v47  ;;  %v7055_v46 = vld [vmem:[%s8728_s5 + $0x468] ss:$16 sps:$4 sm:$0xff]   ;;  %v7060_v47 = vld [vmem:[%s8728_s5 + $0x24c] ss:$16 sps:$4 sm:$0xff]  }
 0x27b   : > { %5379 = vmatprep.subr.bf16.mxu1 %v7009_v51  ;;  %v7063_v51 = vld [vmem:[%s8728_s5 + $0x44c] ss:$16 sps:$4 sm:$0xff]  }
 0x27d   : > { %5339 = vmatpush2.bf16.msra.mxu0 %v7004_v52  ;;  %v7058_v52 = vld [vmem:[%s8728_s5 + $0x248] ss:$16 sps:$4 sm:$0xff]  }
 0x27e   : > { %5380 = vmatpush2.bf16.msra.mxu1 %v7007_v55  ;;  %5340 = vmatprep.subr.bf16.mxu0 %v7012_v56  ;;  %v7061_v55 = vld [vmem:[%s8728_s5 + $0x448] ss:$16 sps:$4 sm:$0xff]   ;;  %v7066_v56 = vld [vmem:[%s8728_s5 + $0x22c] ss:$16 sps:$4 sm:$0xff]  }
 0x27f   : > { %5381 = vmatprep.subr.bf16.mxu1 %v7015_v57  ;;  %v7069_v57 = vld [vmem:[%s8728_s5 + $0x42c] ss:$16 sps:$4 sm:$0xff]  }
 0x281   : > { %5341 = vmatpush2.bf16.msra.mxu0 %v7010_v61  ;;  %v7064_v61 = vld [vmem:[%s8728_s5 + $0x228] ss:$16 sps:$4 sm:$0xff]  }
 0x282   : > { %5382 = vmatpush2.bf16.msra.mxu1 %v7013_v62  ;;  %5342 = vmatprep.subr.bf16.mxu0 %v7018_v0  ;;  %v7067_v62 = vld [vmem:[%s8728_s5 + $0x428] ss:$16 sps:$4 sm:$0xff]   ;;  %v7072_v0 = vld [vmem:[%s8728_s5 + $0x20c] ss:$16 sps:$4 sm:$0xff]  }
 0x283   : > { %5383 = vmatprep.subr.bf16.mxu1 %v7021_v1  ;;  %v7075_v1 = vld [vmem:[%s8728_s5 + $0x40c] ss:$16 sps:$4 sm:$0xff]  }
 0x285   : > { %5343 = vmatpush2.bf16.msra.mxu0 %v7016_v63  ;;  %v7070_v63 = vld [vmem:[%s8728_s5 + $0x208] ss:$16 sps:$4 sm:$0xff]  }
 0x286   : > { %5384 = vmatpush2.bf16.msra.mxu1 %v7019_v2  ;;  %5344 = vmatprep.subr.bf16.mxu0 %v7024_v3  ;;  %v7073_v2 = vld [vmem:[%s8728_s5 + $0x408] ss:$16 sps:$4 sm:$0xff]   ;;  %v7078_v3 = vld [vmem:[%s8728_s5 + $0x3ec] ss:$16 sps:$4 sm:$0xff]  }
 0x287   : > { %5385 = vmatprep.subr.bf16.mxu1 %v7027_v7  ;;  %v7081_v7 = vld [vmem:[%s8728_s5 + $0x5ec] ss:$16 sps:$4 sm:$0xff]  }
 0x289   : > { %5345 = vmatpush2.bf16.msra.mxu0 %v7022_v8  ;;  %v7076_v8 = vld [vmem:[%s8728_s5 + $0x3e8] ss:$16 sps:$4 sm:$0xff]  }
 0x28a   : > { %5386 = vmatpush2.bf16.msra.mxu1 %v7025_v9  ;;  %5396 = vmatprep.subr.bf16.mxu0 %v7030_v10  ;;  %v7079_v9 = vld [vmem:[%s8728_s5 + $0x5e8] ss:$16 sps:$4 sm:$0xff]   ;;  %v7084_v10 = vld [vmem:[%s8728_s5 + $0x3cc] ss:$16 sps:$4 sm:$0xff]  }
 0x28b   : > { %5437 = vmatprep.subr.bf16.mxu1 %v7033_v45  ;;  %v7087_v45 = vld [vmem:[%s8728_s5 + $0x5cc] ss:$16 sps:$4 sm:$0xff]  }
 0x28c   : > { %v5102_v21 = vpop.f32.mrf.mxu0  ;;  %5347 = vmatmul.mubr.bf16.vlgmr.msra.gmra.mxu0 %v9172_v14 }
 0x28d   : > { %v5143_v22 = vpop.f32.mrf.mxu1  ;;  %5388 = vmatmul.mubr.bf16.vlgmr.msra.gmra.mxu1 %v8812_v17  ;;  %v5103_v24 = vadd.f32 %v5102_v21, %v9104_v41  ;;  %5397 = vmatpush1.bf16.msra.mxu0 %v7028_v12  ;;  %v7082_v12 = vld [vmem:[%s8728_s5 + $0x3c8] ss:$16 sps:$4 sm:$0xff]   ;;  %v7096_v21 = vld [vmem:[%s8728_s5 + $0x38c] ss:$16 sps:$4 sm:$0xff]  }
 0x28e   : > { %5438 = vmatpush1.bf16.msra.mxu1 %v7031_v13  ;;  %v5104_v23 = vpop.f32.mrf.mxu0  ;;  %5398 = vmatprep.subr.bf16.mxu0 %v7036_v15  ;;  %v7085_v13 = vld [vmem:[%s8728_s5 + $0x5c8] ss:$16 sps:$4 sm:$0xff]   ;;  %v7090_v15 = vld [vmem:[%s8728_s5 + $0x3ac] ss:$16 sps:$4 sm:$0xff]  }
 0x28f   : > { %v5145_v25 = vpop.f32.mrf.mxu1  ;;  %5439 = vmatprep.subr.bf16.mxu1 %v7039_v16  ;;  %v9183_v28 = vadd.f32 %v5143_v22, %v5103_v24  ;;  %v5105_v31 = vadd.f32 %v5104_v23, %v9108_v48  ;;  %5428 = vmatprep.mubr.bf16.mxu0 %v8796_v4  ;;  %v7048_v48 = vld [vmem:[%s8728_s5 + $0x28c] ss:$16 sps:$4 sm:$0xff]   ;;  %v7094_v24 = vld [vmem:[%s8728_s5 + $0x388] ss:$16 sps:$4 sm:$0xff]  }
 0x290   : > { %5469 = vmatprep.mubr.bf16.mxu1 %v8855_v54  ;;  %v5106_v17 = vpop.f32.mrf.mxu0  ;;  %v7051_v4 = vld [vmem:[%s8728_s5 + $0x48c] ss:$16 sps:$4 sm:$0xff]   ;;  %v7046_v54 = vld [vmem:[%s8728_s5 + $0x288] ss:$16 sps:$4 sm:$0xff]  }
 0x291   : > { %v5147_v41 = vpop.f32.mrf.mxu1  ;;  %v9190_v36 = vadd.f32 %v5145_v25, %v5105_v31  ;;  %5399 = vmatpush1.bf16.msra.mxu0 %v7034_v19  ;;  %v7093_v16 = vld [vmem:[%s8728_s5 + $0x5ac] ss:$16 sps:$4 sm:$0xff]   ;;  %v7088_v19 = vld [vmem:[%s8728_s5 + $0x3a8] ss:$16 sps:$4 sm:$0xff]  }
 0x292   : > { %5440 = vmatpush1.bf16.msra.mxu1 %v7037_v20  ;;  %v5107_v37 = vpop.f32.mrf.mxu0  ;;  %5400 = vmatprep.subr.bf16.mxu0 %v7042_v26  ;;  %v7091_v20 = vld [vmem:[%s8728_s5 + $0x5a8] ss:$16 sps:$4 sm:$0xff]   ;;  %v7099_v22 = vld [vmem:[%s8728_s5 + $0x58c] ss:$16 sps:$4 sm:$0xff]  }
 0x293   : > { %v5148_v59 = vpop.f32.mrf.mxu1  ;;  %5441 = vmatprep.subr.bf16.mxu1 %v7045_v27  ;;  %v7097_v23 = vld [vmem:[%s8728_s5 + $0x588] ss:$16 sps:$4 sm:$0xff]   ;;  %v7102_v25 = vld [vmem:[%s8728_s5 + $0x36c] ss:$16 sps:$4 sm:$0xff]  }
 0x294   : > { %v7105_v26 = vld [vmem:[%s8728_s5 + $0x56c] ss:$16 sps:$4 sm:$0xff]   ;;  %v7100_v27 = vld [vmem:[%s8728_s5 + $0x368] ss:$16 sps:$4 sm:$0xff]  }
 0x295   : > { %5401 = vmatpush1.bf16.msra.mxu0 %v7040_v32  ;;  %v7103_v31 = vld [vmem:[%s8728_s5 + $0x568] ss:$16 sps:$4 sm:$0xff]   ;;  %v7108_v32 = vld [vmem:[%s8728_s5 + $0x34c] ss:$16 sps:$4 sm:$0xff]  }
 0x296   : > { %5442 = vmatpush1.bf16.msra.mxu1 %v7043_v35  ;;  %5402 = vmatprep.subr.bf16.mxu0 %v7048_v48  ;;  %v7111_v35 = vld [vmem:[%s8728_s5 + $0x54c] ss:$16 sps:$4 sm:$0xff]   ;;  %v7106_v17 = vld [vmem:[%s8728_s5 + $0x348] ss:$16 sps:$4 sm:$0xff]  }
 0x297   : > { %5443 = vmatprep.subr.bf16.mxu1 %v7051_v4  ;;  %v7109_v41 = vld [vmem:[%s8728_s5 + $0x548] ss:$16 sps:$4 sm:$0xff]   ;;  %v7114_v37 = vld [vmem:[%s8728_s5 + $0x32c] ss:$16 sps:$4 sm:$0xff]  }
 0x298   : > { %v7117_v59 = vld [vmem:[%s8728_s5 + $0x52c] ss:$16 sps:$4 sm:$0xff]   ;;  %v7112_v48 = vld [vmem:[%s8728_s5 + $0x328] ss:$16 sps:$4 sm:$0xff]  }
 0x299   : > { %5403 = vmatpush1.bf16.msra.mxu0 %v7046_v54  ;;  %v7115_v4 = vld [vmem:[%s8728_s5 + $0x528] ss:$16 sps:$4 sm:$0xff]   ;;  %v7120_v54 = vld [vmem:[%s8728_s5 + $0x30c] ss:$16 sps:$4 sm:$0xff]  }
 0x29a   : > { %5444 = vmatpush1.bf16.msra.mxu1 %v7049_v39  ;;  %5404 = vmatprep.subr.bf16.mxu0 %v7054_v60  ;;  %v7123_v39 = vld [vmem:[%s8728_s5 + $0x50c] ss:$16 sps:$4 sm:$0xff]   ;;  %v7118_v60 = vld [vmem:[%s8728_s5 + $0x308] ss:$16 sps:$4 sm:$0xff]  }
 0x29b   : > { %5445 = vmatprep.subr.bf16.mxu1 %v7057_v42  ;;  %v7121_v42 = vld [vmem:[%s8728_s5 + $0x508] ss:$16 sps:$4 sm:$0xff]  }
 0x29d   : > { %5405 = vmatpush1.bf16.msra.mxu0 %v7052_v43  ;;  %v7126_v43 = vld [vmem:[%s8728_s5 + $0x6ec] ss:$16 sps:$4 sm:$0xff]  }
 0x29e   : > { %5446 = vmatpush1.bf16.msra.mxu1 %v7055_v46  ;;  %5406 = vmatprep.subr.bf16.mxu0 %v7060_v47  ;;  %v7129_v46 = vld [vmem:[%s8728_s5 + $0x8ec] ss:$16 sps:$4 sm:$0xff]   ;;  %v7124_v47 = vld [vmem:[%s8728_s5 + $0x6e8] ss:$16 sps:$4 sm:$0xff]  }
 0x29f   : > { %5447 = vmatprep.subr.bf16.mxu1 %v7063_v51  ;;  %v7127_v51 = vld [vmem:[%s8728_s5 + $0x8e8] ss:$16 sps:$4 sm:$0xff]  }
 0x2a1   : > { %5407 = vmatpush1.bf16.msra.mxu0 %v7058_v52  ;;  %v7132_v52 = vld [vmem:[%s8728_s5 + $0x6cc] ss:$16 sps:$4 sm:$0xff]  }
 0x2a2   : > { %5448 = vmatpush1.bf16.msra.mxu1 %v7061_v55  ;;  %5408 = vmatprep.subr.bf16.mxu0 %v7066_v56  ;;  %v7135_v55 = vld [vmem:[%s8728_s5 + $0x8cc] ss:$16 sps:$4 sm:$0xff]  }
 0x2a3   : > { %5449 = vmatprep.subr.bf16.mxu1 %v7069_v57 }
 0x2a5   : > { %5409 = vmatpush1.bf16.msra.mxu0 %v7064_v61 }
 0x2a6   : > { %5450 = vmatpush1.bf16.msra.mxu1 %v7067_v62  ;;  %5410 = vmatprep.subr.bf16.mxu0 %v7072_v0  ;;  %v7130_v62 = vld [vmem:[%s8728_s5 + $0x6c8] ss:$16 sps:$4 sm:$0xff]  }
 0x2a7   : > { %5451 = vmatprep.subr.bf16.mxu1 %v7075_v1  ;;  %v7133_v0 = vld [vmem:[%s8728_s5 + $0x8c8] ss:$16 sps:$4 sm:$0xff]  }
 0x2a9   : > { %5411 = vmatpush1.bf16.msra.mxu0 %v7070_v63 }
 0x2aa   : > { %5452 = vmatpush1.bf16.msra.mxu1 %v7073_v2  ;;  %5412 = vmatprep.subr.bf16.mxu0 %v7078_v3  ;;  %v7138_v2 = vld [vmem:[%s8728_s5 + $0x6ac] ss:$16 sps:$4 sm:$0xff]  }
 0x2ab   : > { %5453 = vmatprep.subr.bf16.mxu1 %v7081_v7  ;;  %v7141_v3 = vld [vmem:[%s8728_s5 + $0x8ac] ss:$16 sps:$4 sm:$0xff]  }
 0x2ad   : > { %5413 = vmatpush2.bf16.msra.mxu0 %v7076_v8 }
 0x2ae   : > { %5454 = vmatpush2.bf16.msra.mxu1 %v7079_v9  ;;  %5414 = vmatprep.subr.bf16.mxu0 %v7084_v10  ;;  %v7136_v9 = vld [vmem:[%s8728_s5 + $0x6a8] ss:$16 sps:$4 sm:$0xff]  }
 0x2af   : > { %5455 = vmatprep.subr.bf16.mxu1 %v7087_v45  ;;  %v7139_v10 = vld [vmem:[%s8728_s5 + $0x8a8] ss:$16 sps:$4 sm:$0xff]  }
 0x2b1   : > { %5415 = vmatpush2.bf16.msra.mxu0 %v7082_v12 }
 0x2b2   : > { %5456 = vmatpush2.bf16.msra.mxu1 %v7085_v13  ;;  %5416 = vmatprep.subr.bf16.mxu0 %v7090_v15  ;;  %v7145_v13 = vld [vmem:[%s8728_s5 + $0x888] ss:$16 sps:$4 sm:$0xff]   ;;  %v7150_v15 = vld [vmem:[%s8728_s5 + $0x66c] ss:$16 sps:$4 sm:$0xff]  }
 0x2b3   : > { %5457 = vmatprep.subr.bf16.mxu1 %v7093_v16  ;;  %v7153_v16 = vld [vmem:[%s8728_s5 + $0x86c] ss:$16 sps:$4 sm:$0xff]  }
 0x2b5   : > { %5417 = vmatpush2.bf16.msra.mxu0 %v7088_v19  ;;  %v7148_v19 = vld [vmem:[%s8728_s5 + $0x668] ss:$16 sps:$4 sm:$0xff]  }
 0x2b6   : > { %5458 = vmatpush2.bf16.msra.mxu1 %v7091_v20  ;;  %5418 = vmatprep.subr.bf16.mxu0 %v7096_v21  ;;  %v7151_v20 = vld [vmem:[%s8728_s5 + $0x868] ss:$16 sps:$4 sm:$0xff]   ;;  %v7156_v21 = vld [vmem:[%s8728_s5 + $0x64c] ss:$16 sps:$4 sm:$0xff]  }
 0x2b7   : > { %5459 = vmatprep.subr.bf16.mxu1 %v7099_v22  ;;  %v7159_v22 = vld [vmem:[%s8728_s5 + $0x84c] ss:$16 sps:$4 sm:$0xff]  }
 0x2b9   : > { %5419 = vmatpush2.bf16.msra.mxu0 %v7094_v24  ;;  %v7154_v24 = vld [vmem:[%s8728_s5 + $0x648] ss:$16 sps:$4 sm:$0xff]  }
 0x2ba   : > { %5460 = vmatpush2.bf16.msra.mxu1 %v7097_v23  ;;  %5420 = vmatprep.subr.bf16.mxu0 %v7102_v25  ;;  %v7157_v23 = vld [vmem:[%s8728_s5 + $0x848] ss:$16 sps:$4 sm:$0xff]   ;;  %v7162_v25 = vld [vmem:[%s8728_s5 + $0x62c] ss:$16 sps:$4 sm:$0xff]  }
 0x2bb   : > { %5461 = vmatprep.subr.bf16.mxu1 %v7105_v26  ;;  %v7165_v26 = vld [vmem:[%s8728_s5 + $0x82c] ss:$16 sps:$4 sm:$0xff]  }
 0x2bd   : > { %5421 = vmatpush2.bf16.msra.mxu0 %v7100_v27  ;;  %v7160_v27 = vld [vmem:[%s8728_s5 + $0x628] ss:$16 sps:$4 sm:$0xff]  }
 0x2be   : > { %5462 = vmatpush2.bf16.msra.mxu1 %v7103_v31  ;;  %5422 = vmatprep.subr.bf16.mxu0 %v7108_v32  ;;  %v7163_v31 = vld [vmem:[%s8728_s5 + $0x828] ss:$16 sps:$4 sm:$0xff]   ;;  %v7168_v32 = vld [vmem:[%s8728_s5 + $0x60c] ss:$16 sps:$4 sm:$0xff]  }
 0x2bf   : > { %5463 = vmatprep.subr.bf16.mxu1 %v7111_v35  ;;  %v7171_v35 = vld [vmem:[%s8728_s5 + $0x80c] ss:$16 sps:$4 sm:$0xff]  }
 0x2c1   : > { %5423 = vmatpush2.bf16.msra.mxu0 %v7106_v17  ;;  %v7166_v17 = vld [vmem:[%s8728_s5 + $0x608] ss:$16 sps:$4 sm:$0xff]  }
 0x2c2   : > { %5464 = vmatpush2.bf16.msra.mxu1 %v7109_v41  ;;  %5424 = vmatprep.subr.bf16.mxu0 %v7114_v37  ;;  %v7169_v41 = vld [vmem:[%s8728_s5 + $0x808] ss:$16 sps:$4 sm:$0xff]   ;;  %v7174_v37 = vld [vmem:[%s8728_s5 + $0x7ec] ss:$16 sps:$4 sm:$0xff]  }
 0x2c3   : > { %5465 = vmatprep.subr.bf16.mxu1 %v7117_v59  ;;  %v7177_v59 = vld [vmem:[%s8728_s5 + $0x9ec] ss:$16 sps:$4 sm:$0xff]  }
 0x2c5   : > { %5425 = vmatpush2.bf16.msra.mxu0 %v7112_v48  ;;  %v7172_v48 = vld [vmem:[%s8728_s5 + $0x7e8] ss:$16 sps:$4 sm:$0xff]  }
 0x2c6   : > { %5466 = vmatpush2.bf16.msra.mxu1 %v7115_v4  ;;  %5426 = vmatprep.subr.bf16.mxu0 %v7120_v54  ;;  %v7175_v4 = vld [vmem:[%s8728_s5 + $0x9e8] ss:$16 sps:$4 sm:$0xff]   ;;  %v7180_v54 = vld [vmem:[%s8728_s5 + $0x7cc] ss:$16 sps:$4 sm:$0xff]  }
 0x2c7   : > { %5467 = vmatprep.subr.bf16.mxu1 %v7123_v39  ;;  %v7183_v39 = vld [vmem:[%s8728_s5 + $0x9cc] ss:$16 sps:$4 sm:$0xff]  }
 0x2c9   : > { %5427 = vmatpush2.bf16.msra.mxu0 %v7118_v60  ;;  %v7178_v60 = vld [vmem:[%s8728_s5 + $0x7c8] ss:$16 sps:$4 sm:$0xff]  }
 0x2ca   : > { %5468 = vmatpush2.bf16.msra.mxu1 %v7121_v42  ;;  %5478 = vmatprep.subr.bf16.mxu0 %v7126_v43  ;;  %v7181_v42 = vld [vmem:[%s8728_s5 + $0x9c8] ss:$16 sps:$4 sm:$0xff]   ;;  %v7186_v43 = vld [vmem:[%s8728_s5 + $0x7ac] ss:$16 sps:$4 sm:$0xff]  }
 0x2cb   : > { %5519 = vmatprep.subr.bf16.mxu1 %v7129_v46  ;;  %v7189_v46 = vld [vmem:[%s8728_s5 + $0x9ac] ss:$16 sps:$4 sm:$0xff]  }
 0x2cc   : > { %v5184_v56 = vpop.f32.mrf.mxu0  ;;  %5429 = vmatmul.mubr.bf16.vlgmr.msra.gmra.mxu0 %v8814_v18 }
 0x2cd   : > { %v5225_v57 = vpop.f32.mrf.mxu1  ;;  %5470 = vmatmul.mubr.bf16.vlgmr.msra.gmra.mxu1 %v8901_v33  ;;  %v5185_v61 = vadd.f32 %v5184_v56, %v9183_v28  ;;  %5479 = vmatpush1.bf16.msra.mxu0 %v7124_v47  ;;  %v7184_v47 = vld [vmem:[%s8728_s5 + $0x7a8] ss:$16 sps:$4 sm:$0xff]  }
 0x2ce   : > { %5520 = vmatpush1.bf16.msra.mxu1 %v7127_v51  ;;  %v5186_v1 = vpop.f32.mrf.mxu0  ;;  %5480 = vmatprep.subr.bf16.mxu0 %v7132_v52  ;;  %v7187_v51 = vld [vmem:[%s8728_s5 + $0x9a8] ss:$16 sps:$4 sm:$0xff]   ;;  %v7192_v52 = vld [vmem:[%s8728_s5 + $0x78c] ss:$16 sps:$4 sm:$0xff]  }
 0x2cf   : > { %v5227_v63 = vpop.f32.mrf.mxu1  ;;  %5521 = vmatprep.subr.bf16.mxu1 %v7135_v55  ;;  %v9257_v7 = vadd.f32 %v5225_v57, %v5185_v61  ;;  %v5187_v18 = vadd.f32 %v5186_v1, %v9190_v36  ;;  %5510 = vmatprep.mubr.bf16.mxu0 %v8861_v58  ;;  %v7144_v58 = vld [vmem:[%s8728_s5 + $0x68c] ss:$16 sps:$4 sm:$0xff]   ;;  %v7142_v36 = vld [vmem:[%s8728_s5 + $0x688] ss:$16 sps:$4 sm:$0xff]  }
 0x2d0   : > { %5551 = vmatprep.mubr.bf16.mxu1 %v8926_v49  ;;  %v5188_v33 = vpop.f32.mrf.mxu0  ;;  %v7147_v49 = vld [vmem:[%s8728_s5 + $0x88c] ss:$16 sps:$4 sm:$0xff]   ;;  %v7190_v56 = vld [vmem:[%s8728_s5 + $0x788] ss:$16 sps:$4 sm:$0xff]  }
 0x2d1   : > { %v5229_v28 = vpop.f32.mrf.mxu1  ;;  %v9262_v8 = vadd.f32 %v5227_v63, %v5187_v18  ;;  %5481 = vmatpush1.bf16.msra.mxu0 %v7130_v62  ;;  %v7195_v55 = vld [vmem:[%s8728_s5 + $0x98c] ss:$16 sps:$4 sm:$0xff]   ;;  %v7193_v57 = vld [vmem:[%s8728_s5 + $0x988] ss:$16 sps:$4 sm:$0xff]  }
 0x2d2   : > { %5522 = vmatpush1.bf16.msra.mxu1 %v7133_v0  ;;  %v5189_v45 = vpop.f32.mrf.mxu0  ;;  %5482 = vmatprep.subr.bf16.mxu0 %v7138_v2  ;;  %v7198_v61 = vld [vmem:[%s8728_s5 + $0x76c] ss:$16 sps:$4 sm:$0xff]   ;;  %v7196_v0 = vld [vmem:[%s8728_s5 + $0x768] ss:$16 sps:$4 sm:$0xff]  }
 0x2d3   : > { %v5230_v12 = vpop.f32.mrf.mxu1  ;;  %5523 = vmatprep.subr.bf16.mxu1 %v7141_v3  ;;  %v7201_v62 = vld [vmem:[%s8728_s5 + $0x96c] ss:$16 sps:$4 sm:$0xff]   ;;  %v7199_v1 = vld [vmem:[%s8728_s5 + $0x968] ss:$16 sps:$4 sm:$0xff]  }
 0x2d4   : > { %v7204_v63 = vld [vmem:[%s8728_s5 + $0x74c] ss:$16 sps:$4 sm:$0xff]   ;;  %v7202_v3 = vld [vmem:[%s8728_s5 + $0x748] ss:$16 sps:$4 sm:$0xff]  }
 0x2d5   : > { %5483 = vmatpush1.bf16.msra.mxu0 %v7136_v9  ;;  %v7207_v2 = vld [vmem:[%s8728_s5 + $0x94c] ss:$16 sps:$4 sm:$0xff]   ;;  %v7205_v18 = vld [vmem:[%s8728_s5 + $0x948] ss:$16 sps:$4 sm:$0xff]  }
 0x2d6   : > { %5524 = vmatpush1.bf16.msra.mxu1 %v7139_v10  ;;  %5484 = vmatprep.subr.bf16.mxu0 %v7144_v58  ;;  %v7210_v33 = vld [vmem:[%s8728_s5 + $0x72c] ss:$16 sps:$4 sm:$0xff]   ;;  %v7208_v9 = vld [vmem:[%s8728_s5 + $0x728] ss:$16 sps:$4 sm:$0xff]  }
 0x2d7   : > { %5525 = vmatprep.subr.bf16.mxu1 %v7147_v49  ;;  %v7213_v28 = vld [vmem:[%s8728_s5 + $0x92c] ss:$16 sps:$4 sm:$0xff]   ;;  %v7211_v10 = vld [vmem:[%s8728_s5 + $0x928] ss:$16 sps:$4 sm:$0xff]  }
 0x2d8   : > { %v7216_v45 = vld [vmem:[%s8728_s5 + $0x70c] ss:$16 sps:$4 sm:$0xff]   ;;  %v7214_v58 = vld [vmem:[%s8728_s5 + $0x708] ss:$16 sps:$4 sm:$0xff]  }
 0x2d9   : > { %5485 = vmatpush1.bf16.msra.mxu0 %v7142_v36  ;;  %v7219_v12 = vld [vmem:[%s8728_s5 + $0x90c] ss:$16 sps:$4 sm:$0xff]   ;;  %v7217_v49 = vld [vmem:[%s8728_s5 + $0x908] ss:$16 sps:$4 sm:$0xff]  }
 0x2da   : > { %5526 = vmatpush1.bf16.msra.mxu1 %v7145_v13  ;;  %5486 = vmatprep.subr.bf16.mxu0 %v7150_v15  ;;  %v7222_v36 = vld [vmem:[%s8728_s5 + $0xaec] ss:$16 sps:$4 sm:$0xff]   ;;  %v7220_v15 = vld [vmem:[%s8728_s5 + $0xae8] ss:$16 sps:$4 sm:$0xff]  }
 0x2db   : > { %5527 = vmatprep.subr.bf16.mxu1 %v7153_v16  ;;  %v7225_v13 = vld [vmem:[%s8728_s5 + $0xcec] ss:$16 sps:$4 sm:$0xff]   ;;  %v7223_v16 = vld [vmem:[%s8728_s5 + $0xce8] ss:$16 sps:$4 sm:$0xff]  }
 0x2dd   : > { %5487 = vmatpush1.bf16.msra.mxu0 %v7148_v19  ;;  %v7228_v19 = vld [vmem:[%s8728_s5 + $0xacc] ss:$16 sps:$4 sm:$0xff]  }
 0x2de   : > { %5528 = vmatpush1.bf16.msra.mxu1 %v7151_v20  ;;  %5488 = vmatprep.subr.bf16.mxu0 %v7156_v21  ;;  %v7231_v20 = vld [vmem:[%s8728_s5 + $0xccc] ss:$16 sps:$4 sm:$0xff]  }
 0x2df   : > { %5529 = vmatprep.subr.bf16.mxu1 %v7159_v22 }
 0x2e1   : > { %5489 = vmatpush1.bf16.msra.mxu0 %v7154_v24 }
 0x2e2   : > { %5530 = vmatpush1.bf16.msra.mxu1 %v7157_v23  ;;  %5490 = vmatprep.subr.bf16.mxu0 %v7162_v25  ;;  %v7226_v23 = vld [vmem:[%s8728_s5 + $0xac8] ss:$16 sps:$4 sm:$0xff]  }
 0x2e3   : > { %5531 = vmatprep.subr.bf16.mxu1 %v7165_v26  ;;  %v7229_v25 = vld [vmem:[%s8728_s5 + $0xcc8] ss:$16 sps:$4 sm:$0xff]  }
 0x2e5   : > { %5491 = vmatpush1.bf16.msra.mxu0 %v7160_v27 }
 0x2e6   : > { %5532 = vmatpush1.bf16.msra.mxu1 %v7163_v31  ;;  %5492 = vmatprep.subr.bf16.mxu0 %v7168_v32  ;;  %v7234_v31 = vld [vmem:[%s8728_s5 + $0xaac] ss:$16 sps:$4 sm:$0xff]  }
 0x2e7   : > { %5533 = vmatprep.subr.bf16.mxu1 %v7171_v35  ;;  %v7237_v32 = vld [vmem:[%s8728_s5 + $0xcac] ss:$16 sps:$4 sm:$0xff]  }
 0x2e9   : > { %5493 = vmatpush1.bf16.msra.mxu0 %v7166_v17 }
 0x2ea   : > { %5534 = vmatpush1.bf16.msra.mxu1 %v7169_v41  ;;  %5494 = vmatprep.subr.bf16.mxu0 %v7174_v37  ;;  %v7232_v41 = vld [vmem:[%s8728_s5 + $0xaa8] ss:$16 sps:$4 sm:$0xff]  }
 0x2eb   : > { %5535 = vmatprep.subr.bf16.mxu1 %v7177_v59  ;;  %v7235_v37 = vld [vmem:[%s8728_s5 + $0xca8] ss:$16 sps:$4 sm:$0xff]  }
 0x2ed   : > { %5495 = vmatpush2.bf16.msra.mxu0 %v7172_v48 }
 0x2ee   : > { %5536 = vmatpush2.bf16.msra.mxu1 %v7175_v4  ;;  %5496 = vmatprep.subr.bf16.mxu0 %v7180_v54  ;;  %v7241_v4 = vld [vmem:[%s8728_s5 + $0xc88] ss:$16 sps:$4 sm:$0xff]   ;;  %v7246_v54 = vld [vmem:[%s8728_s5 + $0xa6c] ss:$16 sps:$4 sm:$0xff]  }
 0x2ef   : > { %5537 = vmatprep.subr.bf16.mxu1 %v7183_v39  ;;  %v7249_v39 = vld [vmem:[%s8728_s5 + $0xc6c] ss:$16 sps:$4 sm:$0xff]  }
 0x2f1   : > { %5497 = vmatpush2.bf16.msra.mxu0 %v7178_v60  ;;  %v7244_v60 = vld [vmem:[%s8728_s5 + $0xa68] ss:$16 sps:$4 sm:$0xff]  }
 0x2f2   : > { %5538 = vmatpush2.bf16.msra.mxu1 %v7181_v42  ;;  %5498 = vmatprep.subr.bf16.mxu0 %v7186_v43  ;;  %v7247_v42 = vld [vmem:[%s8728_s5 + $0xc68] ss:$16 sps:$4 sm:$0xff]   ;;  %v7252_v43 = vld [vmem:[%s8728_s5 + $0xa4c] ss:$16 sps:$4 sm:$0xff]  }
 0x2f3   : > { %5539 = vmatprep.subr.bf16.mxu1 %v7189_v46  ;;  %v7255_v46 = vld [vmem:[%s8728_s5 + $0xc4c] ss:$16 sps:$4 sm:$0xff]  }
 0x2f5   : > { %5499 = vmatpush2.bf16.msra.mxu0 %v7184_v47  ;;  %v7250_v47 = vld [vmem:[%s8728_s5 + $0xa48] ss:$16 sps:$4 sm:$0xff]  }
 0x2f6   : > { %5540 = vmatpush2.bf16.msra.mxu1 %v7187_v51  ;;  %5500 = vmatprep.subr.bf16.mxu0 %v7192_v52  ;;  %v7253_v51 = vld [vmem:[%s8728_s5 + $0xc48] ss:$16 sps:$4 sm:$0xff]   ;;  %v7258_v52 = vld [vmem:[%s8728_s5 + $0xa2c] ss:$16 sps:$4 sm:$0xff]  }
 0x2f7   : > { %5541 = vmatprep.subr.bf16.mxu1 %v7195_v55  ;;  %v7261_v55 = vld [vmem:[%s8728_s5 + $0xc2c] ss:$16 sps:$4 sm:$0xff]  }
 0x2f9   : > { %5501 = vmatpush2.bf16.msra.mxu0 %v7190_v56  ;;  %v7256_v56 = vld [vmem:[%s8728_s5 + $0xa28] ss:$16 sps:$4 sm:$0xff]  }
 0x2fa   : > { %5542 = vmatpush2.bf16.msra.mxu1 %v7193_v57  ;;  %5502 = vmatprep.subr.bf16.mxu0 %v7198_v61  ;;  %v7259_v57 = vld [vmem:[%s8728_s5 + $0xc28] ss:$16 sps:$4 sm:$0xff]   ;;  %v7264_v61 = vld [vmem:[%s8728_s5 + $0xa0c] ss:$16 sps:$4 sm:$0xff]  }
 0x2fb   : > { %5543 = vmatprep.subr.bf16.mxu1 %v7201_v62  ;;  %v7267_v62 = vld [vmem:[%s8728_s5 + $0xc0c] ss:$16 sps:$4 sm:$0xff]  }
 0x2fd   : > { %5503 = vmatpush2.bf16.msra.mxu0 %v7196_v0  ;;  %v7262_v0 = vld [vmem:[%s8728_s5 + $0xa08] ss:$16 sps:$4 sm:$0xff]  }
 0x2fe   : > { %5544 = vmatpush2.bf16.msra.mxu1 %v7199_v1  ;;  %5504 = vmatprep.subr.bf16.mxu0 %v7204_v63  ;;  %v7265_v1 = vld [vmem:[%s8728_s5 + $0xc08] ss:$16 sps:$4 sm:$0xff]   ;;  %v7270_v63 = vld [vmem:[%s8728_s5 + $0xbec] ss:$16 sps:$4 sm:$0xff]  }
 0x2ff   : > { %5545 = vmatprep.subr.bf16.mxu1 %v7207_v2  ;;  %v7273_v2 = vld [vmem:[%s8728_s5 + $0xdec] ss:$16 sps:$4 sm:$0xff]  }
 0x301   : > { %5505 = vmatpush2.bf16.msra.mxu0 %v7202_v3  ;;  %v7268_v3 = vld [vmem:[%s8728_s5 + $0xbe8] ss:$16 sps:$4 sm:$0xff]  }
 0x302   : > { %5546 = vmatpush2.bf16.msra.mxu1 %v7205_v18  ;;  %5506 = vmatprep.subr.bf16.mxu0 %v7210_v33  ;;  %v7271_v18 = vld [vmem:[%s8728_s5 + $0xde8] ss:$16 sps:$4 sm:$0xff]   ;;  %v7276_v33 = vld [vmem:[%s8728_s5 + $0xbcc] ss:$16 sps:$4 sm:$0xff]  }
 0x303   : > { %5547 = vmatprep.subr.bf16.mxu1 %v7213_v28  ;;  %v7279_v28 = vld [vmem:[%s8728_s5 + $0xdcc] ss:$16 sps:$4 sm:$0xff]  }
 0x305   : > { %5507 = vmatpush2.bf16.msra.mxu0 %v7208_v9  ;;  %v7274_v9 = vld [vmem:[%s8728_s5 + $0xbc8] ss:$16 sps:$4 sm:$0xff]  }
 0x306   : > { %5548 = vmatpush2.bf16.msra.mxu1 %v7211_v10  ;;  %5508 = vmatprep.subr.bf16.mxu0 %v7216_v45  ;;  %v7277_v10 = vld [vmem:[%s8728_s5 + $0xdc8] ss:$16 sps:$4 sm:$0xff]   ;;  %v7282_v45 = vld [vmem:[%s8728_s5 + $0xbac] ss:$16 sps:$4 sm:$0xff]  }
 0x307   : > { %5549 = vmatprep.subr.bf16.mxu1 %v7219_v12  ;;  %v7285_v12 = vld [vmem:[%s8728_s5 + $0xdac] ss:$16 sps:$4 sm:$0xff]  }
 0x309   : > { %5509 = vmatpush2.bf16.msra.mxu0 %v7214_v58  ;;  %v7280_v58 = vld [vmem:[%s8728_s5 + $0xba8] ss:$16 sps:$4 sm:$0xff]  }
 0x30a   : > { %5550 = vmatpush2.bf16.msra.mxu1 %v7217_v49  ;;  %5560 = vmatprep.subr.bf16.mxu0 %v7222_v36  ;;  %v7283_v49 = vld [vmem:[%s8728_s5 + $0xda8] ss:$16 sps:$4 sm:$0xff]   ;;  %v7288_v36 = vld [vmem:[%s8728_s5 + $0xb8c] ss:$16 sps:$4 sm:$0xff]  }
 0x30b   : > { %5601 = vmatprep.subr.bf16.mxu1 %v7225_v13  ;;  %v7291_v13 = vld [vmem:[%s8728_s5 + $0xd8c] ss:$16 sps:$4 sm:$0xff]  }
 0x30c   : > { %v5266_v21 = vpop.f32.mrf.mxu0  ;;  %5511 = vmatmul.mubr.bf16.vlgmr.msra.gmra.mxu0 %v8905_v34 }
 0x30d   : > { %v5307_v22 = vpop.f32.mrf.mxu1  ;;  %5552 = vmatmul.mubr.bf16.vlgmr.msra.gmra.mxu1 %v9003_v5  ;;  %v5267_v24 = vadd.f32 %v5266_v21, %v9257_v7  ;;  %5561 = vmatpush1.bf16.msra.mxu0 %v7220_v15  ;;  %v7286_v15 = vld [vmem:[%s8728_s5 + $0xb88] ss:$16 sps:$4 sm:$0xff]  }
 0x30e   : > { %5602 = vmatpush1.bf16.msra.mxu1 %v7223_v16  ;;  %v5268_v26 = vpop.f32.mrf.mxu0  ;;  %5562 = vmatprep.subr.bf16.mxu0 %v7228_v19  ;;  %v7289_v16 = vld [vmem:[%s8728_s5 + $0xd88] ss:$16 sps:$4 sm:$0xff]   ;;  %v7294_v19 = vld [vmem:[%s8728_s5 + $0xb6c] ss:$16 sps:$4 sm:$0xff]  }
 0x30f   : > { %v5309_v27 = vpop.f32.mrf.mxu1  ;;  %5603 = vmatprep.subr.bf16.mxu1 %v7231_v20  ;;  %v9331_v35 = vadd.f32 %v5307_v22, %v5267_v24  ;;  %v5269_v34 = vadd.f32 %v5268_v26, %v9262_v8  ;;  %5592 = vmatprep.mubr.bf16.mxu0 %v8932_v53  ;;  %v7240_v53 = vld [vmem:[%s8728_s5 + $0xa8c] ss:$16 sps:$4 sm:$0xff]   ;;  %v7238_v8 = vld [vmem:[%s8728_s5 + $0xa88] ss:$16 sps:$4 sm:$0xff]  }
 0x310   : > { %5633 = vmatprep.mubr.bf16.mxu1 %v9013_v11  ;;  %v5270_v5 = vpop.f32.mrf.mxu0  ;;  %v7243_v11 = vld [vmem:[%s8728_s5 + $0xc8c] ss:$16 sps:$4 sm:$0xff]   ;;  %v7292_v21 = vld [vmem:[%s8728_s5 + $0xb68] ss:$16 sps:$4 sm:$0xff]  }
 0x311   : > { %v5311_v7 = vpop.f32.mrf.mxu1  ;;  %v9336_v17 = vadd.f32 %v5309_v27, %v5269_v34  ;;  %5563 = vmatpush1.bf16.msra.mxu0 %v7226_v23  ;;  %v7297_v20 = vld [vmem:[%s8728_s5 + $0xd6c] ss:$16 sps:$4 sm:$0xff]   ;;  %v7295_v22 = vld [vmem:[%s8728_s5 + $0xd68] ss:$16 sps:$4 sm:$0xff]  }
 0x312   : > { %5604 = vmatpush1.bf16.msra.mxu1 %v7229_v25  ;;  %v5271_v59 = vpop.f32.mrf.mxu0  ;;  %5564 = vmatprep.subr.bf16.mxu0 %v7234_v31  ;;  %v7300_v24 = vld [vmem:[%s8728_s5 + $0xb4c] ss:$16 sps:$4 sm:$0xff]   ;;  %v7298_v25 = vld [vmem:[%s8728_s5 + $0xb48] ss:$16 sps:$4 sm:$0xff]  }
 0x313   : > { %v5312_v48 = vpop.f32.mrf.mxu1  ;;  %5605 = vmatprep.subr.bf16.mxu1 %v7237_v32  ;;  %v7303_v23 = vld [vmem:[%s8728_s5 + $0xd4c] ss:$16 sps:$4 sm:$0xff]   ;;  %v7301_v26 = vld [vmem:[%s8728_s5 + $0xd48] ss:$16 sps:$4 sm:$0xff]  }
 0x314   : > { %v7306_v27 = vld [vmem:[%s8728_s5 + $0xb2c] ss:$16 sps:$4 sm:$0xff]   ;;  %v7304_v32 = vld [vmem:[%s8728_s5 + $0xb28] ss:$16 sps:$4 sm:$0xff]  }
 0x315   : > { %5565 = vmatpush1.bf16.msra.mxu0 %v7232_v41  ;;  %v7309_v31 = vld [vmem:[%s8728_s5 + $0xd2c] ss:$16 sps:$4 sm:$0xff]   ;;  %v7307_v34 = vld [vmem:[%s8728_s5 + $0xd28] ss:$16 sps:$4 sm:$0xff]  }
 0x316   : > { %5606 = vmatpush1.bf16.msra.mxu1 %v7235_v37  ;;  %5566 = vmatprep.subr.bf16.mxu0 %v7240_v53  ;;  %v7312_v5 = vld [vmem:[%s8728_s5 + $0xb0c] ss:$16 sps:$4 sm:$0xff]   ;;  %v7310_v41 = vld [vmem:[%s8728_s5 + $0xb08] ss:$16 sps:$4 sm:$0xff]  }
 0x317   : > { %5607 = vmatprep.subr.bf16.mxu1 %v7243_v11  ;;  %v7315_v7 = vld [vmem:[%s8728_s5 + $0xd0c] ss:$16 sps:$4 sm:$0xff]   ;;  %v7313_v37 = vld [vmem:[%s8728_s5 + $0xd08] ss:$16 sps:$4 sm:$0xff]  }
 0x318   : > { %v7318_v59 = vld [vmem:[%s8728_s5 + $0xeec] ss:$16 sps:$4 sm:$0xff]   ;;  %v7316_v53 = vld [vmem:[%s8728_s5 + $0xee8] ss:$16 sps:$4 sm:$0xff]  }
 0x319   : > { %5567 = vmatpush1.bf16.msra.mxu0 %v7238_v8  ;;  %v7321_v48 = vld [vmem:[%s8728_s5 + $0x10ec] ss:$16 sps:$4 sm:$0xff]   ;;  %v7319_v11 = vld [vmem:[%s8728_s5 + $0x10e8] ss:$16 sps:$4 sm:$0xff]  }
 0x31a   : > { %5608 = vmatpush1.bf16.msra.mxu1 %v7241_v4  ;;  %5568 = vmatprep.subr.bf16.mxu0 %v7246_v54  ;;  %v7324_v8 = vld [vmem:[%s8728_s5 + $0xecc] ss:$16 sps:$4 sm:$0xff]  }
 0x31b   : > { %5609 = vmatprep.subr.bf16.mxu1 %v7249_v39  ;;  %v7327_v4 = vld [vmem:[%s8728_s5 + $0x10cc] ss:$16 sps:$4 sm:$0xff]  }
 0x31d   : > { %5569 = vmatpush1.bf16.msra.mxu0 %v7244_v60 }
 0x31e   : > { %5610 = vmatpush1.bf16.msra.mxu1 %v7247_v42  ;;  %5570 = vmatprep.subr.bf16.mxu0 %v7252_v43  ;;  %v7322_v42 = vld [vmem:[%s8728_s5 + $0xec8] ss:$16 sps:$4 sm:$0xff]  }
 0x31f   : > { %5611 = vmatprep.subr.bf16.mxu1 %v7255_v46  ;;  %v7325_v43 = vld [vmem:[%s8728_s5 + $0x10c8] ss:$16 sps:$4 sm:$0xff]  }
 0x321   : > { %5571 = vmatpush1.bf16.msra.mxu0 %v7250_v47 }
 0x322   : > { %5612 = vmatpush1.bf16.msra.mxu1 %v7253_v51  ;;  %5572 = vmatprep.subr.bf16.mxu0 %v7258_v52  ;;  %v7330_v51 = vld [vmem:[%s8728_s5 + $0xeac] ss:$16 sps:$4 sm:$0xff]  }
 0x323   : > { %5613 = vmatprep.subr.bf16.mxu1 %v7261_v55  ;;  %v7333_v52 = vld [vmem:[%s8728_s5 + $0x10ac] ss:$16 sps:$4 sm:$0xff]  }
 0x325   : > { %5573 = vmatpush1.bf16.msra.mxu0 %v7256_v56  ;;  %v7328_v56 = vld [vmem:[%s8728_s5 + $0xea8] ss:$16 sps:$4 sm:$0xff]  }
 0x326   : > { %5614 = vmatpush1.bf16.msra.mxu1 %v7259_v57  ;;  %5574 = vmatprep.subr.bf16.mxu0 %v7264_v61  ;;  %v7331_v57 = vld [vmem:[%s8728_s5 + $0x10a8] ss:$16 sps:$4 sm:$0xff]  }
 0x327   : > { %5615 = vmatprep.subr.bf16.mxu1 %v7267_v62  ;;  %v7334_v62 = vld [vmem:[%s8728_s5 + $0xe88] ss:$16 sps:$4 sm:$0xff]  }
 0x329   : > { %5575 = vmatpush1.bf16.msra.mxu0 %v7262_v0  ;;  %v7337_v0 = vld [vmem:[%s8728_s5 + $0x1088] ss:$16 sps:$4 sm:$0xff]  }
 0x32a   : > { %5616 = vmatpush1.bf16.msra.mxu1 %v7265_v1  ;;  %5576 = vmatprep.subr.bf16.mxu0 %v7270_v63  ;;  %v7342_v1 = vld [vmem:[%s8728_s5 + $0xe6c] ss:$16 sps:$4 sm:$0xff]  }
 0x32b   : > { %5617 = vmatprep.subr.bf16.mxu1 %v7273_v2  ;;  %v7345_v63 = vld [vmem:[%s8728_s5 + $0x106c] ss:$16 sps:$4 sm:$0xff]   ;;  %v7340_v2 = vld [vmem:[%s8728_s5 + $0xe68] ss:$16 sps:$4 sm:$0xff]  }
 0x32d   : > { %5577 = vmatpush2.bf16.msra.mxu0 %v7268_v3  ;;  %v7343_v3 = vld [vmem:[%s8728_s5 + $0x1068] ss:$16 sps:$4 sm:$0xff]  }
 0x32e   : > { %5618 = vmatpush2.bf16.msra.mxu1 %v7271_v18  ;;  %5578 = vmatprep.subr.bf16.mxu0 %v7276_v33  ;;  %v7348_v18 = vld [vmem:[%s8728_s5 + $0xe4c] ss:$16 sps:$4 sm:$0xff]  }
 0x32f   : > { %5619 = vmatprep.subr.bf16.mxu1 %v7279_v28  ;;  %v7351_v33 = vld [vmem:[%s8728_s5 + $0x104c] ss:$16 sps:$4 sm:$0xff]   ;;  %v7346_v28 = vld [vmem:[%s8728_s5 + $0xe48] ss:$16 sps:$4 sm:$0xff]  }
 0x331   : > { %5579 = vmatpush2.bf16.msra.mxu0 %v7274_v9  ;;  %v7349_v9 = vld [vmem:[%s8728_s5 + $0x1048] ss:$16 sps:$4 sm:$0xff]  }
 0x332   : > { %5620 = vmatpush2.bf16.msra.mxu1 %v7277_v10  ;;  %5580 = vmatprep.subr.bf16.mxu0 %v7282_v45  ;;  %v7354_v10 = vld [vmem:[%s8728_s5 + $0xe2c] ss:$16 sps:$4 sm:$0xff]  }
 0x333   : > { %5621 = vmatprep.subr.bf16.mxu1 %v7285_v12  ;;  %v7357_v45 = vld [vmem:[%s8728_s5 + $0x102c] ss:$16 sps:$4 sm:$0xff]   ;;  %v7352_v12 = vld [vmem:[%s8728_s5 + $0xe28] ss:$16 sps:$4 sm:$0xff]  }
 0x335   : > { %5581 = vmatpush2.bf16.msra.mxu0 %v7280_v58  ;;  %v7355_v58 = vld [vmem:[%s8728_s5 + $0x1028] ss:$16 sps:$4 sm:$0xff]  }
 0x336   : > { %5622 = vmatpush2.bf16.msra.mxu1 %v7283_v49  ;;  %5582 = vmatprep.subr.bf16.mxu0 %v7288_v36  ;;  %v7360_v49 = vld [vmem:[%s8728_s5 + $0xe0c] ss:$16 sps:$4 sm:$0xff]  }
 0x337   : > { %5623 = vmatprep.subr.bf16.mxu1 %v7291_v13  ;;  %v7363_v36 = vld [vmem:[%s8728_s5 + $0x100c] ss:$16 sps:$4 sm:$0xff]   ;;  %v7358_v13 = vld [vmem:[%s8728_s5 + $0xe08] ss:$16 sps:$4 sm:$0xff]  }
 0x339   : > { %5583 = vmatpush2.bf16.msra.mxu0 %v7286_v15  ;;  %v7361_v15 = vld [vmem:[%s8728_s5 + $0x1008] ss:$16 sps:$4 sm:$0xff]  }
 0x33a   : > { %5624 = vmatpush2.bf16.msra.mxu1 %v7289_v16  ;;  %5584 = vmatprep.subr.bf16.mxu0 %v7294_v19  ;;  %v7366_v16 = vld [vmem:[%s8728_s5 + $0xfec] ss:$16 sps:$4 sm:$0xff]  }
 0x33b   : > { %5625 = vmatprep.subr.bf16.mxu1 %v7297_v20  ;;  %v7369_v19 = vld [vmem:[%s8728_s5 + $0x11ec] ss:$16 sps:$4 sm:$0xff]   ;;  %v7364_v20 = vld [vmem:[%s8728_s5 + $0xfe8] ss:$16 sps:$4 sm:$0xff]  }
 0x33d   : > { %5585 = vmatpush2.bf16.msra.mxu0 %v7292_v21  ;;  %v7367_v21 = vld [vmem:[%s8728_s5 + $0x11e8] ss:$16 sps:$4 sm:$0xff]  }
 0x33e   : > { %5626 = vmatpush2.bf16.msra.mxu1 %v7295_v22  ;;  %5586 = vmatprep.subr.bf16.mxu0 %v7300_v24  ;;  %v7372_v22 = vld [vmem:[%s8728_s5 + $0xfcc] ss:$16 sps:$4 sm:$0xff]  }
 0x33f   : > { %5627 = vmatprep.subr.bf16.mxu1 %v7303_v23  ;;  %v7375_v24 = vld [vmem:[%s8728_s5 + $0x11cc] ss:$16 sps:$4 sm:$0xff]   ;;  %v7370_v23 = vld [vmem:[%s8728_s5 + $0xfc8] ss:$16 sps:$4 sm:$0xff]  }
 0x341   : > { %5587 = vmatpush2.bf16.msra.mxu0 %v7298_v25  ;;  %v7373_v25 = vld [vmem:[%s8728_s5 + $0x11c8] ss:$16 sps:$4 sm:$0xff]  }
 0x342   : > { %5628 = vmatpush2.bf16.msra.mxu1 %v7301_v26  ;;  %5588 = vmatprep.subr.bf16.mxu0 %v7306_v27  ;;  %v7378_v26 = vld [vmem:[%s8728_s5 + $0xfac] ss:$16 sps:$4 sm:$0xff]  }
 0x343   : > { %5629 = vmatprep.subr.bf16.mxu1 %v7309_v31  ;;  %v7381_v27 = vld [vmem:[%s8728_s5 + $0x11ac] ss:$16 sps:$4 sm:$0xff]   ;;  %v7376_v31 = vld [vmem:[%s8728_s5 + $0xfa8] ss:$16 sps:$4 sm:$0xff]  }
 0x345   : > { %5589 = vmatpush2.bf16.msra.mxu0 %v7304_v32  ;;  %v7379_v32 = vld [vmem:[%s8728_s5 + $0x11a8] ss:$16 sps:$4 sm:$0xff]  }
 0x346   : > { %5630 = vmatpush2.bf16.msra.mxu1 %v7307_v34  ;;  %5590 = vmatprep.subr.bf16.mxu0 %v7312_v5  ;;  %v7384_v34 = vld [vmem:[%s8728_s5 + $0xf8c] ss:$16 sps:$4 sm:$0xff]  }
 0x347   : > { %5631 = vmatprep.subr.bf16.mxu1 %v7315_v7  ;;  %v7387_v5 = vld [vmem:[%s8728_s5 + $0x118c] ss:$16 sps:$4 sm:$0xff]   ;;  %v7382_v7 = vld [vmem:[%s8728_s5 + $0xf88] ss:$16 sps:$4 sm:$0xff]  }
 0x349   : > { %5591 = vmatpush2.bf16.msra.mxu0 %v7310_v41  ;;  %v7385_v41 = vld [vmem:[%s8728_s5 + $0x1188] ss:$16 sps:$4 sm:$0xff]  }
 0x34a   : > { %5632 = vmatpush2.bf16.msra.mxu1 %v7313_v37  ;;  %5642 = vmatprep.subr.bf16.mxu0 %v7318_v59  ;;  %v7390_v37 = vld [vmem:[%s8728_s5 + $0xf6c] ss:$16 sps:$4 sm:$0xff]  }
 0x34b   : > { %5683 = vmatprep.subr.bf16.mxu1 %v7321_v48  ;;  %v7393_v59 = vld [vmem:[%s8728_s5 + $0x116c] ss:$16 sps:$4 sm:$0xff]   ;;  %v7388_v48 = vld [vmem:[%s8728_s5 + $0xf68] ss:$16 sps:$4 sm:$0xff]  }
 0x34c   : > { %v5348_v54 = vpop.f32.mrf.mxu0  ;;  %5593 = vmatmul.mubr.bf16.vlgmr.msra.gmra.mxu0 %v9007_v6 }
 0x34d   : > { %v9398_v39 = vpop.f32.mrf.mxu1  ;;  %5634 = vmatmul.mubr.bf16.vlgmr.msra.gmra.mxu1 %v9088_v29  ;;  %v9403_v60 = vadd.f32 %v5348_v54, %v9331_v35  ;;  %5643 = vmatpush1.bf16.msra.mxu0 %v7316_v53  ;;  %v7391_v53 = vld [vmem:[%s8728_s5 + $0x1168] ss:$16 sps:$4 sm:$0xff]  }
 0x34e   : > { %5684 = vmatpush1.bf16.msra.mxu1 %v7319_v11  ;;  %v5350_v46 = vpop.f32.mrf.mxu0  ;;  %5644 = vmatprep.subr.bf16.mxu0 %v7324_v8  ;;  %v7396_v11 = vld [vmem:[%s8728_s5 + $0xf4c] ss:$16 sps:$4 sm:$0xff]   ;;  %v7397_v54 = vld [vmem:[%s8728_s5 + $0x1148] ss:$16 sps:$4 sm:$0xff]  }
 0x34f   : > { %v9407_v47 = vpop.f32.mrf.mxu1  ;;  %5685 = vmatprep.subr.bf16.mxu1 %v7327_v4  ;;  %v9412_v6 = vadd.f32 %v5350_v46, %v9336_v17  ;;  %5674 = vmatprep.mubr.bf16.mxu0 %v9015_v40  ;;  %v7336_v40 = vld [vmem:[%s8728_s5 + $0xe8c] ss:$16 sps:$4 sm:$0xff]   ;;  %v7394_v4 = vld [vmem:[%s8728_s5 + $0xf48] ss:$16 sps:$4 sm:$0xff]  }
 0x350   : > { %5715 = vmatprep.mubr.bf16.mxu1 %v9099_v38  ;;  %v5352_v29 = vpop.f32.mrf.mxu0  ;;  %v7339_v38 = vld [vmem:[%s8728_s5 + $0x108c] ss:$16 sps:$4 sm:$0xff]   ;;  %v7400_v46 = vld [vmem:[%s8728_s5 + $0xf28] ss:$16 sps:$4 sm:$0xff]  }
 0x351   : > { %v5393_v35 = vpop.f32.mrf.mxu1  ;;  %v5728_v55 = vcombine.low %v9403_v60, %v9412_v6  ;;  %5645 = vmatpush1.bf16.msra.mxu0 %v7322_v42  ;;  %v7399_v8 = vld [vmem:[%s8728_s5 + $0x114c] ss:$16 sps:$4 sm:$0xff]  }
 0x352   : > { %5686 = vmatpush1.bf16.msra.mxu1 %v7325_v43  ;;  %v5353_v61 = vpop.f32.mrf.mxu0  ;;  %5646 = vmatprep.subr.bf16.mxu0 %v7330_v51  ;;  %v7402_v42 = vld [vmem:[%s8728_s5 + $0xf2c] ss:$16 sps:$4 sm:$0xff]   ;;  %v7403_v51 = vld [vmem:[%s8728_s5 + $0x1128] ss:$16 sps:$4 sm:$0xff]  }
 0x353   : > { %v5394_v17 = vpop.f32.mrf.mxu1  ;;  %5687 = vmatprep.subr.bf16.mxu1 %v7333_v52  ;;  %v7405_v43 = vld [vmem:[%s8728_s5 + $0x112c] ss:$16 sps:$4 sm:$0xff]   ;;  %v7406_v35 = vld [vmem:[%s8728_s5 + $0xf08] ss:$16 sps:$4 sm:$0xff]  }
 0x354   : > { %v7408_v52 = vld [vmem:[%s8728_s5 + $0xf0c] ss:$16 sps:$4 sm:$0xff]  }
 0x355   : > { %5647 = vmatpush1.bf16.msra.mxu0 %v7328_v56  ;;  %v7411_v29 = vld [vmem:[%s8728_s5 + $0x110c] ss:$16 sps:$4 sm:$0xff]   ;;  %v7409_v56 = vld [vmem:[%s8728_s5 + $0x1108] ss:$16 sps:$4 sm:$0xff]  }
 0x356   : > { %5688 = vmatpush1.bf16.msra.mxu1 %v7331_v57  ;;  %5648 = vmatprep.subr.bf16.mxu0 %v7336_v40 }
 0x357   : > { %5689 = vmatprep.subr.bf16.mxu1 %v7339_v38 }
 0x359   : > { %5649 = vmatpush1.bf16.msra.mxu0 %v7334_v62 }
 0x35a   : > { %5690 = vmatpush1.bf16.msra.mxu1 %v7337_v0  ;;  %5650 = vmatprep.subr.bf16.mxu0 %v7342_v1 }
 0x35b   : > { %5691 = vmatprep.subr.bf16.mxu1 %v7345_v63 }
 0x35d   : > { %5651 = vmatpush1.bf16.msra.mxu0 %v7340_v2 }
 0x35e   : > { %5692 = vmatpush1.bf16.msra.mxu1 %v7343_v3  ;;  %5652 = vmatprep.subr.bf16.mxu0 %v7348_v18 }
 0x35f   : > { %5693 = vmatprep.subr.bf16.mxu1 %v7351_v33 }
 0x361   : > { %5653 = vmatpush1.bf16.msra.mxu0 %v7346_v28 }
 0x362   : > { %5694 = vmatpush1.bf16.msra.mxu1 %v7349_v9  ;;  %5654 = vmatprep.subr.bf16.mxu0 %v7354_v10 }
 0x363   : > { %5695 = vmatprep.subr.bf16.mxu1 %v7357_v45 }
 0x365   : > { %5655 = vmatpush1.bf16.msra.mxu0 %v7352_v12 }
 0x366   : > { %5696 = vmatpush1.bf16.msra.mxu1 %v7355_v58  ;;  %5656 = vmatprep.subr.bf16.mxu0 %v7360_v49 }
 0x367   : > { %5697 = vmatprep.subr.bf16.mxu1 %v7363_v36 }
 0x369   : > { %5657 = vmatpush1.bf16.msra.mxu0 %v7358_v13 }
 0x36a   : > { %5698 = vmatpush1.bf16.msra.mxu1 %v7361_v15  ;;  %5658 = vmatprep.subr.bf16.mxu0 %v7366_v16 }
 0x36b   : > { %5699 = vmatprep.subr.bf16.mxu1 %v7369_v19 }
 0x36d   : > { %5659 = vmatpush2.bf16.msra.mxu0 %v7364_v20 }
 0x36e   : > { %5700 = vmatpush2.bf16.msra.mxu1 %v7367_v21  ;;  %5660 = vmatprep.subr.bf16.mxu0 %v7372_v22 }
 0x36f   : > { %5701 = vmatprep.subr.bf16.mxu1 %v7375_v24 }
 0x371   : > { %5661 = vmatpush2.bf16.msra.mxu0 %v7370_v23 }
 0x372   : > { %5702 = vmatpush2.bf16.msra.mxu1 %v7373_v25  ;;  %5662 = vmatprep.subr.bf16.mxu0 %v7378_v26 }
 0x373   : > { %5703 = vmatprep.subr.bf16.mxu1 %v7381_v27 }
 0x375   : > { %5663 = vmatpush2.bf16.msra.mxu0 %v7376_v31 }
 0x376   : > { %5704 = vmatpush2.bf16.msra.mxu1 %v7379_v32  ;;  %5664 = vmatprep.subr.bf16.mxu0 %v7384_v34 }
 0x377   : > { %5705 = vmatprep.subr.bf16.mxu1 %v7387_v5 }
 0x379   : > { %5665 = vmatpush2.bf16.msra.mxu0 %v7382_v7 }
 0x37a   : > { %5706 = vmatpush2.bf16.msra.mxu1 %v7385_v41  ;;  %5666 = vmatprep.subr.bf16.mxu0 %v7390_v37 }
 0x37b   : > { %5707 = vmatprep.subr.bf16.mxu1 %v7393_v59 }
 0x37d   : > { %5667 = vmatpush2.bf16.msra.mxu0 %v7388_v48 }
 0x37e   : > { %5708 = vmatpush2.bf16.msra.mxu1 %v7391_v53  ;;  %5668 = vmatprep.subr.bf16.mxu0 %v7396_v11 }
 0x37f   : > { %5709 = vmatprep.subr.bf16.mxu1 %v7399_v8 }
 0x381   : > { %5669 = vmatpush2.bf16.msra.mxu0 %v7394_v4  ;;  %v5736_v4 = vrot.slane %v5728_v55, %v8779_v50 }
 0x382   : > { %5710 = vmatpush2.bf16.msra.mxu1 %v7397_v54  ;;  %5670 = vmatprep.subr.bf16.mxu0 %v7402_v42  ;;  %v1407_v42 = vld [vmem:[%s8726_s4] sm:$0xff] }
 0x383   : > { %5711 = vmatprep.subr.bf16.mxu1 %v7405_v43 }
 0x385   : > { %5671 = vmatpush2.bf16.msra.mxu0 %v7400_v46 }
 0x386   : > { %5712 = vmatpush2.bf16.msra.mxu1 %v7403_v51  ;;  %5672 = vmatprep.subr.bf16.mxu0 %v7408_v52 }
 0x387   : > { %5713 = vmatprep.subr.bf16.mxu1 %v7411_v29 }
 0x389   : > { %5673 = vmatpush2.bf16.msra.mxu0 %v7406_v35 }
 0x38a   : > { %5714 = vmatpush2.bf16.msra.mxu1 %v7409_v56 }
 0x38c   : > { %v5430_v57 = vpop.f32.mrf.mxu0  ;;  %5675 = vmatmul.mubr.bf16.vlgmr.msra.gmra.mxu0 %v9092_v30 }
 0x38d   : > { %v5471_v61 = vpop.f32.mrf.mxu1  ;;  %5716 = vmatmul.mubr.bf16.vlgmr.msra.gmra.mxu1 %v9172_v14  ;;  %v5431_v17 = vadd.f32 %v5430_v57, %v9398_v39 }
 0x38e   : > { %v5432_v40 = vpop.f32.mrf.mxu0 }
 0x38f   : > { %v5473_v38 = vpop.f32.mrf.mxu1  ;;  %v5472_v62 = vadd.f32 %v5471_v61, %v5431_v17  ;;  %v5433_v0 = vadd.f32 %v5432_v40, %v9407_v47 }
 0x390   : > { %v5434_v1 = vpop.f32.mrf.mxu0 }
 0x391   : > { %v5475_v63 = vpop.f32.mrf.mxu1  ;;  %v5474_v2 = vadd.f32 %v5473_v38, %v5433_v0 }
 0x392   : > { %v5435_v3 = vpop.f32.mrf.mxu0 }
 0x393   : > { %v5476_v18 = vpop.f32.mrf.mxu1 }
 0x3cc   : > { %v5512_v33 = vpop.f32.mrf.mxu0 }
 0x3cd   : > { %v5553_v28 = vpop.f32.mrf.mxu1  ;;  %v5513_v9 = vadd.f32 %v5512_v33, %v5472_v62 }
 0x3ce   : > { %v5514_v10 = vpop.f32.mrf.mxu0 }
 0x3cf   : > { %v5555_v45 = vpop.f32.mrf.mxu1  ;;  %v5554_v30 = vadd.f32 %v5553_v28, %v5513_v9  ;;  %v5515_v12 = vadd.f32 %v5514_v10, %v5474_v2 }
 0x3d0   : > { %v5516_v14 = vpop.f32.mrf.mxu0 }
 0x3d1   : > { %v5557_v58 = vpop.f32.mrf.mxu1  ;;  %v5556_v39 = vadd.f32 %v5555_v45, %v5515_v12 }
 0x3d2   : > { %v5517_v49 = vpop.f32.mrf.mxu0 }
 0x3d3   : > { %v5558_v36 = vpop.f32.mrf.mxu1 }
 0x40c   : > { %v5594_v13 = vpop.f32.mrf.mxu0 }
 0x40d   : > { %v5635_v15 = vpop.f32.mrf.mxu1  ;;  %v5595_v47 = vadd.f32 %v5594_v13, %v5554_v30 }
 0x40e   : > { %v5596_v16 = vpop.f32.mrf.mxu0 }
 0x40f   : > { %v5637_v19 = vpop.f32.mrf.mxu1  ;;  %v5636_v20 = vadd.f32 %v5635_v15, %v5595_v47  ;;  %v5597_v25 = vadd.f32 %v5596_v16, %v5556_v39 }
 0x410   : > { %v5598_v21 = vpop.f32.mrf.mxu0 }
 0x411   : > { %v5639_v22 = vpop.f32.mrf.mxu1  ;;  %v5638_v31 = vadd.f32 %v5637_v19, %v5597_v25 }
 0x412   : > { %v5599_v24 = vpop.f32.mrf.mxu0 }
 0x413   : > { %v5640_v23 = vpop.f32.mrf.mxu1 }
 0x44c   : > { %v5676_v26 = vpop.f32.mrf.mxu0 }
 0x44d   : > { %v5717_v27 = vpop.f32.mrf.mxu1  ;;  %v5677_v32 = vadd.f32 %v5676_v26, %v5636_v20 }
 0x44e   : > { %v5678_v34 = vpop.f32.mrf.mxu0 }
 0x44f   : > { %v5719_v5 = vpop.f32.mrf.mxu1  ;;  %v5679_v7 = vadd.f32 %v5678_v34, %v5638_v31  ;;  %v5718_v59 = vadd.f32 %v5717_v27, %v5677_v32 }
 0x450   : > { %v5680_v41 = vpop.f32.mrf.mxu0 }
 0x451   : > { %v5721_v37 = vpop.f32.mrf.mxu1  ;;  %v5720_v48 = vadd.f32 %v5719_v5, %v5679_v7 }
 0x452   : > { %v5681_v53 = vpop.f32.mrf.mxu0 }
 0x453   : > { %v5722_v11 = vpop.f32.mrf.mxu1  ;;  %v5729_v8 = vcombine.low %v5718_v59, %v5720_v48 }
 0x455   : > { %v5743_v54 = vrot.slane %v5729_v8, %v8779_v50 }
 0x457   : > { %v5744_v43 = vcombine.low %v5736_v4, %v5743_v54  ;;  %5751 = sbr.rel (%p6480_p13) target bundleno = 1131 (0x46b), region = 63 }
 0x459   : > { %v5746_v46 = vadd.f32 %v5744_v43, %v1407_v42 }
 0x45b   : > { %5747 = vst [vmem:[%s8726_s4] sm:$0xff] %v5746_v46 }
 0x45c   : > { %v5753_v51 = vld [vmem:[%s1394_s12] sm:$0xf]  ;;  %v5757_v52 = vsub.s32 0, %v8771_v44  ;;  %v5761_v60 = vsub.s32 1, %v8771_v44  ;;  %v5765_v6 = vsub.s32 2, %v8771_v44  ;;  %v5769_v55 = vsub.s32 3, %v8771_v44 }
 0x45e   : > { %v5758_v29 = vrot.slane %v5753_v51, %v5757_v52  ;;  %v5762_v35 = vrot.slane %v5753_v51, %v5761_v60  ;;  %v5766_v56 = vrot.slane %v5753_v51, %v5765_v6  ;;  %v5770_v57 = vrot.slane %v5753_v51, %v5769_v55 }
 0x460   : > { %v5771_v61 = vcombine.low %v5758_v29, %v5762_v35  ;;  %v5772_v17 = vcombine.low %v5766_v56, %v5770_v57 }
 0x462   : > { %v5779_v40 = vrot.slane %v5771_v61, %v8779_v50  ;;  %v5786_v38 = vrot.slane %v5772_v17, %v8779_v50  ;;  %v5752_v62 = vld [vmem:[%s8726_s4] sm:$0xff] }
 0x464   : > { %v5787_v0 = vcombine.low %v5779_v40, %v5786_v38 }
 0x466   : > { %v5789_v1 = vadd.f32 %v5787_v0, %v5752_v62 }
 0x468   : > { %v5790_v63 = vmax.f32 %v5789_v1, 0.0 }
 0x46a   : > { %5791 = vst [vmem:[%s8726_s4] sm:$0xff] %v5790_v63 }
 0x46b PF: > { %s13_s18 = sadd.s32 1, %s7466_s18   ;;  %s9522_s12 = smov %s7446_s13 }
 0x46c   : > { %p10_p0 = scmp.ge.s32.totalorder %s13_s18, 6   ;;  %s9523_s13 = smov %s7541_s25 }
 0x46d   : > { %s9524_s14 = smov %s7458_s16  ;;  %s9525_s15 = smov %s7462_s17 }
 0x46e   : > { %s9526_s16 = smov %s9529_s19  ;;  %s9527_s17 = smov %s9533_s20 }
 0x46f   :  { %12 = sbr.rel (!%p10_p0) target bundleno = 4 (0x4), region = 104 }

</bundles_post_ra>
